<compile_context>
chip_gen: v7x
topology: tpu7x:2x2x1
jax: 0.10.0
libtpu: 0.0.40
codegen_flags: <defaults>
</compile_context>

<pallas_src>
import functools

import jax
import jax.numpy as jnp
from jax.experimental import pallas as pl
from jax.experimental.pallas import tpu as pltpu


# ----------------------------------------------------------------------------- utils
_TM_CAP_MATMUL = 512
_TK_CAP = 2048  # covers every K in DenseNet-121 (<= 9*128 / 1024) in a single K tile


def _round_up(x, m):
    return ((x + m - 1) // m) * m


@functools.lru_cache(maxsize=None)
def _vmem_limit_bytes():
    # v5e/v6e have 128 MiB VMEM -> raise the scoped limit; v7x has 64 MiB -> keep 32.
    try:
        cap = int(pltpu.get_tpu_info().vmem_capacity_bytes)
    except Exception:
        cap = 64 << 20
    return (96 << 20) if cap >= (128 << 20) else (32 << 20)


def _row_cap(bytes_per_row, hard_cap, budget_bytes):
    """Row-tile cap so one double-buffered block stays within a per-buffer budget."""
    cap = budget_bytes // max(1, bytes_per_row)
    cap = max(8, (cap // 8) * 8)
    return min(hard_cap, cap)


def _divisor_rows(m, cap):
    """Largest row tile that is a multiple of 8, <= cap and divides round_up(m, 8),
    so row padding is < 8 rows (no full-activation jnp.pad / slice)."""
    q = _round_up(m, 8) // 8
    best, d = 1, 1
    while d * d <= q:
        if q % d == 0:
            for c in (d, q // d):
                if 8 * c <= cap and c > best:
                    best = c
        d += 1
    return 8 * best


def _slab_width(c):
    """Channel width of a dense-block slab: wide enough that every K tile the fused
    matmul may visit (for any valid-channel prefix <= c) stays in bounds."""
    tk = min(_TK_CAP, _round_up(c, 128))
    return _round_up(c, tk)


# ------------------------------------------------------------------- Pallas kernels
def _matmul_kernel_1k(x_ref, w_ref, ps_ref, pb_ref, es_ref, eb_ref, o_ref, *,
                      prologue, prologue_relu, epilogue, epilogue_relu):
    """Single-K-tile matmul: no accumulator scratch, direct epilogue + store."""
    x = x_ref[...]
    if prologue:
        x = x.astype(jnp.float32) * ps_ref[...] + pb_ref[...]
        if prologue_relu:
            x = jnp.maximum(x, 0.0)
    y = jnp.dot(x.astype(jnp.bfloat16), w_ref[...], preferred_element_type=jnp.float32)
    if epilogue:
        y = y * es_ref[...] + eb_ref[...]
        if epilogue_relu:
            y = jnp.maximum(y, 0.0)
    o_ref[...] = y.astype(o_ref.dtype)


def _matmul_kernel_multik(x_ref, w_ref, ps_ref, pb_ref, es_ref, eb_ref, o_ref, acc_ref,
                          *, prologue, prologue_relu, epilogue, epilogue_relu):
    """(TM,TK)x(TK,TN) matmul accumulated over the K grid axis in f32 (fallback path)."""
    k = pl.program_id(2)

    @pl.when(k == 0)
    def _init():
        acc_ref[...] = jnp.zeros_like(acc_ref)

    x = x_ref[...]
    if prologue:
        x = x.astype(jnp.float32) * ps_ref[...] + pb_ref[...]
        if prologue_relu:
            x = jnp.maximum(x, 0.0)
    acc_ref[...] += jnp.dot(x.astype(jnp.bfloat16), w_ref[...],
                            preferred_element_type=jnp.float32)

    @pl.when(k == pl.num_programs(2) - 1)
    def _finalize():
        y = acc_ref[...]
        if epilogue:
            y = y * es_ref[...] + eb_ref[...]
            if epilogue_relu:
                y = jnp.maximum(y, 0.0)
        o_ref[...] = y.astype(o_ref.dtype)


def _bn_act_kernel(x_ref, s_ref, b_ref, o_ref, *, relu):
    y = x_ref[...].astype(jnp.float32) * s_ref[...] + b_ref[...]
    if relu:
        y = jnp.maximum(y, 0.0)
    o_ref[...] = y.astype(o_ref.dtype)


def _pool_kernel(x_ref, s_ref, b_ref, o_ref, *, op, prologue, relu):
    """Reduce over the leading window axis of a (W, TM, C) block; optional per-channel
    BN(+ReLU) prologue applied to every window element before reducing."""
    w = x_ref.shape[0]

    def tap(i):
        v = x_ref[i].astype(jnp.float32)
        if prologue:
            v = v * s_ref[...] + b_ref[...]
            if relu:
                v = jnp.maximum(v, 0.0)
        return v

    acc = tap(0)
    for i in range(1, w):
        t = tap(i)
        acc = jnp.maximum(acc, t) if op == "max" else acc + t
    if op == "avg":
        acc = acc * (1.0 / float(w))
    o_ref[...] = acc.astype(o_ref.dtype)


# --------------------------------------------------------------- Pallas call wrappers
def fused_matmul(x2d, w2, *, k_valid=None, out_dtype=jnp.float32,
                 pro_scale=None, pro_bias=None, pro_relu=False,
                 epi_scale=None, epi_bias=None, epi_relu=False):
    """x2d:(M, >=Kp); w2:(K, Cout).  Only the first `k_valid` (default K) columns of x2d
    participate; any extra columns (slab padding / not-yet-written channels) are zero
    and contribute nothing (weights and scale/bias are also zero-padded)."""
    M, k_arr = x2d.shape
    K = int(k_valid) if k_valid is not None else w2.shape[0]
    Cout = w2.shape[1]

    TK = min(_TK_CAP, _round_up(K, 128))
    Kp = _round_up(K, TK)
    Np = _round_up(Cout, 128)
    TN = min(256, Np)
    TM = _row_cap(TK * x2d.dtype.itemsize, _TM_CAP_MATMUL, 2 << 20)
    TM = _divisor_rows(M, TM)
    Mp = _round_up(M, TM)  # at most 7 rows of padding by construction

    if Mp != M or k_arr < Kp:
        x2d = jnp.pad(x2d, ((0, Mp - M), (0, max(0, Kp - k_arr))))
    wp = jnp.pad(w2, ((0, Kp - w2.shape[0]), (0, Np - Cout))).astype(jnp.bfloat16)

    def _vec(v, n, np_):
        v = jnp.zeros((n,), jnp.float32) if v is None else v.astype(jnp.float32)
        return jnp.pad(v, (0, np_ - n)).reshape(1, np_)

    ps, pb = _vec(pro_scale, K, Kp), _vec(pro_bias, K, Kp)
    es, eb = _vec(epi_scale, Cout, Np), _vec(epi_bias, Cout, Np)

    prologue, epilogue = pro_scale is not None, epi_scale is not None

    if Kp == TK:
        # Single-K fast path: no scratch accumulator, no K grid axis.
        kernel = functools.partial(
            _matmul_kernel_1k, prologue=prologue, prologue_relu=pro_relu,
            epilogue=epilogue, epilogue_relu=epi_relu)
        out = pl.pallas_call(
            kernel,
            out_shape=jax.ShapeDtypeStruct((Mp, Np), out_dtype),
            grid=(Mp // TM, Np // TN),
            in_specs=[
                pl.BlockSpec((TM, TK), lambda i, j: (i, 0)),
                pl.BlockSpec((TK, TN), lambda i, j: (0, j)),
                pl.BlockSpec((1, TK), lambda i, j: (0, 0)),
                pl.BlockSpec((1, TK), lambda i, j: (0, 0)),
                pl.BlockSpec((1, TN), lambda i, j: (0, j)),
                pl.BlockSpec((1, TN), lambda i, j: (0, j)),
            ],
            out_specs=pl.BlockSpec((TM, TN), lambda i, j: (i, j)),
            compiler_params=pltpu.CompilerParams(
                dimension_semantics=("parallel", "parallel"),
                vmem_limit_bytes=_vmem_limit_bytes()),
        )(x2d, wp, ps, pb, es, eb)
    else:
        kernel = functools.partial(
            _matmul_kernel_multik, prologue=prologue, prologue_relu=pro_relu,
            epilogue=epilogue, epilogue_relu=epi_relu)
        out = pl.pallas_call(
            kernel,
            out_shape=jax.ShapeDtypeStruct((Mp, Np), out_dtype),
            grid=(Mp // TM, Np // TN, Kp // TK),
            in_specs=[
                pl.BlockSpec((TM, TK), lambda i, j, k: (i, k)),
                pl.BlockSpec((TK, TN), lambda i, j, k: (k, j)),
                pl.BlockSpec((1, TK), lambda i, j, k: (0, k)),
                pl.BlockSpec((1, TK), lambda i, j, k: (0, k)),
                pl.BlockSpec((1, TN), lambda i, j, k: (0, j)),
                pl.BlockSpec((1, TN), lambda i, j, k: (0, j)),
            ],
            out_specs=pl.BlockSpec((TM, TN), lambda i, j, k: (i, j)),
            scratch_shapes=[pltpu.VMEM((TM, TN), jnp.float32)],
            compiler_params=pltpu.CompilerParams(
                dimension_semantics=("parallel", "parallel", "arbitrary"),
                vmem_limit_bytes=_vmem_limit_bytes()),
        )(x2d, wp, ps, pb, es, eb)

    if Mp != M or Np != Cout:
        out = out[:M, :Cout]
    return out


def pallas_bn_act(x2d, scale, bias, *, relu, out_dtype=jnp.float32):
    """Standalone eval-mode BN (+optional ReLU); only used for the final norm5, and
    always called on a 128-multiple channel width so stores are lane dense."""
    M, C = x2d.shape
    TM = _row_cap(C * 4, 1024, 3 << 20)
    TM = _divisor_rows(M, TM)
    Mp = _round_up(M, TM)
    if Mp != M:
        x2d = jnp.pad(x2d, ((0, Mp - M), (0, 0)))
    out = pl.pallas_call(
        functools.partial(_bn_act_kernel, relu=relu),
        out_shape=jax.ShapeDtypeStruct((Mp, C), out_dtype),
        grid=(Mp // TM,),
        in_specs=[
            pl.BlockSpec((TM, C), lambda i: (i, 0)),
            pl.BlockSpec((1, C), lambda i: (0, 0)),
            pl.BlockSpec((1, C), lambda i: (0, 0)),
        ],
        out_specs=pl.BlockSpec((TM, C), lambda i: (i, 0)),
        compiler_params=pltpu.CompilerParams(
            dimension_semantics=("parallel",),
            vmem_limit_bytes=_vmem_limit_bytes()),
    )(x2d, scale.astype(jnp.float32).reshape(1, C),
      bias.astype(jnp.float32).reshape(1, C))
    return out[:M]


def pallas_pool_reduce(stacked, op, *, scale=None, bias=None, relu=False,
                       out_dtype=None):
    """stacked:(W, M, C) -> (M, C), max or mean over the window axis, with an optional
    per-channel BN(+ReLU) prologue applied before reducing.  When C underfills the
    128-lane axis, rows are repacked so every store is lane dense."""
    Wn, M, C = stacked.shape
    out_dtype = stacked.dtype if out_dtype is None else out_dtype
    prologue = scale is not None
    pad_val = float("-inf") if op == "max" else 0.0

    rep = 128 // C if (C < 128 and 128 % C == 0) else 1
    x, Mi, Ci, s, b = stacked, M, C, scale, bias
    if rep > 1:
        Mr = _round_up(M, rep)
        if Mr != M:
            x = jnp.pad(x, ((0, 0), (0, Mr - M), (0, 0)), constant_values=pad_val)
        x = x.reshape(Wn, Mr // rep, C * rep)
        Mi, Ci = Mr // rep, C * rep
        if prologue:
            s, b = jnp.tile(scale, rep), jnp.tile(bias, rep)

    TM = _row_cap(Wn * Ci * x.dtype.itemsize, 1024, 3 << 20)
    TM = _divisor_rows(Mi, TM)
    Mp = _round_up(Mi, TM)
    if Mp != Mi:
        x = jnp.pad(x, ((0, 0), (0, Mp - Mi), (0, 0)), constant_values=pad_val)

    if prologue:
        s2 = s.astype(jnp.float32).reshape(1, Ci)
        b2 = b.astype(jnp.float32).reshape(1, Ci)
    else:
        s2 = jnp.zeros((1, Ci), jnp.float32)
        b2 = jnp.zeros((1, Ci), jnp.float32)

    out = pl.pallas_call(
        functools.partial(_pool_kernel, op=op, prologue=prologue, relu=relu),
        out_shape=jax.ShapeDtypeStruct((Mp, Ci), out_dtype),
        grid=(Mp // TM,),
        in_specs=[
            pl.BlockSpec((Wn, TM, Ci), lambda i: (0, i, 0)),
            pl.BlockSpec((1, Ci), lambda i: (0, 0)),
            pl.BlockSpec((1, Ci), lambda i: (0, 0)),
        ],
        out_specs=pl.BlockSpec((TM, Ci), lambda i: (i, 0)),
        compiler_params=pltpu.CompilerParams(
            dimension_semantics=("parallel",),
            vmem_limit_bytes=_vmem_limit_bytes()),
    )(x, s2, b2)

    if rep > 1:
        out = out.reshape(Mp * rep, C)
    return out[:M]


# ---------------------------------------------------------------------- layer helpers
def _fold_bn(bn, eps=1e-5):
    gamma, beta, mean, var = bn
    scale = gamma * jax.lax.rsqrt(var + eps)
    return scale, beta - mean * scale


def _im2col(x, kh, kw, stride, pad):
    """x:(N,H,W,C) -> bf16 patches:(N*Ho*Wo, kh*kw*C) with (kh,kw,c) ordering.
    TODO(synk): replace with in-kernel tap accumulation (shifted index_maps / manual
    DMA) to avoid materialising kh*kw shifted copies of the activation in HBM."""
    N, H, W, C = x.shape
    Ho = (H + 2 * pad - kh) // stride + 1
    Wo = (W + 2 * pad - kw) // stride + 1
    xp = jnp.pad(x, ((0, 0), (pad, pad), (pad, pad), (0, 0)))
    cols = []
    for i in range(kh):
        for j in range(kw):
            cols.append(
                xp[:, i: i + stride * (Ho - 1) + 1: stride,
                      j: j + stride * (Wo - 1) + 1: stride, :])
    patches = jnp.stack(cols, axis=3).astype(jnp.bfloat16)
    return patches.reshape(N * Ho * Wo, kh * kw * C), Ho, Wo


def conv2d_fused(x, w, stride, pad, **fuse):
    """Spatial conv (bias=False) via bf16 im2col + fused matmul; w:(Cout,Cin,KH,KW)."""
    Cout, Cin, KH, KW = w.shape
    patches, Ho, Wo = _im2col(x, KH, KW, stride, pad)
    w2 = jnp.transpose(w, (2, 3, 1, 0)).reshape(KH * KW * Cin, Cout)
    out = fused_matmul(patches, w2, **fuse)
    return out.reshape(x.shape[0], Ho, Wo, Cout)


def conv1x1(x, w, *, k_valid=None, **fuse):
    """1x1 conv; x:(N,H,W,Cx) with only the first `k_valid` (default Cx) channels valid.
    A preceding BN+ReLU may be fused as the matmul prologue (no padding hazard for 1x1)."""
    N, H, W, Cx = x.shape
    Cout, Cin = w.shape[0], w.shape[1]
    w2 = w.reshape(Cout, Cin).T
    out = fused_matmul(x.reshape(N * H * W, Cx), w2, k_valid=k_valid, **fuse)
    return out.reshape(N, H, W, Cout)


def maxpool3x3_s2_p1(x):
    # TODO(synk): read windows in-kernel (shifted index_maps) instead of stacking 9
    # shifted views; runs once on the small stem feature map so the stack is kept.
    N, H, W, C = x.shape
    Ho, Wo = (H + 2 - 3) // 2 + 1, (W + 2 - 3) // 2 + 1
    xp = jnp.pad(x, ((0, 0), (1, 1), (1, 1), (0, 0)), constant_values=float("-inf"))
    wins = [xp[:, i: i + 2 * (Ho - 1) + 1: 2, j: j + 2 * (Wo - 1) + 1: 2, :]
            for i in range(3) for j in range(3)]
    stacked = jnp.stack(wins, axis=0).reshape(9, N * Ho * Wo, C)
    out = pallas_pool_reduce(stacked, "max", out_dtype=x.dtype)
    return out.reshape(N, Ho, Wo, C)


def bn_relu_avgpool2x2(x, scale, bias):
    """avgpool2x2(relu(x*scale+bias)) with BN+ReLU fused as the pool kernel prologue."""
    N, H, W, C = x.shape
    Ho, Wo = H // 2, W // 2
    wins = [x[:, i::2, j::2, :] for i in range(2) for j in range(2)]
    stacked = jnp.stack(wins, axis=0).reshape(4, N * Ho * Wo, C)
    out = pallas_pool_reduce(stacked, "avg", scale=scale, bias=bias, relu=True,
                             out_dtype=jnp.bfloat16)
    return out.reshape(N, Ho, Wo, C)


def dense_block(x, layer_params):
    """DenseNet block with a preallocated bf16 channel slab instead of per-layer concat.
    Each layer: [norm1+relu prologue] 1x1 conv [norm2+relu epilogue] -> 3x3 conv (pad 1)
    -> write its `growth` channels into the slab slice."""
    N, H, W, C0 = x.shape
    growths = [lp["conv2"].shape[0] for lp in layer_params]
    c_final = C0 + sum(growths)
    c_slab = _slab_width(c_final)
    feats = jnp.zeros((N, H, W, c_slab), jnp.bfloat16)
    feats = feats.at[..., :C0].set(x.astype(jnp.bfloat16))
    cur = C0
    for lp, g in zip(layer_params, growths):
        s1, b1 = _fold_bn(lp["norm1"])
        s2, b2 = _fold_bn(lp["norm2"])
        y = conv1x1(feats, lp["conv1"], k_valid=cur,
                    pro_scale=s1, pro_bias=b1, pro_relu=True,
                    epi_scale=s2, epi_bias=b2, epi_relu=True,
                    out_dtype=jnp.bfloat16)
        y = conv2d_fused(y, lp["conv2"], stride=1, pad=1, out_dtype=jnp.bfloat16)
        # TODO(synk): write these channels straight from the matmul kernel into the slab
        # slice (input_output_aliases + masked lane store) to avoid this update pass.
        feats = feats.at[..., cur:cur + g].set(y)
        cur += g
    return feats, c_final


# --------------------------------------------------------------------- parameter init
def _conv_w(key, cout, cin, kh, kw):
    fan_in = cin * kh * kw
    return jax.random.normal(key, (cout, cin, kh, kw), jnp.float32) * (2.0 / fan_in) ** 0.5


def _bn_p(key, c):
    k1, k2, k3, k4 = jax.random.split(key, 4)
    gamma = jax.random.uniform(k1, (c,), jnp.float32, 0.5, 1.5)
    beta = jax.random.normal(k2, (c,), jnp.float32) * 0.1
    mean = jax.random.normal(k3, (c,), jnp.float32) * 0.1
    var = jax.random.uniform(k4, (c,), jnp.float32, 0.5, 1.5)
    return (gamma, beta, mean, var)


def build_densenet_params(key, growth, blocks, init_feat, bn_size, in_ch, num_classes):
    keys = iter(jax.random.split(key, 1024))
    p = {"conv0": _conv_w(next(keys), init_feat, in_ch, 7, 7),
         "norm0": _bn_p(next(keys), init_feat)}
    c = init_feat
    for bi, nlayers in enumerate(blocks):
        block = []
        for li in range(nlayers):
            cin = c + li * growth
            block.append({
                "norm1": _bn_p(next(keys), cin),
                "conv1": _conv_w(next(keys), bn_size * growth, cin, 1, 1),
                "norm2": _bn_p(next(keys), bn_size * growth),
                "conv2": _conv_w(next(keys), growth, bn_size * growth, 3, 3),
            })
        p[f"block{bi + 1}"] = block
        c = c + nlayers * growth
        if bi != len(blocks) - 1:
            p[f"trans{bi + 1}"] = {
                "norm": _bn_p(next(keys), c),
                "conv": _conv_w(next(keys), c // 2, c, 1, 1),
            }
            c = c // 2
    p["norm5"] = _bn_p(next(keys), c)
    # classifier exists in the PyTorch module but is NOT used by forward()
    kw, kb = jax.random.split(next(keys))
    p["classifier"] = (jax.random.normal(kw, (num_classes, c), jnp.float32) * 0.01,
                       jnp.zeros((num_classes,), jnp.float32))
    p["num_features"] = c
    return p


# -------------------------------------------------------------------------- forward
def densenet_encoder_forward(params, x_nchw, blocks):
    """Equivalent of DensenetEncoder.forward: returns self.features(x) (NCHW, f32)."""
    x = jnp.transpose(x_nchw.astype(jnp.float32), (0, 2, 3, 1))  # NCHW -> NHWC
    # conv0 7x7/s2 with norm0+relu fused as epilogue, then maxpool 3x3/s2/p1
    s0, b0 = _fold_bn(params["norm0"])
    x = conv2d_fused(x, params["conv0"], stride=2, pad=3,
                     epi_scale=s0, epi_bias=b0, epi_relu=True, out_dtype=jnp.bfloat16)
    x = maxpool3x3_s2_p1(x)
    # dense blocks + transitions
    for bi, _ in enumerate(blocks):
        slab, c_final = dense_block(x, params[f"block{bi + 1}"])
        cs = slab.shape[-1]
        if bi != len(blocks) - 1:
            t = params[f"trans{bi + 1}"]
            st, bt = _fold_bn(t["norm"])
            st = jnp.pad(st, (0, cs - c_final))
            bt = jnp.pad(bt, (0, cs - c_final))
            # transition commuted: BN+ReLU (pool prologue) -> avgpool 2x2 -> 1x1 conv
            pooled = bn_relu_avgpool2x2(slab, st, bt)
            x = conv1x1(pooled, t["conv"], k_valid=c_final, out_dtype=jnp.bfloat16)
        else:
            # norm5: final BN, no ReLU (exactly what `self.features(x)` returns)
            s5, b5 = _fold_bn(params["norm5"])
            s5 = jnp.pad(s5, (0, cs - c_final))
            b5 = jnp.pad(b5, (0, cs - c_final))
            N, H, W, _ = slab.shape
            y = pallas_bn_act(slab.reshape(N * H * W, cs), s5, b5, relu=False)
            x = y.reshape(N, H, W, cs)[..., :c_final]
    return jnp.transpose(x, (0, 3, 1, 2))  # back to NCHW, like PyTorch


# ------------------------------------------------------------------------------ main
if __name__ == "__main__":
    # scaled-down DenseNet config (densenet121 would be 32, (6,12,24,16), 64)
    GROWTH, BLOCKS, INIT_FEAT, BN_SIZE = 8, (2, 2, 2, 2), 16, 4
    NUM_CLASSES = 10

    key = jax.random.PRNGKey(0)
    kp, kx = jax.random.split(key)
    params = build_densenet_params(kp, GROWTH, BLOCKS, INIT_FEAT, BN_SIZE,
                                   in_ch=3, num_classes=NUM_CLASSES)

    x = jax.random.normal(kx, (2, 3, 64, 64), jnp.float32)  # NCHW, like PyTorch input

    fwd = jax.jit(functools.partial(densenet_encoder_forward, blocks=BLOCKS))
    out = jax.block_until_ready(fwd(params, x))

    # sanity: (N, num_features, H/32, W/32) and finite values
    expected = (2, params["num_features"], 64 // 32, 64 // 32)
    assert out.shape == expected, (out.shape, expected)
    assert bool(jnp.all(jnp.isfinite(out)))
    print("KERNEL_OK")
</pallas_src>

<mosaic_0001>
module attributes {stable_mosaic.version = 11 : i64} {
  func.func @_matmul_kernel_1k(%arg0: i32, %arg1: i32, %arg2: memref<512x256xbf16, #tpu.memory_space<vmem>>, %arg3: memref<256x128xbf16, #tpu.memory_space<vmem>>, %arg4: memref<1x256xf32, #tpu.memory_space<vmem>>, %arg5: memref<1x256xf32, #tpu.memory_space<vmem>>, %arg6: memref<1x128xf32, #tpu.memory_space<vmem>>, %arg7: memref<1x128xf32, #tpu.memory_space<vmem>>, %arg8: memref<512x128xbf16, #tpu.memory_space<vmem>>) attributes {dimension_semantics = [#tpu.dimension_semantics<parallel>, #tpu.dimension_semantics<parallel>], iteration_bounds = array<i64: 4, 1>, scalar_prefetch = 0 : i64, scratch_operands = 0 : i64, tpu.core_type = #tpu.core_type<tc>, window_params = [{transform_indices = @transform_0, window_bounds = array<i64: 512, 256>}, {transform_indices = @transform_1, window_bounds = array<i64: 256, 128>}, {pipeline_mode = #tpu.pipeline_mode<synchronous>, transform_indices = @transform_2, window_bounds = array<i64: 1, 256>}, {pipeline_mode = #tpu.pipeline_mode<synchronous>, transform_indices = @transform_3, window_bounds = array<i64: 1, 256>}, {transform_indices = @transform_4, window_bounds = array<i64: 1, 128>}, {transform_indices = @transform_5, window_bounds = array<i64: 1, 128>}, {transform_indices = @transform_6, window_bounds = array<i64: 512, 128>}]} {
    %c0 = arith.constant 0 : index
    %c0_0 = arith.constant 0 : index
    %0 = vector.load %arg2[%c0, %c0_0] : memref<512x256xbf16, #tpu.memory_space<vmem>>, vector<512x256xbf16>
    %c0_1 = arith.constant 0 : index
    %c0_2 = arith.constant 0 : index
    %1 = vector.load %arg3[%c0_1, %c0_2] : memref<256x128xbf16, #tpu.memory_space<vmem>>, vector<256x128xbf16>
    %cst = arith.constant dense<0.000000e+00> : vector<512x128xf32>
    %2 = tpu.matmul %0, %1, %cst {dimension_numbers = #tpu.dot_dimension_numbers<[1], [0], [0], [1], [0, 0, 1, 1], [], []>} : vector<512x256xbf16>, vector<256x128xbf16>, vector<512x128xf32> -> vector<512x128xf32>
    %c0_3 = arith.constant 0 : index
    %c0_4 = arith.constant 0 : index
    %3 = vector.load %arg6[%c0_3, %c0_4] : memref<1x128xf32, #tpu.memory_space<vmem>>, vector<1x128xf32>
    %4 = vector.broadcast %3 : vector<1x128xf32> to vector<512x128xf32>
    %5 = arith.mulf %2, %4 : vector<512x128xf32>
    %c0_5 = arith.constant 0 : index
    %c0_6 = arith.constant 0 : index
    %6 = vector.load %arg7[%c0_5, %c0_6] : memref<1x128xf32, #tpu.memory_space<vmem>>, vector<1x128xf32>
    %7 = vector.broadcast %6 : vector<1x128xf32> to vector<512x128xf32>
    %8 = arith.addf %5, %7 : vector<512x128xf32>
    %cst_7 = arith.constant 0.000000e+00 : f32
    %9 = vector.broadcast %cst_7 : f32 to vector<512x128xf32>
    %10 = arith.maximumf %8, %9 : vector<512x128xf32>
    %11 = arith.truncf %10 : vector<512x128xf32> to vector<512x128xbf16>
    %c0_8 = arith.constant 0 : index
    %c0_9 = arith.constant 0 : index
    %12 = vector.load %arg8[%c0_8, %c0_9] : memref<512x128xbf16, #tpu.memory_space<vmem>>, vector<512x128xbf16>
    tpu.vector_store %arg8[%c0_8, %c0_9], %11 {strides = array<i32>} : memref<512x128xbf16, #tpu.memory_space<vmem>>, vector<512x128xbf16>,
    return
  }
  func.func @transform_0(%arg0: i32, %arg1: i32) -> (i32, i32) {
    %c0_i32 = arith.constant 0 : i32
    %c0_i32_0 = arith.constant 0 : i32
    return %arg0, %c0_i32 : i32, i32
  }
  func.func @transform_1(%arg0: i32, %arg1: i32) -> (i32, i32) {
    %c0_i32 = arith.constant 0 : i32
    %c0_i32_0 = arith.constant 0 : i32
    return %c0_i32, %arg1 : i32, i32
  }
  func.func @transform_2(%arg0: i32, %arg1: i32) -> (i32, i32) {
    %c0_i32 = arith.constant 0 : i32
    %c0_i32_0 = arith.constant 0 : i32
    %c0_i32_1 = arith.constant 0 : i32
    return %c0_i32, %c0_i32_0 : i32, i32
  }
  func.func @transform_3(%arg0: i32, %arg1: i32) -> (i32, i32) {
    %c0_i32 = arith.constant 0 : i32
    %c0_i32_0 = arith.constant 0 : i32
    %c0_i32_1 = arith.constant 0 : i32
    return %c0_i32, %c0_i32_0 : i32, i32
  }
  func.func @transform_4(%arg0: i32, %arg1: i32) -> (i32, i32) {
    %c0_i32 = arith.constant 0 : i32
    %c0_i32_0 = arith.constant 0 : i32
    return %c0_i32, %arg1 : i32, i32
  }
  func.func @transform_5(%arg0: i32, %arg1: i32) -> (i32, i32) {
    %c0_i32 = arith.constant 0 : i32
    %c0_i32_0 = arith.constant 0 : i32
    return %c0_i32, %arg1 : i32, i32
  }
  func.func @transform_6(%arg0: i32, %arg1: i32) -> (i32, i32) {
    %c0_i32 = arith.constant 0 : i32
    return %arg0, %arg1 : i32, i32
  }
}

module attributes {stable_mosaic.version = 11 : i64} {
  func.func @_matmul_kernel_1k(%arg0: i32, %arg1: i32, %arg2: memref<512x128xbf16, #tpu.memory_space<vmem>>, %arg3: memref<128x128xbf16, #tpu.memory_space<vmem>>, %arg4: memref<1x128xf32, #tpu.memory_space<vmem>>, %arg5: memref<1x128xf32, #tpu.memory_space<vmem>>, %arg6: memref<1x128xf32, #tpu.memory_space<vmem>>, %arg7: memref<1x128xf32, #tpu.memory_space<vmem>>, %arg8: memref<512x128xbf16, #tpu.memory_space<vmem>>) attributes {dimension_semantics = [#tpu.dimension_semantics<parallel>, #tpu.dimension_semantics<parallel>], iteration_bounds = array<i64: 1, 1>, scalar_prefetch = 0 : i64, scratch_operands = 0 : i64, tpu.core_type = #tpu.core_type<tc>, window_params = [{transform_indices = @transform_0, window_bounds = array<i64: 512, 128>}, {transform_indices = @transform_1, window_bounds = array<i64: 128, 128>}, {pipeline_mode = #tpu.pipeline_mode<synchronous>, transform_indices = @transform_2, window_bounds = array<i64: 1, 128>}, {pipeline_mode = #tpu.pipeline_mode<synchronous>, transform_indices = @transform_3, window_bounds = array<i64: 1, 128>}, {transform_indices = @transform_4, window_bounds = array<i64: 1, 128>}, {transform_indices = @transform_5, window_bounds = array<i64: 1, 128>}, {transform_indices = @transform_6, window_bounds = array<i64: 512, 128>}]} {
    %c0 = arith.constant 0 : index
    %c0_0 = arith.constant 0 : index
    %0 = vector.load %arg2[%c0, %c0_0] : memref<512x128xbf16, #tpu.memory_space<vmem>>, vector<512x128xbf16>
    %1 = arith.extf %0 : vector<512x128xbf16> to vector<512x128xf32>
    %c0_1 = arith.constant 0 : index
    %c0_2 = arith.constant 0 : index
    %2 = vector.load %arg4[%c0_1, %c0_2] : memref<1x128xf32, #tpu.memory_space<vmem>>, vector<1x128xf32>
    %3 = vector.broadcast %2 : vector<1x128xf32> to vector<512x128xf32>
    %4 = arith.mulf %1, %3 : vector<512x128xf32>
    %c0_3 = arith.constant 0 : index
    %c0_4 = arith.constant 0 : index
    %5 = vector.load %arg5[%c0_3, %c0_4] : memref<1x128xf32, #tpu.memory_space<vmem>>, vector<1x128xf32>
    %6 = vector.broadcast %5 : vector<1x128xf32> to vector<512x128xf32>
    %7 = arith.addf %4, %6 : vector<512x128xf32>
    %cst = arith.constant 0.000000e+00 : f32
    %8 = vector.broadcast %cst : f32 to vector<512x128xf32>
    %9 = arith.maximumf %7, %8 : vector<512x128xf32>
    %10 = arith.truncf %9 : vector<512x128xf32> to vector<512x128xbf16>
    %c0_5 = arith.constant 0 : index
    %c0_6 = arith.constant 0 : index
    %11 = vector.load %arg3[%c0_5, %c0_6] : memref<128x128xbf16, #tpu.memory_space<vmem>>, vector<128x128xbf16>
    %cst_7 = arith.constant dense<0.000000e+00> : vector<512x128xf32>
    %12 = tpu.matmul %10, %11, %cst_7 {dimension_numbers = #tpu.dot_dimension_numbers<[1], [0], [0], [1], [0, 0, 1, 1], [], []>} : vector<512x128xbf16>, vector<128x128xbf16>, vector<512x128xf32> -> vector<512x128xf32>
    %c0_8 = arith.constant 0 : index
    %c0_9 = arith.constant 0 : index
    %13 = vector.load %arg6[%c0_8, %c0_9] : memref<1x128xf32, #tpu.memory_space<vmem>>, vector<1x128xf32>
    %14 = vector.broadcast %13 : vector<1x128xf32> to vector<512x128xf32>
    %15 = arith.mulf %12, %14 : vector<512x128xf32>
    %c0_10 = arith.constant 0 : index
    %c0_11 = arith.constant 0 : index
    %16 = vector.load %arg7[%c0_10, %c0_11] : memref<1x128xf32, #tpu.memory_space<vmem>>, vector<1x128xf32>
    %17 = vector.broadcast %16 : vector<1x128xf32> to vector<512x128xf32>
    %18 = arith.addf %15, %17 : vector<512x128xf32>
    %cst_12 = arith.constant 0.000000e+00 : f32
    %19 = vector.broadcast %cst_12 : f32 to vector<512x128xf32>
    %20 = arith.maximumf %18, %19 : vector<512x128xf32>
    %21 = arith.truncf %20 : vector<512x128xf32> to vector<512x128xbf16>
    %c0_13 = arith.constant 0 : index
    %c0_14 = arith.constant 0 : index
    %22 = vector.load %arg8[%c0_13, %c0_14] : memref<512x128xbf16, #tpu.memory_space<vmem>>, vector<512x128xbf16>
    tpu.vector_store %arg8[%c0_13, %c0_14], %21 {strides = array<i32>} : memref<512x128xbf16, #tpu.memory_space<vmem>>, vector<512x128xbf16>,
    return
  }
  func.func @transform_0(%arg0: i32, %arg1: i32) -> (i32, i32) {
    %c0_i32 = arith.constant 0 : i32
    %c0_i32_0 = arith.constant 0 : i32
    return %arg0, %c0_i32 : i32, i32
  }
  func.func @transform_1(%arg0: i32, %arg1: i32) -> (i32, i32) {
    %c0_i32 = arith.constant 0 : i32
    %c0_i32_0 = arith.constant 0 : i32
    return %c0_i32, %arg1 : i32, i32
  }
  func.func @transform_2(%arg0: i32, %arg1: i32) -> (i32, i32) {
    %c0_i32 = arith.constant 0 : i32
    %c0_i32_0 = arith.constant 0 : i32
    %c0_i32_1 = arith.constant 0 : i32
    return %c0_i32, %c0_i32_0 : i32, i32
  }
  func.func @transform_3(%arg0: i32, %arg1: i32) -> (i32, i32) {
    %c0_i32 = arith.constant 0 : i32
    %c0_i32_0 = arith.constant 0 : i32
    %c0_i32_1 = arith.constant 0 : i32
    return %c0_i32, %c0_i32_0 : i32, i32
  }
  func.func @transform_4(%arg0: i32, %arg1: i32) -> (i32, i32) {
    %c0_i32 = arith.constant 0 : i32
    %c0_i32_0 = arith.constant 0 : i32
    return %c0_i32, %arg1 : i32, i32
  }
  func.func @transform_5(%arg0: i32, %arg1: i32) -> (i32, i32) {
    %c0_i32 = arith.constant 0 : i32
    %c0_i32_0 = arith.constant 0 : i32
    return %c0_i32, %arg1 : i32, i32
  }
  func.func @transform_6(%arg0: i32, %arg1: i32) -> (i32, i32) {
    %c0_i32 = arith.constant 0 : i32
    return %arg0, %arg1 : i32, i32
  }
}

module attributes {stable_mosaic.version = 11 : i64} {
  func.func @_pool_kernel(%arg0: i32, %arg1: memref<9x64x128xbf16, #tpu.memory_space<vmem>>, %arg2: memref<1x128xf32, #tpu.memory_space<vmem>>, %arg3: memref<1x128xf32, #tpu.memory_space<vmem>>, %arg4: memref<64x128xbf16, #tpu.memory_space<vmem>>) attributes {dimension_semantics = [#tpu.dimension_semantics<parallel>], iteration_bounds = array<i64: 1>, scalar_prefetch = 0 : i64, scratch_operands = 0 : i64, tpu.core_type = #tpu.core_type<tc>, window_params = [{transform_indices = @transform_0, window_bounds = array<i64: 9, 64, 128>}, {pipeline_mode = #tpu.pipeline_mode<synchronous>, transform_indices = @transform_1, window_bounds = array<i64: 1, 128>}, {pipeline_mode = #tpu.pipeline_mode<synchronous>, transform_indices = @transform_2, window_bounds = array<i64: 1, 128>}, {transform_indices = @transform_3, window_bounds = array<i64: 64, 128>}]} {
    %c0 = arith.constant 0 : index
    %c0_0 = arith.constant 0 : index
    %c0_1 = arith.constant 0 : index
    %0 = vector.load %arg1[%c0, %c0_0, %c0_1] : memref<9x64x128xbf16, #tpu.memory_space<vmem>>, vector<1x64x128xbf16>
    %1 = vector.shape_cast %0 : vector<1x64x128xbf16> to vector<64x128xbf16>
    %2 = arith.extf %1 : vector<64x128xbf16> to vector<64x128xf32>
    %c1 = arith.constant 1 : index
    %c0_2 = arith.constant 0 : index
    %c0_3 = arith.constant 0 : index
    %3 = vector.load %arg1[%c1, %c0_2, %c0_3] : memref<9x64x128xbf16, #tpu.memory_space<vmem>>, vector<1x64x128xbf16>
    %4 = vector.shape_cast %3 : vector<1x64x128xbf16> to vector<64x128xbf16>
    %5 = arith.extf %4 : vector<64x128xbf16> to vector<64x128xf32>
    %6 = arith.maximumf %2, %5 : vector<64x128xf32>
    %c2 = arith.constant 2 : index
    %c0_4 = arith.constant 0 : index
    %c0_5 = arith.constant 0 : index
    %7 = vector.load %arg1[%c2, %c0_4, %c0_5] : memref<9x64x128xbf16, #tpu.memory_space<vmem>>, vector<1x64x128xbf16>
    %8 = vector.shape_cast %7 : vector<1x64x128xbf16> to vector<64x128xbf16>
    %9 = arith.extf %8 : vector<64x128xbf16> to vector<64x128xf32>
    %10 = arith.maximumf %6, %9 : vector<64x128xf32>
    %c3 = arith.constant 3 : index
    %c0_6 = arith.constant 0 : index
    %c0_7 = arith.constant 0 : index
    %11 = vector.load %arg1[%c3, %c0_6, %c0_7] : memref<9x64x128xbf16, #tpu.memory_space<vmem>>, vector<1x64x128xbf16>
    %12 = vector.shape_cast %11 : vector<1x64x128xbf16> to vector<64x128xbf16>
    %13 = arith.extf %12 : vector<64x128xbf16> to vector<64x128xf32>
    %14 = arith.maximumf %10, %13 : vector<64x128xf32>
    %c4 = arith.constant 4 : index
    %c0_8 = arith.constant 0 : index
    %c0_9 = arith.constant 0 : index
    %15 = vector.load %arg1[%c4, %c0_8, %c0_9] : memref<9x64x128xbf16, #tpu.memory_space<vmem>>, vector<1x64x128xbf16>
    %16 = vector.shape_cast %15 : vector<1x64x128xbf16> to vector<64x128xbf16>
    %17 = arith.extf %16 : vector<64x128xbf16> to vector<64x128xf32>
    %18 = arith.maximumf %14, %17 : vector<64x128xf32>
    %c5 = arith.constant 5 : index
    %c0_10 = arith.constant 0 : index
    %c0_11 = arith.constant 0 : index
    %19 = vector.load %arg1[%c5, %c0_10, %c0_11] : memref<9x64x128xbf16, #tpu.memory_space<vmem>>, vector<1x64x128xbf16>
    %20 = vector.shape_cast %19 : vector<1x64x128xbf16> to vector<64x128xbf16>
    %21 = arith.extf %20 : vector<64x128xbf16> to vector<64x128xf32>
    %22 = arith.maximumf %18, %21 : vector<64x128xf32>
    %c6 = arith.constant 6 : index
    %c0_12 = arith.constant 0 : index
    %c0_13 = arith.constant 0 : index
    %23 = vector.load %arg1[%c6, %c0_12, %c0_13] : memref<9x64x128xbf16, #tpu.memory_space<vmem>>, vector<1x64x128xbf16>
    %24 = vector.shape_cast %23 : vector<1x64x128xbf16> to vector<64x128xbf16>
    %25 = arith.extf %24 : vector<64x128xbf16> to vector<64x128xf32>
    %26 = arith.maximumf %22, %25 : vector<64x128xf32>
    %c7 = arith.constant 7 : index
    %c0_14 = arith.constant 0 : index
    %c0_15 = arith.constant 0 : index
    %27 = vector.load %arg1[%c7, %c0_14, %c0_15] : memref<9x64x128xbf16, #tpu.memory_space<vmem>>, vector<1x64x128xbf16>
    %28 = vector.shape_cast %27 : vector<1x64x128xbf16> to vector<64x128xbf16>
    %29 = arith.extf %28 : vector<64x128xbf16> to vector<64x128xf32>
    %30 = arith.maximumf %26, %29 : vector<64x128xf32>
    %c8 = arith.constant 8 : index
    %c0_16 = arith.constant 0 : index
    %c0_17 = arith.constant 0 : index
    %31 = vector.load %arg1[%c8, %c0_16, %c0_17] : memref<9x64x128xbf16, #tpu.memory_space<vmem>>, vector<1x64x128xbf16>
    %32 = vector.shape_cast %31 : vector<1x64x128xbf16> to vector<64x128xbf16>
    %33 = arith.extf %32 : vector<64x128xbf16> to vector<64x128xf32>
    %34 = arith.maximumf %30, %33 : vector<64x128xf32>
    %35 = arith.truncf %34 : vector<64x128xf32> to vector<64x128xbf16>
    %c0_18 = arith.constant 0 : index
    %c0_19 = arith.constant 0 : index
    %36 = vector.load %arg4[%c0_18, %c0_19] : memref<64x128xbf16, #tpu.memory_space<vmem>>, vector<64x128xbf16>
    tpu.vector_store %arg4[%c0_18, %c0_19], %35 {strides = array<i32>} : memref<64x128xbf16, #tpu.memory_space<vmem>>, vector<64x128xbf16>,
    return
  }
  func.func @transform_0(%arg0: i32) -> (i32, i32, i32) {
    %c0_i32 = arith.constant 0 : i32
    %c0_i32_0 = arith.constant 0 : i32
    %c0_i32_1 = arith.constant 0 : i32
    return %c0_i32, %arg0, %c0_i32_0 : i32, i32, i32
  }
  func.func @transform_1(%arg0: i32) -> (i32, i32) {
    %c0_i32 = arith.constant 0 : i32
    %c0_i32_0 = arith.constant 0 : i32
    %c0_i32_1 = arith.constant 0 : i32
    return %c0_i32, %c0_i32_0 : i32, i32
  }
  func.func @transform_2(%arg0: i32) -> (i32, i32) {
    %c0_i32 = arith.constant 0 : i32
    %c0_i32_0 = arith.constant 0 : i32
    %c0_i32_1 = arith.constant 0 : i32
    return %c0_i32, %c0_i32_0 : i32, i32
  }
  func.func @transform_3(%arg0: i32) -> (i32, i32) {
    %c0_i32 = arith.constant 0 : i32
    %c0_i32_0 = arith.constant 0 : i32
    return %arg0, %c0_i32 : i32, i32
  }
}

module attributes {stable_mosaic.version = 11 : i64} {
  func.func @_matmul_kernel_1k(%arg0: i32, %arg1: i32, %arg2: memref<512x384xbf16, #tpu.memory_space<vmem>>, %arg3: memref<384x128xbf16, #tpu.memory_space<vmem>>, %arg4: memref<1x384xf32, #tpu.memory_space<vmem>>, %arg5: memref<1x384xf32, #tpu.memory_space<vmem>>, %arg6: memref<1x128xf32, #tpu.memory_space<vmem>>, %arg7: memref<1x128xf32, #tpu.memory_space<vmem>>, %arg8: memref<512x128xbf16, #tpu.memory_space<vmem>>) attributes {dimension_semantics = [#tpu.dimension_semantics<parallel>, #tpu.dimension_semantics<parallel>], iteration_bounds = array<i64: 1, 1>, scalar_prefetch = 0 : i64, scratch_operands = 0 : i64, tpu.core_type = #tpu.core_type<tc>, window_params = [{transform_indices = @transform_0, window_bounds = array<i64: 512, 384>}, {transform_indices = @transform_1, window_bounds = array<i64: 384, 128>}, {pipeline_mode = #tpu.pipeline_mode<synchronous>, transform_indices = @transform_2, window_bounds = array<i64: 1, 384>}, {pipeline_mode = #tpu.pipeline_mode<synchronous>, transform_indices = @transform_3, window_bounds = array<i64: 1, 384>}, {transform_indices = @transform_4, window_bounds = array<i64: 1, 128>}, {transform_indices = @transform_5, window_bounds = array<i64: 1, 128>}, {transform_indices = @transform_6, window_bounds = array<i64: 512, 128>}]} {
    %c0 = arith.constant 0 : index
    %c0_0 = arith.constant 0 : index
    %0 = vector.load %arg2[%c0, %c0_0] : memref<512x384xbf16, #tpu.memory_space<vmem>>, vector<512x384xbf16>
    %c0_1 = arith.constant 0 : index
    %c0_2 = arith.constant 0 : index
    %1 = vector.load %arg3[%c0_1, %c0_2] : memref<384x128xbf16, #tpu.memory_space<vmem>>, vector<384x128xbf16>
    %cst = arith.constant dense<0.000000e+00> : vector<512x128xf32>
    %2 = tpu.matmul %0, %1, %cst {dimension_numbers = #tpu.dot_dimension_numbers<[1], [0], [0], [1], [0, 0, 1, 1], [], []>} : vector<512x384xbf16>, vector<384x128xbf16>, vector<512x128xf32> -> vector<512x128xf32>
    %3 = arith.truncf %2 : vector<512x128xf32> to vector<512x128xbf16>
    %c0_3 = arith.constant 0 : index
    %c0_4 = arith.constant 0 : index
    %4 = vector.load %arg8[%c0_3, %c0_4] : memref<512x128xbf16, #tpu.memory_space<vmem>>, vector<512x128xbf16>
    tpu.vector_store %arg8[%c0_3, %c0_4], %3 {strides = array<i32>} : memref<512x128xbf16, #tpu.memory_space<vmem>>, vector<512x128xbf16>,
    return
  }
  func.func @transform_0(%arg0: i32, %arg1: i32) -> (i32, i32) {
    %c0_i32 = arith.constant 0 : i32
    %c0_i32_0 = arith.constant 0 : i32
    return %arg0, %c0_i32 : i32, i32
  }
  func.func @transform_1(%arg0: i32, %arg1: i32) -> (i32, i32) {
    %c0_i32 = arith.constant 0 : i32
    %c0_i32_0 = arith.constant 0 : i32
    return %c0_i32, %arg1 : i32, i32
  }
  func.func @transform_2(%arg0: i32, %arg1: i32) -> (i32, i32) {
    %c0_i32 = arith.constant 0 : i32
    %c0_i32_0 = arith.constant 0 : i32
    %c0_i32_1 = arith.constant 0 : i32
    return %c0_i32, %c0_i32_0 : i32, i32
  }
  func.func @transform_3(%arg0: i32, %arg1: i32) -> (i32, i32) {
    %c0_i32 = arith.constant 0 : i32
    %c0_i32_0 = arith.constant 0 : i32
    %c0_i32_1 = arith.constant 0 : i32
    return %c0_i32, %c0_i32_0 : i32, i32
  }
  func.func @transform_4(%arg0: i32, %arg1: i32) -> (i32, i32) {
    %c0_i32 = arith.constant 0 : i32
    %c0_i32_0 = arith.constant 0 : i32
    return %c0_i32, %arg1 : i32, i32
  }
  func.func @transform_5(%arg0: i32, %arg1: i32) -> (i32, i32) {
    %c0_i32 = arith.constant 0 : i32
    %c0_i32_0 = arith.constant 0 : i32
    return %c0_i32, %arg1 : i32, i32
  }
  func.func @transform_6(%arg0: i32, %arg1: i32) -> (i32, i32) {
    %c0_i32 = arith.constant 0 : i32
    return %arg0, %arg1 : i32, i32
  }
}

module attributes {stable_mosaic.version = 11 : i64} {
  func.func @_pool_kernel(%arg0: i32, %arg1: memref<4x128x128xbf16, #tpu.memory_space<vmem>>, %arg2: memref<1x128xf32, #tpu.memory_space<vmem>>, %arg3: memref<1x128xf32, #tpu.memory_space<vmem>>, %arg4: memref<128x128xbf16, #tpu.memory_space<vmem>>) attributes {dimension_semantics = [#tpu.dimension_semantics<parallel>], iteration_bounds = array<i64: 1>, scalar_prefetch = 0 : i64, scratch_operands = 0 : i64, tpu.core_type = #tpu.core_type<tc>, window_params = [{transform_indices = @transform_0, window_bounds = array<i64: 4, 128, 128>}, {pipeline_mode = #tpu.pipeline_mode<synchronous>, transform_indices = @transform_1, window_bounds = array<i64: 1, 128>}, {pipeline_mode = #tpu.pipeline_mode<synchronous>, transform_indices = @transform_2, window_bounds = array<i64: 1, 128>}, {transform_indices = @transform_3, window_bounds = array<i64: 128, 128>}]} {
    %c0 = arith.constant 0 : index
    %c0_0 = arith.constant 0 : index
    %c0_1 = arith.constant 0 : index
    %0 = vector.load %arg1[%c0, %c0_0, %c0_1] : memref<4x128x128xbf16, #tpu.memory_space<vmem>>, vector<1x128x128xbf16>
    %1 = vector.shape_cast %0 : vector<1x128x128xbf16> to vector<128x128xbf16>
    %2 = arith.extf %1 : vector<128x128xbf16> to vector<128x128xf32>
    %c0_2 = arith.constant 0 : index
    %c0_3 = arith.constant 0 : index
    %3 = vector.load %arg2[%c0_2, %c0_3] : memref<1x128xf32, #tpu.memory_space<vmem>>, vector<1x128xf32>
    %4 = vector.broadcast %3 : vector<1x128xf32> to vector<128x128xf32>
    %5 = arith.mulf %2, %4 : vector<128x128xf32>
    %c0_4 = arith.constant 0 : index
    %c0_5 = arith.constant 0 : index
    %6 = vector.load %arg3[%c0_4, %c0_5] : memref<1x128xf32, #tpu.memory_space<vmem>>, vector<1x128xf32>
    %7 = vector.broadcast %6 : vector<1x128xf32> to vector<128x128xf32>
    %8 = arith.addf %5, %7 : vector<128x128xf32>
    %cst = arith.constant 0.000000e+00 : f32
    %9 = vector.broadcast %cst : f32 to vector<128x128xf32>
    %10 = arith.maximumf %8, %9 : vector<128x128xf32>
    %c1 = arith.constant 1 : index
    %c0_6 = arith.constant 0 : index
    %c0_7 = arith.constant 0 : index
    %11 = vector.load %arg1[%c1, %c0_6, %c0_7] : memref<4x128x128xbf16, #tpu.memory_space<vmem>>, vector<1x128x128xbf16>
    %12 = vector.shape_cast %11 : vector<1x128x128xbf16> to vector<128x128xbf16>
    %13 = arith.extf %12 : vector<128x128xbf16> to vector<128x128xf32>
    %c0_8 = arith.constant 0 : index
    %c0_9 = arith.constant 0 : index
    %14 = vector.load %arg2[%c0_8, %c0_9] : memref<1x128xf32, #tpu.memory_space<vmem>>, vector<1x128xf32>
    %15 = vector.broadcast %14 : vector<1x128xf32> to vector<128x128xf32>
    %16 = arith.mulf %13, %15 : vector<128x128xf32>
    %c0_10 = arith.constant 0 : index
    %c0_11 = arith.constant 0 : index
    %17 = vector.load %arg3[%c0_10, %c0_11] : memref<1x128xf32, #tpu.memory_space<vmem>>, vector<1x128xf32>
    %18 = vector.broadcast %17 : vector<1x128xf32> to vector<128x128xf32>
    %19 = arith.addf %16, %18 : vector<128x128xf32>
    %cst_12 = arith.constant 0.000000e+00 : f32
    %20 = vector.broadcast %cst_12 : f32 to vector<128x128xf32>
    %21 = arith.maximumf %19, %20 : vector<128x128xf32>
    %22 = arith.addf %10, %21 : vector<128x128xf32>
    %c2 = arith.constant 2 : index
    %c0_13 = arith.constant 0 : index
    %c0_14 = arith.constant 0 : index
    %23 = vector.load %arg1[%c2, %c0_13, %c0_14] : memref<4x128x128xbf16, #tpu.memory_space<vmem>>, vector<1x128x128xbf16>
    %24 = vector.shape_cast %23 : vector<1x128x128xbf16> to vector<128x128xbf16>
    %25 = arith.extf %24 : vector<128x128xbf16> to vector<128x128xf32>
    %c0_15 = arith.constant 0 : index
    %c0_16 = arith.constant 0 : index
    %26 = vector.load %arg2[%c0_15, %c0_16] : memref<1x128xf32, #tpu.memory_space<vmem>>, vector<1x128xf32>
    %27 = vector.broadcast %26 : vector<1x128xf32> to vector<128x128xf32>
    %28 = arith.mulf %25, %27 : vector<128x128xf32>
    %c0_17 = arith.constant 0 : index
    %c0_18 = arith.constant 0 : index
    %29 = vector.load %arg3[%c0_17, %c0_18] : memref<1x128xf32, #tpu.memory_space<vmem>>, vector<1x128xf32>
    %30 = vector.broadcast %29 : vector<1x128xf32> to vector<128x128xf32>
    %31 = arith.addf %28, %30 : vector<128x128xf32>
    %cst_19 = arith.constant 0.000000e+00 : f32
    %32 = vector.broadcast %cst_19 : f32 to vector<128x128xf32>
    %33 = arith.maximumf %31, %32 : vector<128x128xf32>
    %34 = arith.addf %22, %33 : vector<128x128xf32>
    %c3 = arith.constant 3 : index
    %c0_20 = arith.constant 0 : index
    %c0_21 = arith.constant 0 : index
    %35 = vector.load %arg1[%c3, %c0_20, %c0_21] : memref<4x128x128xbf16, #tpu.memory_space<vmem>>, vector<1x128x128xbf16>
    %36 = vector.shape_cast %35 : vector<1x128x128xbf16> to vector<128x128xbf16>
    %37 = arith.extf %36 : vector<128x128xbf16> to vector<128x128xf32>
    %c0_22 = arith.constant 0 : index
    %c0_23 = arith.constant 0 : index
    %38 = vector.load %arg2[%c0_22, %c0_23] : memref<1x128xf32, #tpu.memory_space<vmem>>, vector<1x128xf32>
    %39 = vector.broadcast %38 : vector<1x128xf32> to vector<128x128xf32>
    %40 = arith.mulf %37, %39 : vector<128x128xf32>
    %c0_24 = arith.constant 0 : index
    %c0_25 = arith.constant 0 : index
    %41 = vector.load %arg3[%c0_24, %c0_25] : memref<1x128xf32, #tpu.memory_space<vmem>>, vector<1x128xf32>
    %42 = vector.broadcast %41 : vector<1x128xf32> to vector<128x128xf32>
    %43 = arith.addf %40, %42 : vector<128x128xf32>
    %cst_26 = arith.constant 0.000000e+00 : f32
    %44 = vector.broadcast %cst_26 : f32 to vector<128x128xf32>
    %45 = arith.maximumf %43, %44 : vector<128x128xf32>
    %46 = arith.addf %34, %45 : vector<128x128xf32>
    %cst_27 = arith.constant 2.500000e-01 : f32
    %47 = vector.broadcast %cst_27 : f32 to vector<128x128xf32>
    %48 = arith.mulf %46, %47 : vector<128x128xf32>
    %49 = arith.truncf %48 : vector<128x128xf32> to vector<128x128xbf16>
    %c0_28 = arith.constant 0 : index
    %c0_29 = arith.constant 0 : index
    %50 = vector.load %arg4[%c0_28, %c0_29] : memref<128x128xbf16, #tpu.memory_space<vmem>>, vector<128x128xbf16>
    tpu.vector_store %arg4[%c0_28, %c0_29], %49 {strides = array<i32>} : memref<128x128xbf16, #tpu.memory_space<vmem>>, vector<128x128xbf16>,
    return
  }
  func.func @transform_0(%arg0: i32) -> (i32, i32, i32) {
    %c0_i32 = arith.constant 0 : i32
    %c0_i32_0 = arith.constant 0 : i32
    %c0_i32_1 = arith.constant 0 : i32
    return %c0_i32, %arg0, %c0_i32_0 : i32, i32, i32
  }
  func.func @transform_1(%arg0: i32) -> (i32, i32) {
    %c0_i32 = arith.constant 0 : i32
    %c0_i32_0 = arith.constant 0 : i32
    %c0_i32_1 = arith.constant 0 : i32
    return %c0_i32, %c0_i32_0 : i32, i32
  }
  func.func @transform_2(%arg0: i32) -> (i32, i32) {
    %c0_i32 = arith.constant 0 : i32
    %c0_i32_0 = arith.constant 0 : i32
    %c0_i32_1 = arith.constant 0 : i32
    return %c0_i32, %c0_i32_0 : i32, i32
  }
  func.func @transform_3(%arg0: i32) -> (i32, i32) {
    %c0_i32 = arith.constant 0 : i32
    %c0_i32_0 = arith.constant 0 : i32
    return %arg0, %c0_i32 : i32, i32
  }
}

module attributes {stable_mosaic.version = 11 : i64} {
  func.func @_matmul_kernel_1k(%arg0: i32, %arg1: i32, %arg2: memref<128x128xbf16, #tpu.memory_space<vmem>>, %arg3: memref<128x128xbf16, #tpu.memory_space<vmem>>, %arg4: memref<1x128xf32, #tpu.memory_space<vmem>>, %arg5: memref<1x128xf32, #tpu.memory_space<vmem>>, %arg6: memref<1x128xf32, #tpu.memory_space<vmem>>, %arg7: memref<1x128xf32, #tpu.memory_space<vmem>>, %arg8: memref<128x128xbf16, #tpu.memory_space<vmem>>) attributes {dimension_semantics = [#tpu.dimension_semantics<parallel>, #tpu.dimension_semantics<parallel>], iteration_bounds = array<i64: 1, 1>, scalar_prefetch = 0 : i64, scratch_operands = 0 : i64, tpu.core_type = #tpu.core_type<tc>, window_params = [{transform_indices = @transform_0, window_bounds = array<i64: 128, 128>}, {transform_indices = @transform_1, window_bounds = array<i64: 128, 128>}, {pipeline_mode = #tpu.pipeline_mode<synchronous>, transform_indices = @transform_2, window_bounds = array<i64: 1, 128>}, {pipeline_mode = #tpu.pipeline_mode<synchronous>, transform_indices = @transform_3, window_bounds = array<i64: 1, 128>}, {transform_indices = @transform_4, window_bounds = array<i64: 1, 128>}, {transform_indices = @transform_5, window_bounds = array<i64: 1, 128>}, {transform_indices = @transform_6, window_bounds = array<i64: 128, 128>}]} {
    %c0 = arith.constant 0 : index
    %c0_0 = arith.constant 0 : index
    %0 = vector.load %arg2[%c0, %c0_0] : memref<128x128xbf16, #tpu.memory_space<vmem>>, vector<128x128xbf16>
    %c0_1 = arith.constant 0 : index
    %c0_2 = arith.constant 0 : index
    %1 = vector.load %arg3[%c0_1, %c0_2] : memref<128x128xbf16, #tpu.memory_space<vmem>>, vector<128x128xbf16>
    %cst = arith.constant dense<0.000000e+00> : vector<128x128xf32>
    %2 = tpu.matmul %0, %1, %cst {dimension_numbers = #tpu.dot_dimension_numbers<[1], [0], [0], [1], [0, 0, 1, 1], [], []>} : vector<128x128xbf16>, vector<128x128xbf16>, vector<128x128xf32> -> vector<128x128xf32>
    %3 = arith.truncf %2 : vector<128x128xf32> to vector<128x128xbf16>
    %c0_3 = arith.constant 0 : index
    %c0_4 = arith.constant 0 : index
    %4 = vector.load %arg8[%c0_3, %c0_4] : memref<128x128xbf16, #tpu.memory_space<vmem>>, vector<128x128xbf16>
    tpu.vector_store %arg8[%c0_3, %c0_4], %3 {strides = array<i32>} : memref<128x128xbf16, #tpu.memory_space<vmem>>, vector<128x128xbf16>,
    return
  }
  func.func @transform_0(%arg0: i32, %arg1: i32) -> (i32, i32) {
    %c0_i32 = arith.constant 0 : i32
    %c0_i32_0 = arith.constant 0 : i32
    return %arg0, %c0_i32 : i32, i32
  }
  func.func @transform_1(%arg0: i32, %arg1: i32) -> (i32, i32) {
    %c0_i32 = arith.constant 0 : i32
    %c0_i32_0 = arith.constant 0 : i32
    return %c0_i32, %arg1 : i32, i32
  }
  func.func @transform_2(%arg0: i32, %arg1: i32) -> (i32, i32) {
    %c0_i32 = arith.constant 0 : i32
    %c0_i32_0 = arith.constant 0 : i32
    %c0_i32_1 = arith.constant 0 : i32
    return %c0_i32, %c0_i32_0 : i32, i32
  }
  func.func @transform_3(%arg0: i32, %arg1: i32) -> (i32, i32) {
    %c0_i32 = arith.constant 0 : i32
    %c0_i32_0 = arith.constant 0 : i32
    %c0_i32_1 = arith.constant 0 : i32
    return %c0_i32, %c0_i32_0 : i32, i32
  }
  func.func @transform_4(%arg0: i32, %arg1: i32) -> (i32, i32) {
    %c0_i32 = arith.constant 0 : i32
    %c0_i32_0 = arith.constant 0 : i32
    return %c0_i32, %arg1 : i32, i32
  }
  func.func @transform_5(%arg0: i32, %arg1: i32) -> (i32, i32) {
    %c0_i32 = arith.constant 0 : i32
    %c0_i32_0 = arith.constant 0 : i32
    return %c0_i32, %arg1 : i32, i32
  }
  func.func @transform_6(%arg0: i32, %arg1: i32) -> (i32, i32) {
    %c0_i32 = arith.constant 0 : i32
    return %arg0, %arg1 : i32, i32
  }
}

module attributes {stable_mosaic.version = 11 : i64} {
  func.func @_matmul_kernel_1k(%arg0: i32, %arg1: i32, %arg2: memref<128x128xbf16, #tpu.memory_space<vmem>>, %arg3: memref<128x128xbf16, #tpu.memory_space<vmem>>, %arg4: memref<1x128xf32, #tpu.memory_space<vmem>>, %arg5: memref<1x128xf32, #tpu.memory_space<vmem>>, %arg6: memref<1x128xf32, #tpu.memory_space<vmem>>, %arg7: memref<1x128xf32, #tpu.memory_space<vmem>>, %arg8: memref<128x128xbf16, #tpu.memory_space<vmem>>) attributes {dimension_semantics = [#tpu.dimension_semantics<parallel>, #tpu.dimension_semantics<parallel>], iteration_bounds = array<i64: 1, 1>, scalar_prefetch = 0 : i64, scratch_operands = 0 : i64, tpu.core_type = #tpu.core_type<tc>, window_params = [{transform_indices = @transform_0, window_bounds = array<i64: 128, 128>}, {transform_indices = @transform_1, window_bounds = array<i64: 128, 128>}, {pipeline_mode = #tpu.pipeline_mode<synchronous>, transform_indices = @transform_2, window_bounds = array<i64: 1, 128>}, {pipeline_mode = #tpu.pipeline_mode<synchronous>, transform_indices = @transform_3, window_bounds = array<i64: 1, 128>}, {transform_indices = @transform_4, window_bounds = array<i64: 1, 128>}, {transform_indices = @transform_5, window_bounds = array<i64: 1, 128>}, {transform_indices = @transform_6, window_bounds = array<i64: 128, 128>}]} {
    %c0 = arith.constant 0 : index
    %c0_0 = arith.constant 0 : index
    %0 = vector.load %arg2[%c0, %c0_0] : memref<128x128xbf16, #tpu.memory_space<vmem>>, vector<128x128xbf16>
    %1 = arith.extf %0 : vector<128x128xbf16> to vector<128x128xf32>
    %c0_1 = arith.constant 0 : index
    %c0_2 = arith.constant 0 : index
    %2 = vector.load %arg4[%c0_1, %c0_2] : memref<1x128xf32, #tpu.memory_space<vmem>>, vector<1x128xf32>
    %3 = vector.broadcast %2 : vector<1x128xf32> to vector<128x128xf32>
    %4 = arith.mulf %1, %3 : vector<128x128xf32>
    %c0_3 = arith.constant 0 : index
    %c0_4 = arith.constant 0 : index
    %5 = vector.load %arg5[%c0_3, %c0_4] : memref<1x128xf32, #tpu.memory_space<vmem>>, vector<1x128xf32>
    %6 = vector.broadcast %5 : vector<1x128xf32> to vector<128x128xf32>
    %7 = arith.addf %4, %6 : vector<128x128xf32>
    %cst = arith.constant 0.000000e+00 : f32
    %8 = vector.broadcast %cst : f32 to vector<128x128xf32>
    %9 = arith.maximumf %7, %8 : vector<128x128xf32>
    %10 = arith.truncf %9 : vector<128x128xf32> to vector<128x128xbf16>
    %c0_5 = arith.constant 0 : index
    %c0_6 = arith.constant 0 : index
    %11 = vector.load %arg3[%c0_5, %c0_6] : memref<128x128xbf16, #tpu.memory_space<vmem>>, vector<128x128xbf16>
    %cst_7 = arith.constant dense<0.000000e+00> : vector<128x128xf32>
    %12 = tpu.matmul %10, %11, %cst_7 {dimension_numbers = #tpu.dot_dimension_numbers<[1], [0], [0], [1], [0, 0, 1, 1], [], []>} : vector<128x128xbf16>, vector<128x128xbf16>, vector<128x128xf32> -> vector<128x128xf32>
    %c0_8 = arith.constant 0 : index
    %c0_9 = arith.constant 0 : index
    %13 = vector.load %arg6[%c0_8, %c0_9] : memref<1x128xf32, #tpu.memory_space<vmem>>, vector<1x128xf32>
    %14 = vector.broadcast %13 : vector<1x128xf32> to vector<128x128xf32>
    %15 = arith.mulf %12, %14 : vector<128x128xf32>
    %c0_10 = arith.constant 0 : index
    %c0_11 = arith.constant 0 : index
    %16 = vector.load %arg7[%c0_10, %c0_11] : memref<1x128xf32, #tpu.memory_space<vmem>>, vector<1x128xf32>
    %17 = vector.broadcast %16 : vector<1x128xf32> to vector<128x128xf32>
    %18 = arith.addf %15, %17 : vector<128x128xf32>
    %cst_12 = arith.constant 0.000000e+00 : f32
    %19 = vector.broadcast %cst_12 : f32 to vector<128x128xf32>
    %20 = arith.maximumf %18, %19 : vector<128x128xf32>
    %21 = arith.truncf %20 : vector<128x128xf32> to vector<128x128xbf16>
    %c0_13 = arith.constant 0 : index
    %c0_14 = arith.constant 0 : index
    %22 = vector.load %arg8[%c0_13, %c0_14] : memref<128x128xbf16, #tpu.memory_space<vmem>>, vector<128x128xbf16>
    tpu.vector_store %arg8[%c0_13, %c0_14], %21 {strides = array<i32>} : memref<128x128xbf16, #tpu.memory_space<vmem>>, vector<128x128xbf16>,
    return
  }
  func.func @transform_0(%arg0: i32, %arg1: i32) -> (i32, i32) {
    %c0_i32 = arith.constant 0 : i32
    %c0_i32_0 = arith.constant 0 : i32
    return %arg0, %c0_i32 : i32, i32
  }
  func.func @transform_1(%arg0: i32, %arg1: i32) -> (i32, i32) {
    %c0_i32 = arith.constant 0 : i32
    %c0_i32_0 = arith.constant 0 : i32
    return %c0_i32, %arg1 : i32, i32
  }
  func.func @transform_2(%arg0: i32, %arg1: i32) -> (i32, i32) {
    %c0_i32 = arith.constant 0 : i32
    %c0_i32_0 = arith.constant 0 : i32
    %c0_i32_1 = arith.constant 0 : i32
    return %c0_i32, %c0_i32_0 : i32, i32
  }
  func.func @transform_3(%arg0: i32, %arg1: i32) -> (i32, i32) {
    %c0_i32 = arith.constant 0 : i32
    %c0_i32_0 = arith.constant 0 : i32
    %c0_i32_1 = arith.constant 0 : i32
    return %c0_i32, %c0_i32_0 : i32, i32
  }
  func.func @transform_4(%arg0: i32, %arg1: i32) -> (i32, i32) {
    %c0_i32 = arith.constant 0 : i32
    %c0_i32_0 = arith.constant 0 : i32
    return %c0_i32, %arg1 : i32, i32
  }
  func.func @transform_5(%arg0: i32, %arg1: i32) -> (i32, i32) {
    %c0_i32 = arith.constant 0 : i32
    %c0_i32_0 = arith.constant 0 : i32
    return %c0_i32, %arg1 : i32, i32
  }
  func.func @transform_6(%arg0: i32, %arg1: i32) -> (i32, i32) {
    %c0_i32 = arith.constant 0 : i32
    return %arg0, %arg1 : i32, i32
  }
}

module attributes {stable_mosaic.version = 11 : i64} {
  func.func @_matmul_kernel_1k(%arg0: i32, %arg1: i32, %arg2: memref<128x384xbf16, #tpu.memory_space<vmem>>, %arg3: memref<384x128xbf16, #tpu.memory_space<vmem>>, %arg4: memref<1x384xf32, #tpu.memory_space<vmem>>, %arg5: memref<1x384xf32, #tpu.memory_space<vmem>>, %arg6: memref<1x128xf32, #tpu.memory_space<vmem>>, %arg7: memref<1x128xf32, #tpu.memory_space<vmem>>, %arg8: memref<128x128xbf16, #tpu.memory_space<vmem>>) attributes {dimension_semantics = [#tpu.dimension_semantics<parallel>, #tpu.dimension_semantics<parallel>], iteration_bounds = array<i64: 1, 1>, scalar_prefetch = 0 : i64, scratch_operands = 0 : i64, tpu.core_type = #tpu.core_type<tc>, window_params = [{transform_indices = @transform_0, window_bounds = array<i64: 128, 384>}, {transform_indices = @transform_1, window_bounds = array<i64: 384, 128>}, {pipeline_mode = #tpu.pipeline_mode<synchronous>, transform_indices = @transform_2, window_bounds = array<i64: 1, 384>}, {pipeline_mode = #tpu.pipeline_mode<synchronous>, transform_indices = @transform_3, window_bounds = array<i64: 1, 384>}, {transform_indices = @transform_4, window_bounds = array<i64: 1, 128>}, {transform_indices = @transform_5, window_bounds = array<i64: 1, 128>}, {transform_indices = @transform_6, window_bounds = array<i64: 128, 128>}]} {
    %c0 = arith.constant 0 : index
    %c0_0 = arith.constant 0 : index
    %0 = vector.load %arg2[%c0, %c0_0] : memref<128x384xbf16, #tpu.memory_space<vmem>>, vector<128x384xbf16>
    %c0_1 = arith.constant 0 : index
    %c0_2 = arith.constant 0 : index
    %1 = vector.load %arg3[%c0_1, %c0_2] : memref<384x128xbf16, #tpu.memory_space<vmem>>, vector<384x128xbf16>
    %cst = arith.constant dense<0.000000e+00> : vector<128x128xf32>
    %2 = tpu.matmul %0, %1, %cst {dimension_numbers = #tpu.dot_dimension_numbers<[1], [0], [0], [1], [0, 0, 1, 1], [], []>} : vector<128x384xbf16>, vector<384x128xbf16>, vector<128x128xf32> -> vector<128x128xf32>
    %3 = arith.truncf %2 : vector<128x128xf32> to vector<128x128xbf16>
    %c0_3 = arith.constant 0 : index
    %c0_4 = arith.constant 0 : index
    %4 = vector.load %arg8[%c0_3, %c0_4] : memref<128x128xbf16, #tpu.memory_space<vmem>>, vector<128x128xbf16>
    tpu.vector_store %arg8[%c0_3, %c0_4], %3 {strides = array<i32>} : memref<128x128xbf16, #tpu.memory_space<vmem>>, vector<128x128xbf16>,
    return
  }
  func.func @transform_0(%arg0: i32, %arg1: i32) -> (i32, i32) {
    %c0_i32 = arith.constant 0 : i32
    %c0_i32_0 = arith.constant 0 : i32
    return %arg0, %c0_i32 : i32, i32
  }
  func.func @transform_1(%arg0: i32, %arg1: i32) -> (i32, i32) {
    %c0_i32 = arith.constant 0 : i32
    %c0_i32_0 = arith.constant 0 : i32
    return %c0_i32, %arg1 : i32, i32
  }
  func.func @transform_2(%arg0: i32, %arg1: i32) -> (i32, i32) {
    %c0_i32 = arith.constant 0 : i32
    %c0_i32_0 = arith.constant 0 : i32
    %c0_i32_1 = arith.constant 0 : i32
    return %c0_i32, %c0_i32_0 : i32, i32
  }
  func.func @transform_3(%arg0: i32, %arg1: i32) -> (i32, i32) {
    %c0_i32 = arith.constant 0 : i32
    %c0_i32_0 = arith.constant 0 : i32
    %c0_i32_1 = arith.constant 0 : i32
    return %c0_i32, %c0_i32_0 : i32, i32
  }
  func.func @transform_4(%arg0: i32, %arg1: i32) -> (i32, i32) {
    %c0_i32 = arith.constant 0 : i32
    %c0_i32_0 = arith.constant 0 : i32
    return %c0_i32, %arg1 : i32, i32
  }
  func.func @transform_5(%arg0: i32, %arg1: i32) -> (i32, i32) {
    %c0_i32 = arith.constant 0 : i32
    %c0_i32_0 = arith.constant 0 : i32
    return %c0_i32, %arg1 : i32, i32
  }
  func.func @transform_6(%arg0: i32, %arg1: i32) -> (i32, i32) {
    %c0_i32 = arith.constant 0 : i32
    return %arg0, %arg1 : i32, i32
  }
}

module attributes {stable_mosaic.version = 11 : i64} {
  func.func @_pool_kernel(%arg0: i32, %arg1: memref<4x32x128xbf16, #tpu.memory_space<vmem>>, %arg2: memref<1x128xf32, #tpu.memory_space<vmem>>, %arg3: memref<1x128xf32, #tpu.memory_space<vmem>>, %arg4: memref<32x128xbf16, #tpu.memory_space<vmem>>) attributes {dimension_semantics = [#tpu.dimension_semantics<parallel>], iteration_bounds = array<i64: 1>, scalar_prefetch = 0 : i64, scratch_operands = 0 : i64, tpu.core_type = #tpu.core_type<tc>, window_params = [{transform_indices = @transform_0, window_bounds = array<i64: 4, 32, 128>}, {pipeline_mode = #tpu.pipeline_mode<synchronous>, transform_indices = @transform_1, window_bounds = array<i64: 1, 128>}, {pipeline_mode = #tpu.pipeline_mode<synchronous>, transform_indices = @transform_2, window_bounds = array<i64: 1, 128>}, {transform_indices = @transform_3, window_bounds = array<i64: 32, 128>}]} {
    %c0 = arith.constant 0 : index
    %c0_0 = arith.constant 0 : index
    %c0_1 = arith.constant 0 : index
    %0 = vector.load %arg1[%c0, %c0_0, %c0_1] : memref<4x32x128xbf16, #tpu.memory_space<vmem>>, vector<1x32x128xbf16>
    %1 = vector.shape_cast %0 : vector<1x32x128xbf16> to vector<32x128xbf16>
    %2 = arith.extf %1 : vector<32x128xbf16> to vector<32x128xf32>
    %c0_2 = arith.constant 0 : index
    %c0_3 = arith.constant 0 : index
    %3 = vector.load %arg2[%c0_2, %c0_3] : memref<1x128xf32, #tpu.memory_space<vmem>>, vector<1x128xf32>
    %4 = vector.broadcast %3 : vector<1x128xf32> to vector<32x128xf32>
    %5 = arith.mulf %2, %4 : vector<32x128xf32>
    %c0_4 = arith.constant 0 : index
    %c0_5 = arith.constant 0 : index
    %6 = vector.load %arg3[%c0_4, %c0_5] : memref<1x128xf32, #tpu.memory_space<vmem>>, vector<1x128xf32>
    %7 = vector.broadcast %6 : vector<1x128xf32> to vector<32x128xf32>
    %8 = arith.addf %5, %7 : vector<32x128xf32>
    %cst = arith.constant 0.000000e+00 : f32
    %9 = vector.broadcast %cst : f32 to vector<32x128xf32>
    %10 = arith.maximumf %8, %9 : vector<32x128xf32>
    %c1 = arith.constant 1 : index
    %c0_6 = arith.constant 0 : index
    %c0_7 = arith.constant 0 : index
    %11 = vector.load %arg1[%c1, %c0_6, %c0_7] : memref<4x32x128xbf16, #tpu.memory_space<vmem>>, vector<1x32x128xbf16>
    %12 = vector.shape_cast %11 : vector<1x32x128xbf16> to vector<32x128xbf16>
    %13 = arith.extf %12 : vector<32x128xbf16> to vector<32x128xf32>
    %c0_8 = arith.constant 0 : index
    %c0_9 = arith.constant 0 : index
    %14 = vector.load %arg2[%c0_8, %c0_9] : memref<1x128xf32, #tpu.memory_space<vmem>>, vector<1x128xf32>
    %15 = vector.broadcast %14 : vector<1x128xf32> to vector<32x128xf32>
    %16 = arith.mulf %13, %15 : vector<32x128xf32>
    %c0_10 = arith.constant 0 : index
    %c0_11 = arith.constant 0 : index
    %17 = vector.load %arg3[%c0_10, %c0_11] : memref<1x128xf32, #tpu.memory_space<vmem>>, vector<1x128xf32>
    %18 = vector.broadcast %17 : vector<1x128xf32> to vector<32x128xf32>
    %19 = arith.addf %16, %18 : vector<32x128xf32>
    %cst_12 = arith.constant 0.000000e+00 : f32
    %20 = vector.broadcast %cst_12 : f32 to vector<32x128xf32>
    %21 = arith.maximumf %19, %20 : vector<32x128xf32>
    %22 = arith.addf %10, %21 : vector<32x128xf32>
    %c2 = arith.constant 2 : index
    %c0_13 = arith.constant 0 : index
    %c0_14 = arith.constant 0 : index
    %23 = vector.load %arg1[%c2, %c0_13, %c0_14] : memref<4x32x128xbf16, #tpu.memory_space<vmem>>, vector<1x32x128xbf16>
    %24 = vector.shape_cast %23 : vector<1x32x128xbf16> to vector<32x128xbf16>
    %25 = arith.extf %24 : vector<32x128xbf16> to vector<32x128xf32>
    %c0_15 = arith.constant 0 : index
    %c0_16 = arith.constant 0 : index
    %26 = vector.load %arg2[%c0_15, %c0_16] : memref<1x128xf32, #tpu.memory_space<vmem>>, vector<1x128xf32>
    %27 = vector.broadcast %26 : vector<1x128xf32> to vector<32x128xf32>
    %28 = arith.mulf %25, %27 : vector<32x128xf32>
    %c0_17 = arith.constant 0 : index
    %c0_18 = arith.constant 0 : index
    %29 = vector.load %arg3[%c0_17, %c0_18] : memref<1x128xf32, #tpu.memory_space<vmem>>, vector<1x128xf32>
    %30 = vector.broadcast %29 : vector<1x128xf32> to vector<32x128xf32>
    %31 = arith.addf %28, %30 : vector<32x128xf32>
    %cst_19 = arith.constant 0.000000e+00 : f32
    %32 = vector.broadcast %cst_19 : f32 to vector<32x128xf32>
    %33 = arith.maximumf %31, %32 : vector<32x128xf32>
    %34 = arith.addf %22, %33 : vector<32x128xf32>
    %c3 = arith.constant 3 : index
    %c0_20 = arith.constant 0 : index
    %c0_21 = arith.constant 0 : index
    %35 = vector.load %arg1[%c3, %c0_20, %c0_21] : memref<4x32x128xbf16, #tpu.memory_space<vmem>>, vector<1x32x128xbf16>
    %36 = vector.shape_cast %35 : vector<1x32x128xbf16> to vector<32x128xbf16>
    %37 = arith.extf %36 : vector<32x128xbf16> to vector<32x128xf32>
    %c0_22 = arith.constant 0 : index
    %c0_23 = arith.constant 0 : index
    %38 = vector.load %arg2[%c0_22, %c0_23] : memref<1x128xf32, #tpu.memory_space<vmem>>, vector<1x128xf32>
    %39 = vector.broadcast %38 : vector<1x128xf32> to vector<32x128xf32>
    %40 = arith.mulf %37, %39 : vector<32x128xf32>
    %c0_24 = arith.constant 0 : index
    %c0_25 = arith.constant 0 : index
    %41 = vector.load %arg3[%c0_24, %c0_25] : memref<1x128xf32, #tpu.memory_space<vmem>>, vector<1x128xf32>
    %42 = vector.broadcast %41 : vector<1x128xf32> to vector<32x128xf32>
    %43 = arith.addf %40, %42 : vector<32x128xf32>
    %cst_26 = arith.constant 0.000000e+00 : f32
    %44 = vector.broadcast %cst_26 : f32 to vector<32x128xf32>
    %45 = arith.maximumf %43, %44 : vector<32x128xf32>
    %46 = arith.addf %34, %45 : vector<32x128xf32>
    %cst_27 = arith.constant 2.500000e-01 : f32
    %47 = vector.broadcast %cst_27 : f32 to vector<32x128xf32>
    %48 = arith.mulf %46, %47 : vector<32x128xf32>
    %49 = arith.truncf %48 : vector<32x128xf32> to vector<32x128xbf16>
    %c0_28 = arith.constant 0 : index
    %c0_29 = arith.constant 0 : index
    %50 = vector.load %arg4[%c0_28, %c0_29] : memref<32x128xbf16, #tpu.memory_space<vmem>>, vector<32x128xbf16>
    tpu.vector_store %arg4[%c0_28, %c0_29], %49 {strides = array<i32>} : memref<32x128xbf16, #tpu.memory_space<vmem>>, vector<32x128xbf16>,
    return
  }
  func.func @transform_0(%arg0: i32) -> (i32, i32, i32) {
    %c0_i32 = arith.constant 0 : i32
    %c0_i32_0 = arith.constant 0 : i32
    %c0_i32_1 = arith.constant 0 : i32
    return %c0_i32, %arg0, %c0_i32_0 : i32, i32, i32
  }
  func.func @transform_1(%arg0: i32) -> (i32, i32) {
    %c0_i32 = arith.constant 0 : i32
    %c0_i32_0 = arith.constant 0 : i32
    %c0_i32_1 = arith.constant 0 : i32
    return %c0_i32, %c0_i32_0 : i32, i32
  }
  func.func @transform_2(%arg0: i32) -> (i32, i32) {
    %c0_i32 = arith.constant 0 : i32
    %c0_i32_0 = arith.constant 0 : i32
    %c0_i32_1 = arith.constant 0 : i32
    return %c0_i32, %c0_i32_0 : i32, i32
  }
  func.func @transform_3(%arg0: i32) -> (i32, i32) {
    %c0_i32 = arith.constant 0 : i32
    %c0_i32_0 = arith.constant 0 : i32
    return %arg0, %c0_i32 : i32, i32
  }
}

module attributes {stable_mosaic.version = 11 : i64} {
  func.func @_matmul_kernel_1k(%arg0: i32, %arg1: i32, %arg2: memref<32x128xbf16, #tpu.memory_space<vmem>>, %arg3: memref<128x128xbf16, #tpu.memory_space<vmem>>, %arg4: memref<1x128xf32, #tpu.memory_space<vmem>>, %arg5: memref<1x128xf32, #tpu.memory_space<vmem>>, %arg6: memref<1x128xf32, #tpu.memory_space<vmem>>, %arg7: memref<1x128xf32, #tpu.memory_space<vmem>>, %arg8: memref<32x128xbf16, #tpu.memory_space<vmem>>) attributes {dimension_semantics = [#tpu.dimension_semantics<parallel>, #tpu.dimension_semantics<parallel>], iteration_bounds = array<i64: 1, 1>, scalar_prefetch = 0 : i64, scratch_operands = 0 : i64, tpu.core_type = #tpu.core_type<tc>, window_params = [{transform_indices = @transform_0, window_bounds = array<i64: 32, 128>}, {transform_indices = @transform_1, window_bounds = array<i64: 128, 128>}, {pipeline_mode = #tpu.pipeline_mode<synchronous>, transform_indices = @transform_2, window_bounds = array<i64: 1, 128>}, {pipeline_mode = #tpu.pipeline_mode<synchronous>, transform_indices = @transform_3, window_bounds = array<i64: 1, 128>}, {transform_indices = @transform_4, window_bounds = array<i64: 1, 128>}, {transform_indices = @transform_5, window_bounds = array<i64: 1, 128>}, {transform_indices = @transform_6, window_bounds = array<i64: 32, 128>}]} {
    %c0 = arith.constant 0 : index
    %c0_0 = arith.constant 0 : index
    %0 = vector.load %arg2[%c0, %c0_0] : memref<32x128xbf16, #tpu.memory_space<vmem>>, vector<32x128xbf16>
    %c0_1 = arith.constant 0 : index
    %c0_2 = arith.constant 0 : index
    %1 = vector.load %arg3[%c0_1, %c0_2] : memref<128x128xbf16, #tpu.memory_space<vmem>>, vector<128x128xbf16>
    %cst = arith.constant dense<0.000000e+00> : vector<32x128xf32>
    %2 = tpu.matmul %0, %1, %cst {dimension_numbers = #tpu.dot_dimension_numbers<[1], [0], [0], [1], [0, 0, 1, 1], [], []>} : vector<32x128xbf16>, vector<128x128xbf16>, vector<32x128xf32> -> vector<32x128xf32>
    %3 = arith.truncf %2 : vector<32x128xf32> to vector<32x128xbf16>
    %c0_3 = arith.constant 0 : index
    %c0_4 = arith.constant 0 : index
    %4 = vector.load %arg8[%c0_3, %c0_4] : memref<32x128xbf16, #tpu.memory_space<vmem>>, vector<32x128xbf16>
    tpu.vector_store %arg8[%c0_3, %c0_4], %3 {strides = array<i32>} : memref<32x128xbf16, #tpu.memory_space<vmem>>, vector<32x128xbf16>,
    return
  }
  func.func @transform_0(%arg0: i32, %arg1: i32) -> (i32, i32) {
    %c0_i32 = arith.constant 0 : i32
    %c0_i32_0 = arith.constant 0 : i32
    return %arg0, %c0_i32 : i32, i32
  }
  func.func @transform_1(%arg0: i32, %arg1: i32) -> (i32, i32) {
    %c0_i32 = arith.constant 0 : i32
    %c0_i32_0 = arith.constant 0 : i32
    return %c0_i32, %arg1 : i32, i32
  }
  func.func @transform_2(%arg0: i32, %arg1: i32) -> (i32, i32) {
    %c0_i32 = arith.constant 0 : i32
    %c0_i32_0 = arith.constant 0 : i32
    %c0_i32_1 = arith.constant 0 : i32
    return %c0_i32, %c0_i32_0 : i32, i32
  }
  func.func @transform_3(%arg0: i32, %arg1: i32) -> (i32, i32) {
    %c0_i32 = arith.constant 0 : i32
    %c0_i32_0 = arith.constant 0 : i32
    %c0_i32_1 = arith.constant 0 : i32
    return %c0_i32, %c0_i32_0 : i32, i32
  }
  func.func @transform_4(%arg0: i32, %arg1: i32) -> (i32, i32) {
    %c0_i32 = arith.constant 0 : i32
    %c0_i32_0 = arith.constant 0 : i32
    return %c0_i32, %arg1 : i32, i32
  }
  func.func @transform_5(%arg0: i32, %arg1: i32) -> (i32, i32) {
    %c0_i32 = arith.constant 0 : i32
    %c0_i32_0 = arith.constant 0 : i32
    return %c0_i32, %arg1 : i32, i32
  }
  func.func @transform_6(%arg0: i32, %arg1: i32) -> (i32, i32) {
    %c0_i32 = arith.constant 0 : i32
    return %arg0, %arg1 : i32, i32
  }
}

module attributes {stable_mosaic.version = 11 : i64} {
  func.func @_matmul_kernel_1k(%arg0: i32, %arg1: i32, %arg2: memref<32x128xbf16, #tpu.memory_space<vmem>>, %arg3: memref<128x128xbf16, #tpu.memory_space<vmem>>, %arg4: memref<1x128xf32, #tpu.memory_space<vmem>>, %arg5: memref<1x128xf32, #tpu.memory_space<vmem>>, %arg6: memref<1x128xf32, #tpu.memory_space<vmem>>, %arg7: memref<1x128xf32, #tpu.memory_space<vmem>>, %arg8: memref<32x128xbf16, #tpu.memory_space<vmem>>) attributes {dimension_semantics = [#tpu.dimension_semantics<parallel>, #tpu.dimension_semantics<parallel>], iteration_bounds = array<i64: 1, 1>, scalar_prefetch = 0 : i64, scratch_operands = 0 : i64, tpu.core_type = #tpu.core_type<tc>, window_params = [{transform_indices = @transform_0, window_bounds = array<i64: 32, 128>}, {transform_indices = @transform_1, window_bounds = array<i64: 128, 128>}, {pipeline_mode = #tpu.pipeline_mode<synchronous>, transform_indices = @transform_2, window_bounds = array<i64: 1, 128>}, {pipeline_mode = #tpu.pipeline_mode<synchronous>, transform_indices = @transform_3, window_bounds = array<i64: 1, 128>}, {transform_indices = @transform_4, window_bounds = array<i64: 1, 128>}, {transform_indices = @transform_5, window_bounds = array<i64: 1, 128>}, {transform_indices = @transform_6, window_bounds = array<i64: 32, 128>}]} {
    %c0 = arith.constant 0 : index
    %c0_0 = arith.constant 0 : index
    %0 = vector.load %arg2[%c0, %c0_0] : memref<32x128xbf16, #tpu.memory_space<vmem>>, vector<32x128xbf16>
    %1 = arith.extf %0 : vector<32x128xbf16> to vector<32x128xf32>
    %c0_1 = arith.constant 0 : index
    %c0_2 = arith.constant 0 : index
    %2 = vector.load %arg4[%c0_1, %c0_2] : memref<1x128xf32, #tpu.memory_space<vmem>>, vector<1x128xf32>
    %3 = vector.broadcast %2 : vector<1x128xf32> to vector<32x128xf32>
    %4 = arith.mulf %1, %3 : vector<32x128xf32>
    %c0_3 = arith.constant 0 : index
    %c0_4 = arith.constant 0 : index
    %5 = vector.load %arg5[%c0_3, %c0_4] : memref<1x128xf32, #tpu.memory_space<vmem>>, vector<1x128xf32>
    %6 = vector.broadcast %5 : vector<1x128xf32> to vector<32x128xf32>
    %7 = arith.addf %4, %6 : vector<32x128xf32>
    %cst = arith.constant 0.000000e+00 : f32
    %8 = vector.broadcast %cst : f32 to vector<32x128xf32>
    %9 = arith.maximumf %7, %8 : vector<32x128xf32>
    %10 = arith.truncf %9 : vector<32x128xf32> to vector<32x128xbf16>
    %c0_5 = arith.constant 0 : index
    %c0_6 = arith.constant 0 : index
    %11 = vector.load %arg3[%c0_5, %c0_6] : memref<128x128xbf16, #tpu.memory_space<vmem>>, vector<128x128xbf16>
    %cst_7 = arith.constant dense<0.000000e+00> : vector<32x128xf32>
    %12 = tpu.matmul %10, %11, %cst_7 {dimension_numbers = #tpu.dot_dimension_numbers<[1], [0], [0], [1], [0, 0, 1, 1], [], []>} : vector<32x128xbf16>, vector<128x128xbf16>, vector<32x128xf32> -> vector<32x128xf32>
    %c0_8 = arith.constant 0 : index
    %c0_9 = arith.constant 0 : index
    %13 = vector.load %arg6[%c0_8, %c0_9] : memref<1x128xf32, #tpu.memory_space<vmem>>, vector<1x128xf32>
    %14 = vector.broadcast %13 : vector<1x128xf32> to vector<32x128xf32>
    %15 = arith.mulf %12, %14 : vector<32x128xf32>
    %c0_10 = arith.constant 0 : index
    %c0_11 = arith.constant 0 : index
    %16 = vector.load %arg7[%c0_10, %c0_11] : memref<1x128xf32, #tpu.memory_space<vmem>>, vector<1x128xf32>
    %17 = vector.broadcast %16 : vector<1x128xf32> to vector<32x128xf32>
    %18 = arith.addf %15, %17 : vector<32x128xf32>
    %cst_12 = arith.constant 0.000000e+00 : f32
    %19 = vector.broadcast %cst_12 : f32 to vector<32x128xf32>
    %20 = arith.maximumf %18, %19 : vector<32x128xf32>
    %21 = arith.truncf %20 : vector<32x128xf32> to vector<32x128xbf16>
    %c0_13 = arith.constant 0 : index
    %c0_14 = arith.constant 0 : index
    %22 = vector.load %arg8[%c0_13, %c0_14] : memref<32x128xbf16, #tpu.memory_space<vmem>>, vector<32x128xbf16>
    tpu.vector_store %arg8[%c0_13, %c0_14], %21 {strides = array<i32>} : memref<32x128xbf16, #tpu.memory_space<vmem>>, vector<32x128xbf16>,
    return
  }
  func.func @transform_0(%arg0: i32, %arg1: i32) -> (i32, i32) {
    %c0_i32 = arith.constant 0 : i32
    %c0_i32_0 = arith.constant 0 : i32
    return %arg0, %c0_i32 : i32, i32
  }
  func.func @transform_1(%arg0: i32, %arg1: i32) -> (i32, i32) {
    %c0_i32 = arith.constant 0 : i32
    %c0_i32_0 = arith.constant 0 : i32
    return %c0_i32, %arg1 : i32, i32
  }
  func.func @transform_2(%arg0: i32, %arg1: i32) -> (i32, i32) {
    %c0_i32 = arith.constant 0 : i32
    %c0_i32_0 = arith.constant 0 : i32
    %c0_i32_1 = arith.constant 0 : i32
    return %c0_i32, %c0_i32_0 : i32, i32
  }
  func.func @transform_3(%arg0: i32, %arg1: i32) -> (i32, i32) {
    %c0_i32 = arith.constant 0 : i32
    %c0_i32_0 = arith.constant 0 : i32
    %c0_i32_1 = arith.constant 0 : i32
    return %c0_i32, %c0_i32_0 : i32, i32
  }
  func.func @transform_4(%arg0: i32, %arg1: i32) -> (i32, i32) {
    %c0_i32 = arith.constant 0 : i32
    %c0_i32_0 = arith.constant 0 : i32
    return %c0_i32, %arg1 : i32, i32
  }
  func.func @transform_5(%arg0: i32, %arg1: i32) -> (i32, i32) {
    %c0_i32 = arith.constant 0 : i32
    %c0_i32_0 = arith.constant 0 : i32
    return %c0_i32, %arg1 : i32, i32
  }
  func.func @transform_6(%arg0: i32, %arg1: i32) -> (i32, i32) {
    %c0_i32 = arith.constant 0 : i32
    return %arg0, %arg1 : i32, i32
  }
}

module attributes {stable_mosaic.version = 11 : i64} {
  func.func @_matmul_kernel_1k(%arg0: i32, %arg1: i32, %arg2: memref<32x384xbf16, #tpu.memory_space<vmem>>, %arg3: memref<384x128xbf16, #tpu.memory_space<vmem>>, %arg4: memref<1x384xf32, #tpu.memory_space<vmem>>, %arg5: memref<1x384xf32, #tpu.memory_space<vmem>>, %arg6: memref<1x128xf32, #tpu.memory_space<vmem>>, %arg7: memref<1x128xf32, #tpu.memory_space<vmem>>, %arg8: memref<32x128xbf16, #tpu.memory_space<vmem>>) attributes {dimension_semantics = [#tpu.dimension_semantics<parallel>, #tpu.dimension_semantics<parallel>], iteration_bounds = array<i64: 1, 1>, scalar_prefetch = 0 : i64, scratch_operands = 0 : i64, tpu.core_type = #tpu.core_type<tc>, window_params = [{transform_indices = @transform_0, window_bounds = array<i64: 32, 384>}, {transform_indices = @transform_1, window_bounds = array<i64: 384, 128>}, {pipeline_mode = #tpu.pipeline_mode<synchronous>, transform_indices = @transform_2, window_bounds = array<i64: 1, 384>}, {pipeline_mode = #tpu.pipeline_mode<synchronous>, transform_indices = @transform_3, window_bounds = array<i64: 1, 384>}, {transform_indices = @transform_4, window_bounds = array<i64: 1, 128>}, {transform_indices = @transform_5, window_bounds = array<i64: 1, 128>}, {transform_indices = @transform_6, window_bounds = array<i64: 32, 128>}]} {
    %c0 = arith.constant 0 : index
    %c0_0 = arith.constant 0 : index
    %0 = vector.load %arg2[%c0, %c0_0] : memref<32x384xbf16, #tpu.memory_space<vmem>>, vector<32x384xbf16>
    %c0_1 = arith.constant 0 : index
    %c0_2 = arith.constant 0 : index
    %1 = vector.load %arg3[%c0_1, %c0_2] : memref<384x128xbf16, #tpu.memory_space<vmem>>, vector<384x128xbf16>
    %cst = arith.constant dense<0.000000e+00> : vector<32x128xf32>
    %2 = tpu.matmul %0, %1, %cst {dimension_numbers = #tpu.dot_dimension_numbers<[1], [0], [0], [1], [0, 0, 1, 1], [], []>} : vector<32x384xbf16>, vector<384x128xbf16>, vector<32x128xf32> -> vector<32x128xf32>
    %3 = arith.truncf %2 : vector<32x128xf32> to vector<32x128xbf16>
    %c0_3 = arith.constant 0 : index
    %c0_4 = arith.constant 0 : index
    %4 = vector.load %arg8[%c0_3, %c0_4] : memref<32x128xbf16, #tpu.memory_space<vmem>>, vector<32x128xbf16>
    tpu.vector_store %arg8[%c0_3, %c0_4], %3 {strides = array<i32>} : memref<32x128xbf16, #tpu.memory_space<vmem>>, vector<32x128xbf16>,
    return
  }
  func.func @transform_0(%arg0: i32, %arg1: i32) -> (i32, i32) {
    %c0_i32 = arith.constant 0 : i32
    %c0_i32_0 = arith.constant 0 : i32
    return %arg0, %c0_i32 : i32, i32
  }
  func.func @transform_1(%arg0: i32, %arg1: i32) -> (i32, i32) {
    %c0_i32 = arith.constant 0 : i32
    %c0_i32_0 = arith.constant 0 : i32
    return %c0_i32, %arg1 : i32, i32
  }
  func.func @transform_2(%arg0: i32, %arg1: i32) -> (i32, i32) {
    %c0_i32 = arith.constant 0 : i32
    %c0_i32_0 = arith.constant 0 : i32
    %c0_i32_1 = arith.constant 0 : i32
    return %c0_i32, %c0_i32_0 : i32, i32
  }
  func.func @transform_3(%arg0: i32, %arg1: i32) -> (i32, i32) {
    %c0_i32 = arith.constant 0 : i32
    %c0_i32_0 = arith.constant 0 : i32
    %c0_i32_1 = arith.constant 0 : i32
    return %c0_i32, %c0_i32_0 : i32, i32
  }
  func.func @transform_4(%arg0: i32, %arg1: i32) -> (i32, i32) {
    %c0_i32 = arith.constant 0 : i32
    %c0_i32_0 = arith.constant 0 : i32
    return %c0_i32, %arg1 : i32, i32
  }
  func.func @transform_5(%arg0: i32, %arg1: i32) -> (i32, i32) {
    %c0_i32 = arith.constant 0 : i32
    %c0_i32_0 = arith.constant 0 : i32
    return %c0_i32, %arg1 : i32, i32
  }
  func.func @transform_6(%arg0: i32, %arg1: i32) -> (i32, i32) {
    %c0_i32 = arith.constant 0 : i32
    return %arg0, %arg1 : i32, i32
  }
}

module attributes {stable_mosaic.version = 11 : i64} {
  func.func @_pool_kernel(%arg0: i32, %arg1: memref<4x8x128xbf16, #tpu.memory_space<vmem>>, %arg2: memref<1x128xf32, #tpu.memory_space<vmem>>, %arg3: memref<1x128xf32, #tpu.memory_space<vmem>>, %arg4: memref<8x128xbf16, #tpu.memory_space<vmem>>) attributes {dimension_semantics = [#tpu.dimension_semantics<parallel>], iteration_bounds = array<i64: 1>, scalar_prefetch = 0 : i64, scratch_operands = 0 : i64, tpu.core_type = #tpu.core_type<tc>, window_params = [{transform_indices = @transform_0, window_bounds = array<i64: 4, 8, 128>}, {pipeline_mode = #tpu.pipeline_mode<synchronous>, transform_indices = @transform_1, window_bounds = array<i64: 1, 128>}, {pipeline_mode = #tpu.pipeline_mode<synchronous>, transform_indices = @transform_2, window_bounds = array<i64: 1, 128>}, {transform_indices = @transform_3, window_bounds = array<i64: 8, 128>}]} {
    %c0 = arith.constant 0 : index
    %c0_0 = arith.constant 0 : index
    %c0_1 = arith.constant 0 : index
    %0 = vector.load %arg1[%c0, %c0_0, %c0_1] : memref<4x8x128xbf16, #tpu.memory_space<vmem>>, vector<1x8x128xbf16>
    %1 = vector.shape_cast %0 : vector<1x8x128xbf16> to vector<8x128xbf16>
    %2 = arith.extf %1 : vector<8x128xbf16> to vector<8x128xf32>
    %c0_2 = arith.constant 0 : index
    %c0_3 = arith.constant 0 : index
    %3 = vector.load %arg2[%c0_2, %c0_3] : memref<1x128xf32, #tpu.memory_space<vmem>>, vector<1x128xf32>
    %4 = vector.broadcast %3 : vector<1x128xf32> to vector<8x128xf32>
    %5 = arith.mulf %2, %4 : vector<8x128xf32>
    %c0_4 = arith.constant 0 : index
    %c0_5 = arith.constant 0 : index
    %6 = vector.load %arg3[%c0_4, %c0_5] : memref<1x128xf32, #tpu.memory_space<vmem>>, vector<1x128xf32>
    %7 = vector.broadcast %6 : vector<1x128xf32> to vector<8x128xf32>
    %8 = arith.addf %5, %7 : vector<8x128xf32>
    %cst = arith.constant 0.000000e+00 : f32
    %9 = vector.broadcast %cst : f32 to vector<8x128xf32>
    %10 = arith.maximumf %8, %9 : vector<8x128xf32>
    %c1 = arith.constant 1 : index
    %c0_6 = arith.constant 0 : index
    %c0_7 = arith.constant 0 : index
    %11 = vector.load %arg1[%c1, %c0_6, %c0_7] : memref<4x8x128xbf16, #tpu.memory_space<vmem>>, vector<1x8x128xbf16>
    %12 = vector.shape_cast %11 : vector<1x8x128xbf16> to vector<8x128xbf16>
    %13 = arith.extf %12 : vector<8x128xbf16> to vector<8x128xf32>
    %c0_8 = arith.constant 0 : index
    %c0_9 = arith.constant 0 : index
    %14 = vector.load %arg2[%c0_8, %c0_9] : memref<1x128xf32, #tpu.memory_space<vmem>>, vector<1x128xf32>
    %15 = vector.broadcast %14 : vector<1x128xf32> to vector<8x128xf32>
    %16 = arith.mulf %13, %15 : vector<8x128xf32>
    %c0_10 = arith.constant 0 : index
    %c0_11 = arith.constant 0 : index
    %17 = vector.load %arg3[%c0_10, %c0_11] : memref<1x128xf32, #tpu.memory_space<vmem>>, vector<1x128xf32>
    %18 = vector.broadcast %17 : vector<1x128xf32> to vector<8x128xf32>
    %19 = arith.addf %16, %18 : vector<8x128xf32>
    %cst_12 = arith.constant 0.000000e+00 : f32
    %20 = vector.broadcast %cst_12 : f32 to vector<8x128xf32>
    %21 = arith.maximumf %19, %20 : vector<8x128xf32>
    %22 = arith.addf %10, %21 : vector<8x128xf32>
    %c2 = arith.constant 2 : index
    %c0_13 = arith.constant 0 : index
    %c0_14 = arith.constant 0 : index
    %23 = vector.load %arg1[%c2, %c0_13, %c0_14] : memref<4x8x128xbf16, #tpu.memory_space<vmem>>, vector<1x8x128xbf16>
    %24 = vector.shape_cast %23 : vector<1x8x128xbf16> to vector<8x128xbf16>
    %25 = arith.extf %24 : vector<8x128xbf16> to vector<8x128xf32>
    %c0_15 = arith.constant 0 : index
    %c0_16 = arith.constant 0 : index
    %26 = vector.load %arg2[%c0_15, %c0_16] : memref<1x128xf32, #tpu.memory_space<vmem>>, vector<1x128xf32>
    %27 = vector.broadcast %26 : vector<1x128xf32> to vector<8x128xf32>
    %28 = arith.mulf %25, %27 : vector<8x128xf32>
    %c0_17 = arith.constant 0 : index
    %c0_18 = arith.constant 0 : index
    %29 = vector.load %arg3[%c0_17, %c0_18] : memref<1x128xf32, #tpu.memory_space<vmem>>, vector<1x128xf32>
    %30 = vector.broadcast %29 : vector<1x128xf32> to vector<8x128xf32>
    %31 = arith.addf %28, %30 : vector<8x128xf32>
    %cst_19 = arith.constant 0.000000e+00 : f32
    %32 = vector.broadcast %cst_19 : f32 to vector<8x128xf32>
    %33 = arith.maximumf %31, %32 : vector<8x128xf32>
    %34 = arith.addf %22, %33 : vector<8x128xf32>
    %c3 = arith.constant 3 : index
    %c0_20 = arith.constant 0 : index
    %c0_21 = arith.constant 0 : index
    %35 = vector.load %arg1[%c3, %c0_20, %c0_21] : memref<4x8x128xbf16, #tpu.memory_space<vmem>>, vector<1x8x128xbf16>
    %36 = vector.shape_cast %35 : vector<1x8x128xbf16> to vector<8x128xbf16>
    %37 = arith.extf %36 : vector<8x128xbf16> to vector<8x128xf32>
    %c0_22 = arith.constant 0 : index
    %c0_23 = arith.constant 0 : index
    %38 = vector.load %arg2[%c0_22, %c0_23] : memref<1x128xf32, #tpu.memory_space<vmem>>, vector<1x128xf32>
    %39 = vector.broadcast %38 : vector<1x128xf32> to vector<8x128xf32>
    %40 = arith.mulf %37, %39 : vector<8x128xf32>
    %c0_24 = arith.constant 0 : index
    %c0_25 = arith.constant 0 : index
    %41 = vector.load %arg3[%c0_24, %c0_25] : memref<1x128xf32, #tpu.memory_space<vmem>>, vector<1x128xf32>
    %42 = vector.broadcast %41 : vector<1x128xf32> to vector<8x128xf32>
    %43 = arith.addf %40, %42 : vector<8x128xf32>
    %cst_26 = arith.constant 0.000000e+00 : f32
    %44 = vector.broadcast %cst_26 : f32 to vector<8x128xf32>
    %45 = arith.maximumf %43, %44 : vector<8x128xf32>
    %46 = arith.addf %34, %45 : vector<8x128xf32>
    %cst_27 = arith.constant 2.500000e-01 : f32
    %47 = vector.broadcast %cst_27 : f32 to vector<8x128xf32>
    %48 = arith.mulf %46, %47 : vector<8x128xf32>
    %49 = arith.truncf %48 : vector<8x128xf32> to vector<8x128xbf16>
    %c0_28 = arith.constant 0 : index
    %c0_29 = arith.constant 0 : index
    %50 = vector.load %arg4[%c0_28, %c0_29] : memref<8x128xbf16, #tpu.memory_space<vmem>>, vector<8x128xbf16>
    tpu.vector_store %arg4[%c0_28, %c0_29], %49 {strides = array<i32>} : memref<8x128xbf16, #tpu.memory_space<vmem>>, vector<8x128xbf16>,
    return
  }
  func.func @transform_0(%arg0: i32) -> (i32, i32, i32) {
    %c0_i32 = arith.constant 0 : i32
    %c0_i32_0 = arith.constant 0 : i32
    %c0_i32_1 = arith.constant 0 : i32
    return %c0_i32, %arg0, %c0_i32_0 : i32, i32, i32
  }
  func.func @transform_1(%arg0: i32) -> (i32, i32) {
    %c0_i32 = arith.constant 0 : i32
    %c0_i32_0 = arith.constant 0 : i32
    %c0_i32_1 = arith.constant 0 : i32
    return %c0_i32, %c0_i32_0 : i32, i32
  }
  func.func @transform_2(%arg0: i32) -> (i32, i32) {
    %c0_i32 = arith.constant 0 : i32
    %c0_i32_0 = arith.constant 0 : i32
    %c0_i32_1 = arith.constant 0 : i32
    return %c0_i32, %c0_i32_0 : i32, i32
  }
  func.func @transform_3(%arg0: i32) -> (i32, i32) {
    %c0_i32 = arith.constant 0 : i32
    %c0_i32_0 = arith.constant 0 : i32
    return %arg0, %c0_i32 : i32, i32
  }
}

module attributes {stable_mosaic.version = 11 : i64} {
  func.func @_matmul_kernel_1k(%arg0: i32, %arg1: i32, %arg2: memref<8x128xbf16, #tpu.memory_space<vmem>>, %arg3: memref<128x128xbf16, #tpu.memory_space<vmem>>, %arg4: memref<1x128xf32, #tpu.memory_space<vmem>>, %arg5: memref<1x128xf32, #tpu.memory_space<vmem>>, %arg6: memref<1x128xf32, #tpu.memory_space<vmem>>, %arg7: memref<1x128xf32, #tpu.memory_space<vmem>>, %arg8: memref<8x128xbf16, #tpu.memory_space<vmem>>) attributes {dimension_semantics = [#tpu.dimension_semantics<parallel>, #tpu.dimension_semantics<parallel>], iteration_bounds = array<i64: 1, 1>, scalar_prefetch = 0 : i64, scratch_operands = 0 : i64, tpu.core_type = #tpu.core_type<tc>, window_params = [{transform_indices = @transform_0, window_bounds = array<i64: 8, 128>}, {transform_indices = @transform_1, window_bounds = array<i64: 128, 128>}, {pipeline_mode = #tpu.pipeline_mode<synchronous>, transform_indices = @transform_2, window_bounds = array<i64: 1, 128>}, {pipeline_mode = #tpu.pipeline_mode<synchronous>, transform_indices = @transform_3, window_bounds = array<i64: 1, 128>}, {transform_indices = @transform_4, window_bounds = array<i64: 1, 128>}, {transform_indices = @transform_5, window_bounds = array<i64: 1, 128>}, {transform_indices = @transform_6, window_bounds = array<i64: 8, 128>}]} {
    %c0 = arith.constant 0 : index
    %c0_0 = arith.constant 0 : index
    %0 = vector.load %arg2[%c0, %c0_0] : memref<8x128xbf16, #tpu.memory_space<vmem>>, vector<8x128xbf16>
    %c0_1 = arith.constant 0 : index
    %c0_2 = arith.constant 0 : index
    %1 = vector.load %arg3[%c0_1, %c0_2] : memref<128x128xbf16, #tpu.memory_space<vmem>>, vector<128x128xbf16>
    %cst = arith.constant dense<0.000000e+00> : vector<8x128xf32>
    %2 = tpu.matmul %0, %1, %cst {dimension_numbers = #tpu.dot_dimension_numbers<[1], [0], [0], [1], [0, 0, 1, 1], [], []>} : vector<8x128xbf16>, vector<128x128xbf16>, vector<8x128xf32> -> vector<8x128xf32>
    %3 = arith.truncf %2 : vector<8x128xf32> to vector<8x128xbf16>
    %c0_3 = arith.constant 0 : index
    %c0_4 = arith.constant 0 : index
    %4 = vector.load %arg8[%c0_3, %c0_4] : memref<8x128xbf16, #tpu.memory_space<vmem>>, vector<8x128xbf16>
    tpu.vector_store %arg8[%c0_3, %c0_4], %3 {strides = array<i32>} : memref<8x128xbf16, #tpu.memory_space<vmem>>, vector<8x128xbf16>,
    return
  }
  func.func @transform_0(%arg0: i32, %arg1: i32) -> (i32, i32) {
    %c0_i32 = arith.constant 0 : i32
    %c0_i32_0 = arith.constant 0 : i32
    return %arg0, %c0_i32 : i32, i32
  }
  func.func @transform_1(%arg0: i32, %arg1: i32) -> (i32, i32) {
    %c0_i32 = arith.constant 0 : i32
    %c0_i32_0 = arith.constant 0 : i32
    return %c0_i32, %arg1 : i32, i32
  }
  func.func @transform_2(%arg0: i32, %arg1: i32) -> (i32, i32) {
    %c0_i32 = arith.constant 0 : i32
    %c0_i32_0 = arith.constant 0 : i32
    %c0_i32_1 = arith.constant 0 : i32
    return %c0_i32, %c0_i32_0 : i32, i32
  }
  func.func @transform_3(%arg0: i32, %arg1: i32) -> (i32, i32) {
    %c0_i32 = arith.constant 0 : i32
    %c0_i32_0 = arith.constant 0 : i32
    %c0_i32_1 = arith.constant 0 : i32
    return %c0_i32, %c0_i32_0 : i32, i32
  }
  func.func @transform_4(%arg0: i32, %arg1: i32) -> (i32, i32) {
    %c0_i32 = arith.constant 0 : i32
    %c0_i32_0 = arith.constant 0 : i32
    return %c0_i32, %arg1 : i32, i32
  }
  func.func @transform_5(%arg0: i32, %arg1: i32) -> (i32, i32) {
    %c0_i32 = arith.constant 0 : i32
    %c0_i32_0 = arith.constant 0 : i32
    return %c0_i32, %arg1 : i32, i32
  }
  func.func @transform_6(%arg0: i32, %arg1: i32) -> (i32, i32) {
    %c0_i32 = arith.constant 0 : i32
    return %arg0, %arg1 : i32, i32
  }
}

module attributes {stable_mosaic.version = 11 : i64} {
  func.func @_matmul_kernel_1k(%arg0: i32, %arg1: i32, %arg2: memref<8x128xbf16, #tpu.memory_space<vmem>>, %arg3: memref<128x128xbf16, #tpu.memory_space<vmem>>, %arg4: memref<1x128xf32, #tpu.memory_space<vmem>>, %arg5: memref<1x128xf32, #tpu.memory_space<vmem>>, %arg6: memref<1x128xf32, #tpu.memory_space<vmem>>, %arg7: memref<1x128xf32, #tpu.memory_space<vmem>>, %arg8: memref<8x128xbf16, #tpu.memory_space<vmem>>) attributes {dimension_semantics = [#tpu.dimension_semantics<parallel>, #tpu.dimension_semantics<parallel>], iteration_bounds = array<i64: 1, 1>, scalar_prefetch = 0 : i64, scratch_operands = 0 : i64, tpu.core_type = #tpu.core_type<tc>, window_params = [{transform_indices = @transform_0, window_bounds = array<i64: 8, 128>}, {transform_indices = @transform_1, window_bounds = array<i64: 128, 128>}, {pipeline_mode = #tpu.pipeline_mode<synchronous>, transform_indices = @transform_2, window_bounds = array<i64: 1, 128>}, {pipeline_mode = #tpu.pipeline_mode<synchronous>, transform_indices = @transform_3, window_bounds = array<i64: 1, 128>}, {transform_indices = @transform_4, window_bounds = array<i64: 1, 128>}, {transform_indices = @transform_5, window_bounds = array<i64: 1, 128>}, {transform_indices = @transform_6, window_bounds = array<i64: 8, 128>}]} {
    %c0 = arith.constant 0 : index
    %c0_0 = arith.constant 0 : index
    %0 = vector.load %arg2[%c0, %c0_0] : memref<8x128xbf16, #tpu.memory_space<vmem>>, vector<8x128xbf16>
    %1 = arith.extf %0 : vector<8x128xbf16> to vector<8x128xf32>
    %c0_1 = arith.constant 0 : index
    %c0_2 = arith.constant 0 : index
    %2 = vector.load %arg4[%c0_1, %c0_2] : memref<1x128xf32, #tpu.memory_space<vmem>>, vector<1x128xf32>
    %3 = vector.broadcast %2 : vector<1x128xf32> to vector<8x128xf32>
    %4 = arith.mulf %1, %3 : vector<8x128xf32>
    %c0_3 = arith.constant 0 : index
    %c0_4 = arith.constant 0 : index
    %5 = vector.load %arg5[%c0_3, %c0_4] : memref<1x128xf32, #tpu.memory_space<vmem>>, vector<1x128xf32>
    %6 = vector.broadcast %5 : vector<1x128xf32> to vector<8x128xf32>
    %7 = arith.addf %4, %6 : vector<8x128xf32>
    %cst = arith.constant 0.000000e+00 : f32
    %8 = vector.broadcast %cst : f32 to vector<8x128xf32>
    %9 = arith.maximumf %7, %8 : vector<8x128xf32>
    %10 = arith.truncf %9 : vector<8x128xf32> to vector<8x128xbf16>
    %c0_5 = arith.constant 0 : index
    %c0_6 = arith.constant 0 : index
    %11 = vector.load %arg3[%c0_5, %c0_6] : memref<128x128xbf16, #tpu.memory_space<vmem>>, vector<128x128xbf16>
    %cst_7 = arith.constant dense<0.000000e+00> : vector<8x128xf32>
    %12 = tpu.matmul %10, %11, %cst_7 {dimension_numbers = #tpu.dot_dimension_numbers<[1], [0], [0], [1], [0, 0, 1, 1], [], []>} : vector<8x128xbf16>, vector<128x128xbf16>, vector<8x128xf32> -> vector<8x128xf32>
    %c0_8 = arith.constant 0 : index
    %c0_9 = arith.constant 0 : index
    %13 = vector.load %arg6[%c0_8, %c0_9] : memref<1x128xf32, #tpu.memory_space<vmem>>, vector<1x128xf32>
    %14 = vector.broadcast %13 : vector<1x128xf32> to vector<8x128xf32>
    %15 = arith.mulf %12, %14 : vector<8x128xf32>
    %c0_10 = arith.constant 0 : index
    %c0_11 = arith.constant 0 : index
    %16 = vector.load %arg7[%c0_10, %c0_11] : memref<1x128xf32, #tpu.memory_space<vmem>>, vector<1x128xf32>
    %17 = vector.broadcast %16 : vector<1x128xf32> to vector<8x128xf32>
    %18 = arith.addf %15, %17 : vector<8x128xf32>
    %cst_12 = arith.constant 0.000000e+00 : f32
    %19 = vector.broadcast %cst_12 : f32 to vector<8x128xf32>
    %20 = arith.maximumf %18, %19 : vector<8x128xf32>
    %21 = arith.truncf %20 : vector<8x128xf32> to vector<8x128xbf16>
    %c0_13 = arith.constant 0 : index
    %c0_14 = arith.constant 0 : index
    %22 = vector.load %arg8[%c0_13, %c0_14] : memref<8x128xbf16, #tpu.memory_space<vmem>>, vector<8x128xbf16>
    tpu.vector_store %arg8[%c0_13, %c0_14], %21 {strides = array<i32>} : memref<8x128xbf16, #tpu.memory_space<vmem>>, vector<8x128xbf16>,
    return
  }
  func.func @transform_0(%arg0: i32, %arg1: i32) -> (i32, i32) {
    %c0_i32 = arith.constant 0 : i32
    %c0_i32_0 = arith.constant 0 : i32
    return %arg0, %c0_i32 : i32, i32
  }
  func.func @transform_1(%arg0: i32, %arg1: i32) -> (i32, i32) {
    %c0_i32 = arith.constant 0 : i32
    %c0_i32_0 = arith.constant 0 : i32
    return %c0_i32, %arg1 : i32, i32
  }
  func.func @transform_2(%arg0: i32, %arg1: i32) -> (i32, i32) {
    %c0_i32 = arith.constant 0 : i32
    %c0_i32_0 = arith.constant 0 : i32
    %c0_i32_1 = arith.constant 0 : i32
    return %c0_i32, %c0_i32_0 : i32, i32
  }
  func.func @transform_3(%arg0: i32, %arg1: i32) -> (i32, i32) {
    %c0_i32 = arith.constant 0 : i32
    %c0_i32_0 = arith.constant 0 : i32
    %c0_i32_1 = arith.constant 0 : i32
    return %c0_i32, %c0_i32_0 : i32, i32
  }
  func.func @transform_4(%arg0: i32, %arg1: i32) -> (i32, i32) {
    %c0_i32 = arith.constant 0 : i32
    %c0_i32_0 = arith.constant 0 : i32
    return %c0_i32, %arg1 : i32, i32
  }
  func.func @transform_5(%arg0: i32, %arg1: i32) -> (i32, i32) {
    %c0_i32 = arith.constant 0 : i32
    %c0_i32_0 = arith.constant 0 : i32
    return %c0_i32, %arg1 : i32, i32
  }
  func.func @transform_6(%arg0: i32, %arg1: i32) -> (i32, i32) {
    %c0_i32 = arith.constant 0 : i32
    return %arg0, %arg1 : i32, i32
  }
}

module attributes {stable_mosaic.version = 11 : i64} {
  func.func @_matmul_kernel_1k(%arg0: i32, %arg1: i32, %arg2: memref<8x384xbf16, #tpu.memory_space<vmem>>, %arg3: memref<384x128xbf16, #tpu.memory_space<vmem>>, %arg4: memref<1x384xf32, #tpu.memory_space<vmem>>, %arg5: memref<1x384xf32, #tpu.memory_space<vmem>>, %arg6: memref<1x128xf32, #tpu.memory_space<vmem>>, %arg7: memref<1x128xf32, #tpu.memory_space<vmem>>, %arg8: memref<8x128xbf16, #tpu.memory_space<vmem>>) attributes {dimension_semantics = [#tpu.dimension_semantics<parallel>, #tpu.dimension_semantics<parallel>], iteration_bounds = array<i64: 1, 1>, scalar_prefetch = 0 : i64, scratch_operands = 0 : i64, tpu.core_type = #tpu.core_type<tc>, window_params = [{transform_indices = @transform_0, window_bounds = array<i64: 8, 384>}, {transform_indices = @transform_1, window_bounds = array<i64: 384, 128>}, {pipeline_mode = #tpu.pipeline_mode<synchronous>, transform_indices = @transform_2, window_bounds = array<i64: 1, 384>}, {pipeline_mode = #tpu.pipeline_mode<synchronous>, transform_indices = @transform_3, window_bounds = array<i64: 1, 384>}, {transform_indices = @transform_4, window_bounds = array<i64: 1, 128>}, {transform_indices = @transform_5, window_bounds = array<i64: 1, 128>}, {transform_indices = @transform_6, window_bounds = array<i64: 8, 128>}]} {
    %c0 = arith.constant 0 : index
    %c0_0 = arith.constant 0 : index
    %0 = vector.load %arg2[%c0, %c0_0] : memref<8x384xbf16, #tpu.memory_space<vmem>>, vector<8x384xbf16>
    %c0_1 = arith.constant 0 : index
    %c0_2 = arith.constant 0 : index
    %1 = vector.load %arg3[%c0_1, %c0_2] : memref<384x128xbf16, #tpu.memory_space<vmem>>, vector<384x128xbf16>
    %cst = arith.constant dense<0.000000e+00> : vector<8x128xf32>
    %2 = tpu.matmul %0, %1, %cst {dimension_numbers = #tpu.dot_dimension_numbers<[1], [0], [0], [1], [0, 0, 1, 1], [], []>} : vector<8x384xbf16>, vector<384x128xbf16>, vector<8x128xf32> -> vector<8x128xf32>
    %3 = arith.truncf %2 : vector<8x128xf32> to vector<8x128xbf16>
    %c0_3 = arith.constant 0 : index
    %c0_4 = arith.constant 0 : index
    %4 = vector.load %arg8[%c0_3, %c0_4] : memref<8x128xbf16, #tpu.memory_space<vmem>>, vector<8x128xbf16>
    tpu.vector_store %arg8[%c0_3, %c0_4], %3 {strides = array<i32>} : memref<8x128xbf16, #tpu.memory_space<vmem>>, vector<8x128xbf16>,
    return
  }
  func.func @transform_0(%arg0: i32, %arg1: i32) -> (i32, i32) {
    %c0_i32 = arith.constant 0 : i32
    %c0_i32_0 = arith.constant 0 : i32
    return %arg0, %c0_i32 : i32, i32
  }
  func.func @transform_1(%arg0: i32, %arg1: i32) -> (i32, i32) {
    %c0_i32 = arith.constant 0 : i32
    %c0_i32_0 = arith.constant 0 : i32
    return %c0_i32, %arg1 : i32, i32
  }
  func.func @transform_2(%arg0: i32, %arg1: i32) -> (i32, i32) {
    %c0_i32 = arith.constant 0 : i32
    %c0_i32_0 = arith.constant 0 : i32
    %c0_i32_1 = arith.constant 0 : i32
    return %c0_i32, %c0_i32_0 : i32, i32
  }
  func.func @transform_3(%arg0: i32, %arg1: i32) -> (i32, i32) {
    %c0_i32 = arith.constant 0 : i32
    %c0_i32_0 = arith.constant 0 : i32
    %c0_i32_1 = arith.constant 0 : i32
    return %c0_i32, %c0_i32_0 : i32, i32
  }
  func.func @transform_4(%arg0: i32, %arg1: i32) -> (i32, i32) {
    %c0_i32 = arith.constant 0 : i32
    %c0_i32_0 = arith.constant 0 : i32
    return %c0_i32, %arg1 : i32, i32
  }
  func.func @transform_5(%arg0: i32, %arg1: i32) -> (i32, i32) {
    %c0_i32 = arith.constant 0 : i32
    %c0_i32_0 = arith.constant 0 : i32
    return %c0_i32, %arg1 : i32, i32
  }
  func.func @transform_6(%arg0: i32, %arg1: i32) -> (i32, i32) {
    %c0_i32 = arith.constant 0 : i32
    return %arg0, %arg1 : i32, i32
  }
}

module attributes {stable_mosaic.version = 11 : i64} {
  func.func @_bn_act_kernel(%arg0: i32, %arg1: memref<8x128xbf16, #tpu.memory_space<vmem>>, %arg2: memref<1x128xf32, #tpu.memory_space<vmem>>, %arg3: memref<1x128xf32, #tpu.memory_space<vmem>>, %arg4: memref<8x128xf32, #tpu.memory_space<vmem>>) attributes {dimension_semantics = [#tpu.dimension_semantics<parallel>], iteration_bounds = array<i64: 1>, scalar_prefetch = 0 : i64, scratch_operands = 0 : i64, tpu.core_type = #tpu.core_type<tc>, window_params = [{transform_indices = @transform_0, window_bounds = array<i64: 8, 128>}, {pipeline_mode = #tpu.pipeline_mode<synchronous>, transform_indices = @transform_1, window_bounds = array<i64: 1, 128>}, {pipeline_mode = #tpu.pipeline_mode<synchronous>, transform_indices = @transform_2, window_bounds = array<i64: 1, 128>}, {transform_indices = @transform_3, window_bounds = array<i64: 8, 128>}]} {
    %c0 = arith.constant 0 : index
    %c0_0 = arith.constant 0 : index
    %0 = vector.load %arg1[%c0, %c0_0] : memref<8x128xbf16, #tpu.memory_space<vmem>>, vector<8x128xbf16>
    %1 = arith.extf %0 : vector<8x128xbf16> to vector<8x128xf32>
    %c0_1 = arith.constant 0 : index
    %c0_2 = arith.constant 0 : index
    %2 = vector.load %arg2[%c0_1, %c0_2] : memref<1x128xf32, #tpu.memory_space<vmem>>, vector<1x128xf32>
    %3 = vector.broadcast %2 : vector<1x128xf32> to vector<8x128xf32>
    %4 = arith.mulf %1, %3 : vector<8x128xf32>
    %c0_3 = arith.constant 0 : index
    %c0_4 = arith.constant 0 : index
    %5 = vector.load %arg3[%c0_3, %c0_4] : memref<1x128xf32, #tpu.memory_space<vmem>>, vector<1x128xf32>
    %6 = vector.broadcast %5 : vector<1x128xf32> to vector<8x128xf32>
    %7 = arith.addf %4, %6 : vector<8x128xf32>
    %c0_5 = arith.constant 0 : index
    %c0_6 = arith.constant 0 : index
    %8 = vector.load %arg4[%c0_5, %c0_6] : memref<8x128xf32, #tpu.memory_space<vmem>>, vector<8x128xf32>
    tpu.vector_store %arg4[%c0_5, %c0_6], %7 {strides = array<i32>} : memref<8x128xf32, #tpu.memory_space<vmem>>, vector<8x128xf32>,
    return
  }
  func.func @transform_0(%arg0: i32) -> (i32, i32) {
    %c0_i32 = arith.constant 0 : i32
    %c0_i32_0 = arith.constant 0 : i32
    return %arg0, %c0_i32 : i32, i32
  }
  func.func @transform_1(%arg0: i32) -> (i32, i32) {
    %c0_i32 = arith.constant 0 : i32
    %c0_i32_0 = arith.constant 0 : i32
    %c0_i32_1 = arith.constant 0 : i32
    return %c0_i32, %c0_i32_0 : i32, i32
  }
  func.func @transform_2(%arg0: i32) -> (i32, i32) {
    %c0_i32 = arith.constant 0 : i32
    %c0_i32_0 = arith.constant 0 : i32
    %c0_i32_1 = arith.constant 0 : i32
    return %c0_i32, %c0_i32_0 : i32, i32
  }
  func.func @transform_3(%arg0: i32) -> (i32, i32) {
    %c0_i32 = arith.constant 0 : i32
    %c0_i32_0 = arith.constant 0 : i32
    return %arg0, %c0_i32 : i32, i32
  }
}

</mosaic_0001>

<bundles_post_ra>
// kernel: densenet_encoder_forward.25
= control target key start
LH: loop header
LB: loop body
LE: loop exit
PB: predicated region body
PF: predicated region fallthrough
CT: control target
= control target key end

     0   :  { %s2411_s21 = smov 0   ;;  %s2413_s22 = smov 0   ;;  %s2766_s0 = inlined_call_operand.vmem [shape: bf16[2048,256], index: 0, kind: input, shape index: {}]   ;;  %s2767_s1 = inlined_call_operand.vmem [shape: bf16[256,128], index: 1, kind: input, shape index: {}]   ;;  %s2768_s2 = inlined_call_operand.vmem [shape: f32[1,256], index: 2, kind: input, shape index: {}, may-alias: {2,3}]   ;;  %s2769_s3 = inlined_call_operand.vmem [shape: f32[1,256], index: 3, kind: input, shape index: {}, may-alias: {2,3}]   ;;  %s2770_s4 = inlined_call_operand.vmem [shape: f32[1,128], index: 4, kind: input, shape index: {}]   ;;  %s2771_s5 = inlined_call_operand.vmem [shape: f32[1,128], index: 5, kind: input, shape index: {}]   ;;  %s2772_s6 = inlined_call_operand.vmem [shape: bf16[2048,128], index: 6, kind: output, shape index: {}]  }
   0x1   :  { %s2415_s23 = smov 0  }
   0x2 LB: > { %s28_s2 = sadd.s32 1, %s2369_s22  ;;  %p1772_p0 = scmp.ge.s32.totalorder %s2373_s23, 1  ;;  %s2373_s23 = sphi %s2415_s23, %s16_s23   ;;  %s2369_s22 = sphi %s2413_s22, %s2774_s22   ;;  %s2365_s21 = sphi %s2411_s21, %s2773_s21  }
   0x3   : > { %p30_p1 = scmp.ge.s32.totalorder %s28_s2, 4  ;;  %p253_p2 = scmp.lt.s32.totalorder %s2373_s23, 5 }
   0x5   : > { %s2776_s2 = smov (%p30_p1, %s28_s2), 0  ;;  %p254_p3 = pnand %p1772_p0, %p253_p2 }
   0x6   : > { %v2239_v0 = vld [vmem:[%s2767_s1] sm:$0xff] (!%p254_p3)   ;;  %v2375_v1 = vmov (!%p254_p3), 0   ;;  %s1773_s25 = sshll.u32 (!%p254_p3), %s2365_s21, 6  ;;  %v2240_v2 = vld [vmem:[%s2767_s1 + $0x8] sm:$0xff] (!%p254_p3)   ;;  %v2241_v3 = vld [vmem:[%s2767_s1 + $0x10] sm:$0xff] (!%p254_p3)  }
   0x7   : > { %257 = sbr.rel (%p254_p3) target bundleno = 415 (0x19f), region = 44  ;;  %836 = vmatprep.subr.bf16.mxu0 (!%p254_p3), %v2375_v1  ;;  %2182 = vmatprep.subr.bf16.mxu1 (!%p254_p3), %v2375_v1  ;;  %p298_p4 = scmp.lt.s32.totalorder (!%p254_p3), %s1773_s25, 255  ;;  %v2242_v4 = vld [vmem:[%s2767_s1 + $0x18] sm:$0xff] (!%p254_p3)   ;;  %v2243_v5 = vld [vmem:[%s2767_s1 + $0x20] sm:$0xff] (!%p254_p3)   ;;  %v2244_v7 = vld [vmem:[%s2767_s1 + $0x28] sm:$0xff] (!%p254_p3)  }
   0x8   : > { %837 = vmatpush1.bf16.msra.mxu0 (!%p254_p3), %v2239_v0  ;;  %2198 = vmatpush1.bf16.msra.mxu1 (!%p254_p3), %v2239_v0  ;;  %v2245_v9 = vld [vmem:[%s2767_s1 + $0x30] sm:$0xff] (!%p254_p3)   ;;  %v2246_v10 = vld [vmem:[%s2767_s1 + $0x38] sm:$0xff] (!%p254_p3)   ;;  %v2247_v11 = vld [vmem:[%s2767_s1 + $0x40] sm:$0xff] (!%p254_p3)  }
   0x9   : > { %838 = vmatprep.subr.bf16.mxu0 (!%p254_p3), %v2375_v1  ;;  %2183 = vmatprep.subr.bf16.mxu1 (!%p254_p3), %v2375_v1  ;;  %v2248_v12 = vld [vmem:[%s2767_s1 + $0x48] sm:$0xff] (!%p254_p3)   ;;  %v2249_v13 = vld [vmem:[%s2767_s1 + $0x50] sm:$0xff] (!%p254_p3)   ;;  %v2250_v14 = vld [vmem:[%s2767_s1 + $0x58] sm:$0xff] (!%p254_p3)  }
   0xa   : > { %v2251_v15 = vld [vmem:[%s2767_s1 + $0x60] sm:$0xff] (!%p254_p3)   ;;  %v2252_v16 = vld [vmem:[%s2767_s1 + $0x68] sm:$0xff] (!%p254_p3)   ;;  %v2253_v17 = vld [vmem:[%s2767_s1 + $0x70] sm:$0xff] (!%p254_p3)  }
   0xb   : > { %v2254_v18 = vld [vmem:[%s2767_s1 + $0x78] sm:$0xff] (!%p254_p3)  }
   0xc   : > { %839 = vmatpush1.bf16.msra.mxu0 (!%p254_p3), %v2240_v2  ;;  %2199 = vmatpush1.bf16.msra.mxu1 (!%p254_p3), %v2240_v2 }
   0xd   : > { %840 = vmatprep.subr.bf16.mxu0 (!%p254_p3), %v2375_v1  ;;  %2184 = vmatprep.subr.bf16.mxu1 (!%p254_p3), %v2375_v1 }
   0xe   : > { %s2778_s25 = smov (!%p298_p4, %s1773_s25), 255 }
   0xf   : > { %s1926_s8 = sshll.u32 %s2778_s25, 3 }
  0x10   : > { %841 = vmatpush1.bf16.msra.mxu0 %v2241_v3  ;;  %2200 = vmatpush1.bf16.msra.mxu1 %v2241_v3  ;;  %s2458_s13 = scalar_lea.vmem %s2766_s0, %s1926_s8 }
  0x11   : > { %842 = vmatprep.subr.bf16.mxu0 %v2375_v1  ;;  %2185 = vmatprep.subr.bf16.mxu1 %v2375_v1  ;;  %v2257_v6 = vld [vmem:[%s2458_s13 + $0x4] ss:$8 sps:$4 sm:$0xff]   ;;  %v2255_v19 = vld [vmem:[%s2458_s13] ss:$8 sps:$4 sm:$0xff]   ;;  %v2261_v21 = vld [vmem:[%s2458_s13 + $0x14] ss:$8 sps:$4 sm:$0xff]  }
  0x12   : > { %v2260_v8 = vld [vmem:[%s2458_s13 + $0x104] ss:$8 sps:$4 sm:$0xff]   ;;  %868 = vmatprep.mubr.bf16.mxu0 %v2257_v6  ;;  %v2258_v20 = vld [vmem:[%s2458_s13 + $0x100] ss:$8 sps:$4 sm:$0xff]   ;;  %v2263_v22 = vld [vmem:[%s2458_s13 + $0x114] ss:$8 sps:$4 sm:$0xff]  }
  0x13   : > { %996 = vmatprep.mubr.bf16.mxu1 %v2260_v8  ;;  %v2265_v23 = vld [vmem:[%s2458_s13 + $0x10] ss:$8 sps:$4 sm:$0xff]   ;;  %v2267_v25 = vld [vmem:[%s2458_s13 + $0x24] ss:$8 sps:$4 sm:$0xff]   ;;  %v2271_v27 = vld [vmem:[%s2458_s13 + $0x20] ss:$8 sps:$4 sm:$0xff]  }
  0x14   : > { %843 = vmatpush1.bf16.msra.mxu0 %v2242_v4  ;;  %2201 = vmatpush1.bf16.msra.mxu1 %v2242_v4  ;;  %v2266_v24 = vld [vmem:[%s2458_s13 + $0x110] ss:$8 sps:$4 sm:$0xff]   ;;  %v2269_v26 = vld [vmem:[%s2458_s13 + $0x124] ss:$8 sps:$4 sm:$0xff]   ;;  %v2272_v28 = vld [vmem:[%s2458_s13 + $0x120] ss:$8 sps:$4 sm:$0xff]  }
  0x15   : > { %844 = vmatprep.subr.bf16.mxu0 %v2375_v1  ;;  %2186 = vmatprep.subr.bf16.mxu1 %v2375_v1  ;;  %v2273_v29 = vld [vmem:[%s2458_s13 + $0x34] ss:$8 sps:$4 sm:$0xff]   ;;  %v2277_v31 = vld [vmem:[%s2458_s13 + $0x30] ss:$8 sps:$4 sm:$0xff]   ;;  %v2279_v33 = vld [vmem:[%s2458_s13 + $0x44] ss:$8 sps:$4 sm:$0xff]  }
  0x16   : > { %v2275_v30 = vld [vmem:[%s2458_s13 + $0x134] ss:$8 sps:$4 sm:$0xff]   ;;  %v2278_v32 = vld [vmem:[%s2458_s13 + $0x130] ss:$8 sps:$4 sm:$0xff]   ;;  %v2281_v34 = vld [vmem:[%s2458_s13 + $0x144] ss:$8 sps:$4 sm:$0xff]  }
  0x17   : > { %v2283_v35 = vld [vmem:[%s2458_s13 + $0x40] ss:$8 sps:$4 sm:$0xff]   ;;  %v2285_v37 = vld [vmem:[%s2458_s13 + $0x54] ss:$8 sps:$4 sm:$0xff]   ;;  %v2289_v39 = vld [vmem:[%s2458_s13 + $0x50] ss:$8 sps:$4 sm:$0xff]  }
  0x18   : > { %845 = vmatpush1.bf16.msra.mxu0 %v2243_v5  ;;  %2202 = vmatpush1.bf16.msra.mxu1 %v2243_v5  ;;  %v2284_v36 = vld [vmem:[%s2458_s13 + $0x140] ss:$8 sps:$4 sm:$0xff]   ;;  %v2287_v38 = vld [vmem:[%s2458_s13 + $0x154] ss:$8 sps:$4 sm:$0xff]   ;;  %v2290_v40 = vld [vmem:[%s2458_s13 + $0x150] ss:$8 sps:$4 sm:$0xff]  }
  0x19   : > { %846 = vmatprep.subr.bf16.mxu0 %v2375_v1  ;;  %2187 = vmatprep.subr.bf16.mxu1 %v2375_v1  ;;  %v2291_v41 = vld [vmem:[%s2458_s13 + $0x64] ss:$8 sps:$4 sm:$0xff]   ;;  %v2295_v43 = vld [vmem:[%s2458_s13 + $0x60] ss:$8 sps:$4 sm:$0xff]   ;;  %v2297_v45 = vld [vmem:[%s2458_s13 + $0x74] ss:$8 sps:$4 sm:$0xff]  }
  0x1a   : > { %v2293_v42 = vld [vmem:[%s2458_s13 + $0x164] ss:$8 sps:$4 sm:$0xff]   ;;  %v2296_v44 = vld [vmem:[%s2458_s13 + $0x160] ss:$8 sps:$4 sm:$0xff]   ;;  %v2299_v46 = vld [vmem:[%s2458_s13 + $0x174] ss:$8 sps:$4 sm:$0xff]  }
  0x1b   : > { %v2301_v47 = vld [vmem:[%s2458_s13 + $0x70] ss:$8 sps:$4 sm:$0xff]   ;;  %v2303_v49 = vld [vmem:[%s2458_s13 + $0x84] ss:$8 sps:$4 sm:$0xff]   ;;  %v2307_v51 = vld [vmem:[%s2458_s13 + $0x80] ss:$8 sps:$4 sm:$0xff]  }
  0x1c   : > { %847 = vmatpush1.bf16.msra.mxu0 %v2244_v7  ;;  %2203 = vmatpush1.bf16.msra.mxu1 %v2244_v7  ;;  %v2302_v48 = vld [vmem:[%s2458_s13 + $0x170] ss:$8 sps:$4 sm:$0xff]   ;;  %v2305_v50 = vld [vmem:[%s2458_s13 + $0x184] ss:$8 sps:$4 sm:$0xff]   ;;  %v2308_v52 = vld [vmem:[%s2458_s13 + $0x180] ss:$8 sps:$4 sm:$0xff]  }
  0x1d   : > { %848 = vmatprep.subr.bf16.mxu0 %v2375_v1  ;;  %2188 = vmatprep.subr.bf16.mxu1 %v2375_v1  ;;  %v2309_v53 = vld [vmem:[%s2458_s13 + $0x94] ss:$8 sps:$4 sm:$0xff]   ;;  %v2313_v55 = vld [vmem:[%s2458_s13 + $0x90] ss:$8 sps:$4 sm:$0xff]   ;;  %v2315_v57 = vld [vmem:[%s2458_s13 + $0xa4] ss:$8 sps:$4 sm:$0xff]  }
  0x1e   : > { %v2311_v54 = vld [vmem:[%s2458_s13 + $0x194] ss:$8 sps:$4 sm:$0xff]   ;;  %v2314_v56 = vld [vmem:[%s2458_s13 + $0x190] ss:$8 sps:$4 sm:$0xff]   ;;  %v2317_v58 = vld [vmem:[%s2458_s13 + $0x1a4] ss:$8 sps:$4 sm:$0xff]  }
  0x1f   : > { %v2319_v59 = vld [vmem:[%s2458_s13 + $0xa0] ss:$8 sps:$4 sm:$0xff]   ;;  %v2321_v61 = vld [vmem:[%s2458_s13 + $0xb4] ss:$8 sps:$4 sm:$0xff]   ;;  %v2325_v63 = vld [vmem:[%s2458_s13 + $0xb0] ss:$8 sps:$4 sm:$0xff]  }
  0x20   : > { %849 = vmatpush1.bf16.msra.mxu0 %v2245_v9  ;;  %2204 = vmatpush1.bf16.msra.mxu1 %v2245_v9  ;;  %v2320_v60 = vld [vmem:[%s2458_s13 + $0x1a0] ss:$8 sps:$4 sm:$0xff]   ;;  %v2323_v62 = vld [vmem:[%s2458_s13 + $0x1b4] ss:$8 sps:$4 sm:$0xff]   ;;  %v2326_v0 = vld [vmem:[%s2458_s13 + $0x1b0] ss:$8 sps:$4 sm:$0xff]  }
  0x21   : > { %850 = vmatprep.subr.bf16.mxu0 %v2375_v1  ;;  %2189 = vmatprep.subr.bf16.mxu1 %v2375_v1  ;;  %v2329_v2 = vld [vmem:[%s2458_s13 + $0x1c4] ss:$8 sps:$4 sm:$0xff]   ;;  %v2331_v3 = vld [vmem:[%s2458_s13 + $0xc0] ss:$8 sps:$4 sm:$0xff]   ;;  %v2333_v5 = vld [vmem:[%s2458_s13 + $0xd4] ss:$8 sps:$4 sm:$0xff]  }
  0x22   : > { %v2332_v4 = vld [vmem:[%s2458_s13 + $0x1c0] ss:$8 sps:$4 sm:$0xff]   ;;  %v2335_v6 = vld [vmem:[%s2458_s13 + $0x1d4] ss:$8 sps:$4 sm:$0xff]   ;;  %v2337_v7 = vld [vmem:[%s2458_s13 + $0xd0] ss:$8 sps:$4 sm:$0xff]  }
  0x23   : > { %v2338_v8 = vld [vmem:[%s2458_s13 + $0x1d0] ss:$8 sps:$4 sm:$0xff]   ;;  %v2339_v9 = vld [vmem:[%s2458_s13 + $0xe4] ss:$8 sps:$4 sm:$0xff]  }
  0x24   : > { %851 = vmatpush1.bf16.msra.mxu0 %v2246_v10  ;;  %2205 = vmatpush1.bf16.msra.mxu1 %v2246_v10  ;;  %v2341_v10 = vld [vmem:[%s2458_s13 + $0x1e4] ss:$8 sps:$4 sm:$0xff]  }
  0x25   : > { %852 = vmatprep.subr.bf16.mxu0 %v2375_v1  ;;  %2190 = vmatprep.subr.bf16.mxu1 %v2375_v1 }
  0x28   : > { %853 = vmatpush1.bf16.msra.mxu0 %v2247_v11  ;;  %2206 = vmatpush1.bf16.msra.mxu1 %v2247_v11  ;;  %v2343_v11 = vld [vmem:[%s2458_s13 + $0xe0] ss:$8 sps:$4 sm:$0xff]  }
  0x29   : > { %854 = vmatprep.subr.bf16.mxu0 %v2375_v1  ;;  %2191 = vmatprep.subr.bf16.mxu1 %v2375_v1 }
  0x2c   : > { %855 = vmatpush1.bf16.msra.mxu0 %v2248_v12  ;;  %2207 = vmatpush1.bf16.msra.mxu1 %v2248_v12  ;;  %v2344_v12 = vld [vmem:[%s2458_s13 + $0x1e0] ss:$8 sps:$4 sm:$0xff]  }
  0x2d   : > { %856 = vmatprep.subr.bf16.mxu0 %v2375_v1  ;;  %2192 = vmatprep.subr.bf16.mxu1 %v2375_v1 }
  0x30   : > { %857 = vmatpush1.bf16.msra.mxu0 %v2249_v13  ;;  %2208 = vmatpush1.bf16.msra.mxu1 %v2249_v13  ;;  %v2345_v13 = vld [vmem:[%s2458_s13 + $0xf4] ss:$8 sps:$4 sm:$0xff]  }
  0x31   : > { %858 = vmatprep.subr.bf16.mxu0 %v2375_v1  ;;  %2193 = vmatprep.subr.bf16.mxu1 %v2375_v1 }
  0x34   : > { %859 = vmatpush1.bf16.msra.mxu0 %v2250_v14  ;;  %2209 = vmatpush1.bf16.msra.mxu1 %v2250_v14  ;;  %v2347_v14 = vld [vmem:[%s2458_s13 + $0x1f4] ss:$8 sps:$4 sm:$0xff]  }
  0x35   : > { %860 = vmatprep.subr.bf16.mxu0 %v2375_v1  ;;  %2194 = vmatprep.subr.bf16.mxu1 %v2375_v1 }
  0x38   : > { %861 = vmatpush1.bf16.msra.mxu0 %v2251_v15  ;;  %2210 = vmatpush1.bf16.msra.mxu1 %v2251_v15  ;;  %v2349_v15 = vld [vmem:[%s2458_s13 + $0xf0] ss:$8 sps:$4 sm:$0xff]  }
  0x39   : > { %862 = vmatprep.subr.bf16.mxu0 %v2375_v1  ;;  %2195 = vmatprep.subr.bf16.mxu1 %v2375_v1 }
  0x3c   : > { %863 = vmatpush1.bf16.msra.mxu0 %v2252_v16  ;;  %2211 = vmatpush1.bf16.msra.mxu1 %v2252_v16  ;;  %v2350_v16 = vld [vmem:[%s2458_s13 + $0x1f0] ss:$8 sps:$4 sm:$0xff]  }
  0x3d   : > { %864 = vmatprep.subr.bf16.mxu0 %v2375_v1  ;;  %2196 = vmatprep.subr.bf16.mxu1 %v2375_v1 }
  0x40   : > { %865 = vmatpush1.bf16.msra.mxu0 %v2253_v17  ;;  %2212 = vmatpush1.bf16.msra.mxu1 %v2253_v17  ;;  %v2584_v17 = vld [vmem:[%s2770_s4] ss:$0 sm:$0xff] }
  0x41   : > { %866 = vmatprep.subr.bf16.mxu0 %v2375_v1  ;;  %2197 = vmatprep.subr.bf16.mxu1 %v2375_v1  ;;  %v2327_v1 = vld [vmem:[%s2458_s13 + $0xc4] ss:$8 sps:$4 sm:$0xff]   ;;  %s1777_s13 = sshll.u32 %s2778_s25, 2 }
  0x42   : > { %s2603_s21 = scalar_lea.vmem %s2772_s6, %s1777_s13 }
  0x44   : > { %867 = vmatpush1.bf16.msra.mxu0 %v2254_v18  ;;  %2213 = vmatpush1.bf16.msra.mxu1 %v2254_v18 }
  0x47   : > { %869 = vmatmul.mubr.bf16.vlgmr.msra.gmra.mrb[0].mxu0 %v2255_v19  ;;  %997 = vmatmul.mubr.bf16.vlgmr.msra.gmra.mrb[0].mxu1 %v2258_v20  ;;  %v2589_v19 = vld [vmem:[%s2771_s5] ss:$0 sm:$0xff] }
  0x48   : > { %876 = vmatprep.mubr.bf16.mxu0 %v2261_v21  ;;  %1004 = vmatprep.mubr.bf16.mxu1 %v2263_v22 }
  0x4f   : > { %877 = vmatmul.mubr.bf16.gmra.mrb[4].mxu0 %v2265_v23  ;;  %1005 = vmatmul.mubr.bf16.gmra.mrb[4].mxu1 %v2266_v24 }
  0x50   : > { %884 = vmatprep.mubr.bf16.mxu0 %v2267_v25  ;;  %1012 = vmatprep.mubr.bf16.mxu1 %v2269_v26 }
  0x57   : > { %885 = vmatmul.mubr.bf16.gmra.mrb[8].mxu0 %v2271_v27  ;;  %1013 = vmatmul.mubr.bf16.gmra.mrb[8].mxu1 %v2272_v28 }
  0x58   : > { %892 = vmatprep.mubr.bf16.mxu0 %v2273_v29  ;;  %1020 = vmatprep.mubr.bf16.mxu1 %v2275_v30 }
  0x5f   : > { %893 = vmatmul.mubr.bf16.gmra.mrb[12].mxu0 %v2277_v31  ;;  %1021 = vmatmul.mubr.bf16.gmra.mrb[12].mxu1 %v2278_v32 }
  0x60   : > { %900 = vmatprep.mubr.bf16.mxu0 %v2279_v33  ;;  %1028 = vmatprep.mubr.bf16.mxu1 %v2281_v34 }
  0x67   : > { %901 = vmatmul.mubr.bf16.gmra.mrb[16].mxu0 %v2283_v35  ;;  %1029 = vmatmul.mubr.bf16.gmra.mrb[16].mxu1 %v2284_v36 }
  0x68   : > { %908 = vmatprep.mubr.bf16.mxu0 %v2285_v37  ;;  %1036 = vmatprep.mubr.bf16.mxu1 %v2287_v38 }
  0x6f   : > { %909 = vmatmul.mubr.bf16.gmra.mrb[20].mxu0 %v2289_v39  ;;  %1037 = vmatmul.mubr.bf16.gmra.mrb[20].mxu1 %v2290_v40 }
  0x70   : > { %916 = vmatprep.mubr.bf16.mxu0 %v2291_v41  ;;  %1044 = vmatprep.mubr.bf16.mxu1 %v2293_v42 }
  0x77   : > { %917 = vmatmul.mubr.bf16.gmra.mrb[24].mxu0 %v2295_v43  ;;  %1045 = vmatmul.mubr.bf16.gmra.mrb[24].mxu1 %v2296_v44 }
  0x78   : > { %924 = vmatprep.mubr.bf16.mxu0 %v2297_v45  ;;  %1052 = vmatprep.mubr.bf16.mxu1 %v2299_v46 }
  0x7f   : > { %925 = vmatmul.mubr.bf16.gmra.mrb[28].mxu0 %v2301_v47  ;;  %1053 = vmatmul.mubr.bf16.gmra.mrb[28].mxu1 %v2302_v48 }
  0x80   : > { %932 = vmatprep.mubr.bf16.mxu0 %v2303_v49  ;;  %1060 = vmatprep.mubr.bf16.mxu1 %v2305_v50 }
  0x87   : > { %933 = vmatmul.mubr.bf16.gmra.mrb[32].mxu0 %v2307_v51  ;;  %1061 = vmatmul.mubr.bf16.gmra.mrb[32].mxu1 %v2308_v52 }
  0x88   : > { %940 = vmatprep.mubr.bf16.mxu0 %v2309_v53  ;;  %1068 = vmatprep.mubr.bf16.mxu1 %v2311_v54 }
  0x8f   : > { %941 = vmatmul.mubr.bf16.gmra.mrb[36].mxu0 %v2313_v55  ;;  %1069 = vmatmul.mubr.bf16.gmra.mrb[36].mxu1 %v2314_v56 }
  0x90   : > { %948 = vmatprep.mubr.bf16.mxu0 %v2315_v57  ;;  %1076 = vmatprep.mubr.bf16.mxu1 %v2317_v58 }
  0x97   : > { %949 = vmatmul.mubr.bf16.gmra.mrb[40].mxu0 %v2319_v59  ;;  %1077 = vmatmul.mubr.bf16.gmra.mrb[40].mxu1 %v2320_v60 }
  0x98   : > { %956 = vmatprep.mubr.bf16.mxu0 %v2321_v61  ;;  %1084 = vmatprep.mubr.bf16.mxu1 %v2323_v62 }
  0x9f   : > { %957 = vmatmul.mubr.bf16.gmra.mrb[44].mxu0 %v2325_v63  ;;  %1085 = vmatmul.mubr.bf16.gmra.mrb[44].mxu1 %v2326_v0 }
  0xa0   : > { %964 = vmatprep.mubr.bf16.mxu0 %v2327_v1  ;;  %1092 = vmatprep.mubr.bf16.mxu1 %v2329_v2 }
  0xa7   : > { %965 = vmatmul.mubr.bf16.gmra.mrb[48].mxu0 %v2331_v3  ;;  %1093 = vmatmul.mubr.bf16.gmra.mrb[48].mxu1 %v2332_v4 }
  0xa8   : > { %972 = vmatprep.mubr.bf16.mxu0 %v2333_v5  ;;  %1100 = vmatprep.mubr.bf16.mxu1 %v2335_v6 }
  0xaf   : > { %973 = vmatmul.mubr.bf16.gmra.mrb[52].mxu0 %v2337_v7  ;;  %1101 = vmatmul.mubr.bf16.gmra.mrb[52].mxu1 %v2338_v8 }
  0xb0   : > { %980 = vmatprep.mubr.bf16.mxu0 %v2339_v9  ;;  %1108 = vmatprep.mubr.bf16.mxu1 %v2341_v10 }
  0xb7   : > { %981 = vmatmul.mubr.bf16.gmra.mrb[56].mxu0 %v2343_v11  ;;  %1109 = vmatmul.mubr.bf16.gmra.mrb[56].mxu1 %v2344_v12 }
  0xb8   : > { %988 = vmatprep.mubr.bf16.mxu0 %v2345_v13  ;;  %1116 = vmatprep.mubr.bf16.mxu1 %v2347_v14 }
  0xbf   : > { %989 = vmatmul.mubr.bf16.gmra.mrb[60].mxu0 %v2349_v15  ;;  %1117 = vmatmul.mubr.bf16.gmra.mrb[60].mxu1 %v2350_v16 }
 0x11a   : > { %v870_v18 = vpop.f32.mrb[0].mxu0  ;;  %v998_v20 = vpop.f32.mrb[0].mxu1 }
 0x11b   : > { %v1132_v21 = vmul.f32 %v2584_v17, %v870_v18  ;;  %v1164_v22 = vmul.f32 %v2584_v17, %v998_v20  ;;  %v872_v23 = vpop.f32.mrb[1].mxu0  ;;  %v1000_v24 = vpop.f32.mrb[1].mxu1 }
 0x11c   : > { %v873_v25 = vpop.f32.mrb[2].mxu0  ;;  %v1001_v26 = vpop.f32.mrb[2].mxu1 }
 0x11d   : > { %v1203_v27 = vadd.f32 %v2589_v19, %v1132_v21  ;;  %v1235_v28 = vadd.f32 %v2589_v19, %v1164_v22  ;;  %v1133_v29 = vmul.f32 %v2584_v17, %v873_v25  ;;  %v1165_v30 = vmul.f32 %v2584_v17, %v1001_v26  ;;  %v875_v31 = vpop.f32.mrb[3].mxu0  ;;  %v1003_v32 = vpop.f32.mrb[3].mxu1 }
 0x11f   : > { %v1204_v33 = vadd.f32 %v2589_v19, %v1133_v29  ;;  %v1236_v34 = vadd.f32 %v2589_v19, %v1165_v30  ;;  %v1267_v35 = vmax.f32 %v1203_v27, 0.0  ;;  %v1299_v36 = vmax.f32 %v1235_v28, 0.0 }
 0x121   : > { %v1268_v37 = vmax.f32 %v1204_v33, 0.0  ;;  %v1300_v38 = vmax.f32 %v1236_v34, 0.0 }
 0x122   : > { %v878_v39 = vpop.f32.mrb[4].mxu0  ;;  %v1006_v40 = vpop.f32.mrb[4].mxu1 }
 0x123   : > { %v1994_v41 = vpack.c.bf16 %v1268_v37, %v1267_v35  ;;  %v2074_v42 = vpack.c.bf16 %v1300_v38, %v1299_v36  ;;  %v1134_v43 = vmul.f32 %v2584_v17, %v878_v39  ;;  %v1166_v44 = vmul.f32 %v2584_v17, %v1006_v40  ;;  %v880_v45 = vpop.f32.mrb[5].mxu0  ;;  %v1008_v46 = vpop.f32.mrb[5].mxu1 }
 0x124   : > { %v881_v47 = vpop.f32.mrb[6].mxu0  ;;  %v1009_v48 = vpop.f32.mrb[6].mxu1 }
 0x125   : > { %1995 = vst [vmem:[%s2603_s21] sm:$0xff] %v1994_v41   ;;  %2166 = vst [vmem:[%s2603_s21 + $0x80] sm:$0xff] %v2074_v42   ;;  %v1205_v49 = vadd.f32 %v2589_v19, %v1134_v43  ;;  %v1237_v50 = vadd.f32 %v2589_v19, %v1166_v44  ;;  %v1135_v51 = vmul.f32 %v2584_v17, %v881_v47  ;;  %v883_v53 = vpop.f32.mrb[7].mxu0  ;;  %v1011_v54 = vpop.f32.mrb[7].mxu1 }
 0x126   : > { %v1167_v52 = vmul.f32 %v2584_v17, %v1009_v48 }
 0x127   : > { %v1206_v55 = vadd.f32 %v2589_v19, %v1135_v51  ;;  %v1269_v57 = vmax.f32 %v1205_v49, 0.0  ;;  %v1301_v58 = vmax.f32 %v1237_v50, 0.0 }
 0x128   : > { %v1238_v56 = vadd.f32 %v2589_v19, %v1167_v52 }
 0x129   : > { %v1270_v59 = vmax.f32 %v1206_v55, 0.0 }
 0x12a   : > { %v1302_v60 = vmax.f32 %v1238_v56, 0.0  ;;  %v886_v61 = vpop.f32.mrb[8].mxu0  ;;  %v1014_v62 = vpop.f32.mrb[8].mxu1 }
 0x12b   : > { %v1999_v63 = vpack.c.bf16 %v1270_v59, %v1269_v57  ;;  %v1136_v1 = vmul.f32 %v2584_v17, %v886_v61  ;;  %v1168_v2 = vmul.f32 %v2584_v17, %v1014_v62  ;;  %v888_v3 = vpop.f32.mrb[9].mxu0  ;;  %v1016_v4 = vpop.f32.mrb[9].mxu1 }
 0x12c   : > { %v2079_v0 = vpack.c.bf16 %v1302_v60, %v1301_v58  ;;  %v889_v5 = vpop.f32.mrb[10].mxu0  ;;  %v1017_v6 = vpop.f32.mrb[10].mxu1 }
 0x12d   : > { %2151 = vst [vmem:[%s2603_s21 + $0x8] sm:$0xff] %v1999_v63   ;;  %v1207_v7 = vadd.f32 %v2589_v19, %v1136_v1  ;;  %v1239_v8 = vadd.f32 %v2589_v19, %v1168_v2  ;;  %v1137_v9 = vmul.f32 %v2584_v17, %v889_v5  ;;  %v1169_v10 = vmul.f32 %v2584_v17, %v1017_v6  ;;  %v891_v11 = vpop.f32.mrb[11].mxu0  ;;  %v1019_v12 = vpop.f32.mrb[11].mxu1 }
 0x12e   : > { %2167 = vst [vmem:[%s2603_s21 + $0x88] sm:$0xff] %v2079_v0  }
 0x12f   : > { %v1208_v13 = vadd.f32 %v2589_v19, %v1137_v9  ;;  %v1240_v14 = vadd.f32 %v2589_v19, %v1169_v10  ;;  %v1271_v15 = vmax.f32 %v1207_v7, 0.0  ;;  %v1303_v16 = vmax.f32 %v1239_v8, 0.0 }
 0x131   : > { %v1272_v18 = vmax.f32 %v1208_v13, 0.0  ;;  %v1304_v20 = vmax.f32 %v1240_v14, 0.0 }
 0x132   : > { %v894_v21 = vpop.f32.mrb[12].mxu0  ;;  %v1022_v22 = vpop.f32.mrb[12].mxu1 }
 0x133   : > { %v2004_v23 = vpack.c.bf16 %v1272_v18, %v1271_v15  ;;  %v2084_v24 = vpack.c.bf16 %v1304_v20, %v1303_v16  ;;  %v1138_v25 = vmul.f32 %v2584_v17, %v894_v21  ;;  %v1170_v26 = vmul.f32 %v2584_v17, %v1022_v22  ;;  %v896_v27 = vpop.f32.mrb[13].mxu0  ;;  %v1024_v28 = vpop.f32.mrb[13].mxu1 }
 0x134   : > { %v897_v29 = vpop.f32.mrb[14].mxu0  ;;  %v1025_v30 = vpop.f32.mrb[14].mxu1 }
 0x135   : > { %2152 = vst [vmem:[%s2603_s21 + $0x10] sm:$0xff] %v2004_v23   ;;  %2168 = vst [vmem:[%s2603_s21 + $0x90] sm:$0xff] %v2084_v24   ;;  %v1209_v31 = vadd.f32 %v2589_v19, %v1138_v25  ;;  %v1241_v32 = vadd.f32 %v2589_v19, %v1170_v26  ;;  %v1139_v33 = vmul.f32 %v2584_v17, %v897_v29  ;;  %v899_v35 = vpop.f32.mrb[15].mxu0  ;;  %v1027_v36 = vpop.f32.mrb[15].mxu1 }
 0x136   : > { %v1171_v34 = vmul.f32 %v2584_v17, %v1025_v30 }
 0x137   : > { %v1210_v37 = vadd.f32 %v2589_v19, %v1139_v33  ;;  %v1273_v39 = vmax.f32 %v1209_v31, 0.0  ;;  %v1305_v40 = vmax.f32 %v1241_v32, 0.0 }
 0x138   : > { %v1242_v38 = vadd.f32 %v2589_v19, %v1171_v34 }
 0x139   : > { %v1274_v41 = vmax.f32 %v1210_v37, 0.0 }
 0x13a   : > { %v1306_v42 = vmax.f32 %v1242_v38, 0.0  ;;  %v902_v43 = vpop.f32.mrb[16].mxu0  ;;  %v1030_v44 = vpop.f32.mrb[16].mxu1 }
 0x13b   : > { %v2009_v45 = vpack.c.bf16 %v1274_v41, %v1273_v39  ;;  %v1140_v47 = vmul.f32 %v2584_v17, %v902_v43  ;;  %v1172_v48 = vmul.f32 %v2584_v17, %v1030_v44  ;;  %v904_v49 = vpop.f32.mrb[17].mxu0  ;;  %v1032_v50 = vpop.f32.mrb[17].mxu1 }
 0x13c   : > { %v2089_v46 = vpack.c.bf16 %v1306_v42, %v1305_v40  ;;  %v905_v51 = vpop.f32.mrb[18].mxu0  ;;  %v1033_v52 = vpop.f32.mrb[18].mxu1 }
 0x13d   : > { %2153 = vst [vmem:[%s2603_s21 + $0x18] sm:$0xff] %v2009_v45   ;;  %v1211_v53 = vadd.f32 %v2589_v19, %v1140_v47  ;;  %v1243_v54 = vadd.f32 %v2589_v19, %v1172_v48  ;;  %v1141_v55 = vmul.f32 %v2584_v17, %v905_v51  ;;  %v1173_v56 = vmul.f32 %v2584_v17, %v1033_v52  ;;  %v907_v57 = vpop.f32.mrb[19].mxu0  ;;  %v1035_v58 = vpop.f32.mrb[19].mxu1 }
 0x13e   : > { %2169 = vst [vmem:[%s2603_s21 + $0x98] sm:$0xff] %v2089_v46  }
 0x13f   : > { %v1212_v59 = vadd.f32 %v2589_v19, %v1141_v55  ;;  %v1244_v60 = vadd.f32 %v2589_v19, %v1173_v56  ;;  %v1275_v61 = vmax.f32 %v1211_v53, 0.0  ;;  %v1307_v62 = vmax.f32 %v1243_v54, 0.0 }
 0x141   : > { %v1276_v63 = vmax.f32 %v1212_v59, 0.0  ;;  %v1308_v0 = vmax.f32 %v1244_v60, 0.0 }
 0x142   : > { %v910_v1 = vpop.f32.mrb[20].mxu0  ;;  %v1038_v2 = vpop.f32.mrb[20].mxu1 }
 0x143   : > { %v2014_v3 = vpack.c.bf16 %v1276_v63, %v1275_v61  ;;  %v2094_v4 = vpack.c.bf16 %v1308_v0, %v1307_v62  ;;  %v1142_v5 = vmul.f32 %v2584_v17, %v910_v1  ;;  %v1174_v6 = vmul.f32 %v2584_v17, %v1038_v2  ;;  %v912_v7 = vpop.f32.mrb[21].mxu0  ;;  %v1040_v8 = vpop.f32.mrb[21].mxu1 }
 0x144   : > { %v913_v9 = vpop.f32.mrb[22].mxu0  ;;  %v1041_v10 = vpop.f32.mrb[22].mxu1 }
 0x145   : > { %2154 = vst [vmem:[%s2603_s21 + $0x20] sm:$0xff] %v2014_v3   ;;  %2170 = vst [vmem:[%s2603_s21 + $0xa0] sm:$0xff] %v2094_v4   ;;  %v1213_v11 = vadd.f32 %v2589_v19, %v1142_v5  ;;  %v1245_v12 = vadd.f32 %v2589_v19, %v1174_v6  ;;  %v1143_v13 = vmul.f32 %v2584_v17, %v913_v9  ;;  %v915_v15 = vpop.f32.mrb[23].mxu0  ;;  %v1043_v16 = vpop.f32.mrb[23].mxu1 }
 0x146   : > { %v1175_v14 = vmul.f32 %v2584_v17, %v1041_v10 }
 0x147   : > { %v1214_v18 = vadd.f32 %v2589_v19, %v1143_v13  ;;  %v1277_v21 = vmax.f32 %v1213_v11, 0.0  ;;  %v1309_v22 = vmax.f32 %v1245_v12, 0.0 }
 0x148   : > { %v1246_v20 = vadd.f32 %v2589_v19, %v1175_v14 }
 0x149   : > { %v1278_v23 = vmax.f32 %v1214_v18, 0.0 }
 0x14a   : > { %v1310_v24 = vmax.f32 %v1246_v20, 0.0  ;;  %v918_v25 = vpop.f32.mrb[24].mxu0  ;;  %v1046_v26 = vpop.f32.mrb[24].mxu1 }
 0x14b   : > { %v2019_v27 = vpack.c.bf16 %v1278_v23, %v1277_v21  ;;  %v1144_v29 = vmul.f32 %v2584_v17, %v918_v25  ;;  %v1176_v30 = vmul.f32 %v2584_v17, %v1046_v26  ;;  %v920_v31 = vpop.f32.mrb[25].mxu0  ;;  %v1048_v32 = vpop.f32.mrb[25].mxu1 }
 0x14c   : > { %v2099_v28 = vpack.c.bf16 %v1310_v24, %v1309_v22  ;;  %v921_v33 = vpop.f32.mrb[26].mxu0  ;;  %v1049_v34 = vpop.f32.mrb[26].mxu1 }
 0x14d   : > { %2155 = vst [vmem:[%s2603_s21 + $0x28] sm:$0xff] %v2019_v27   ;;  %v1215_v35 = vadd.f32 %v2589_v19, %v1144_v29  ;;  %v1247_v36 = vadd.f32 %v2589_v19, %v1176_v30  ;;  %v1145_v37 = vmul.f32 %v2584_v17, %v921_v33  ;;  %v1177_v38 = vmul.f32 %v2584_v17, %v1049_v34  ;;  %v923_v39 = vpop.f32.mrb[27].mxu0  ;;  %v1051_v40 = vpop.f32.mrb[27].mxu1 }
 0x14e   : > { %2171 = vst [vmem:[%s2603_s21 + $0xa8] sm:$0xff] %v2099_v28  }
 0x14f   : > { %v1216_v41 = vadd.f32 %v2589_v19, %v1145_v37  ;;  %v1248_v42 = vadd.f32 %v2589_v19, %v1177_v38  ;;  %v1279_v43 = vmax.f32 %v1215_v35, 0.0  ;;  %v1311_v44 = vmax.f32 %v1247_v36, 0.0 }
 0x151   : > { %v1280_v45 = vmax.f32 %v1216_v41, 0.0  ;;  %v1312_v46 = vmax.f32 %v1248_v42, 0.0 }
 0x152   : > { %v926_v47 = vpop.f32.mrb[28].mxu0  ;;  %v1054_v48 = vpop.f32.mrb[28].mxu1 }
 0x153   : > { %v2024_v49 = vpack.c.bf16 %v1280_v45, %v1279_v43  ;;  %v2104_v50 = vpack.c.bf16 %v1312_v46, %v1311_v44  ;;  %v1146_v51 = vmul.f32 %v2584_v17, %v926_v47  ;;  %v1178_v52 = vmul.f32 %v2584_v17, %v1054_v48  ;;  %v928_v53 = vpop.f32.mrb[29].mxu0  ;;  %v1056_v54 = vpop.f32.mrb[29].mxu1 }
 0x154   : > { %v929_v55 = vpop.f32.mrb[30].mxu0  ;;  %v1057_v56 = vpop.f32.mrb[30].mxu1 }
 0x155   : > { %2156 = vst [vmem:[%s2603_s21 + $0x30] sm:$0xff] %v2024_v49   ;;  %2172 = vst [vmem:[%s2603_s21 + $0xb0] sm:$0xff] %v2104_v50   ;;  %v1217_v57 = vadd.f32 %v2589_v19, %v1146_v51  ;;  %v1249_v58 = vadd.f32 %v2589_v19, %v1178_v52  ;;  %v1147_v59 = vmul.f32 %v2584_v17, %v929_v55  ;;  %v931_v61 = vpop.f32.mrb[31].mxu0  ;;  %v1059_v62 = vpop.f32.mrb[31].mxu1 }
 0x156   : > { %v1179_v60 = vmul.f32 %v2584_v17, %v1057_v56 }
 0x157   : > { %v1218_v63 = vadd.f32 %v2589_v19, %v1147_v59  ;;  %v1281_v1 = vmax.f32 %v1217_v57, 0.0  ;;  %v1313_v2 = vmax.f32 %v1249_v58, 0.0 }
 0x158   : > { %v1250_v0 = vadd.f32 %v2589_v19, %v1179_v60 }
 0x159   : > { %v1282_v3 = vmax.f32 %v1218_v63, 0.0 }
 0x15a   : > { %v1314_v4 = vmax.f32 %v1250_v0, 0.0  ;;  %v934_v5 = vpop.f32.mrb[32].mxu0  ;;  %v1062_v6 = vpop.f32.mrb[32].mxu1 }
 0x15b   : > { %v2029_v7 = vpack.c.bf16 %v1282_v3, %v1281_v1  ;;  %v1148_v9 = vmul.f32 %v2584_v17, %v934_v5  ;;  %v1180_v10 = vmul.f32 %v2584_v17, %v1062_v6  ;;  %v936_v11 = vpop.f32.mrb[33].mxu0  ;;  %v1064_v12 = vpop.f32.mrb[33].mxu1 }
 0x15c   : > { %v2109_v8 = vpack.c.bf16 %v1314_v4, %v1313_v2  ;;  %v937_v13 = vpop.f32.mrb[34].mxu0  ;;  %v1065_v14 = vpop.f32.mrb[34].mxu1 }
 0x15d   : > { %2157 = vst [vmem:[%s2603_s21 + $0x38] sm:$0xff] %v2029_v7   ;;  %v1219_v15 = vadd.f32 %v2589_v19, %v1148_v9  ;;  %v1251_v16 = vadd.f32 %v2589_v19, %v1180_v10  ;;  %v1149_v18 = vmul.f32 %v2584_v17, %v937_v13  ;;  %v1181_v20 = vmul.f32 %v2584_v17, %v1065_v14  ;;  %v939_v21 = vpop.f32.mrb[35].mxu0  ;;  %v1067_v22 = vpop.f32.mrb[35].mxu1 }
 0x15e   : > { %2173 = vst [vmem:[%s2603_s21 + $0xb8] sm:$0xff] %v2109_v8  }
 0x15f   : > { %v1220_v23 = vadd.f32 %v2589_v19, %v1149_v18  ;;  %v1252_v24 = vadd.f32 %v2589_v19, %v1181_v20  ;;  %v1283_v25 = vmax.f32 %v1219_v15, 0.0  ;;  %v1315_v26 = vmax.f32 %v1251_v16, 0.0 }
 0x161   : > { %v1284_v27 = vmax.f32 %v1220_v23, 0.0  ;;  %v1316_v28 = vmax.f32 %v1252_v24, 0.0 }
 0x162   : > { %v942_v29 = vpop.f32.mrb[36].mxu0  ;;  %v1070_v30 = vpop.f32.mrb[36].mxu1 }
 0x163   : > { %v2034_v31 = vpack.c.bf16 %v1284_v27, %v1283_v25  ;;  %v2114_v32 = vpack.c.bf16 %v1316_v28, %v1315_v26  ;;  %v1150_v33 = vmul.f32 %v2584_v17, %v942_v29  ;;  %v1182_v34 = vmul.f32 %v2584_v17, %v1070_v30  ;;  %v944_v35 = vpop.f32.mrb[37].mxu0  ;;  %v1072_v36 = vpop.f32.mrb[37].mxu1 }
 0x164   : > { %v945_v37 = vpop.f32.mrb[38].mxu0  ;;  %v1073_v38 = vpop.f32.mrb[38].mxu1 }
 0x165   : > { %2158 = vst [vmem:[%s2603_s21 + $0x40] sm:$0xff] %v2034_v31   ;;  %2174 = vst [vmem:[%s2603_s21 + $0xc0] sm:$0xff] %v2114_v32   ;;  %v1221_v39 = vadd.f32 %v2589_v19, %v1150_v33  ;;  %v1253_v40 = vadd.f32 %v2589_v19, %v1182_v34  ;;  %v1151_v41 = vmul.f32 %v2584_v17, %v945_v37  ;;  %v947_v43 = vpop.f32.mrb[39].mxu0  ;;  %v1075_v44 = vpop.f32.mrb[39].mxu1 }
 0x166   : > { %v1183_v42 = vmul.f32 %v2584_v17, %v1073_v38 }
 0x167   : > { %v1222_v45 = vadd.f32 %v2589_v19, %v1151_v41  ;;  %v1285_v47 = vmax.f32 %v1221_v39, 0.0  ;;  %v1317_v48 = vmax.f32 %v1253_v40, 0.0 }
 0x168   : > { %v1254_v46 = vadd.f32 %v2589_v19, %v1183_v42 }
 0x169   : > { %v1286_v49 = vmax.f32 %v1222_v45, 0.0 }
 0x16a   : > { %v1318_v50 = vmax.f32 %v1254_v46, 0.0  ;;  %v950_v51 = vpop.f32.mrb[40].mxu0  ;;  %v1078_v52 = vpop.f32.mrb[40].mxu1 }
 0x16b   : > { %v2039_v53 = vpack.c.bf16 %v1286_v49, %v1285_v47  ;;  %v1152_v55 = vmul.f32 %v2584_v17, %v950_v51  ;;  %v1184_v56 = vmul.f32 %v2584_v17, %v1078_v52  ;;  %v952_v57 = vpop.f32.mrb[41].mxu0  ;;  %v1080_v58 = vpop.f32.mrb[41].mxu1 }
 0x16c   : > { %v2119_v54 = vpack.c.bf16 %v1318_v50, %v1317_v48  ;;  %v953_v59 = vpop.f32.mrb[42].mxu0  ;;  %v1081_v60 = vpop.f32.mrb[42].mxu1 }
 0x16d   : > { %2159 = vst [vmem:[%s2603_s21 + $0x48] sm:$0xff] %v2039_v53   ;;  %v1223_v61 = vadd.f32 %v2589_v19, %v1152_v55  ;;  %v1255_v62 = vadd.f32 %v2589_v19, %v1184_v56  ;;  %v1153_v63 = vmul.f32 %v2584_v17, %v953_v59  ;;  %v1185_v0 = vmul.f32 %v2584_v17, %v1081_v60  ;;  %v955_v1 = vpop.f32.mrb[43].mxu0  ;;  %v1083_v2 = vpop.f32.mrb[43].mxu1 }
 0x16e   : > { %2175 = vst [vmem:[%s2603_s21 + $0xc8] sm:$0xff] %v2119_v54  }
 0x16f   : > { %v1224_v3 = vadd.f32 %v2589_v19, %v1153_v63  ;;  %v1256_v4 = vadd.f32 %v2589_v19, %v1185_v0  ;;  %v1287_v5 = vmax.f32 %v1223_v61, 0.0  ;;  %v1319_v6 = vmax.f32 %v1255_v62, 0.0 }
 0x171   : > { %v1288_v7 = vmax.f32 %v1224_v3, 0.0  ;;  %v1320_v8 = vmax.f32 %v1256_v4, 0.0 }
 0x172   : > { %v958_v9 = vpop.f32.mrb[44].mxu0  ;;  %v1086_v10 = vpop.f32.mrb[44].mxu1 }
 0x173   : > { %v2044_v11 = vpack.c.bf16 %v1288_v7, %v1287_v5  ;;  %v2124_v12 = vpack.c.bf16 %v1320_v8, %v1319_v6  ;;  %v1154_v13 = vmul.f32 %v2584_v17, %v958_v9  ;;  %v1186_v14 = vmul.f32 %v2584_v17, %v1086_v10  ;;  %v960_v15 = vpop.f32.mrb[45].mxu0  ;;  %v1088_v16 = vpop.f32.mrb[45].mxu1 }
 0x174   : > { %v961_v18 = vpop.f32.mrb[46].mxu0  ;;  %v1089_v20 = vpop.f32.mrb[46].mxu1 }
 0x175   : > { %2160 = vst [vmem:[%s2603_s21 + $0x50] sm:$0xff] %v2044_v11   ;;  %2176 = vst [vmem:[%s2603_s21 + $0xd0] sm:$0xff] %v2124_v12   ;;  %v1225_v21 = vadd.f32 %v2589_v19, %v1154_v13  ;;  %v1257_v22 = vadd.f32 %v2589_v19, %v1186_v14  ;;  %v1155_v23 = vmul.f32 %v2584_v17, %v961_v18  ;;  %v963_v25 = vpop.f32.mrb[47].mxu0  ;;  %v1091_v26 = vpop.f32.mrb[47].mxu1 }
 0x176   : > { %v1187_v24 = vmul.f32 %v2584_v17, %v1089_v20 }
 0x177   : > { %v1226_v27 = vadd.f32 %v2589_v19, %v1155_v23  ;;  %v1289_v29 = vmax.f32 %v1225_v21, 0.0  ;;  %v1321_v30 = vmax.f32 %v1257_v22, 0.0 }
 0x178   : > { %v1258_v28 = vadd.f32 %v2589_v19, %v1187_v24 }
 0x179   : > { %v1290_v31 = vmax.f32 %v1226_v27, 0.0 }
 0x17a   : > { %v1322_v32 = vmax.f32 %v1258_v28, 0.0  ;;  %v966_v33 = vpop.f32.mrb[48].mxu0  ;;  %v1094_v34 = vpop.f32.mrb[48].mxu1 }
 0x17b   : > { %v2049_v35 = vpack.c.bf16 %v1290_v31, %v1289_v29  ;;  %v1156_v37 = vmul.f32 %v2584_v17, %v966_v33  ;;  %v1188_v38 = vmul.f32 %v2584_v17, %v1094_v34  ;;  %v968_v39 = vpop.f32.mrb[49].mxu0  ;;  %v1096_v40 = vpop.f32.mrb[49].mxu1 }
 0x17c   : > { %v2129_v36 = vpack.c.bf16 %v1322_v32, %v1321_v30  ;;  %v969_v41 = vpop.f32.mrb[50].mxu0  ;;  %v1097_v42 = vpop.f32.mrb[50].mxu1 }
 0x17d   : > { %2161 = vst [vmem:[%s2603_s21 + $0x58] sm:$0xff] %v2049_v35   ;;  %v1227_v43 = vadd.f32 %v2589_v19, %v1156_v37  ;;  %v1259_v44 = vadd.f32 %v2589_v19, %v1188_v38  ;;  %v1157_v45 = vmul.f32 %v2584_v17, %v969_v41  ;;  %v1189_v46 = vmul.f32 %v2584_v17, %v1097_v42  ;;  %v971_v47 = vpop.f32.mrb[51].mxu0  ;;  %v1099_v48 = vpop.f32.mrb[51].mxu1 }
 0x17e   : > { %2177 = vst [vmem:[%s2603_s21 + $0xd8] sm:$0xff] %v2129_v36  }
 0x17f   : > { %v1228_v49 = vadd.f32 %v2589_v19, %v1157_v45  ;;  %v1260_v50 = vadd.f32 %v2589_v19, %v1189_v46  ;;  %v1291_v51 = vmax.f32 %v1227_v43, 0.0  ;;  %v1323_v52 = vmax.f32 %v1259_v44, 0.0 }
 0x181   : > { %v1292_v53 = vmax.f32 %v1228_v49, 0.0  ;;  %v1324_v54 = vmax.f32 %v1260_v50, 0.0 }
 0x182   : > { %v974_v55 = vpop.f32.mrb[52].mxu0  ;;  %v1102_v56 = vpop.f32.mrb[52].mxu1 }
 0x183   : > { %v2054_v57 = vpack.c.bf16 %v1292_v53, %v1291_v51  ;;  %v2134_v58 = vpack.c.bf16 %v1324_v54, %v1323_v52  ;;  %v1158_v59 = vmul.f32 %v2584_v17, %v974_v55  ;;  %v1190_v60 = vmul.f32 %v2584_v17, %v1102_v56  ;;  %v976_v61 = vpop.f32.mrb[53].mxu0  ;;  %v1104_v62 = vpop.f32.mrb[53].mxu1 }
 0x184   : > { %v977_v63 = vpop.f32.mrb[54].mxu0  ;;  %v1105_v0 = vpop.f32.mrb[54].mxu1 }
 0x185   : > { %2162 = vst [vmem:[%s2603_s21 + $0x60] sm:$0xff] %v2054_v57   ;;  %2178 = vst [vmem:[%s2603_s21 + $0xe0] sm:$0xff] %v2134_v58   ;;  %v1229_v1 = vadd.f32 %v2589_v19, %v1158_v59  ;;  %v1261_v2 = vadd.f32 %v2589_v19, %v1190_v60  ;;  %v1159_v3 = vmul.f32 %v2584_v17, %v977_v63  ;;  %v979_v5 = vpop.f32.mrb[55].mxu0  ;;  %v1107_v6 = vpop.f32.mrb[55].mxu1 }
 0x186   : > { %v1191_v4 = vmul.f32 %v2584_v17, %v1105_v0 }
 0x187   : > { %v1230_v7 = vadd.f32 %v2589_v19, %v1159_v3  ;;  %v1293_v9 = vmax.f32 %v1229_v1, 0.0  ;;  %v1325_v10 = vmax.f32 %v1261_v2, 0.0 }
 0x188   : > { %v1262_v8 = vadd.f32 %v2589_v19, %v1191_v4 }
 0x189   : > { %v1294_v11 = vmax.f32 %v1230_v7, 0.0 }
 0x18a   : > { %v1326_v12 = vmax.f32 %v1262_v8, 0.0  ;;  %v982_v13 = vpop.f32.mrb[56].mxu0  ;;  %v1110_v14 = vpop.f32.mrb[56].mxu1 }
 0x18b   : > { %v2059_v15 = vpack.c.bf16 %v1294_v11, %v1293_v9  ;;  %v1160_v18 = vmul.f32 %v2584_v17, %v982_v13  ;;  %v1192_v20 = vmul.f32 %v2584_v17, %v1110_v14  ;;  %v984_v21 = vpop.f32.mrb[57].mxu0  ;;  %v1112_v22 = vpop.f32.mrb[57].mxu1 }
 0x18c   : > { %v2139_v16 = vpack.c.bf16 %v1326_v12, %v1325_v10  ;;  %v985_v23 = vpop.f32.mrb[58].mxu0  ;;  %v1113_v24 = vpop.f32.mrb[58].mxu1 }
 0x18d   : > { %2163 = vst [vmem:[%s2603_s21 + $0x68] sm:$0xff] %v2059_v15   ;;  %v1231_v25 = vadd.f32 %v2589_v19, %v1160_v18  ;;  %v1263_v26 = vadd.f32 %v2589_v19, %v1192_v20  ;;  %v1161_v27 = vmul.f32 %v2584_v17, %v985_v23  ;;  %v1193_v28 = vmul.f32 %v2584_v17, %v1113_v24  ;;  %v987_v29 = vpop.f32.mrb[59].mxu0  ;;  %v1115_v30 = vpop.f32.mrb[59].mxu1 }
 0x18e   : > { %2179 = vst [vmem:[%s2603_s21 + $0xe8] sm:$0xff] %v2139_v16  }
 0x18f   : > { %v1232_v31 = vadd.f32 %v2589_v19, %v1161_v27  ;;  %v1264_v32 = vadd.f32 %v2589_v19, %v1193_v28  ;;  %v1295_v33 = vmax.f32 %v1231_v25, 0.0  ;;  %v1327_v34 = vmax.f32 %v1263_v26, 0.0 }
 0x191   : > { %v1296_v35 = vmax.f32 %v1232_v31, 0.0  ;;  %v1328_v36 = vmax.f32 %v1264_v32, 0.0 }
 0x192   : > { %v990_v37 = vpop.f32.mrb[60].mxu0  ;;  %v1118_v38 = vpop.f32.mrb[60].mxu1 }
 0x193   : > { %v2064_v39 = vpack.c.bf16 %v1296_v35, %v1295_v33  ;;  %v2144_v40 = vpack.c.bf16 %v1328_v36, %v1327_v34  ;;  %v1162_v41 = vmul.f32 %v2584_v17, %v990_v37  ;;  %v1194_v42 = vmul.f32 %v2584_v17, %v1118_v38  ;;  %v992_v43 = vpop.f32.mrb[61].mxu0  ;;  %v1120_v44 = vpop.f32.mrb[61].mxu1 }
 0x194   : > { %v993_v45 = vpop.f32.mrb[62].mxu0  ;;  %v1121_v46 = vpop.f32.mrb[62].mxu1 }
 0x195   : > { %2164 = vst [vmem:[%s2603_s21 + $0x70] sm:$0xff] %v2064_v39   ;;  %2180 = vst [vmem:[%s2603_s21 + $0xf0] sm:$0xff] %v2144_v40   ;;  %v1233_v47 = vadd.f32 %v2589_v19, %v1162_v41  ;;  %v1265_v48 = vadd.f32 %v2589_v19, %v1194_v42  ;;  %v1163_v49 = vmul.f32 %v2584_v17, %v993_v45  ;;  %v995_v51 = vpop.f32.mrb[63].mxu0  ;;  %v1123_v52 = vpop.f32.mrb[63].mxu1 }
 0x196   : > { %v1195_v50 = vmul.f32 %v2584_v17, %v1121_v46 }
 0x197   : > { %v1234_v53 = vadd.f32 %v2589_v19, %v1163_v49  ;;  %v1297_v55 = vmax.f32 %v1233_v47, 0.0  ;;  %v1329_v56 = vmax.f32 %v1265_v48, 0.0 }
 0x198   : > { %v1266_v54 = vadd.f32 %v2589_v19, %v1195_v50 }
 0x199   : > { %v1298_v57 = vmax.f32 %v1234_v53, 0.0 }
 0x19a   : > { %v1330_v58 = vmax.f32 %v1266_v54, 0.0 }
 0x19b   : > { %v2069_v59 = vpack.c.bf16 %v1298_v57, %v1297_v55 }
 0x19c   : > { %v2149_v60 = vpack.c.bf16 %v1330_v58, %v1329_v56 }
 0x19d   : > { %2165 = vst [vmem:[%s2603_s21 + $0x78] sm:$0xff] %v2069_v59  }
 0x19e   : > { %2181 = vst [vmem:[%s2603_s21 + $0xf8] sm:$0xff] %v2149_v60  }
 0x19f PF: > { %s16_s23 = sadd.s32 1, %s2373_s23   ;;  %s2773_s21 = smov %s2369_s22 }
 0x1a0   : > { %p13_p5 = scmp.ge.s32.totalorder %s16_s23, 6   ;;  %s2774_s22 = smov %s2776_s2 }
 0x1a2   :  { %15 = sbr.rel (!%p13_p5) target bundleno = 2 (0x2), region = 83 }

// kernel: densenet_encoder_forward.27
= control target key start
LH: loop header
LB: loop body
LE: loop exit
PB: predicated region body
PF: predicated region fallthrough
CT: control target
= control target key end

     0   :  { %s2443_s1 = inlined_call_operand.vmem [shape: bf16[128,128], index: 1, kind: input, shape index: {}]   ;;  %s2444_s0 = inlined_call_operand.vmem [shape: bf16[512,128], index: 0, kind: input, shape index: {}]   ;;  %s2445_s2 = inlined_call_operand.vmem [shape: f32[1,128], index: 2, kind: input, shape index: {}]   ;;  %s2446_s3 = inlined_call_operand.vmem [shape: f32[1,128], index: 3, kind: input, shape index: {}]   ;;  %s2447_s4 = inlined_call_operand.vmem [shape: f32[1,128], index: 4, kind: input, shape index: {}]   ;;  %s2448_s5 = inlined_call_operand.vmem [shape: f32[1,128], index: 5, kind: input, shape index: {}]   ;;  %s2449_s6 = inlined_call_operand.vmem [shape: bf16[512,128], index: 6, kind: output, shape index: {}]  }
   0x1   :  { %v1899_v0 = vld [vmem:[%s2443_s1] sm:$0xff]   ;;  %v1900_v1 = vld [vmem:[%s2443_s1 + $0x8] sm:$0xff]   ;;  %v1901_v2 = vld [vmem:[%s2443_s1 + $0x10] sm:$0xff]  }
   0x2   :  { %1803 = vmatprep.subr.bf16.mxu0 %v1899_v0  ;;  %1883 = vmatprep.subr.bf16.mxu1 %v1899_v0  ;;  %v1902_v3 = vld [vmem:[%s2443_s1 + $0x18] sm:$0xff]   ;;  %v1414_v4 = vld [vmem:[%s2444_s0] sm:$0xff]   ;;  %v1701_v9 = vld [vmem:[%s2444_s0 + $0x8] sm:$0xff]  }
   0x3   :  { %1804 = vmatpush3.bf16.msra.mxu0 %v1899_v0  ;;  %1891 = vmatpush3.bf16.msra.mxu1 %v1899_v0  ;;  %v1960_v5 = vld [vmem:[%s2445_s2] ss:$0 sm:$0xff]  ;;  %v1415_v6 = vunpack.c.l.bf16 %v1414_v4  ;;  %v1416_v7 = vunpack.c.h.bf16 %v1414_v4  ;;  %v1717_v10 = vld [vmem:[%s2444_s0 + $0x88] sm:$0xff]   ;;  %v1419_v14 = vunpack.c.l.bf16 %v1701_v9  ;;  %v1420_v15 = vunpack.c.h.bf16 %v1701_v9  ;;  %v1702_v16 = vld [vmem:[%s2444_s0 + $0x10] sm:$0xff]  }
   0x4   :  { %1805 = vmatprep.subr.bf16.mxu0 %v1900_v1  ;;  %1884 = vmatprep.subr.bf16.mxu1 %v1900_v1  ;;  %v1716_v8 = vld [vmem:[%s2444_s0 + $0x80] sm:$0xff]   ;;  %v1483_v19 = vunpack.c.l.bf16 %v1717_v10  ;;  %v1484_v20 = vunpack.c.h.bf16 %v1717_v10  ;;  %v1423_v25 = vunpack.c.l.bf16 %v1702_v16  ;;  %v1718_v38 = vld [vmem:[%s2444_s0 + $0x90] sm:$0xff]   ;;  %v1904_v39 = vld [vmem:[%s2443_s1 + $0x28] sm:$0xff]   ;;  %v1424_v48 = vunpack.c.h.bf16 %v1702_v16 }
   0x5   :  { %v1974_v11 = vld [vmem:[%s2446_s3] ss:$0 sm:$0xff]  ;;  %v1479_v12 = vunpack.c.l.bf16 %v1716_v8  ;;  %v1480_v13 = vunpack.c.h.bf16 %v1716_v8  ;;  %v159_v17 = vmul.f32 %v1415_v6, %v1960_v5  ;;  %v160_v18 = vmul.f32 %v1416_v7, %v1960_v5  ;;  %v1703_v44 = vld [vmem:[%s2444_s0 + $0x18] sm:$0xff]   ;;  %v1905_v58 = vld [vmem:[%s2443_s1 + $0x30] sm:$0xff]  }
   0x6   :  { %v1903_v21 = vld [vmem:[%s2443_s1 + $0x20] sm:$0xff]   ;;  %v161_v24 = vmul.f32 %v1419_v14, %v1960_v5  ;;  %v162_v28 = vmul.f32 %v1420_v15, %v1960_v5  ;;  %v193_v29 = vmul.f32 %v1483_v19, %v1960_v5  ;;  %v194_v33 = vmul.f32 %v1484_v20, %v1960_v5  ;;  %v1719_v53 = vld [vmem:[%s2444_s0 + $0x98] sm:$0xff]  }
   0x7   :  { %1806 = vmatpush3.bf16.msra.mxu0 %v1900_v1  ;;  %1892 = vmatpush3.bf16.msra.mxu1 %v1900_v1  ;;  %v191_v22 = vmul.f32 %v1479_v12, %v1960_v5  ;;  %v192_v23 = vmul.f32 %v1480_v13, %v1960_v5  ;;  %v230_v26 = vadd.f32 %v1974_v11, %v159_v17  ;;  %v1487_v52 = vunpack.c.l.bf16 %v1718_v38  ;;  %v1906_v14 = vld [vmem:[%s2443_s1 + $0x38] sm:$0xff]   ;;  %v1720_v19 = vld [vmem:[%s2444_s0 + $0xa0] sm:$0xff]  }
   0x8   :  { %1807 = vmatprep.subr.bf16.mxu0 %v1901_v2  ;;  %1885 = vmatprep.subr.bf16.mxu1 %v1901_v2  ;;  %v231_v27 = vadd.f32 %v1974_v11, %v160_v18  ;;  %v232_v32 = vadd.f32 %v1974_v11, %v161_v24  ;;  %v233_v36 = vadd.f32 %v1974_v11, %v162_v28  ;;  %v1488_v56 = vunpack.c.h.bf16 %v1718_v38  ;;  %v1705_v28 = vld [vmem:[%s2444_s0 + $0x28] sm:$0xff]  }
   0x9   :  { %v262_v30 = vadd.f32 %v1974_v11, %v191_v22  ;;  %v263_v31 = vadd.f32 %v1974_v11, %v192_v23  ;;  %v294_v34 = vmax.f32 %v230_v26, 0.0  ;;  %v264_v37 = vadd.f32 %v1974_v11, %v193_v29 }
   0xa   :  { %v295_v35 = vmax.f32 %v231_v27, 0.0  ;;  %v296_v42 = vmax.f32 %v232_v32, 0.0  ;;  %v265_v43 = vadd.f32 %v1974_v11, %v194_v33  ;;  %v297_v46 = vmax.f32 %v233_v36, 0.0  ;;  %v1721_v33 = vld [vmem:[%s2444_s0 + $0xa8] sm:$0xff]  }
   0xb   :  { %1808 = vmatpush3.bf16.msra.mxu0 %v1901_v2  ;;  %1893 = vmatpush3.bf16.msra.mxu1 %v1901_v2  ;;  %v326_v40 = vmax.f32 %v262_v30, 0.0  ;;  %v327_v41 = vmax.f32 %v263_v31, 0.0  ;;  %v328_v47 = vmax.f32 %v264_v37, 0.0  ;;  %v163_v51 = vmul.f32 %v1423_v25, %v1960_v5 }
   0xc   :  { %1809 = vmatprep.subr.bf16.mxu0 %v1902_v3  ;;  %1886 = vmatprep.subr.bf16.mxu1 %v1902_v3  ;;  %v358_v45 = vpack.c.bf16 %v295_v35, %v294_v34  ;;  %v329_v50 = vmax.f32 %v265_v43, 0.0  ;;  %v2011_v54 = vpack.c.bf16 %v297_v46, %v296_v42  ;;  %v164_v55 = vmul.f32 %v1424_v48, %v1960_v5  ;;  %v1706_v42 = vld [vmem:[%s2444_s0 + $0x30] sm:$0xff]  }
   0xd   :  { %v374_v49 = vpack.c.bf16 %v327_v41, %v326_v40  ;;  %v1427_v57 = vunpack.c.l.bf16 %v1703_v44  ;;  %v234_v60 = vadd.f32 %v1974_v11, %v163_v51  ;;  %v195_v61 = vmul.f32 %v1487_v52, %v1960_v5 }
   0xe   :  { %v2017_v59 = vpack.c.bf16 %v329_v50, %v328_v47  ;;  %v1428_v62 = vunpack.c.h.bf16 %v1703_v44  ;;  %1819 = vmatprep.mubr.bf16.mxu0 %v358_v45  ;;  %v235_v63 = vadd.f32 %v1974_v11, %v164_v55  ;;  %v196_v0 = vmul.f32 %v1488_v56, %v1960_v5 }
   0xf   :  { %1810 = vmatpush3.bf16.msra.mxu0 %v1902_v3  ;;  %1894 = vmatpush3.bf16.msra.mxu1 %v1902_v3  ;;  %v165_v1 = vmul.f32 %v1427_v57, %v1960_v5  ;;  %v1491_v2 = vunpack.c.l.bf16 %v1719_v53  ;;  %v1704_v3 = vld [vmem:[%s2444_s0 + $0x20] sm:$0xff]   ;;  %v298_v4 = vmax.f32 %v234_v60, 0.0  ;;  %v266_v6 = vadd.f32 %v1974_v11, %v195_v61  ;;  %v1722_v61 = vld [vmem:[%s2444_s0 + $0xb0] sm:$0xff]  }
  0x10   :  { %1811 = vmatprep.subr.bf16.mxu0 %v1903_v21  ;;  %1887 = vmatprep.subr.bf16.mxu1 %v1903_v21  ;;  %v166_v7 = vmul.f32 %v1428_v62, %v1960_v5  ;;  %v1492_v8 = vunpack.c.h.bf16 %v1719_v53  ;;  %v299_v9 = vmax.f32 %v235_v63, 0.0  ;;  %v267_v10 = vadd.f32 %v1974_v11, %v196_v0 }
  0x11   :  { %1851 = vmatprep.mubr.bf16.mxu1 %v374_v49  ;;  %v236_v12 = vadd.f32 %v1974_v11, %v165_v1  ;;  %v197_v13 = vmul.f32 %v1491_v2, %v1960_v5  ;;  %v330_v15 = vmax.f32 %v266_v6, 0.0  ;;  %v1431_v18 = vunpack.c.l.bf16 %v1704_v3  ;;  %v1707_v2 = vld [vmem:[%s2444_s0 + $0x38] sm:$0xff]  }
  0x12   :  { %v237_v16 = vadd.f32 %v1974_v11, %v166_v7  ;;  %v198_v17 = vmul.f32 %v1492_v8, %v1960_v5  ;;  %v360_v20 = vpack.c.bf16 %v299_v9, %v298_v4  ;;  %v1432_v26 = vunpack.c.h.bf16 %v1704_v3 }
  0x13   :  { %1812 = vmatpush3.bf16.msra.mxu0 %v1903_v21  ;;  %1895 = vmatpush3.bf16.msra.mxu1 %v1903_v21  ;;  %v331_v21 = vmax.f32 %v267_v10, 0.0  ;;  %v300_v22 = vmax.f32 %v236_v12, 0.0  ;;  %v268_v23 = vadd.f32 %v1974_v11, %v197_v13  ;;  %v167_v27 = vmul.f32 %v1431_v18, %v1960_v5 }
  0x14   :  { %1813 = vmatprep.subr.bf16.mxu0 %v1904_v39  ;;  %1888 = vmatprep.subr.bf16.mxu1 %v1904_v39  ;;  %v301_v24 = vmax.f32 %v237_v16, 0.0  ;;  %v269_v25 = vadd.f32 %v1974_v11, %v198_v17  ;;  %v1495_v31 = vunpack.c.l.bf16 %v1720_v19  ;;  %v1496_v32 = vunpack.c.h.bf16 %v1720_v19 }
  0x15   :  { %v376_v29 = vpack.c.bf16 %v331_v21, %v330_v15  ;;  %v332_v30 = vmax.f32 %v268_v23, 0.0  ;;  %v168_v36 = vmul.f32 %v1432_v26, %v1960_v5  ;;  %v238_v37 = vadd.f32 %v1974_v11, %v167_v27  ;;  %v1723_v15 = vld [vmem:[%s2444_s0 + $0xb8] sm:$0xff]  }
  0x16   :  { %v2049_v34 = vpack.c.bf16 %v301_v24, %v300_v22  ;;  %v333_v35 = vmax.f32 %v269_v25, 0.0  ;;  %v199_v38 = vmul.f32 %v1495_v31, %v1960_v5  ;;  %v1435_v40 = vunpack.c.l.bf16 %v1705_v28 }
  0x17   :  { %1814 = vmatpush3.bf16.msra.mxu0 %v1904_v39  ;;  %1896 = vmatpush3.bf16.msra.mxu1 %v1904_v39  ;;  %v200_v39 = vmul.f32 %v1496_v32, %v1960_v5  ;;  %v1436_v41 = vunpack.c.h.bf16 %v1705_v28  ;;  %v239_v44 = vadd.f32 %v1974_v11, %v168_v36  ;;  %v302_v45 = vmax.f32 %v238_v37, 0.0 }
  0x18   :  { %1815 = vmatprep.subr.bf16.mxu0 %v1905_v58  ;;  %1889 = vmatprep.subr.bf16.mxu1 %v1905_v58  ;;  %v377_v43 = vpack.c.bf16 %v333_v35, %v332_v30  ;;  %v1499_v46 = vunpack.c.l.bf16 %v1721_v33  ;;  %v270_v47 = vadd.f32 %v1974_v11, %v199_v38  ;;  %v169_v49 = vmul.f32 %v1435_v40, %v1960_v5 }
  0x19   :  { %v271_v48 = vadd.f32 %v1974_v11, %v200_v39  ;;  %v1500_v50 = vunpack.c.h.bf16 %v1721_v33  ;;  %v303_v51 = vmax.f32 %v239_v44, 0.0  ;;  %v170_v52 = vmul.f32 %v1436_v41, %v1960_v5  ;;  %v1724_v33 = vld [vmem:[%s2444_s0 + $0xc0] sm:$0xff]  }
  0x1a   :  { %v201_v53 = vmul.f32 %v1499_v46, %v1960_v5  ;;  %v1439_v55 = vunpack.c.l.bf16 %v1706_v42  ;;  %v334_v56 = vmax.f32 %v270_v47, 0.0  ;;  %v1440_v1 = vunpack.c.h.bf16 %v1706_v42 }
  0x1b   :  { %1816 = vmatpush3.bf16.msra.mxu0 %v1905_v58  ;;  %1897 = vmatpush3.bf16.msra.mxu1 %v1905_v58  ;;  %v335_v57 = vmax.f32 %v271_v48, 0.0  ;;  %v240_v58 = vadd.f32 %v1974_v11, %v169_v49  ;;  %v202_v60 = vmul.f32 %v1500_v50, %v1960_v5  ;;  %v362_v62 = vpack.c.bf16 %v303_v51, %v302_v45  ;;  %v1725_v51 = vld [vmem:[%s2444_s0 + $0xc8] sm:$0xff]  }
  0x1c   :  { %1817 = vmatprep.subr.bf16.mxu0 %v1906_v14  ;;  %1890 = vmatprep.subr.bf16.mxu1 %v1906_v14  ;;  %v241_v63 = vadd.f32 %v1974_v11, %v170_v52  ;;  %v272_v0 = vadd.f32 %v1974_v11, %v201_v53  ;;  %v172_v8 = vmul.f32 %v1440_v1, %v1960_v5  ;;  %v1503_v9 = vunpack.c.l.bf16 %v1722_v61 }
  0x1d   :  { %v378_v3 = vpack.c.bf16 %v335_v57, %v334_v56  ;;  %v304_v4 = vmax.f32 %v240_v58, 0.0  ;;  %v273_v6 = vadd.f32 %v1974_v11, %v202_v60  ;;  %v1504_v13 = vunpack.c.h.bf16 %v1722_v61 }
  0x1e   :  { %v305_v7 = vmax.f32 %v241_v63, 0.0  ;;  %v243_v17 = vadd.f32 %v1974_v11, %v172_v8  ;;  %v203_v18 = vmul.f32 %v1503_v9, %v1960_v5  ;;  %v1444_v19 = vunpack.c.h.bf16 %v1707_v2 }
  0x1f   :  { %1818 = vmatpush3.bf16.msra.mxu0 %v1906_v14  ;;  %1898 = vmatpush3.bf16.msra.mxu1 %v1906_v14  ;;  %v337_v10 = vmax.f32 %v273_v6, 0.0  ;;  %v1443_v14 = vunpack.c.l.bf16 %v1707_v2  ;;  %v204_v23 = vmul.f32 %v1504_v13, %v1960_v5  ;;  %v1507_v28 = vunpack.c.l.bf16 %v1723_v15  ;;  %v1710_v2 = vld [vmem:[%s2444_s0 + $0x50] sm:$0xff]  }
  0x20   :  { %v363_v16 = vpack.c.bf16 %v305_v7, %v304_v4  ;;  %v307_v25 = vmax.f32 %v243_v17, 0.0  ;;  %v274_v26 = vadd.f32 %v1974_v11, %v203_v18  ;;  %v174_v27 = vmul.f32 %v1444_v19, %v1960_v5 }
  0x21   :  { %v173_v24 = vmul.f32 %v1443_v14, %v1960_v5  ;;  %v1508_v31 = vunpack.c.h.bf16 %v1723_v15  ;;  %v205_v38 = vmul.f32 %v1507_v28, %v1960_v5  ;;  %v1512_v50 = vunpack.c.h.bf16 %v1724_v33 }
  0x22   :  { %1820 = vmatmul.mubr.bf16.vlgmr.msra.gmra.mrb[0].mxu0 %v2011_v54  ;;  %1852 = vmatmul.mubr.bf16.vlgmr.msra.gmra.mrb[0].mxu1 %v2017_v59  ;;  %v171_v54 = vmul.f32 %v1439_v55, %v1960_v5  ;;  %v336_v59 = vmax.f32 %v272_v0, 0.0  ;;  %v338_v36 = vmax.f32 %v274_v26, 0.0  ;;  %v245_v37 = vadd.f32 %v1974_v11, %v174_v27 }
  0x23   :  { %1823 = vmatprep.mubr.bf16.mxu0 %v360_v20  ;;  %1855 = vmatprep.mubr.bf16.mxu1 %v376_v29  ;;  %v1708_v20 = vld [vmem:[%s2444_s0 + $0x40] sm:$0xff]   ;;  %v275_v29 = vadd.f32 %v1974_v11, %v204_v23  ;;  %v244_v30 = vadd.f32 %v1974_v11, %v173_v24  ;;  %v206_v41 = vmul.f32 %v1508_v31, %v1960_v5  ;;  %v1515_v1 = vunpack.c.l.bf16 %v1725_v51 }
  0x24   :  { %v242_v12 = vadd.f32 %v1974_v11, %v171_v54  ;;  %v379_v21 = vpack.c.bf16 %v337_v10, %v336_v59  ;;  %v1447_v32 = vunpack.c.l.bf16 %v1708_v20  ;;  %v1448_v42 = vunpack.c.h.bf16 %v1708_v20  ;;  %v1726_v10 = vld [vmem:[%s2444_s0 + $0xd0] sm:$0xff]   ;;  %v1711_v20 = vld [vmem:[%s2444_s0 + $0x58] sm:$0xff]  }
  0x25   :  { %v339_v39 = vmax.f32 %v275_v29, 0.0  ;;  %v308_v40 = vmax.f32 %v244_v30, 0.0  ;;  %v309_v44 = vmax.f32 %v245_v37, 0.0  ;;  %v276_v45 = vadd.f32 %v1974_v11, %v205_v38 }
  0x26   :  { %v306_v22 = vmax.f32 %v242_v12, 0.0  ;;  %v175_v46 = vmul.f32 %v1447_v32, %v1960_v5  ;;  %v277_v48 = vadd.f32 %v1974_v11, %v206_v41  ;;  %v176_v49 = vmul.f32 %v1448_v42, %v1960_v5 }
  0x27   :  { %v380_v47 = vpack.c.bf16 %v339_v39, %v338_v36  ;;  %v365_v52 = vpack.c.bf16 %v309_v44, %v308_v40  ;;  %v340_v53 = vmax.f32 %v276_v45, 0.0  ;;  %v208_v60 = vmul.f32 %v1512_v50, %v1960_v5  ;;  %v1712_v44 = vld [vmem:[%s2444_s0 + $0x60] sm:$0xff]  }
  0x28   :  { %v364_v35 = vpack.c.bf16 %v307_v25, %v306_v22  ;;  %v246_v55 = vadd.f32 %v1974_v11, %v175_v46  ;;  %v341_v57 = vmax.f32 %v277_v48, 0.0  ;;  %v247_v58 = vadd.f32 %v1974_v11, %v176_v49 }
  0x29   :  { %v279_v6 = vadd.f32 %v1974_v11, %v208_v60  ;;  %v1516_v8 = vunpack.c.h.bf16 %v1725_v51  ;;  %v209_v9 = vmul.f32 %v1515_v1, %v1960_v5  ;;  %v1455_v15 = vunpack.c.l.bf16 %v1710_v2  ;;  %v1728_v51 = vld [vmem:[%s2444_s0 + $0xe0] sm:$0xff]  }
  0x2a   :  { %1824 = vmatmul.mubr.bf16.gmra.mrb[4].mxu0 %v2049_v34  ;;  %1856 = vmatmul.mubr.bf16.gmra.mrb[4].mxu1 %v377_v43  ;;  %v1511_v34 = vunpack.c.l.bf16 %v1724_v33  ;;  %v1709_v43 = vld [vmem:[%s2444_s0 + $0x48] sm:$0xff]   ;;  %v311_v4 = vmax.f32 %v247_v58, 0.0  ;;  %v1456_v19 = vunpack.c.h.bf16 %v1710_v2  ;;  %v1519_v24 = vunpack.c.l.bf16 %v1726_v10  ;;  %v1727_v33 = vld [vmem:[%s2444_s0 + $0xd8] sm:$0xff]  }
  0x2b   :  { %1827 = vmatprep.mubr.bf16.mxu0 %v362_v62  ;;  %1859 = vmatprep.mubr.bf16.mxu1 %v378_v3  ;;  %v1451_v61 = vunpack.c.l.bf16 %v1709_v43  ;;  %v310_v62 = vmax.f32 %v246_v55, 0.0  ;;  %v1452_v0 = vunpack.c.h.bf16 %v1709_v43  ;;  %v381_v3 = vpack.c.bf16 %v341_v57, %v340_v53  ;;  %v1713_v2 = vld [vmem:[%s2444_s0 + $0x68] sm:$0xff]  }
  0x2c   :  { %v207_v56 = vmul.f32 %v1511_v34, %v1960_v5  ;;  %v343_v13 = vmax.f32 %v279_v6, 0.0  ;;  %v210_v17 = vmul.f32 %v1516_v8, %v1960_v5  ;;  %v280_v18 = vadd.f32 %v1974_v11, %v209_v9 }
  0x2d   :  { %v177_v54 = vmul.f32 %v1451_v61, %v1960_v5  ;;  %v178_v59 = vmul.f32 %v1452_v0, %v1960_v5  ;;  %v366_v12 = vpack.c.bf16 %v311_v4, %v310_v62  ;;  %v179_v23 = vmul.f32 %v1455_v15, %v1960_v5 }
  0x2e   :  { %v278_v63 = vadd.f32 %v1974_v11, %v207_v56  ;;  %v281_v26 = vadd.f32 %v1974_v11, %v210_v17  ;;  %v344_v27 = vmax.f32 %v280_v18, 0.0  ;;  %v180_v28 = vmul.f32 %v1456_v19, %v1960_v5  ;;  %v1714_v19 = vld [vmem:[%s2444_s0 + $0x70] sm:$0xff]  }
  0x2f   :  { %v248_v14 = vadd.f32 %v1974_v11, %v177_v54  ;;  %v250_v29 = vadd.f32 %v1974_v11, %v179_v23  ;;  %v1520_v30 = vunpack.c.h.bf16 %v1726_v10  ;;  %v211_v31 = vmul.f32 %v1519_v24, %v1960_v5 }
  0x30   :  { %v342_v7 = vmax.f32 %v278_v63, 0.0  ;;  %v1459_v32 = vunpack.c.l.bf16 %v1711_v20  ;;  %v345_v36 = vmax.f32 %v281_v26, 0.0  ;;  %v251_v37 = vadd.f32 %v1974_v11, %v180_v28  ;;  %v1730_v28 = vld [vmem:[%s2444_s0 + $0xf0] sm:$0xff]  }
  0x31   :  { %v312_v22 = vmax.f32 %v248_v14, 0.0  ;;  %v1460_v38 = vunpack.c.h.bf16 %v1711_v20  ;;  %v314_v39 = vmax.f32 %v250_v29, 0.0  ;;  %v212_v40 = vmul.f32 %v1520_v30, %v1960_v5 }
  0x32   :  { %1828 = vmatmul.mubr.bf16.gmra.mrb[8].mxu0 %v363_v16  ;;  %1860 = vmatmul.mubr.bf16.gmra.mrb[8].mxu1 %v379_v21  ;;  %v249_v16 = vadd.f32 %v1974_v11, %v178_v59  ;;  %v382_v21 = vpack.c.bf16 %v343_v13, %v342_v7  ;;  %v282_v41 = vadd.f32 %v1974_v11, %v211_v31  ;;  %v315_v46 = vmax.f32 %v251_v37, 0.0  ;;  %v1729_v7 = vld [vmem:[%s2444_s0 + $0xe8] sm:$0xff]  }
  0x33   :  { %1831 = vmatprep.mubr.bf16.mxu0 %v364_v35  ;;  %1863 = vmatprep.mubr.bf16.mxu1 %v380_v47  ;;  %v181_v42 = vmul.f32 %v1459_v32, %v1960_v5  ;;  %v383_v45 = vpack.c.bf16 %v345_v36, %v344_v27  ;;  %v182_v34 = vmul.f32 %v1460_v38, %v1960_v5  ;;  %v1523_v43 = vunpack.c.l.bf16 %v1727_v33  ;;  %v1715_v38 = vld [vmem:[%s2444_s0 + $0x78] sm:$0xff]  }
  0x34   :  { %v313_v25 = vmax.f32 %v249_v16, 0.0  ;;  %v283_v47 = vadd.f32 %v1974_v11, %v212_v40  ;;  %v346_v48 = vmax.f32 %v282_v41, 0.0  ;;  %v1524_v50 = vunpack.c.h.bf16 %v1727_v33 }
  0x35   :  { %v252_v49 = vadd.f32 %v1974_v11, %v181_v42  ;;  %v368_v53 = vpack.c.bf16 %v315_v46, %v314_v39  ;;  %v213_v55 = vmul.f32 %v1523_v43, %v1960_v5  ;;  %v1463_v56 = vunpack.c.l.bf16 %v1712_v44 }
  0x36   :  { %v367_v35 = vpack.c.bf16 %v313_v25, %v312_v22  ;;  %v347_v57 = vmax.f32 %v283_v47, 0.0  ;;  %v214_v60 = vmul.f32 %v1524_v50, %v1960_v5  ;;  %v1464_v61 = vunpack.c.h.bf16 %v1712_v44  ;;  %v1731_v50 = vld [vmem:[%s2444_s0 + $0xf8] sm:$0xff]  }
  0x37   :  { %v316_v58 = vmax.f32 %v252_v49, 0.0  ;;  %v284_v63 = vadd.f32 %v1974_v11, %v213_v55  ;;  %v183_v0 = vmul.f32 %v1463_v56, %v1960_v5  ;;  %v1527_v1 = vunpack.c.l.bf16 %v1728_v51 }
  0x38   :  { %v285_v4 = vadd.f32 %v1974_v11, %v214_v60  ;;  %v184_v6 = vmul.f32 %v1464_v61, %v1960_v5  ;;  %v1528_v54 = vunpack.c.h.bf16 %v1728_v51  ;;  %v1467_v14 = vunpack.c.l.bf16 %v1713_v2 }
  0x39   :  { %v348_v59 = vmax.f32 %v284_v63, 0.0  ;;  %v254_v8 = vadd.f32 %v1974_v11, %v183_v0  ;;  %v215_v9 = vmul.f32 %v1527_v1, %v1960_v5  ;;  %v1468_v17 = vunpack.c.h.bf16 %v1713_v2 }
  0x3a   :  { %1832 = vmatmul.mubr.bf16.gmra.mrb[12].mxu0 %v365_v52  ;;  %1864 = vmatmul.mubr.bf16.gmra.mrb[12].mxu1 %v381_v3  ;;  %v253_v52 = vadd.f32 %v1974_v11, %v182_v34  ;;  %v384_v3 = vpack.c.bf16 %v347_v57, %v346_v48  ;;  %v349_v10 = vmax.f32 %v285_v4, 0.0  ;;  %v216_v13 = vmul.f32 %v1528_v54, %v1960_v5 }
  0x3b   :  { %1835 = vmatprep.mubr.bf16.mxu0 %v366_v12  ;;  %1867 = vmatprep.mubr.bf16.mxu1 %v382_v21  ;;  %v255_v12 = vadd.f32 %v1974_v11, %v184_v6  ;;  %v286_v16 = vadd.f32 %v1974_v11, %v215_v9  ;;  %v1531_v18 = vunpack.c.l.bf16 %v1729_v7  ;;  %v318_v20 = vmax.f32 %v254_v8, 0.0 }
  0x3c   :  { %v317_v62 = vmax.f32 %v253_v52, 0.0  ;;  %v287_v22 = vadd.f32 %v1974_v11, %v216_v13  ;;  %v185_v23 = vmul.f32 %v1467_v14, %v1960_v5  ;;  %v186_v25 = vmul.f32 %v1468_v17, %v1960_v5 }
  0x3d   :  { %v319_v21 = vmax.f32 %v255_v12, 0.0  ;;  %v350_v24 = vmax.f32 %v286_v16, 0.0  ;;  %v1532_v26 = vunpack.c.h.bf16 %v1729_v7  ;;  %v217_v27 = vmul.f32 %v1531_v18, %v1960_v5 }
  0x3e   :  { %v369_v15 = vpack.c.bf16 %v317_v62, %v316_v58  ;;  %v385_v29 = vpack.c.bf16 %v349_v10, %v348_v59  ;;  %v351_v30 = vmax.f32 %v287_v22, 0.0  ;;  %v256_v31 = vadd.f32 %v1974_v11, %v185_v23 }
  0x3f   :  { %v1471_v32 = vunpack.c.l.bf16 %v1714_v19  ;;  %v257_v33 = vadd.f32 %v1974_v11, %v186_v25  ;;  %v288_v36 = vadd.f32 %v1974_v11, %v217_v27  ;;  %v1472_v37 = vunpack.c.h.bf16 %v1714_v19 }
  0x40   :  { %v370_v39 = vpack.c.bf16 %v319_v21, %v318_v20  ;;  %v386_v40 = vpack.c.bf16 %v351_v30, %v350_v24  ;;  %v1535_v42 = vunpack.c.l.bf16 %v1730_v28  ;;  %v320_v44 = vmax.f32 %v256_v31, 0.0 }
  0x41   :  { %v187_v41 = vmul.f32 %v1471_v32, %v1960_v5  ;;  %v188_v34 = vmul.f32 %v1472_v37, %v1960_v5  ;;  %v1536_v47 = vunpack.c.h.bf16 %v1730_v28  ;;  %v1475_v49 = vunpack.c.l.bf16 %v1715_v38 }
  0x42   :  { %1836 = vmatmul.mubr.bf16.gmra.mrb[16].mxu0 %v367_v35  ;;  %1868 = vmatmul.mubr.bf16.gmra.mrb[16].mxu1 %v383_v45  ;;  %v218_v35 = vmul.f32 %v1532_v26, %v1960_v5  ;;  %v321_v45 = vmax.f32 %v257_v33, 0.0  ;;  %v219_v48 = vmul.f32 %v1535_v42, %v1960_v5  ;;  %v352_v51 = vmax.f32 %v288_v36, 0.0 }
  0x43   :  { %1839 = vmatprep.mubr.bf16.mxu0 %v368_v53  ;;  %1871 = vmatprep.mubr.bf16.mxu1 %v384_v3  ;;  %v258_v43 = vadd.f32 %v1974_v11, %v187_v41  ;;  %v259_v52 = vadd.f32 %v1974_v11, %v188_v34  ;;  %v1476_v55 = vunpack.c.h.bf16 %v1715_v38  ;;  %v220_v57 = vmul.f32 %v1536_v47, %v1960_v5 }
  0x44   :  { %v289_v46 = vadd.f32 %v1974_v11, %v218_v35  ;;  %v290_v58 = vadd.f32 %v1974_v11, %v219_v48  ;;  %v189_v60 = vmul.f32 %v1475_v49, %v1960_v5  ;;  %v1539_v63 = vunpack.c.l.bf16 %v1731_v50 }
  0x45   :  { %v322_v56 = vmax.f32 %v258_v43, 0.0  ;;  %v323_v61 = vmax.f32 %v259_v52, 0.0  ;;  %v190_v62 = vmul.f32 %v1476_v55, %v1960_v5  ;;  %v371_v0 = vpack.c.bf16 %v321_v45, %v320_v44 }
  0x46   :  { %v353_v53 = vmax.f32 %v289_v46, 0.0  ;;  %v291_v1 = vadd.f32 %v1974_v11, %v220_v57  ;;  %v354_v2 = vmax.f32 %v290_v58, 0.0  ;;  %v1540_v3 = vunpack.c.h.bf16 %v1731_v50 }
  0x47   :  { %v260_v6 = vadd.f32 %v1974_v11, %v189_v60  ;;  %v261_v54 = vadd.f32 %v1974_v11, %v190_v62  ;;  %v221_v7 = vmul.f32 %v1539_v63, %v1960_v5  ;;  %v372_v59 = vpack.c.bf16 %v323_v61, %v322_v56 }
  0x48   :  { %v387_v4 = vpack.c.bf16 %v353_v53, %v352_v51  ;;  %v355_v8 = vmax.f32 %v291_v1, 0.0  ;;  %v222_v9 = vmul.f32 %v1540_v3, %v1960_v5  ;;  %v2212_v5 = vld [vmem:[%s2447_s4] ss:$0 sm:$0xff] }
  0x49   :  { %v292_v10 = vadd.f32 %v1974_v11, %v221_v7  ;;  %v324_v14 = vmax.f32 %v260_v6, 0.0 }
  0x4a   :  { %1840 = vmatmul.mubr.bf16.gmra.mrb[20].mxu0 %v369_v15  ;;  %1872 = vmatmul.mubr.bf16.gmra.mrb[20].mxu1 %v385_v29  ;;  %v388_v12 = vpack.c.bf16 %v355_v8, %v354_v2  ;;  %v293_v13 = vadd.f32 %v1974_v11, %v222_v9  ;;  %v325_v15 = vmax.f32 %v261_v54, 0.0  ;;  %v2217_v11 = vld [vmem:[%s2448_s5] ss:$0 sm:$0xff] }
  0x4b   :  { %1843 = vmatprep.mubr.bf16.mxu0 %v370_v39  ;;  %1875 = vmatprep.mubr.bf16.mxu1 %v386_v40  ;;  %v356_v16 = vmax.f32 %v292_v10, 0.0 }
  0x4c   :  { %v357_v17 = vmax.f32 %v293_v13, 0.0  ;;  %v373_v18 = vpack.c.bf16 %v325_v15, %v324_v14 }
  0x4e   :  { %v389_v19 = vpack.c.bf16 %v357_v17, %v356_v16 }
  0x52   :  { %1844 = vmatmul.mubr.bf16.gmra.mrb[24].mxu0 %v371_v0  ;;  %1876 = vmatmul.mubr.bf16.gmra.mrb[24].mxu1 %v387_v4 }
  0x53   :  { %1847 = vmatprep.mubr.bf16.mxu0 %v372_v59  ;;  %1879 = vmatprep.mubr.bf16.mxu1 %v388_v12 }
  0x5a   :  { %1848 = vmatmul.mubr.bf16.gmra.mrb[28].mxu0 %v373_v18  ;;  %1880 = vmatmul.mubr.bf16.gmra.mrb[28].mxu1 %v389_v19 }
  0xf5   :  { %v1821_v20 = vpop.f32.mrb[0].mxu0  ;;  %v1853_v21 = vpop.f32.mrb[0].mxu1 }
  0xf6   :  { %v752_v22 = vmul.f32 %v1821_v20, %v2212_v5  ;;  %v784_v23 = vmul.f32 %v1853_v21, %v2212_v5  ;;  %v488_v24 = vpop.f32.mrb[1].mxu0  ;;  %v616_v25 = vpop.f32.mrb[1].mxu1 }
  0xf7   :  { %v750_v26 = vmul.f32 %v2212_v5, %v488_v24  ;;  %v782_v27 = vmul.f32 %v2212_v5, %v616_v25  ;;  %v1822_v28 = vpop.f32.mrb[2].mxu0  ;;  %v1854_v29 = vpop.f32.mrb[2].mxu1 }
  0xf8   :  { %v823_v30 = vadd.f32 %v2217_v11, %v752_v22  ;;  %v855_v31 = vadd.f32 %v2217_v11, %v784_v23  ;;  %v753_v32 = vmul.f32 %v1822_v28, %v2212_v5  ;;  %v785_v33 = vmul.f32 %v1854_v29, %v2212_v5  ;;  %v491_v35 = vpop.f32.mrb[3].mxu0  ;;  %v619_v36 = vpop.f32.mrb[3].mxu1 }
  0xf9   :  { %v821_v37 = vadd.f32 %v2217_v11, %v750_v26  ;;  %v853_v38 = vadd.f32 %v2217_v11, %v782_v27  ;;  %v751_v39 = vmul.f32 %v2212_v5, %v491_v35  ;;  %v783_v40 = vmul.f32 %v2212_v5, %v619_v36 }
  0xfa   :  { %v824_v41 = vadd.f32 %v2217_v11, %v753_v32  ;;  %v856_v42 = vadd.f32 %v2217_v11, %v785_v33  ;;  %v887_v46 = vmax.f32 %v823_v30, 0.0  ;;  %v919_v34 = vmax.f32 %v855_v31, 0.0 }
  0xfb   :  { %v822_v44 = vadd.f32 %v2217_v11, %v751_v39  ;;  %v854_v45 = vadd.f32 %v2217_v11, %v783_v40  ;;  %v885_v48 = vmax.f32 %v821_v37, 0.0  ;;  %v917_v49 = vmax.f32 %v853_v38, 0.0 }
  0xfc   :  { %v888_v43 = vmax.f32 %v824_v41, 0.0  ;;  %v920_v47 = vmax.f32 %v856_v42, 0.0 }
  0xfd   :  { %v886_v50 = vmax.f32 %v822_v44, 0.0  ;;  %v918_v51 = vmax.f32 %v854_v45, 0.0  ;;  %v1825_v53 = vpop.f32.mrb[4].mxu0  ;;  %v1857_v52 = vpop.f32.mrb[4].mxu1 }
  0xfe   :  { %v1549_v55 = vpack.c.bf16 %v888_v43, %v887_v46  ;;  %v1629_v56 = vpack.c.bf16 %v920_v47, %v919_v34  ;;  %v756_v57 = vmul.f32 %v1825_v53, %v2212_v5  ;;  %v788_v58 = vmul.f32 %v1857_v52, %v2212_v5  ;;  %v504_v60 = vpop.f32.mrb[5].mxu0  ;;  %v632_v61 = vpop.f32.mrb[5].mxu1 }
  0xff   :  { %v1544_v62 = vpack.c.bf16 %v886_v50, %v885_v48  ;;  %v1624_v63 = vpack.c.bf16 %v918_v51, %v917_v49  ;;  %v754_v0 = vmul.f32 %v2212_v5, %v504_v60  ;;  %v786_v1 = vmul.f32 %v2212_v5, %v632_v61  ;;  %v1826_v2 = vpop.f32.mrb[6].mxu0  ;;  %v1858_v3 = vpop.f32.mrb[6].mxu1 }
 0x100   :  { %1732 = vst [vmem:[%s2449_s6 + $0x8] sm:$0xff] %v1549_v55   ;;  %1748 = vst [vmem:[%s2449_s6 + $0x88] sm:$0xff] %v1629_v56   ;;  %v827_v4 = vadd.f32 %v2217_v11, %v756_v57  ;;  %v859_v6 = vadd.f32 %v2217_v11, %v788_v58  ;;  %v757_v54 = vmul.f32 %v1826_v2, %v2212_v5  ;;  %v507_v59 = vpop.f32.mrb[7].mxu0  ;;  %v635_v8 = vpop.f32.mrb[7].mxu1 }
 0x101   :  { %v789_v7 = vmul.f32 %v1858_v3, %v2212_v5  ;;  %1545 = vst [vmem:[%s2449_s6] sm:$0xff] %v1544_v62   ;;  %1747 = vst [vmem:[%s2449_s6 + $0x80] sm:$0xff] %v1624_v63   ;;  %v825_v9 = vadd.f32 %v2217_v11, %v754_v0  ;;  %v857_v10 = vadd.f32 %v2217_v11, %v786_v1 }
 0x102   :  { %v755_v12 = vmul.f32 %v2212_v5, %v507_v59  ;;  %v787_v13 = vmul.f32 %v2212_v5, %v635_v8  ;;  %v828_v14 = vadd.f32 %v2217_v11, %v757_v54  ;;  %v891_v18 = vmax.f32 %v827_v4, 0.0 }
 0x103   :  { %v860_v15 = vadd.f32 %v2217_v11, %v789_v7  ;;  %v923_v19 = vmax.f32 %v859_v6, 0.0  ;;  %v889_v22 = vmax.f32 %v825_v9, 0.0  ;;  %v921_v23 = vmax.f32 %v857_v10, 0.0 }
 0x104   :  { %v826_v16 = vadd.f32 %v2217_v11, %v755_v12  ;;  %v858_v17 = vadd.f32 %v2217_v11, %v787_v13  ;;  %v892_v20 = vmax.f32 %v828_v14, 0.0 }
 0x105   :  { %v924_v21 = vmax.f32 %v860_v15, 0.0  ;;  %v1829_v26 = vpop.f32.mrb[8].mxu0  ;;  %v1861_v27 = vpop.f32.mrb[8].mxu1 }
 0x106   :  { %v890_v24 = vmax.f32 %v826_v16, 0.0  ;;  %v922_v25 = vmax.f32 %v858_v17, 0.0  ;;  %v1559_v28 = vpack.c.bf16 %v892_v20, %v891_v18  ;;  %v760_v30 = vmul.f32 %v1829_v26, %v2212_v5  ;;  %v520_v32 = vpop.f32.mrb[9].mxu0  ;;  %v648_v33 = vpop.f32.mrb[9].mxu1 }
 0x107   :  { %v1639_v29 = vpack.c.bf16 %v924_v21, %v923_v19  ;;  %v792_v31 = vmul.f32 %v1861_v27, %v2212_v5  ;;  %v758_v37 = vmul.f32 %v2212_v5, %v520_v32  ;;  %v790_v38 = vmul.f32 %v2212_v5, %v648_v33  ;;  %v1830_v39 = vpop.f32.mrb[10].mxu0  ;;  %v1862_v40 = vpop.f32.mrb[10].mxu1 }
 0x108   :  { %v1554_v35 = vpack.c.bf16 %v890_v24, %v889_v22  ;;  %v1634_v36 = vpack.c.bf16 %v922_v25, %v921_v23  ;;  %1734 = vst [vmem:[%s2449_s6 + $0x18] sm:$0xff] %v1559_v28   ;;  %v831_v41 = vadd.f32 %v2217_v11, %v760_v30  ;;  %v761_v44 = vmul.f32 %v1830_v39, %v2212_v5  ;;  %v523_v46 = vpop.f32.mrb[11].mxu0  ;;  %v651_v34 = vpop.f32.mrb[11].mxu1 }
 0x109   :  { %1750 = vst [vmem:[%s2449_s6 + $0x98] sm:$0xff] %v1639_v29   ;;  %v863_v42 = vadd.f32 %v2217_v11, %v792_v31  ;;  %v793_v45 = vmul.f32 %v1862_v40, %v2212_v5  ;;  %v829_v43 = vadd.f32 %v2217_v11, %v758_v37  ;;  %v861_v47 = vadd.f32 %v2217_v11, %v790_v38 }
 0x10a   :  { %1733 = vst [vmem:[%s2449_s6 + $0x10] sm:$0xff] %v1554_v35   ;;  %1749 = vst [vmem:[%s2449_s6 + $0x90] sm:$0xff] %v1634_v36   ;;  %v759_v48 = vmul.f32 %v2212_v5, %v523_v46  ;;  %v791_v49 = vmul.f32 %v2212_v5, %v651_v34  ;;  %v832_v50 = vadd.f32 %v2217_v11, %v761_v44  ;;  %v895_v55 = vmax.f32 %v831_v41, 0.0 }
 0x10b   :  { %v864_v51 = vadd.f32 %v2217_v11, %v793_v45  ;;  %v927_v56 = vmax.f32 %v863_v42, 0.0  ;;  %v893_v60 = vmax.f32 %v829_v43, 0.0  ;;  %v925_v61 = vmax.f32 %v861_v47, 0.0 }
 0x10c   :  { %v830_v53 = vadd.f32 %v2217_v11, %v759_v48  ;;  %v862_v52 = vadd.f32 %v2217_v11, %v791_v49  ;;  %v896_v57 = vmax.f32 %v832_v50, 0.0 }
 0x10d   :  { %v928_v58 = vmax.f32 %v864_v51, 0.0  ;;  %v1833_v0 = vpop.f32.mrb[12].mxu0  ;;  %v1865_v1 = vpop.f32.mrb[12].mxu1 }
 0x10e   :  { %v894_v62 = vmax.f32 %v830_v53, 0.0  ;;  %v926_v63 = vmax.f32 %v862_v52, 0.0  ;;  %v1569_v2 = vpack.c.bf16 %v896_v57, %v895_v55  ;;  %v764_v4 = vmul.f32 %v1833_v0, %v2212_v5  ;;  %v536_v54 = vpop.f32.mrb[13].mxu0  ;;  %v664_v7 = vpop.f32.mrb[13].mxu1 }
 0x10f   :  { %v1649_v3 = vpack.c.bf16 %v928_v58, %v927_v56  ;;  %v796_v6 = vmul.f32 %v1865_v1, %v2212_v5  ;;  %v762_v9 = vmul.f32 %v2212_v5, %v536_v54  ;;  %v794_v10 = vmul.f32 %v2212_v5, %v664_v7  ;;  %v1834_v12 = vpop.f32.mrb[14].mxu0  ;;  %v1866_v13 = vpop.f32.mrb[14].mxu1 }
 0x110   :  { %v1564_v59 = vpack.c.bf16 %v894_v62, %v893_v60  ;;  %v1644_v8 = vpack.c.bf16 %v926_v63, %v925_v61  ;;  %1736 = vst [vmem:[%s2449_s6 + $0x28] sm:$0xff] %v1569_v2   ;;  %v835_v14 = vadd.f32 %v2217_v11, %v764_v4  ;;  %v765_v16 = vmul.f32 %v1834_v12, %v2212_v5  ;;  %v539_v18 = vpop.f32.mrb[15].mxu0  ;;  %v667_v19 = vpop.f32.mrb[15].mxu1 }
 0x111   :  { %1752 = vst [vmem:[%s2449_s6 + $0xa8] sm:$0xff] %v1649_v3   ;;  %v867_v15 = vadd.f32 %v2217_v11, %v796_v6  ;;  %v797_v17 = vmul.f32 %v1866_v13, %v2212_v5  ;;  %v833_v20 = vadd.f32 %v2217_v11, %v762_v9  ;;  %v865_v21 = vadd.f32 %v2217_v11, %v794_v10 }
 0x112   :  { %1735 = vst [vmem:[%s2449_s6 + $0x20] sm:$0xff] %v1564_v59   ;;  %1751 = vst [vmem:[%s2449_s6 + $0xa0] sm:$0xff] %v1644_v8   ;;  %v763_v22 = vmul.f32 %v2212_v5, %v539_v18  ;;  %v795_v23 = vmul.f32 %v2212_v5, %v667_v19  ;;  %v836_v24 = vadd.f32 %v2217_v11, %v765_v16  ;;  %v899_v28 = vmax.f32 %v835_v14, 0.0 }
 0x113   :  { %v868_v25 = vadd.f32 %v2217_v11, %v797_v17  ;;  %v931_v29 = vmax.f32 %v867_v15, 0.0  ;;  %v897_v32 = vmax.f32 %v833_v20, 0.0  ;;  %v929_v33 = vmax.f32 %v865_v21, 0.0 }
 0x114   :  { %v834_v26 = vadd.f32 %v2217_v11, %v763_v22  ;;  %v866_v27 = vadd.f32 %v2217_v11, %v795_v23  ;;  %v900_v30 = vmax.f32 %v836_v24, 0.0 }
 0x115   :  { %v932_v31 = vmax.f32 %v868_v25, 0.0  ;;  %v1837_v37 = vpop.f32.mrb[16].mxu0  ;;  %v1869_v38 = vpop.f32.mrb[16].mxu1 }
 0x116   :  { %v898_v35 = vmax.f32 %v834_v26, 0.0  ;;  %v930_v36 = vmax.f32 %v866_v27, 0.0  ;;  %v1579_v39 = vpack.c.bf16 %v900_v30, %v899_v28  ;;  %v768_v41 = vmul.f32 %v1837_v37, %v2212_v5  ;;  %v552_v44 = vpop.f32.mrb[17].mxu0  ;;  %v680_v45 = vpop.f32.mrb[17].mxu1 }
 0x117   :  { %v1659_v40 = vpack.c.bf16 %v932_v31, %v931_v29  ;;  %v800_v42 = vmul.f32 %v1869_v38, %v2212_v5  ;;  %v766_v43 = vmul.f32 %v2212_v5, %v552_v44  ;;  %v798_v47 = vmul.f32 %v2212_v5, %v680_v45  ;;  %v1838_v48 = vpop.f32.mrb[18].mxu0  ;;  %v1870_v49 = vpop.f32.mrb[18].mxu1 }
 0x118   :  { %v1574_v46 = vpack.c.bf16 %v898_v35, %v897_v32  ;;  %v1654_v34 = vpack.c.bf16 %v930_v36, %v929_v33  ;;  %1738 = vst [vmem:[%s2449_s6 + $0x38] sm:$0xff] %v1579_v39   ;;  %v839_v50 = vadd.f32 %v2217_v11, %v768_v41  ;;  %v769_v53 = vmul.f32 %v1838_v48, %v2212_v5  ;;  %v555_v55 = vpop.f32.mrb[19].mxu0  ;;  %v683_v56 = vpop.f32.mrb[19].mxu1 }
 0x119   :  { %1754 = vst [vmem:[%s2449_s6 + $0xb8] sm:$0xff] %v1659_v40   ;;  %v871_v51 = vadd.f32 %v2217_v11, %v800_v42  ;;  %v801_v52 = vmul.f32 %v1870_v49, %v2212_v5  ;;  %v837_v57 = vadd.f32 %v2217_v11, %v766_v43  ;;  %v869_v58 = vadd.f32 %v2217_v11, %v798_v47 }
 0x11a   :  { %1737 = vst [vmem:[%s2449_s6 + $0x30] sm:$0xff] %v1574_v46   ;;  %1753 = vst [vmem:[%s2449_s6 + $0xb0] sm:$0xff] %v1654_v34   ;;  %v767_v60 = vmul.f32 %v2212_v5, %v555_v55  ;;  %v799_v61 = vmul.f32 %v2212_v5, %v683_v56  ;;  %v840_v62 = vadd.f32 %v2217_v11, %v769_v53  ;;  %v903_v2 = vmax.f32 %v839_v50, 0.0 }
 0x11b   :  { %v872_v63 = vadd.f32 %v2217_v11, %v801_v52  ;;  %v935_v3 = vmax.f32 %v871_v51, 0.0  ;;  %v901_v54 = vmax.f32 %v837_v57, 0.0  ;;  %v933_v7 = vmax.f32 %v869_v58, 0.0 }
 0x11c   :  { %v838_v0 = vadd.f32 %v2217_v11, %v767_v60  ;;  %v870_v1 = vadd.f32 %v2217_v11, %v799_v61  ;;  %v904_v4 = vmax.f32 %v840_v62, 0.0 }
 0x11d   :  { %v936_v6 = vmax.f32 %v872_v63, 0.0  ;;  %v1841_v9 = vpop.f32.mrb[20].mxu0  ;;  %v1873_v10 = vpop.f32.mrb[20].mxu1 }
 0x11e   :  { %v902_v59 = vmax.f32 %v838_v0, 0.0  ;;  %v934_v8 = vmax.f32 %v870_v1, 0.0  ;;  %v1589_v12 = vpack.c.bf16 %v904_v4, %v903_v2  ;;  %v772_v14 = vmul.f32 %v1841_v9, %v2212_v5  ;;  %v568_v16 = vpop.f32.mrb[21].mxu0  ;;  %v696_v17 = vpop.f32.mrb[21].mxu1 }
 0x11f   :  { %v1669_v13 = vpack.c.bf16 %v936_v6, %v935_v3  ;;  %v804_v15 = vmul.f32 %v1873_v10, %v2212_v5  ;;  %v770_v20 = vmul.f32 %v2212_v5, %v568_v16  ;;  %v802_v21 = vmul.f32 %v2212_v5, %v696_v17  ;;  %v1842_v22 = vpop.f32.mrb[22].mxu0  ;;  %v1874_v23 = vpop.f32.mrb[22].mxu1 }
 0x120   :  { %v1584_v18 = vpack.c.bf16 %v902_v59, %v901_v54  ;;  %v1664_v19 = vpack.c.bf16 %v934_v8, %v933_v7  ;;  %1740 = vst [vmem:[%s2449_s6 + $0x48] sm:$0xff] %v1589_v12   ;;  %v843_v24 = vadd.f32 %v2217_v11, %v772_v14  ;;  %v773_v26 = vmul.f32 %v1842_v22, %v2212_v5  ;;  %v571_v28 = vpop.f32.mrb[23].mxu0  ;;  %v699_v29 = vpop.f32.mrb[23].mxu1 }
 0x121   :  { %1756 = vst [vmem:[%s2449_s6 + $0xc8] sm:$0xff] %v1669_v13   ;;  %v875_v25 = vadd.f32 %v2217_v11, %v804_v15  ;;  %v805_v27 = vmul.f32 %v1874_v23, %v2212_v5  ;;  %v841_v30 = vadd.f32 %v2217_v11, %v770_v20  ;;  %v873_v31 = vadd.f32 %v2217_v11, %v802_v21 }
 0x122   :  { %1739 = vst [vmem:[%s2449_s6 + $0x40] sm:$0xff] %v1584_v18   ;;  %1755 = vst [vmem:[%s2449_s6 + $0xc0] sm:$0xff] %v1664_v19   ;;  %v771_v32 = vmul.f32 %v2212_v5, %v571_v28  ;;  %v803_v33 = vmul.f32 %v2212_v5, %v699_v29  ;;  %v844_v35 = vadd.f32 %v2217_v11, %v773_v26  ;;  %v907_v39 = vmax.f32 %v843_v24, 0.0 }
 0x123   :  { %v876_v36 = vadd.f32 %v2217_v11, %v805_v27  ;;  %v939_v40 = vmax.f32 %v875_v25, 0.0  ;;  %v905_v44 = vmax.f32 %v841_v30, 0.0  ;;  %v937_v45 = vmax.f32 %v873_v31, 0.0 }
 0x124   :  { %v842_v37 = vadd.f32 %v2217_v11, %v771_v32  ;;  %v874_v38 = vadd.f32 %v2217_v11, %v803_v33  ;;  %v908_v41 = vmax.f32 %v844_v35, 0.0 }
 0x125   :  { %v940_v42 = vmax.f32 %v876_v36, 0.0  ;;  %v1845_v43 = vpop.f32.mrb[24].mxu0  ;;  %v1877_v47 = vpop.f32.mrb[24].mxu1 }
 0x126   :  { %v906_v46 = vmax.f32 %v842_v37, 0.0  ;;  %v938_v34 = vmax.f32 %v874_v38, 0.0  ;;  %v1599_v48 = vpack.c.bf16 %v908_v41, %v907_v39  ;;  %v776_v50 = vmul.f32 %v1845_v43, %v2212_v5  ;;  %v584_v53 = vpop.f32.mrb[25].mxu0  ;;  %v712_v52 = vpop.f32.mrb[25].mxu1 }
 0x127   :  { %v1679_v49 = vpack.c.bf16 %v940_v42, %v939_v40  ;;  %v808_v51 = vmul.f32 %v1877_v47, %v2212_v5  ;;  %v774_v57 = vmul.f32 %v2212_v5, %v584_v53  ;;  %v806_v58 = vmul.f32 %v2212_v5, %v712_v52  ;;  %v1846_v60 = vpop.f32.mrb[26].mxu0  ;;  %v1878_v61 = vpop.f32.mrb[26].mxu1 }
 0x128   :  { %v1594_v55 = vpack.c.bf16 %v906_v46, %v905_v44  ;;  %v1674_v56 = vpack.c.bf16 %v938_v34, %v937_v45  ;;  %1742 = vst [vmem:[%s2449_s6 + $0x58] sm:$0xff] %v1599_v48   ;;  %v847_v62 = vadd.f32 %v2217_v11, %v776_v50  ;;  %v777_v0 = vmul.f32 %v1846_v60, %v2212_v5  ;;  %v587_v2 = vpop.f32.mrb[27].mxu0  ;;  %v715_v3 = vpop.f32.mrb[27].mxu1 }
 0x129   :  { %1758 = vst [vmem:[%s2449_s6 + $0xd8] sm:$0xff] %v1679_v49   ;;  %v879_v63 = vadd.f32 %v2217_v11, %v808_v51  ;;  %v809_v1 = vmul.f32 %v1878_v61, %v2212_v5  ;;  %v845_v4 = vadd.f32 %v2217_v11, %v774_v57  ;;  %v877_v6 = vadd.f32 %v2217_v11, %v806_v58 }
 0x12a   :  { %1741 = vst [vmem:[%s2449_s6 + $0x50] sm:$0xff] %v1594_v55   ;;  %1757 = vst [vmem:[%s2449_s6 + $0xd0] sm:$0xff] %v1674_v56   ;;  %v775_v54 = vmul.f32 %v2212_v5, %v587_v2  ;;  %v807_v7 = vmul.f32 %v2212_v5, %v715_v3  ;;  %v848_v59 = vadd.f32 %v2217_v11, %v777_v0  ;;  %v911_v12 = vmax.f32 %v847_v62, 0.0 }
 0x12b   :  { %v880_v8 = vadd.f32 %v2217_v11, %v809_v1  ;;  %v943_v13 = vmax.f32 %v879_v63, 0.0  ;;  %v909_v16 = vmax.f32 %v845_v4, 0.0  ;;  %v941_v17 = vmax.f32 %v877_v6, 0.0 }
 0x12c   :  { %v846_v9 = vadd.f32 %v2217_v11, %v775_v54  ;;  %v878_v10 = vadd.f32 %v2217_v11, %v807_v7  ;;  %v912_v14 = vmax.f32 %v848_v59, 0.0 }
 0x12d   :  { %v944_v15 = vmax.f32 %v880_v8, 0.0  ;;  %v1849_v20 = vpop.f32.mrb[28].mxu0  ;;  %v1881_v21 = vpop.f32.mrb[28].mxu1 }
 0x12e   :  { %v910_v18 = vmax.f32 %v846_v9, 0.0  ;;  %v942_v19 = vmax.f32 %v878_v10, 0.0  ;;  %v1609_v22 = vpack.c.bf16 %v912_v14, %v911_v12  ;;  %v780_v24 = vmul.f32 %v1849_v20, %v2212_v5  ;;  %v600_v26 = vpop.f32.mrb[29].mxu0  ;;  %v728_v27 = vpop.f32.mrb[29].mxu1 }
 0x12f   :  { %v1689_v23 = vpack.c.bf16 %v944_v15, %v943_v13  ;;  %v812_v25 = vmul.f32 %v1881_v21, %v2212_v5  ;;  %v778_v30 = vmul.f32 %v2212_v5, %v600_v26  ;;  %v810_v31 = vmul.f32 %v2212_v5, %v728_v27  ;;  %v1850_v32 = vpop.f32.mrb[30].mxu0  ;;  %v1882_v33 = vpop.f32.mrb[30].mxu1 }
 0x130   :  { %v1604_v28 = vpack.c.bf16 %v910_v18, %v909_v16  ;;  %v1684_v29 = vpack.c.bf16 %v942_v19, %v941_v17  ;;  %1744 = vst [vmem:[%s2449_s6 + $0x68] sm:$0xff] %v1609_v22   ;;  %v851_v35 = vadd.f32 %v2217_v11, %v780_v24  ;;  %v781_v37 = vmul.f32 %v1850_v32, %v2212_v5  ;;  %v603_v39 = vpop.f32.mrb[31].mxu0  ;;  %v731_v40 = vpop.f32.mrb[31].mxu1 }
 0x131   :  { %1760 = vst [vmem:[%s2449_s6 + $0xe8] sm:$0xff] %v1689_v23   ;;  %v883_v36 = vadd.f32 %v2217_v11, %v812_v25  ;;  %v813_v38 = vmul.f32 %v1882_v33, %v2212_v5  ;;  %v849_v41 = vadd.f32 %v2217_v11, %v778_v30  ;;  %v881_v42 = vadd.f32 %v2217_v11, %v810_v31 }
 0x132   :  { %1743 = vst [vmem:[%s2449_s6 + $0x60] sm:$0xff] %v1604_v28   ;;  %1759 = vst [vmem:[%s2449_s6 + $0xe0] sm:$0xff] %v1684_v29   ;;  %v779_v44 = vmul.f32 %v2212_v5, %v603_v39  ;;  %v811_v45 = vmul.f32 %v2212_v5, %v731_v40  ;;  %v852_v46 = vadd.f32 %v2217_v11, %v781_v37  ;;  %v915_v48 = vmax.f32 %v851_v35, 0.0 }
 0x133   :  { %v884_v34 = vadd.f32 %v2217_v11, %v813_v38  ;;  %v947_v49 = vmax.f32 %v883_v36, 0.0  ;;  %v913_v53 = vmax.f32 %v849_v41, 0.0  ;;  %v945_v52 = vmax.f32 %v881_v42, 0.0 }
 0x134   :  { %v850_v43 = vadd.f32 %v2217_v11, %v779_v44  ;;  %v882_v47 = vadd.f32 %v2217_v11, %v811_v45  ;;  %v916_v50 = vmax.f32 %v852_v46, 0.0 }
 0x135   :  { %v948_v51 = vmax.f32 %v884_v34, 0.0 }
 0x136   :  { %v914_v55 = vmax.f32 %v850_v43, 0.0  ;;  %v946_v56 = vmax.f32 %v882_v47, 0.0  ;;  %v1619_v57 = vpack.c.bf16 %v916_v50, %v915_v48 }
 0x137   :  { %v1699_v58 = vpack.c.bf16 %v948_v51, %v947_v49 }
 0x138   :  { %v1614_v60 = vpack.c.bf16 %v914_v55, %v913_v53  ;;  %v1694_v5 = vpack.c.bf16 %v946_v56, %v945_v52  ;;  %1746 = vst [vmem:[%s2449_s6 + $0x78] sm:$0xff] %v1619_v57  }
 0x139   :  { %1762 = vst [vmem:[%s2449_s6 + $0xf8] sm:$0xff] %v1699_v58  }
 0x13a   :  { %1745 = vst [vmem:[%s2449_s6 + $0x70] sm:$0xff] %v1614_v60   ;;  %1761 = vst [vmem:[%s2449_s6 + $0xf0] sm:$0xff] %v1694_v5  }

// kernel: densenet_encoder_forward.26
= control target key start
LH: loop header
LB: loop body
LE: loop exit
PB: predicated region body
PF: predicated region fallthrough
CT: control target
= control target key end

     0   :  { %s704_s0 = inlined_call_operand.vmem [shape: bf16[9,64,128], index: 0, kind: input, shape index: {}]   ;;  %s705_s1 = inlined_call_operand.vmem [shape: f32[1,128], index: 1, kind: input, shape index: {}, may-alias: {1,2}]   ;;  %s706_s2 = inlined_call_operand.vmem [shape: f32[1,128], index: 2, kind: input, shape index: {}, may-alias: {1,2}]   ;;  %s707_s3 = inlined_call_operand.vmem [shape: bf16[64,128], index: 3, kind: output, shape index: {}]  }
   0x1   :  { %v355_v0 = vld [vmem:[%s704_s0] sm:$0xff]   ;;  %v518_v20 = vld [vmem:[%s704_s0 + $0x8] sm:$0xff]   ;;  %v519_v61 = vld [vmem:[%s704_s0 + $0x10] sm:$0xff]  }
   0x2   :  { %v521_v1 = vld [vmem:[%s704_s0 + $0x20] sm:$0xff]   ;;  %v356_v3 = vunpack.c.l.bf16 %v355_v0  ;;  %v357_v4 = vunpack.c.h.bf16 %v355_v0  ;;  %v522_v25 = vld [vmem:[%s704_s0 + $0x28] sm:$0xff]   ;;  %v360_v34 = vunpack.c.l.bf16 %v518_v20  ;;  %v361_v35 = vunpack.c.h.bf16 %v518_v20 }
   0x3   :  { %v525_v2 = vld [vmem:[%s704_s0 + $0x40] sm:$0xff]   ;;  %v372_v5 = vunpack.c.l.bf16 %v521_v1  ;;  %v373_v6 = vunpack.c.h.bf16 %v521_v1  ;;  %v526_v30 = vld [vmem:[%s704_s0 + $0x48] sm:$0xff]   ;;  %v376_v38 = vunpack.c.l.bf16 %v522_v25  ;;  %v377_v39 = vunpack.c.h.bf16 %v522_v25  ;;  %v535_v25 = vld [vmem:[%s704_s0 + $0x90] sm:$0xff]  }
   0x4   :  { %v529_v7 = vld [vmem:[%s704_s0 + $0x60] sm:$0xff]   ;;  %v388_v10 = vunpack.c.l.bf16 %v525_v2  ;;  %v389_v11 = vunpack.c.h.bf16 %v525_v2  ;;  %v530_v31 = vld [vmem:[%s704_s0 + $0x68] sm:$0xff]   ;;  %v392_v42 = vunpack.c.l.bf16 %v526_v30  ;;  %v393_v43 = vunpack.c.h.bf16 %v526_v30  ;;  %v539_v30 = vld [vmem:[%s704_s0 + $0xb0] sm:$0xff]  }
   0x5   :  { %v533_v8 = vld [vmem:[%s704_s0 + $0x80] sm:$0xff]   ;;  %v404_v12 = vunpack.c.l.bf16 %v529_v7  ;;  %v47_v15 = vmax.f32 %v356_v3, %v372_v5  ;;  %v48_v16 = vmax.f32 %v357_v4, %v373_v6  ;;  %v405_v17 = vunpack.c.h.bf16 %v529_v7  ;;  %v534_v40 = vld [vmem:[%s704_s0 + $0x88] sm:$0xff]   ;;  %v523_v6 = vld [vmem:[%s704_s0 + $0x30] sm:$0xff]  }
   0x6   :  { %v537_v9 = vld [vmem:[%s704_s0 + $0xa0] sm:$0xff]   ;;  %v420_v18 = vunpack.c.l.bf16 %v533_v8  ;;  %v421_v21 = vunpack.c.h.bf16 %v533_v8  ;;  %v538_v41 = vld [vmem:[%s704_s0 + $0xa8] sm:$0xff]   ;;  %v408_v44 = vunpack.c.l.bf16 %v530_v31  ;;  %v409_v45 = vunpack.c.h.bf16 %v530_v31  ;;  %v527_v7 = vld [vmem:[%s704_s0 + $0x50] sm:$0xff]  }
   0x7   :  { %v541_v13 = vld [vmem:[%s704_s0 + $0xc0] sm:$0xff]   ;;  %v436_v22 = vunpack.c.l.bf16 %v537_v9  ;;  %v437_v23 = vunpack.c.h.bf16 %v537_v9  ;;  %v72_v26 = vmax.f32 %v47_v15, %v388_v10  ;;  %v73_v27 = vmax.f32 %v48_v16, %v389_v11  ;;  %v542_v50 = vld [vmem:[%s704_s0 + $0xc8] sm:$0xff]   ;;  %v531_v16 = vld [vmem:[%s704_s0 + $0x70] sm:$0xff]  }
   0x8   :  { %v600_v14 = vld [vmem:[%s704_s0 + $0xe0] sm:$0xff]   ;;  %v452_v24 = vunpack.c.l.bf16 %v541_v13  ;;  %v453_v28 = vunpack.c.h.bf16 %v541_v13  ;;  %v49_v48 = vmax.f32 %v360_v34, %v376_v38  ;;  %v50_v49 = vmax.f32 %v361_v35, %v377_v39  ;;  %v546_v51 = vld [vmem:[%s704_s0 + $0xe8] sm:$0xff]  }
   0x9   :  { %v605_v19 = vld [vmem:[%s704_s0 + $0x100] sm:$0xff]   ;;  %v468_v29 = vunpack.c.l.bf16 %v600_v14  ;;  %v469_v32 = vunpack.c.h.bf16 %v600_v14  ;;  %v97_v36 = vmax.f32 %v72_v26, %v404_v12  ;;  %v98_v37 = vmax.f32 %v73_v27, %v405_v17  ;;  %v550_v60 = vld [vmem:[%s704_s0 + $0x108] sm:$0xff]  }
   0xa   :  { %v484_v33 = vunpack.c.l.bf16 %v605_v19  ;;  %v485_v52 = vunpack.c.h.bf16 %v605_v19  ;;  %v424_v53 = vunpack.c.l.bf16 %v534_v40  ;;  %v425_v54 = vunpack.c.h.bf16 %v534_v40  ;;  %v547_v40 = vld [vmem:[%s704_s0 + $0xf0] sm:$0xff]  }
   0xb   :  { %v122_v46 = vmax.f32 %v97_v36, %v420_v18  ;;  %v123_v47 = vmax.f32 %v98_v37, %v421_v21  ;;  %v440_v55 = vunpack.c.l.bf16 %v538_v41  ;;  %v74_v58 = vmax.f32 %v49_v48, %v392_v42 }
   0xc   :  { %v75_v59 = vmax.f32 %v50_v49, %v393_v43  ;;  %v441_v62 = vunpack.c.h.bf16 %v538_v41  ;;  %v456_v63 = vunpack.c.l.bf16 %v542_v50  ;;  %v457_v0 = vunpack.c.h.bf16 %v542_v50  ;;  %v524_v49 = vld [vmem:[%s704_s0 + $0x38] sm:$0xff]  }
   0xd   :  { %v147_v56 = vmax.f32 %v122_v46, %v436_v22  ;;  %v148_v57 = vmax.f32 %v123_v47, %v437_v23  ;;  %v472_v1 = vunpack.c.l.bf16 %v546_v51  ;;  %v99_v4 = vmax.f32 %v74_v58, %v408_v44  ;;  %v520_v44 = vld [vmem:[%s704_s0 + $0x18] sm:$0xff]  }
   0xe   :  { %v100_v5 = vmax.f32 %v75_v59, %v409_v45  ;;  %v473_v8 = vunpack.c.h.bf16 %v546_v51  ;;  %v488_v9 = vunpack.c.l.bf16 %v550_v60  ;;  %v364_v10 = vunpack.c.l.bf16 %v519_v61  ;;  %v532_v59 = vld [vmem:[%s704_s0 + $0x78] sm:$0xff]  }
   0xf   :  { %v172_v2 = vmax.f32 %v147_v56, %v452_v24  ;;  %v173_v3 = vmax.f32 %v148_v57, %v453_v28  ;;  %v365_v11 = vunpack.c.h.bf16 %v519_v61  ;;  %v124_v14 = vmax.f32 %v99_v4, %v424_v53  ;;  %v551_v61 = vld [vmem:[%s704_s0 + $0x110] sm:$0xff]  }
  0x10   :  { %v125_v15 = vmax.f32 %v100_v5, %v425_v54  ;;  %v380_v17 = vunpack.c.l.bf16 %v523_v6  ;;  %v381_v18 = vunpack.c.h.bf16 %v523_v6  ;;  %v396_v19 = vunpack.c.l.bf16 %v527_v7  ;;  %v528_v54 = vld [vmem:[%s704_s0 + $0x58] sm:$0xff]  }
  0x11   :  { %v197_v12 = vmax.f32 %v172_v2, %v468_v29  ;;  %v198_v13 = vmax.f32 %v173_v3, %v469_v32  ;;  %v397_v20 = vunpack.c.h.bf16 %v527_v7  ;;  %v149_v23 = vmax.f32 %v124_v14, %v440_v55  ;;  %v536_v5 = vld [vmem:[%s704_s0 + $0x98] sm:$0xff]  }
  0x12   :  { %v150_v24 = vmax.f32 %v125_v15, %v441_v62  ;;  %v51_v26 = vmax.f32 %v364_v10, %v380_v17  ;;  %v52_v27 = vmax.f32 %v365_v11, %v381_v18  ;;  %v412_v28 = vunpack.c.l.bf16 %v531_v16  ;;  %v540_v14 = vld [vmem:[%s704_s0 + $0xb8] sm:$0xff]  }
  0x13   :  { %v222_v21 = vmax.f32 %v197_v12, %v484_v33  ;;  %v223_v22 = vmax.f32 %v198_v13, %v485_v52  ;;  %v413_v29 = vunpack.c.h.bf16 %v531_v16  ;;  %v174_v32 = vmax.f32 %v149_v23, %v456_v63  ;;  %v543_v33 = vld [vmem:[%s704_s0 + $0xd0] sm:$0xff]  }
  0x14   :  { %v175_v34 = vmax.f32 %v150_v24, %v457_v0  ;;  %v489_v35 = vunpack.c.h.bf16 %v550_v60  ;;  %v76_v36 = vmax.f32 %v51_v26, %v396_v19  ;;  %v77_v37 = vmax.f32 %v52_v27, %v397_v20 }
  0x15   :  { %v501_v31 = vpack.c.bf16 %v223_v22, %v222_v21  ;;  %v428_v38 = vunpack.c.l.bf16 %v535_v25  ;;  %v429_v39 = vunpack.c.h.bf16 %v535_v25  ;;  %v199_v41 = vmax.f32 %v174_v32, %v472_v1  ;;  %v544_v21 = vld [vmem:[%s704_s0 + $0xd8] sm:$0xff]  }
  0x16   :  { %v200_v42 = vmax.f32 %v175_v34, %v473_v8  ;;  %v444_v43 = vunpack.c.l.bf16 %v539_v30  ;;  %v101_v45 = vmax.f32 %v76_v36, %v412_v28  ;;  %v102_v46 = vmax.f32 %v77_v37, %v413_v29  ;;  %v548_v28 = vld [vmem:[%s704_s0 + $0xf8] sm:$0xff]  }
  0x17   :  { %502 = vst [vmem:[%s707_s3] sm:$0xff] %v501_v31   ;;  %v445_v47 = vunpack.c.h.bf16 %v539_v30  ;;  %v460_v48 = vunpack.c.l.bf16 %v543_v33  ;;  %v224_v50 = vmax.f32 %v199_v41, %v488_v9  ;;  %v461_v52 = vunpack.c.h.bf16 %v543_v33 }
  0x18   :  { %v225_v51 = vmax.f32 %v200_v42, %v489_v35  ;;  %v476_v53 = vunpack.c.l.bf16 %v547_v40  ;;  %v126_v55 = vmax.f32 %v101_v45, %v428_v38  ;;  %v127_v56 = vmax.f32 %v102_v46, %v429_v39  ;;  %v552_v35 = vld [vmem:[%s704_s0 + $0x118] sm:$0xff]  }
  0x19   :  { %v477_v57 = vunpack.c.h.bf16 %v547_v40  ;;  %v368_v58 = vunpack.c.l.bf16 %v520_v44  ;;  %v369_v62 = vunpack.c.h.bf16 %v520_v44  ;;  %v384_v63 = vunpack.c.l.bf16 %v524_v49 }
  0x1a   :  { %v506_v60 = vpack.c.bf16 %v225_v51, %v224_v50  ;;  %v385_v0 = vunpack.c.h.bf16 %v524_v49  ;;  %v151_v1 = vmax.f32 %v126_v55, %v444_v43  ;;  %v152_v2 = vmax.f32 %v127_v56, %v445_v47 }
  0x1b   :  { %v400_v3 = vunpack.c.l.bf16 %v528_v54  ;;  %v401_v4 = vunpack.c.h.bf16 %v528_v54  ;;  %v53_v6 = vmax.f32 %v368_v58, %v384_v63  ;;  %v416_v8 = vunpack.c.l.bf16 %v532_v59 }
  0x1c   :  { %553 = vst [vmem:[%s707_s3 + $0x8] sm:$0xff] %v506_v60   ;;  %v54_v7 = vmax.f32 %v369_v62, %v385_v0  ;;  %v417_v9 = vunpack.c.h.bf16 %v532_v59  ;;  %v176_v10 = vmax.f32 %v151_v1, %v460_v48  ;;  %v177_v11 = vmax.f32 %v152_v2, %v461_v52 }
  0x1d   :  { %v492_v12 = vunpack.c.l.bf16 %v551_v61  ;;  %v493_v13 = vunpack.c.h.bf16 %v551_v61  ;;  %v78_v15 = vmax.f32 %v53_v6, %v400_v3  ;;  %v432_v17 = vunpack.c.l.bf16 %v536_v5 }
  0x1e   :  { %v79_v16 = vmax.f32 %v54_v7, %v401_v4  ;;  %v433_v18 = vunpack.c.h.bf16 %v536_v5  ;;  %v201_v19 = vmax.f32 %v176_v10, %v476_v53  ;;  %v202_v20 = vmax.f32 %v177_v11, %v477_v57 }
  0x1f   :  { %v103_v22 = vmax.f32 %v78_v15, %v416_v8  ;;  %v448_v24 = vunpack.c.l.bf16 %v540_v14  ;;  %v449_v25 = vunpack.c.h.bf16 %v540_v14  ;;  %v464_v31 = vunpack.c.l.bf16 %v544_v21 }
  0x20   :  { %v104_v23 = vmax.f32 %v79_v16, %v417_v9  ;;  %v226_v26 = vmax.f32 %v201_v19, %v492_v12  ;;  %v227_v27 = vmax.f32 %v202_v20, %v493_v13  ;;  %v465_v32 = vunpack.c.h.bf16 %v544_v21 }
  0x21   :  { %v128_v29 = vmax.f32 %v103_v22, %v432_v17  ;;  %v480_v37 = vunpack.c.l.bf16 %v548_v28  ;;  %v481_v38 = vunpack.c.h.bf16 %v548_v28  ;;  %v496_v41 = vunpack.c.l.bf16 %v552_v35 }
  0x22   :  { %v129_v30 = vmax.f32 %v104_v23, %v433_v18  ;;  %v511_v34 = vpack.c.bf16 %v227_v27, %v226_v26  ;;  %v497_v42 = vunpack.c.h.bf16 %v552_v35 }
  0x23   :  { %v153_v33 = vmax.f32 %v128_v29, %v448_v24 }
  0x24   :  { %v154_v36 = vmax.f32 %v129_v30, %v449_v25  ;;  %554 = vst [vmem:[%s707_s3 + $0x10] sm:$0xff] %v511_v34  }
  0x25   :  { %v178_v39 = vmax.f32 %v153_v33, %v464_v31 }
  0x26   :  { %v179_v40 = vmax.f32 %v154_v36, %v465_v32 }
  0x27   :  { %v203_v43 = vmax.f32 %v178_v39, %v480_v37 }
  0x28   :  { %v204_v44 = vmax.f32 %v179_v40, %v481_v38 }
  0x29   :  { %v228_v45 = vmax.f32 %v203_v43, %v496_v41 }
  0x2a   :  { %v229_v46 = vmax.f32 %v204_v44, %v497_v42 }
  0x2c   :  { %v516_v47 = vpack.c.bf16 %v229_v46, %v228_v45 }
  0x2e   :  { %555 = vst [vmem:[%s707_s3 + $0x18] sm:$0xff] %v516_v47  }

// kernel: densenet_encoder_forward.28
= control target key start
LH: loop header
LB: loop body
LE: loop exit
PB: predicated region body
PF: predicated region fallthrough
CT: control target
= control target key end

     0   :  { %v2502_v0 = vmov 0   ;;  %s3110_s2 = inlined_call_operand.vmem [shape: f32[1,384], index: 2, kind: input, shape index: {}, may-alias: {2,3}]   ;;  %s3111_s3 = inlined_call_operand.vmem [shape: f32[1,384], index: 3, kind: input, shape index: {}, may-alias: {2,3}]   ;;  %s3112_s4 = inlined_call_operand.vmem [shape: f32[1,128], index: 4, kind: input, shape index: {}, may-alias: {4,5}]   ;;  %s3113_s5 = inlined_call_operand.vmem [shape: f32[1,128], index: 5, kind: input, shape index: {}, may-alias: {4,5}]   ;;  %s3114_s1 = inlined_call_operand.vmem [shape: bf16[384,128], index: 1, kind: input, shape index: {}]   ;;  %s3115_s0 = inlined_call_operand.vmem [shape: bf16[512,384], index: 0, kind: input, shape index: {}]   ;;  %s3116_s6 = inlined_call_operand.vmem [shape: bf16[512,128], index: 6, kind: output, shape index: {}]  }
   0x1   :  { %856 = vmatprep.subr.bf16.mxu0 %v2502_v0  ;;  %2317 = vmatprep.subr.bf16.mxu1 %v2502_v0  ;;  %v2350_v1 = vld [vmem:[%s3114_s1] sm:$0xff]   ;;  %v2351_v2 = vld [vmem:[%s3114_s1 + $0x8] sm:$0xff]   ;;  %v2352_v3 = vld [vmem:[%s3114_s1 + $0x10] sm:$0xff]  }
   0x2   :  { %857 = vmatpush1.bf16.msra.mxu0 %v2350_v1  ;;  %2333 = vmatpush1.bf16.msra.mxu1 %v2350_v1  ;;  %v2353_v4 = vld [vmem:[%s3114_s1 + $0x18] sm:$0xff]   ;;  %v2354_v5 = vld [vmem:[%s3114_s1 + $0x20] sm:$0xff]   ;;  %v2355_v7 = vld [vmem:[%s3114_s1 + $0x28] sm:$0xff]  }
   0x3   :  { %858 = vmatprep.subr.bf16.mxu0 %v2502_v0  ;;  %2318 = vmatprep.subr.bf16.mxu1 %v2502_v0  ;;  %v2368_v6 = vld [vmem:[%s3115_s0 + $0x4] ss:$12 sps:$4 sm:$0xff]   ;;  %v2357_v10 = vld [vmem:[%s3114_s1 + $0x38] sm:$0xff]   ;;  %v2359_v12 = vld [vmem:[%s3114_s1 + $0x48] sm:$0xff]  }
   0x4   :  { %v2371_v8 = vld [vmem:[%s3115_s0 + $0x244] ss:$12 sps:$4 sm:$0xff]   ;;  %888 = vmatprep.mubr.bf16.mxu0 %v2368_v6  ;;  %v2361_v14 = vld [vmem:[%s3114_s1 + $0x58] sm:$0xff]   ;;  %v2363_v16 = vld [vmem:[%s3114_s1 + $0x68] sm:$0xff]  }
   0x5   :  { %1080 = vmatprep.mubr.bf16.mxu1 %v2371_v8  ;;  %v2356_v9 = vld [vmem:[%s3114_s1 + $0x30] sm:$0xff]   ;;  %v2358_v11 = vld [vmem:[%s3114_s1 + $0x40] sm:$0xff]   ;;  %v2365_v18 = vld [vmem:[%s3114_s1 + $0x78] sm:$0xff]  }
   0x6   :  { %859 = vmatpush1.bf16.msra.mxu0 %v2351_v2  ;;  %2334 = vmatpush1.bf16.msra.mxu1 %v2351_v2  ;;  %v2360_v13 = vld [vmem:[%s3114_s1 + $0x50] sm:$0xff]   ;;  %v2362_v15 = vld [vmem:[%s3114_s1 + $0x60] sm:$0xff]   ;;  %v2373_v22 = vld [vmem:[%s3115_s0 + $0x1c] ss:$12 sps:$4 sm:$0xff]  }
   0x7   :  { %860 = vmatprep.subr.bf16.mxu0 %v2502_v0  ;;  %2319 = vmatprep.subr.bf16.mxu1 %v2502_v0  ;;  %v2364_v17 = vld [vmem:[%s3114_s1 + $0x70] sm:$0xff]   ;;  %v2372_v19 = vld [vmem:[%s3114_s1 + $0x80] sm:$0xff]   ;;  %v2375_v23 = vld [vmem:[%s3115_s0 + $0x25c] ss:$12 sps:$4 sm:$0xff]  }
   0x8   :  { %v2366_v20 = vld [vmem:[%s3115_s0] ss:$12 sps:$4 sm:$0xff]   ;;  %v2386_v25 = vld [vmem:[%s3114_s1 + $0x90] sm:$0xff]   ;;  %v2377_v26 = vld [vmem:[%s3115_s0 + $0x18] ss:$12 sps:$4 sm:$0xff]  }
   0x9   :  { %v2369_v21 = vld [vmem:[%s3115_s0 + $0x240] ss:$12 sps:$4 sm:$0xff]   ;;  %v2378_v27 = vld [vmem:[%s3115_s0 + $0x258] ss:$12 sps:$4 sm:$0xff]   ;;  %v2384_v31 = vld [vmem:[%s3115_s0 + $0x30] ss:$12 sps:$4 sm:$0xff]  }
   0xa   :  { %861 = vmatpush1.bf16.msra.mxu0 %v2352_v3  ;;  %2335 = vmatpush1.bf16.msra.mxu1 %v2352_v3  ;;  %v2379_v24 = vld [vmem:[%s3114_s1 + $0x88] sm:$0xff]   ;;  %v2380_v28 = vld [vmem:[%s3115_s0 + $0x34] ss:$12 sps:$4 sm:$0xff]   ;;  %v2393_v30 = vld [vmem:[%s3114_s1 + $0x98] sm:$0xff]  }
   0xb   :  { %862 = vmatprep.subr.bf16.mxu0 %v2502_v0  ;;  %2320 = vmatprep.subr.bf16.mxu1 %v2502_v0  ;;  %v2382_v29 = vld [vmem:[%s3115_s0 + $0x274] ss:$12 sps:$4 sm:$0xff]   ;;  %v2385_v33 = vld [vmem:[%s3115_s0 + $0x270] ss:$12 sps:$4 sm:$0xff]   ;;  %v2387_v34 = vld [vmem:[%s3115_s0 + $0x4c] ss:$12 sps:$4 sm:$0xff]  }
   0xc   :  { %v2400_v32 = vld [vmem:[%s3114_s1 + $0xa0] sm:$0xff]   ;;  %v2389_v35 = vld [vmem:[%s3115_s0 + $0x28c] ss:$12 sps:$4 sm:$0xff]   ;;  %v2391_v37 = vld [vmem:[%s3115_s0 + $0x48] ss:$12 sps:$4 sm:$0xff]  }
   0xd   :  { %v2407_v36 = vld [vmem:[%s3114_s1 + $0xa8] sm:$0xff]   ;;  %v2394_v39 = vld [vmem:[%s3115_s0 + $0x64] ss:$12 sps:$4 sm:$0xff]   ;;  %v2421_v42 = vld [vmem:[%s3114_s1 + $0xb8] sm:$0xff]  }
   0xe   :  { %863 = vmatpush1.bf16.msra.mxu0 %v2353_v4  ;;  %2336 = vmatpush1.bf16.msra.mxu1 %v2353_v4  ;;  %v2392_v38 = vld [vmem:[%s3115_s0 + $0x288] ss:$12 sps:$4 sm:$0xff]   ;;  %v2396_v40 = vld [vmem:[%s3115_s0 + $0x2a4] ss:$12 sps:$4 sm:$0xff]   ;;  %v2398_v43 = vld [vmem:[%s3115_s0 + $0x60] ss:$12 sps:$4 sm:$0xff]  }
   0xf   :  { %864 = vmatprep.subr.bf16.mxu0 %v2502_v0  ;;  %2321 = vmatprep.subr.bf16.mxu1 %v2502_v0  ;;  %v2414_v41 = vld [vmem:[%s3114_s1 + $0xb0] sm:$0xff]   ;;  %v2399_v44 = vld [vmem:[%s3115_s0 + $0x2a0] ss:$12 sps:$4 sm:$0xff]   ;;  %v2401_v45 = vld [vmem:[%s3115_s0 + $0x7c] ss:$12 sps:$4 sm:$0xff]  }
  0x10   :  { %v2403_v46 = vld [vmem:[%s3115_s0 + $0x2bc] ss:$12 sps:$4 sm:$0xff]   ;;  %v2405_v47 = vld [vmem:[%s3115_s0 + $0x78] ss:$12 sps:$4 sm:$0xff]   ;;  %v2408_v49 = vld [vmem:[%s3115_s0 + $0x94] ss:$12 sps:$4 sm:$0xff]  }
  0x11   :  { %v2406_v48 = vld [vmem:[%s3115_s0 + $0x2b8] ss:$12 sps:$4 sm:$0xff]   ;;  %v2410_v50 = vld [vmem:[%s3115_s0 + $0x2d4] ss:$12 sps:$4 sm:$0xff]   ;;  %v2412_v51 = vld [vmem:[%s3115_s0 + $0x90] ss:$12 sps:$4 sm:$0xff]  }
  0x12   :  { %865 = vmatpush1.bf16.msra.mxu0 %v2354_v5  ;;  %2337 = vmatpush1.bf16.msra.mxu1 %v2354_v5  ;;  %v2413_v52 = vld [vmem:[%s3115_s0 + $0x2d0] ss:$12 sps:$4 sm:$0xff]   ;;  %v2415_v53 = vld [vmem:[%s3115_s0 + $0xac] ss:$12 sps:$4 sm:$0xff]   ;;  %v2419_v55 = vld [vmem:[%s3115_s0 + $0xa8] ss:$12 sps:$4 sm:$0xff]  }
  0x13   :  { %866 = vmatprep.subr.bf16.mxu0 %v2502_v0  ;;  %2322 = vmatprep.subr.bf16.mxu1 %v2502_v0  ;;  %v2417_v54 = vld [vmem:[%s3115_s0 + $0x2ec] ss:$12 sps:$4 sm:$0xff]   ;;  %v2420_v56 = vld [vmem:[%s3115_s0 + $0x2e8] ss:$12 sps:$4 sm:$0xff]   ;;  %v2422_v57 = vld [vmem:[%s3115_s0 + $0xc4] ss:$12 sps:$4 sm:$0xff]  }
  0x14   :  { %v2424_v58 = vld [vmem:[%s3115_s0 + $0x8] ss:$12 sps:$4 sm:$0xff]   ;;  %v2425_v59 = vld [vmem:[%s3115_s0 + $0xc0] ss:$12 sps:$4 sm:$0xff]   ;;  %v2429_v62 = vld [vmem:[%s3115_s0 + $0x38] ss:$12 sps:$4 sm:$0xff]  }
  0x15   :  { %v2426_v60 = vld [vmem:[%s3115_s0 + $0x20] ss:$12 sps:$4 sm:$0xff]   ;;  %v2427_v61 = vld [vmem:[%s3115_s0 + $0xdc] ss:$12 sps:$4 sm:$0xff]   ;;  %v2430_v63 = vld [vmem:[%s3115_s0 + $0xd8] ss:$12 sps:$4 sm:$0xff]  }
  0x16   :  { %867 = vmatpush1.bf16.msra.mxu0 %v2355_v7  ;;  %2338 = vmatpush1.bf16.msra.mxu1 %v2355_v7  ;;  %v2432_v1 = vld [vmem:[%s3115_s0 + $0xf4] ss:$12 sps:$4 sm:$0xff]   ;;  %v2435_v3 = vld [vmem:[%s3115_s0 + $0xf0] ss:$12 sps:$4 sm:$0xff]   ;;  %v2437_v5 = vld [vmem:[%s3115_s0 + $0x10c] ss:$12 sps:$4 sm:$0xff]  }
  0x17   :  { %868 = vmatprep.subr.bf16.mxu0 %v2502_v0  ;;  %2323 = vmatprep.subr.bf16.mxu1 %v2502_v0  ;;  %v2434_v2 = vld [vmem:[%s3115_s0 + $0x68] ss:$12 sps:$4 sm:$0xff]   ;;  %v2436_v4 = vld [vmem:[%s3115_s0 + $0x80] ss:$12 sps:$4 sm:$0xff]   ;;  %v2439_v6 = vld [vmem:[%s3115_s0 + $0x98] ss:$12 sps:$4 sm:$0xff]  }
  0x18   :  { %v2440_v7 = vld [vmem:[%s3115_s0 + $0x108] ss:$12 sps:$4 sm:$0xff]   ;;  %v2441_v8 = vld [vmem:[%s3115_s0 + $0xb0] ss:$12 sps:$4 sm:$0xff]  }
  0x1a   :  { %869 = vmatpush1.bf16.msra.mxu0 %v2356_v9  ;;  %2339 = vmatpush1.bf16.msra.mxu1 %v2356_v9  ;;  %v2442_v9 = vld [vmem:[%s3115_s0 + $0x124] ss:$12 sps:$4 sm:$0xff]  }
  0x1b   :  { %870 = vmatprep.subr.bf16.mxu0 %v2502_v0  ;;  %2324 = vmatprep.subr.bf16.mxu1 %v2502_v0 }
  0x1e   :  { %871 = vmatpush1.bf16.msra.mxu0 %v2357_v10  ;;  %2340 = vmatpush1.bf16.msra.mxu1 %v2357_v10  ;;  %v2444_v10 = vld [vmem:[%s3115_s0 + $0xc8] ss:$12 sps:$4 sm:$0xff]  }
  0x1f   :  { %872 = vmatprep.subr.bf16.mxu0 %v2502_v0  ;;  %2325 = vmatprep.subr.bf16.mxu1 %v2502_v0 }
  0x22   :  { %873 = vmatpush1.bf16.msra.mxu0 %v2358_v11  ;;  %2341 = vmatpush1.bf16.msra.mxu1 %v2358_v11  ;;  %v2445_v11 = vld [vmem:[%s3115_s0 + $0x120] ss:$12 sps:$4 sm:$0xff]  }
  0x23   :  { %874 = vmatprep.subr.bf16.mxu0 %v2502_v0  ;;  %2326 = vmatprep.subr.bf16.mxu1 %v2502_v0 }
  0x26   :  { %875 = vmatpush1.bf16.msra.mxu0 %v2359_v12  ;;  %2342 = vmatpush1.bf16.msra.mxu1 %v2359_v12  ;;  %v2446_v12 = vld [vmem:[%s3115_s0 + $0xe0] ss:$12 sps:$4 sm:$0xff]  }
  0x27   :  { %876 = vmatprep.subr.bf16.mxu0 %v2502_v0  ;;  %2327 = vmatprep.subr.bf16.mxu1 %v2502_v0 }
  0x2a   :  { %877 = vmatpush1.bf16.msra.mxu0 %v2360_v13  ;;  %2343 = vmatpush1.bf16.msra.mxu1 %v2360_v13  ;;  %v2447_v13 = vld [vmem:[%s3115_s0 + $0x13c] ss:$12 sps:$4 sm:$0xff]  }
  0x2b   :  { %878 = vmatprep.subr.bf16.mxu0 %v2502_v0  ;;  %2328 = vmatprep.subr.bf16.mxu1 %v2502_v0 }
  0x2e   :  { %879 = vmatpush1.bf16.msra.mxu0 %v2361_v14  ;;  %2344 = vmatpush1.bf16.msra.mxu1 %v2361_v14  ;;  %v2449_v14 = vld [vmem:[%s3115_s0 + $0xf8] ss:$12 sps:$4 sm:$0xff]  }
  0x2f   :  { %880 = vmatprep.subr.bf16.mxu0 %v2502_v0  ;;  %2329 = vmatprep.subr.bf16.mxu1 %v2502_v0 }
  0x32   :  { %881 = vmatpush1.bf16.msra.mxu0 %v2362_v15  ;;  %2345 = vmatpush1.bf16.msra.mxu1 %v2362_v15  ;;  %v2450_v15 = vld [vmem:[%s3115_s0 + $0x138] ss:$12 sps:$4 sm:$0xff]  }
  0x33   :  { %882 = vmatprep.subr.bf16.mxu0 %v2502_v0  ;;  %2330 = vmatprep.subr.bf16.mxu1 %v2502_v0 }
  0x36   :  { %883 = vmatpush1.bf16.msra.mxu0 %v2363_v16  ;;  %2346 = vmatpush1.bf16.msra.mxu1 %v2363_v16  ;;  %v2451_v16 = vld [vmem:[%s3115_s0 + $0x110] ss:$12 sps:$4 sm:$0xff]  }
  0x37   :  { %884 = vmatprep.subr.bf16.mxu0 %v2502_v0  ;;  %2331 = vmatprep.subr.bf16.mxu1 %v2502_v0 }
  0x3a   :  { %885 = vmatpush1.bf16.msra.mxu0 %v2364_v17  ;;  %2347 = vmatpush1.bf16.msra.mxu1 %v2364_v17  ;;  %v2452_v17 = vld [vmem:[%s3115_s0 + $0x154] ss:$12 sps:$4 sm:$0xff]  }
  0x3b   :  { %886 = vmatprep.subr.bf16.mxu0 %v2502_v0  ;;  %2332 = vmatprep.subr.bf16.mxu1 %v2502_v0  ;;  %v2431_v0 = vld [vmem:[%s3115_s0 + $0x50] ss:$12 sps:$4 sm:$0xff]  }
  0x3e   :  { %887 = vmatpush1.bf16.msra.mxu0 %v2365_v18  ;;  %2348 = vmatpush1.bf16.msra.mxu1 %v2365_v18  ;;  %v2454_v18 = vld [vmem:[%s3115_s0 + $0x128] ss:$12 sps:$4 sm:$0xff]  }
  0x3f   :  { %2237 = vmatprep.subr.bf16.mxu1 %v2372_v19 }
  0x41   :  { %889 = vmatmul.mubr.bf16.vlgmr.msra.gmra.mrb[0].mxu0 %v2366_v20  ;;  %1081 = vmatmul.mubr.bf16.vlgmr.msra.gmra.mrb[0].mxu1 %v2369_v21  ;;  %v2456_v20 = vld [vmem:[%s3115_s0 + $0x140] ss:$12 sps:$4 sm:$0xff]  }
  0x42   :  { %2238 = vmatpush3.bf16.msra.mxu1 %v2372_v19  ;;  %896 = vmatprep.mubr.bf16.mxu0 %v2373_v22  ;;  %v2455_v19 = vld [vmem:[%s3115_s0 + $0x150] ss:$12 sps:$4 sm:$0xff]   ;;  %v2457_v21 = vld [vmem:[%s3115_s0 + $0x16c] ss:$12 sps:$4 sm:$0xff]  }
  0x43   :  { %1088 = vmatprep.mubr.bf16.mxu1 %v2375_v23  ;;  %2239 = vmatprep.subr.bf16.mxu1 %v2379_v24  ;;  %v2459_v22 = vld [vmem:[%s3115_s0 + $0x158] ss:$12 sps:$4 sm:$0xff]   ;;  %v2460_v23 = vld [vmem:[%s3115_s0 + $0x168] ss:$12 sps:$4 sm:$0xff]  }
  0x46   :  { %2240 = vmatpush3.bf16.msra.mxu1 %v2379_v24  ;;  %v2461_v24 = vld [vmem:[%s3115_s0 + $0x170] ss:$12 sps:$4 sm:$0xff]  }
  0x47   :  { %2241 = vmatprep.subr.bf16.mxu1 %v2386_v25 }
  0x49   :  { %897 = vmatmul.mubr.bf16.gmra.mrb[4].mxu0 %v2377_v26  ;;  %1089 = vmatmul.mubr.bf16.gmra.mrb[4].mxu1 %v2378_v27  ;;  %v2464_v26 = vld [vmem:[%s3115_s0 + $0x188] ss:$12 sps:$4 sm:$0xff]   ;;  %v2465_v27 = vld [vmem:[%s3115_s0 + $0x180] ss:$12 sps:$4 sm:$0xff]  }
  0x4a   :  { %904 = vmatprep.mubr.bf16.mxu0 %v2380_v28  ;;  %1096 = vmatprep.mubr.bf16.mxu1 %v2382_v29  ;;  %v2466_v28 = vld [vmem:[%s3115_s0 + $0x1a0] ss:$12 sps:$4 sm:$0xff]   ;;  %v2467_v29 = vld [vmem:[%s3115_s0 + $0x19c] ss:$12 sps:$4 sm:$0xff]  }
  0x4b   :  { %2242 = vmatpush3.bf16.msra.mxu1 %v2386_v25  ;;  %v2462_v25 = vld [vmem:[%s3115_s0 + $0x184] ss:$12 sps:$4 sm:$0xff]  }
  0x4c   :  { %2243 = vmatprep.subr.bf16.mxu1 %v2393_v30 }
  0x4f   :  { %2244 = vmatpush3.bf16.msra.mxu1 %v2393_v30  ;;  %v2469_v30 = vld [vmem:[%s3115_s0 + $0x1b8] ss:$12 sps:$4 sm:$0xff]  }
  0x50   :  { %2245 = vmatprep.subr.bf16.mxu1 %v2400_v32 }
  0x51   :  { %905 = vmatmul.mubr.bf16.gmra.mrb[8].mxu0 %v2384_v31  ;;  %1097 = vmatmul.mubr.bf16.gmra.mrb[8].mxu1 %v2385_v33  ;;  %v2470_v31 = vld [vmem:[%s3115_s0 + $0x198] ss:$12 sps:$4 sm:$0xff]   ;;  %v2472_v33 = vld [vmem:[%s3115_s0 + $0x1b4] ss:$12 sps:$4 sm:$0xff]  }
  0x52   :  { %912 = vmatprep.mubr.bf16.mxu0 %v2387_v34  ;;  %1104 = vmatprep.mubr.bf16.mxu1 %v2389_v35  ;;  %v2474_v34 = vld [vmem:[%s3115_s0 + $0x1e8] ss:$12 sps:$4 sm:$0xff]   ;;  %v2475_v35 = vld [vmem:[%s3115_s0 + $0x1b0] ss:$12 sps:$4 sm:$0xff]  }
  0x53   :  { %2246 = vmatpush3.bf16.msra.mxu1 %v2400_v32  ;;  %v2471_v32 = vld [vmem:[%s3115_s0 + $0x1d0] ss:$12 sps:$4 sm:$0xff]  }
  0x54   :  { %2247 = vmatprep.subr.bf16.mxu1 %v2407_v36 }
  0x57   :  { %2248 = vmatpush3.bf16.msra.mxu1 %v2407_v36  ;;  %v2476_v36 = vld [vmem:[%s3115_s0 + $0x200] ss:$12 sps:$4 sm:$0xff]  }
  0x58   :  { %2249 = vmatprep.subr.bf16.mxu1 %v2414_v41 }
  0x59   :  { %913 = vmatmul.mubr.bf16.gmra.mrb[12].mxu0 %v2391_v37  ;;  %1105 = vmatmul.mubr.bf16.gmra.mrb[12].mxu1 %v2392_v38  ;;  %v2477_v37 = vld [vmem:[%s3115_s0 + $0x1cc] ss:$12 sps:$4 sm:$0xff]  }
  0x5a   :  { %920 = vmatprep.mubr.bf16.mxu0 %v2394_v39  ;;  %1112 = vmatprep.mubr.bf16.mxu1 %v2396_v40  ;;  %v2479_v38 = vld [vmem:[%s3115_s0 + $0x218] ss:$12 sps:$4 sm:$0xff]   ;;  %v2480_v39 = vld [vmem:[%s3115_s0 + $0x1c8] ss:$12 sps:$4 sm:$0xff]   ;;  %v2481_v40 = vld [vmem:[%s3115_s0 + $0x230] ss:$12 sps:$4 sm:$0xff]  }
  0x5b   :  { %2250 = vmatpush3.bf16.msra.mxu1 %v2414_v41  ;;  %v2482_v41 = vld [vmem:[%s3115_s0 + $0x1e4] ss:$12 sps:$4 sm:$0xff]  }
  0x5c   :  { %2251 = vmatprep.subr.bf16.mxu1 %v2421_v42 }
  0x5f   :  { %2252 = vmatpush3.bf16.msra.mxu1 %v2421_v42  ;;  %v2484_v42 = vld [vmem:[%s3115_s0 + $0x248] ss:$12 sps:$4 sm:$0xff]  }
  0x61   :  { %921 = vmatmul.mubr.bf16.gmra.mrb[16].mxu0 %v2398_v43  ;;  %1113 = vmatmul.mubr.bf16.gmra.mrb[16].mxu1 %v2399_v44  ;;  %v2485_v43 = vld [vmem:[%s3115_s0 + $0x1e0] ss:$12 sps:$4 sm:$0xff]  }
  0x62   :  { %928 = vmatprep.mubr.bf16.mxu0 %v2401_v45  ;;  %1120 = vmatprep.mubr.bf16.mxu1 %v2403_v46  ;;  %v2486_v44 = vld [vmem:[%s3115_s0 + $0x260] ss:$12 sps:$4 sm:$0xff]   ;;  %v2487_v45 = vld [vmem:[%s3115_s0 + $0x1fc] ss:$12 sps:$4 sm:$0xff]   ;;  %v2489_v46 = vld [vmem:[%s3115_s0 + $0x278] ss:$12 sps:$4 sm:$0xff]  }
  0x69   :  { %929 = vmatmul.mubr.bf16.gmra.mrb[20].mxu0 %v2405_v47  ;;  %1121 = vmatmul.mubr.bf16.gmra.mrb[20].mxu1 %v2406_v48  ;;  %v2490_v47 = vld [vmem:[%s3115_s0 + $0x1f8] ss:$12 sps:$4 sm:$0xff]   ;;  %v2491_v48 = vld [vmem:[%s3115_s0 + $0x290] ss:$12 sps:$4 sm:$0xff]  }
  0x6a   :  { %936 = vmatprep.mubr.bf16.mxu0 %v2408_v49  ;;  %1128 = vmatprep.mubr.bf16.mxu1 %v2410_v50  ;;  %v2492_v49 = vld [vmem:[%s3115_s0 + $0x214] ss:$12 sps:$4 sm:$0xff]  }
  0x6b   :  { %v2494_v50 = vld [vmem:[%s3115_s0 + $0x2a8] ss:$12 sps:$4 sm:$0xff]  }
  0x71   :  { %937 = vmatmul.mubr.bf16.gmra.mrb[24].mxu0 %v2412_v51  ;;  %1129 = vmatmul.mubr.bf16.gmra.mrb[24].mxu1 %v2413_v52  ;;  %v2495_v51 = vld [vmem:[%s3115_s0 + $0x210] ss:$12 sps:$4 sm:$0xff]   ;;  %v2496_v52 = vld [vmem:[%s3115_s0 + $0x2c0] ss:$12 sps:$4 sm:$0xff]  }
  0x72   :  { %944 = vmatprep.mubr.bf16.mxu0 %v2415_v53  ;;  %1136 = vmatprep.mubr.bf16.mxu1 %v2417_v54  ;;  %v2497_v53 = vld [vmem:[%s3115_s0 + $0x22c] ss:$12 sps:$4 sm:$0xff]  }
  0x73   :  { %v2499_v54 = vld [vmem:[%s3115_s0 + $0x2d8] ss:$12 sps:$4 sm:$0xff]  }
  0x79   :  { %945 = vmatmul.mubr.bf16.gmra.mrb[28].mxu0 %v2419_v55  ;;  %1137 = vmatmul.mubr.bf16.gmra.mrb[28].mxu1 %v2420_v56  ;;  %v2500_v55 = vld [vmem:[%s3115_s0 + $0x228] ss:$12 sps:$4 sm:$0xff]   ;;  %v2501_v56 = vld [vmem:[%s3115_s0 + $0x2f0] ss:$12 sps:$4 sm:$0xff]  }
  0x7a   :  { %952 = vmatprep.mubr.bf16.mxu0 %v2422_v57  ;;  %2253 = vmatprep.mubr.bf16.mxu1 %v2424_v58 }
  0x81   :  { %953 = vmatmul.mubr.bf16.gmra.mrb[32].mxu0 %v2425_v59  ;;  %2254 = vmatmul.mubr.bf16.vlgmr.msra.gmra.mrb[32].mxu1 %v2426_v60 }
  0x82   :  { %960 = vmatprep.mubr.bf16.mxu0 %v2427_v61  ;;  %2257 = vmatprep.mubr.bf16.mxu1 %v2429_v62 }
  0x89   :  { %961 = vmatmul.mubr.bf16.gmra.mrb[36].mxu0 %v2430_v63  ;;  %2258 = vmatmul.mubr.bf16.gmra.mrb[36].mxu1 %v2431_v0 }
  0x8a   :  { %968 = vmatprep.mubr.bf16.mxu0 %v2432_v1  ;;  %2261 = vmatprep.mubr.bf16.mxu1 %v2434_v2 }
  0x91   :  { %969 = vmatmul.mubr.bf16.gmra.mrb[40].mxu0 %v2435_v3  ;;  %2262 = vmatmul.mubr.bf16.gmra.mrb[40].mxu1 %v2436_v4 }
  0x92   :  { %976 = vmatprep.mubr.bf16.mxu0 %v2437_v5  ;;  %2265 = vmatprep.mubr.bf16.mxu1 %v2439_v6 }
  0x99   :  { %977 = vmatmul.mubr.bf16.gmra.mrb[44].mxu0 %v2440_v7  ;;  %2266 = vmatmul.mubr.bf16.gmra.mrb[44].mxu1 %v2441_v8 }
  0x9a   :  { %984 = vmatprep.mubr.bf16.mxu0 %v2442_v9  ;;  %2269 = vmatprep.mubr.bf16.mxu1 %v2444_v10 }
  0xa1   :  { %985 = vmatmul.mubr.bf16.gmra.mrb[48].mxu0 %v2445_v11  ;;  %2270 = vmatmul.mubr.bf16.gmra.mrb[48].mxu1 %v2446_v12 }
  0xa2   :  { %992 = vmatprep.mubr.bf16.mxu0 %v2447_v13  ;;  %2273 = vmatprep.mubr.bf16.mxu1 %v2449_v14 }
  0xa9   :  { %993 = vmatmul.mubr.bf16.gmra.mrb[52].mxu0 %v2450_v15  ;;  %2274 = vmatmul.mubr.bf16.gmra.mrb[52].mxu1 %v2451_v16 }
  0xaa   :  { %1000 = vmatprep.mubr.bf16.mxu0 %v2452_v17  ;;  %2277 = vmatprep.mubr.bf16.mxu1 %v2454_v18 }
  0xb1   :  { %1001 = vmatmul.mubr.bf16.gmra.mrb[56].mxu0 %v2455_v19  ;;  %2278 = vmatmul.mubr.bf16.gmra.mrb[56].mxu1 %v2456_v20 }
  0xb2   :  { %1008 = vmatprep.mubr.bf16.mxu0 %v2457_v21  ;;  %2281 = vmatprep.mubr.bf16.mxu1 %v2459_v22 }
  0xb9   :  { %1009 = vmatmul.mubr.bf16.gmra.mrb[60].mxu0 %v2460_v23  ;;  %2282 = vmatmul.mubr.bf16.gmra.mrb[60].mxu1 %v2461_v24 }
  0xba   :  { %1016 = vmatprep.mubr.bf16.mxu0 %v2462_v25  ;;  %2285 = vmatprep.mubr.bf16.mxu1 %v2464_v26 }
  0xc1   :  { %1017 = vmatmul.mubr.bf16.gmra.mrb[64].mxu0 %v2465_v27  ;;  %2286 = vmatmul.mubr.bf16.gmra.mrb[64].mxu1 %v2466_v28 }
  0xc2   :  { %1024 = vmatprep.mubr.bf16.mxu0 %v2467_v29  ;;  %2289 = vmatprep.mubr.bf16.mxu1 %v2469_v30 }
  0xc9   :  { %1025 = vmatmul.mubr.bf16.gmra.mrb[68].mxu0 %v2470_v31  ;;  %2290 = vmatmul.mubr.bf16.gmra.mrb[68].mxu1 %v2471_v32 }
  0xca   :  { %1032 = vmatprep.mubr.bf16.mxu0 %v2472_v33  ;;  %2293 = vmatprep.mubr.bf16.mxu1 %v2474_v34 }
  0xd1   :  { %1033 = vmatmul.mubr.bf16.gmra.mrb[72].mxu0 %v2475_v35  ;;  %2294 = vmatmul.mubr.bf16.gmra.mrb[72].mxu1 %v2476_v36 }
  0xd2   :  { %1040 = vmatprep.mubr.bf16.mxu0 %v2477_v37  ;;  %2297 = vmatprep.mubr.bf16.mxu1 %v2479_v38 }
  0xd9   :  { %1041 = vmatmul.mubr.bf16.gmra.mrb[76].mxu0 %v2480_v39  ;;  %2298 = vmatmul.mubr.bf16.gmra.mrb[76].mxu1 %v2481_v40 }
  0xda   :  { %1048 = vmatprep.mubr.bf16.mxu0 %v2482_v41  ;;  %2301 = vmatprep.mubr.bf16.mxu1 %v2484_v42 }
  0xe1   :  { %1049 = vmatmul.mubr.bf16.gmra.mrb[80].mxu0 %v2485_v43  ;;  %2302 = vmatmul.mubr.bf16.gmra.mrb[80].mxu1 %v2486_v44 }
  0xe2   :  { %1056 = vmatprep.mubr.bf16.mxu0 %v2487_v45  ;;  %2305 = vmatprep.mubr.bf16.mxu1 %v2489_v46 }
  0xe9   :  { %1057 = vmatmul.mubr.bf16.gmra.mrb[84].mxu0 %v2490_v47  ;;  %2306 = vmatmul.mubr.bf16.gmra.mrb[84].mxu1 %v2491_v48 }
  0xea   :  { %1064 = vmatprep.mubr.bf16.mxu0 %v2492_v49  ;;  %2309 = vmatprep.mubr.bf16.mxu1 %v2494_v50 }
  0xf1   :  { %1065 = vmatmul.mubr.bf16.gmra.mrb[88].mxu0 %v2495_v51  ;;  %2310 = vmatmul.mubr.bf16.gmra.mrb[88].mxu1 %v2496_v52 }
  0xf2   :  { %1072 = vmatprep.mubr.bf16.mxu0 %v2497_v53  ;;  %2313 = vmatprep.mubr.bf16.mxu1 %v2499_v54 }
  0xf9   :  { %1073 = vmatmul.mubr.bf16.gmra.mrb[92].mxu0 %v2500_v55  ;;  %2314 = vmatmul.mubr.bf16.gmra.mrb[92].mxu1 %v2501_v56 }
 0x114   :  { %v2930_v57 = vpop.f32.mrb[0].mxu0  ;;  %v2932_v58 = vpop.f32.mrb[0].mxu1 }
 0x115   :  { %v892_v59 = vpop.f32.mrb[1].mxu0  ;;  %v1084_v60 = vpop.f32.mrb[1].mxu1 }
 0x116   :  { %v2934_v61 = vpop.f32.mrb[2].mxu0  ;;  %v2936_v62 = vpop.f32.mrb[2].mxu1 }
 0x117   :  { %v895_v63 = vpop.f32.mrb[3].mxu0  ;;  %v1087_v0 = vpop.f32.mrb[3].mxu1 }
 0x11c   :  { %v898_v1 = vpop.f32.mrb[4].mxu0  ;;  %v2938_v2 = vpop.f32.mrb[4].mxu1 }
 0x11d   :  { %v900_v3 = vpop.f32.mrb[5].mxu0  ;;  %v1092_v4 = vpop.f32.mrb[5].mxu1 }
 0x11e   :  { %v901_v5 = vpop.f32.mrb[6].mxu0  ;;  %v2940_v6 = vpop.f32.mrb[6].mxu1 }
 0x11f   :  { %v903_v7 = vpop.f32.mrb[7].mxu0  ;;  %v1095_v8 = vpop.f32.mrb[7].mxu1 }
 0x124   :  { %v2942_v9 = vpop.f32.mrb[8].mxu0  ;;  %v2944_v10 = vpop.f32.mrb[8].mxu1 }
 0x125   :  { %v908_v11 = vpop.f32.mrb[9].mxu0  ;;  %v1100_v12 = vpop.f32.mrb[9].mxu1 }
 0x126   :  { %v2946_v13 = vpop.f32.mrb[10].mxu0  ;;  %v2948_v14 = vpop.f32.mrb[10].mxu1 }
 0x127   :  { %v911_v15 = vpop.f32.mrb[11].mxu0  ;;  %v1103_v16 = vpop.f32.mrb[11].mxu1 }
 0x12c   :  { %v914_v17 = vpop.f32.mrb[12].mxu0  ;;  %v2950_v18 = vpop.f32.mrb[12].mxu1 }
 0x12d   :  { %v916_v19 = vpop.f32.mrb[13].mxu0  ;;  %v1108_v20 = vpop.f32.mrb[13].mxu1 }
 0x12e   :  { %v917_v21 = vpop.f32.mrb[14].mxu0  ;;  %v2952_v22 = vpop.f32.mrb[14].mxu1 }
 0x12f   :  { %v919_v23 = vpop.f32.mrb[15].mxu0  ;;  %v1111_v24 = vpop.f32.mrb[15].mxu1 }
 0x134   :  { %v2954_v25 = vpop.f32.mrb[16].mxu0  ;;  %v2956_v26 = vpop.f32.mrb[16].mxu1 }
 0x135   :  { %v924_v27 = vpop.f32.mrb[17].mxu0  ;;  %v1116_v28 = vpop.f32.mrb[17].mxu1 }
 0x136   :  { %v2958_v29 = vpop.f32.mrb[18].mxu0  ;;  %v2960_v30 = vpop.f32.mrb[18].mxu1 }
 0x137   :  { %v927_v31 = vpop.f32.mrb[19].mxu0  ;;  %v1119_v32 = vpop.f32.mrb[19].mxu1 }
 0x13c   :  { %v930_v33 = vpop.f32.mrb[20].mxu0  ;;  %v2962_v34 = vpop.f32.mrb[20].mxu1 }
 0x13d   :  { %v932_v35 = vpop.f32.mrb[21].mxu0  ;;  %v1124_v36 = vpop.f32.mrb[21].mxu1 }
 0x13e   :  { %v933_v37 = vpop.f32.mrb[22].mxu0  ;;  %v2964_v38 = vpop.f32.mrb[22].mxu1 }
 0x13f   :  { %v935_v39 = vpop.f32.mrb[23].mxu0  ;;  %v1127_v40 = vpop.f32.mrb[23].mxu1 }
 0x144   :  { %v2966_v41 = vpop.f32.mrb[24].mxu0  ;;  %v2968_v42 = vpop.f32.mrb[24].mxu1 }
 0x145   :  { %v940_v43 = vpop.f32.mrb[25].mxu0  ;;  %v1132_v44 = vpop.f32.mrb[25].mxu1 }
 0x146   :  { %v2970_v45 = vpop.f32.mrb[26].mxu0  ;;  %v2972_v46 = vpop.f32.mrb[26].mxu1 }
 0x147   :  { %v943_v47 = vpop.f32.mrb[27].mxu0  ;;  %v1135_v48 = vpop.f32.mrb[27].mxu1 }
 0x14c   :  { %v946_v49 = vpop.f32.mrb[28].mxu0  ;;  %v2974_v50 = vpop.f32.mrb[28].mxu1 }
 0x14d   :  { %v948_v51 = vpop.f32.mrb[29].mxu0  ;;  %v1140_v52 = vpop.f32.mrb[29].mxu1 }
 0x14e   :  { %v949_v53 = vpop.f32.mrb[30].mxu0  ;;  %v2976_v54 = vpop.f32.mrb[30].mxu1 }
 0x14f   :  { %v951_v55 = vpop.f32.mrb[31].mxu0  ;;  %v1143_v56 = vpop.f32.mrb[31].mxu1 }
 0x154   :  { %v2978_v59 = vpop.f32.mrb[32].mxu0  ;;  %v2255_v60 = vpop.f32.mrb[32].mxu1 }
 0x155   :  { %v1188_v63 = vadd.f32 %v2255_v60, %v898_v1  ;;  %v956_v0 = vpop.f32.mrb[33].mxu0  ;;  %v1179_v3 = vpop.f32.mrb[33].mxu1 }
 0x156   :  { %v1180_v4 = vadd.f32 %v1179_v3, %v2930_v57  ;;  %v2981_v7 = vpop.f32.mrb[34].mxu0  ;;  %v2256_v8 = vpop.f32.mrb[34].mxu1 }
 0x157   :  { %v1191_v11 = vadd.f32 %v2256_v8, %v901_v5  ;;  %v959_v12 = vpop.f32.mrb[35].mxu0  ;;  %v1182_v15 = vpop.f32.mrb[35].mxu1 }
 0x158   :  { %v1183_v16 = vadd.f32 %v1182_v15, %v2934_v61 }
 0x159   :  { %v2014_v19 = vpack.c.bf16 %v1191_v11, %v1188_v63 }
 0x15a   :  { %v2009_v20 = vpack.c.bf16 %v1183_v16, %v1180_v4 }
 0x15b   :  { %2166 = vst [vmem:[%s3116_s6 + $0x8] sm:$0xff] %v2014_v19  }
 0x15c   :  { %2010 = vst [vmem:[%s3116_s6] sm:$0xff] %v2009_v20   ;;  %v962_v1 = vpop.f32.mrb[36].mxu0  ;;  %v2259_v57 = vpop.f32.mrb[36].mxu1 }
 0x15d   :  { %v1204_v23 = vadd.f32 %v2259_v57, %v914_v17  ;;  %v964_v24 = vpop.f32.mrb[37].mxu0  ;;  %v1195_v27 = vpop.f32.mrb[37].mxu1 }
 0x15e   :  { %v1196_v5 = vadd.f32 %v1195_v27, %v2942_v9  ;;  %v965_v28 = vpop.f32.mrb[38].mxu0  ;;  %v2260_v31 = vpop.f32.mrb[38].mxu1 }
 0x15f   :  { %v1207_v61 = vadd.f32 %v2260_v31, %v917_v21  ;;  %v967_v32 = vpop.f32.mrb[39].mxu0  ;;  %v1198_v35 = vpop.f32.mrb[39].mxu1 }
 0x160   :  { %v1199_v36 = vadd.f32 %v1198_v35, %v2946_v13 }
 0x161   :  { %v2024_v39 = vpack.c.bf16 %v1207_v61, %v1204_v23 }
 0x162   :  { %v2019_v40 = vpack.c.bf16 %v1199_v36, %v1196_v5 }
 0x163   :  { %2168 = vst [vmem:[%s3116_s6 + $0x18] sm:$0xff] %v2024_v39  }
 0x164   :  { %2167 = vst [vmem:[%s3116_s6 + $0x10] sm:$0xff] %v2019_v40   ;;  %v970_v17 = vpop.f32.mrb[40].mxu0  ;;  %v2263_v43 = vpop.f32.mrb[40].mxu1 }
 0x165   :  { %v1220_v9 = vadd.f32 %v2263_v43, %v930_v33  ;;  %v972_v44 = vpop.f32.mrb[41].mxu0  ;;  %v1211_v47 = vpop.f32.mrb[41].mxu1 }
 0x166   :  { %v1212_v21 = vadd.f32 %v1211_v47, %v2954_v25  ;;  %v973_v48 = vpop.f32.mrb[42].mxu0  ;;  %v2264_v51 = vpop.f32.mrb[42].mxu1 }
 0x167   :  { %v1223_v13 = vadd.f32 %v2264_v51, %v933_v37  ;;  %v975_v52 = vpop.f32.mrb[43].mxu0  ;;  %v1214_v55 = vpop.f32.mrb[43].mxu1 }
 0x168   :  { %v1215_v56 = vadd.f32 %v1214_v55, %v2958_v29 }
 0x169   :  { %v2034_v60 = vpack.c.bf16 %v1223_v13, %v1220_v9 }
 0x16a   :  { %v2029_v63 = vpack.c.bf16 %v1215_v56, %v1212_v21 }
 0x16b   :  { %2170 = vst [vmem:[%s3116_s6 + $0x28] sm:$0xff] %v2034_v60  }
 0x16c   :  { %2169 = vst [vmem:[%s3116_s6 + $0x20] sm:$0xff] %v2029_v63   ;;  %v978_v33 = vpop.f32.mrb[44].mxu0  ;;  %v2267_v0 = vpop.f32.mrb[44].mxu1 }
 0x16d   :  { %v1236_v25 = vadd.f32 %v2267_v0, %v946_v49  ;;  %v980_v3 = vpop.f32.mrb[45].mxu0  ;;  %v1227_v4 = vpop.f32.mrb[45].mxu1 }
 0x16e   :  { %v1228_v37 = vadd.f32 %v1227_v4, %v2966_v41  ;;  %v981_v8 = vpop.f32.mrb[46].mxu0  ;;  %v2268_v11 = vpop.f32.mrb[46].mxu1 }
 0x16f   :  { %v1239_v29 = vadd.f32 %v2268_v11, %v949_v53  ;;  %v983_v12 = vpop.f32.mrb[47].mxu0  ;;  %v1230_v15 = vpop.f32.mrb[47].mxu1 }
 0x170   :  { %v1231_v16 = vadd.f32 %v1230_v15, %v2970_v45 }
 0x171   :  { %v2044_v19 = vpack.c.bf16 %v1239_v29, %v1236_v25 }
 0x172   :  { %v2039_v20 = vpack.c.bf16 %v1231_v16, %v1228_v37 }
 0x173   :  { %2172 = vst [vmem:[%s3116_s6 + $0x38] sm:$0xff] %v2044_v19  }
 0x174   :  { %2171 = vst [vmem:[%s3116_s6 + $0x30] sm:$0xff] %v2039_v20   ;;  %v986_v49 = vpop.f32.mrb[48].mxu0  ;;  %v2271_v57 = vpop.f32.mrb[48].mxu1 }
 0x175   :  { %v1252_v41 = vadd.f32 %v2271_v57, %v962_v1  ;;  %v988_v23 = vpop.f32.mrb[49].mxu0  ;;  %v1243_v24 = vpop.f32.mrb[49].mxu1 }
 0x176   :  { %v1244_v53 = vadd.f32 %v1243_v24, %v2978_v59  ;;  %v989_v27 = vpop.f32.mrb[50].mxu0  ;;  %v2272_v5 = vpop.f32.mrb[50].mxu1 }
 0x177   :  { %v1255_v45 = vadd.f32 %v2272_v5, %v965_v28  ;;  %v991_v31 = vpop.f32.mrb[51].mxu0  ;;  %v1246_v61 = vpop.f32.mrb[51].mxu1 }
 0x178   :  { %v1247_v32 = vadd.f32 %v1246_v61, %v2981_v7 }
 0x179   :  { %v2054_v35 = vpack.c.bf16 %v1255_v45, %v1252_v41 }
 0x17a   :  { %v2049_v36 = vpack.c.bf16 %v1247_v32, %v1244_v53 }
 0x17b   :  { %2174 = vst [vmem:[%s3116_s6 + $0x48] sm:$0xff] %v2054_v35  }
 0x17c   :  { %2173 = vst [vmem:[%s3116_s6 + $0x40] sm:$0xff] %v2049_v36   ;;  %v994_v1 = vpop.f32.mrb[52].mxu0  ;;  %v2275_v39 = vpop.f32.mrb[52].mxu1 }
 0x17d   :  { %v1268_v59 = vadd.f32 %v2275_v39, %v978_v33  ;;  %v996_v40 = vpop.f32.mrb[53].mxu0  ;;  %v1259_v43 = vpop.f32.mrb[53].mxu1 }
 0x17e   :  { %v1260_v28 = vadd.f32 %v1259_v43, %v970_v17  ;;  %v997_v9 = vpop.f32.mrb[54].mxu0  ;;  %v2276_v44 = vpop.f32.mrb[54].mxu1 }
 0x17f   :  { %v1271_v47 = vadd.f32 %v2276_v44, %v981_v8  ;;  %v999_v7 = vpop.f32.mrb[55].mxu0  ;;  %v1262_v21 = vpop.f32.mrb[55].mxu1 }
 0x180   :  { %v1263_v51 = vadd.f32 %v1262_v21, %v973_v48 }
 0x181   :  { %v2064_v13 = vpack.c.bf16 %v1271_v47, %v1268_v59 }
 0x182   :  { %v2059_v52 = vpack.c.bf16 %v1263_v51, %v1260_v28 }
 0x183   :  { %2176 = vst [vmem:[%s3116_s6 + $0x58] sm:$0xff] %v2064_v13  }
 0x184   :  { %2175 = vst [vmem:[%s3116_s6 + $0x50] sm:$0xff] %v2059_v52   ;;  %v1002_v55 = vpop.f32.mrb[56].mxu0  ;;  %v2279_v56 = vpop.f32.mrb[56].mxu1 }
 0x185   :  { %v1284_v60 = vadd.f32 %v2279_v56, %v994_v1  ;;  %v1004_v17 = vpop.f32.mrb[57].mxu0  ;;  %v1275_v63 = vpop.f32.mrb[57].mxu1 }
 0x186   :  { %v1276_v33 = vadd.f32 %v1275_v63, %v986_v49  ;;  %v1005_v0 = vpop.f32.mrb[58].mxu0  ;;  %v2280_v25 = vpop.f32.mrb[58].mxu1 }
 0x187   :  { %v1287_v3 = vadd.f32 %v2280_v25, %v997_v9  ;;  %v1007_v48 = vpop.f32.mrb[59].mxu0  ;;  %v1278_v4 = vpop.f32.mrb[59].mxu1 }
 0x188   :  { %v1279_v37 = vadd.f32 %v1278_v4, %v989_v27 }
 0x189   :  { %v2074_v8 = vpack.c.bf16 %v1287_v3, %v1284_v60 }
 0x18a   :  { %v2069_v11 = vpack.c.bf16 %v1279_v37, %v1276_v33 }
 0x18b   :  { %2178 = vst [vmem:[%s3116_s6 + $0x68] sm:$0xff] %v2074_v8  }
 0x18c   :  { %2177 = vst [vmem:[%s3116_s6 + $0x60] sm:$0xff] %v2069_v11   ;;  %v1010_v29 = vpop.f32.mrb[60].mxu0  ;;  %v2283_v12 = vpop.f32.mrb[60].mxu1 }
 0x18d   :  { %v1300_v15 = vadd.f32 %v2283_v12, %v1010_v29  ;;  %v1012_v16 = vpop.f32.mrb[61].mxu0  ;;  %v1291_v19 = vpop.f32.mrb[61].mxu1 }
 0x18e   :  { %v1292_v20 = vadd.f32 %v1291_v19, %v1002_v55  ;;  %v1013_v49 = vpop.f32.mrb[62].mxu0  ;;  %v2284_v57 = vpop.f32.mrb[62].mxu1 }
 0x18f   :  { %v1303_v41 = vadd.f32 %v2284_v57, %v1013_v49  ;;  %v1015_v23 = vpop.f32.mrb[63].mxu0  ;;  %v1294_v24 = vpop.f32.mrb[63].mxu1 }
 0x190   :  { %v1295_v53 = vadd.f32 %v1294_v24, %v1005_v0 }
 0x191   :  { %v2084_v27 = vpack.c.bf16 %v1303_v41, %v1300_v15 }
 0x192   :  { %v2079_v5 = vpack.c.bf16 %v1295_v53, %v1292_v20 }
 0x193   :  { %2180 = vst [vmem:[%s3116_s6 + $0x78] sm:$0xff] %v2084_v27  }
 0x194   :  { %2179 = vst [vmem:[%s3116_s6 + $0x70] sm:$0xff] %v2079_v5   ;;  %v1018_v45 = vpop.f32.mrb[64].mxu0  ;;  %v2287_v31 = vpop.f32.mrb[64].mxu1 }
 0x195   :  { %v1020_v61 = vpop.f32.mrb[65].mxu0  ;;  %v1307_v32 = vpop.f32.mrb[65].mxu1 }
 0x196   :  { %v1308_v35 = vadd.f32 %v1307_v32, %v1018_v45  ;;  %v1021_v36 = vpop.f32.mrb[66].mxu0  ;;  %v2288_v1 = vpop.f32.mrb[66].mxu1 }
 0x197   :  { %v1023_v39 = vpop.f32.mrb[67].mxu0  ;;  %v1310_v59 = vpop.f32.mrb[67].mxu1 }
 0x198   :  { %v1311_v40 = vadd.f32 %v1310_v59, %v1021_v36 }
 0x19a   :  { %v2089_v43 = vpack.c.bf16 %v1311_v40, %v1308_v35 }
 0x19c   :  { %2181 = vst [vmem:[%s3116_s6 + $0x80] sm:$0xff] %v2089_v43   ;;  %v1026_v28 = vpop.f32.mrb[68].mxu0  ;;  %v2291_v9 = vpop.f32.mrb[68].mxu1 }
 0x19d   :  { %v1316_v44 = vadd.f32 %v2287_v31, %v1026_v28  ;;  %v1028_v47 = vpop.f32.mrb[69].mxu0  ;;  %v1323_v7 = vpop.f32.mrb[69].mxu1 }
 0x19e   :  { %v1029_v21 = vpop.f32.mrb[70].mxu0  ;;  %v2292_v51 = vpop.f32.mrb[70].mxu1 }
 0x19f   :  { %v1319_v13 = vadd.f32 %v2288_v1, %v1029_v21  ;;  %v1031_v52 = vpop.f32.mrb[71].mxu0  ;;  %v1326_v55 = vpop.f32.mrb[71].mxu1 }
 0x1a1   :  { %v2094_v56 = vpack.c.bf16 %v1319_v13, %v1316_v44 }
 0x1a3   :  { %2182 = vst [vmem:[%s3116_s6 + $0x88] sm:$0xff] %v2094_v56  }
 0x1a4   :  { %v1034_v60 = vpop.f32.mrb[72].mxu0  ;;  %v2295_v17 = vpop.f32.mrb[72].mxu1 }
 0x1a5   :  { %v1324_v63 = vadd.f32 %v1323_v7, %v1034_v60  ;;  %v1036_v33 = vpop.f32.mrb[73].mxu0  ;;  %v1339_v0 = vpop.f32.mrb[73].mxu1 }
 0x1a6   :  { %v1037_v25 = vpop.f32.mrb[74].mxu0  ;;  %v2296_v3 = vpop.f32.mrb[74].mxu1 }
 0x1a7   :  { %v1327_v48 = vadd.f32 %v1326_v55, %v1037_v25  ;;  %v1039_v4 = vpop.f32.mrb[75].mxu0  ;;  %v1342_v37 = vpop.f32.mrb[75].mxu1 }
 0x1a9   :  { %v2099_v8 = vpack.c.bf16 %v1327_v48, %v1324_v63 }
 0x1ab   :  { %2183 = vst [vmem:[%s3116_s6 + $0x90] sm:$0xff] %v2099_v8  }
 0x1ac   :  { %v1042_v11 = vpop.f32.mrb[76].mxu0  ;;  %v3049_v29 = vpop.f32.mrb[76].mxu1 }
 0x1ad   :  { %v1332_v12 = vadd.f32 %v2291_v9, %v1042_v11  ;;  %v1044_v15 = vpop.f32.mrb[77].mxu0  ;;  %v1355_v16 = vpop.f32.mrb[77].mxu1 }
 0x1ae   :  { %v1045_v19 = vpop.f32.mrb[78].mxu0  ;;  %v3051_v20 = vpop.f32.mrb[78].mxu1 }
 0x1af   :  { %v1335_v49 = vadd.f32 %v2292_v51, %v1045_v19  ;;  %v1047_v57 = vpop.f32.mrb[79].mxu0  ;;  %v1358_v41 = vpop.f32.mrb[79].mxu1 }
 0x1b1   :  { %v2104_v23 = vpack.c.bf16 %v1335_v49, %v1332_v12 }
 0x1b3   :  { %2184 = vst [vmem:[%s3116_s6 + $0x98] sm:$0xff] %v2104_v23  }
 0x1b4   :  { %v1050_v24 = vpop.f32.mrb[80].mxu0  ;;  %v2303_v53 = vpop.f32.mrb[80].mxu1 }
 0x1b5   :  { %v1340_v27 = vadd.f32 %v1339_v0, %v1050_v24  ;;  %v1380_v5 = vadd.f32 %v2303_v53, %v2938_v2  ;;  %v1052_v45 = vpop.f32.mrb[81].mxu0  ;;  %v1371_v31 = vpop.f32.mrb[81].mxu1 }
 0x1b6   :  { %v1372_v61 = vadd.f32 %v1371_v31, %v2932_v58  ;;  %v1053_v32 = vpop.f32.mrb[82].mxu0  ;;  %v2304_v35 = vpop.f32.mrb[82].mxu1 }
 0x1b7   :  { %v1343_v36 = vadd.f32 %v1342_v37, %v1053_v32  ;;  %v1383_v1 = vadd.f32 %v2304_v35, %v2940_v6  ;;  %v1055_v39 = vpop.f32.mrb[83].mxu0  ;;  %v1374_v59 = vpop.f32.mrb[83].mxu1 }
 0x1b8   :  { %v1375_v40 = vadd.f32 %v1374_v59, %v2936_v62 }
 0x1b9   :  { %v2109_v43 = vpack.c.bf16 %v1343_v36, %v1340_v27  ;;  %v2134_v28 = vpack.c.bf16 %v1383_v1, %v1380_v5 }
 0x1ba   :  { %v2129_v9 = vpack.c.bf16 %v1375_v40, %v1372_v61 }
 0x1bb   :  { %2185 = vst [vmem:[%s3116_s6 + $0xa0] sm:$0xff] %v2109_v43   ;;  %2190 = vst [vmem:[%s3116_s6 + $0xc8] sm:$0xff] %v2134_v28  }
 0x1bc   :  { %2189 = vst [vmem:[%s3116_s6 + $0xc0] sm:$0xff] %v2129_v9   ;;  %v1058_v58 = vpop.f32.mrb[84].mxu0  ;;  %v2307_v2 = vpop.f32.mrb[84].mxu1 }
 0x1bd   :  { %v1348_v6 = vadd.f32 %v2295_v17, %v1058_v58  ;;  %v1396_v62 = vadd.f32 %v2307_v2, %v2950_v18  ;;  %v1060_v44 = vpop.f32.mrb[85].mxu0  ;;  %v1387_v47 = vpop.f32.mrb[85].mxu1 }
 0x1be   :  { %v1388_v7 = vadd.f32 %v1387_v47, %v2944_v10  ;;  %v1061_v21 = vpop.f32.mrb[86].mxu0  ;;  %v2308_v51 = vpop.f32.mrb[86].mxu1 }
 0x1bf   :  { %v1351_v13 = vadd.f32 %v2296_v3, %v1061_v21  ;;  %v1399_v52 = vadd.f32 %v2308_v51, %v2952_v22  ;;  %v1063_v55 = vpop.f32.mrb[87].mxu0  ;;  %v1390_v56 = vpop.f32.mrb[87].mxu1 }
 0x1c0   :  { %v1391_v60 = vadd.f32 %v1390_v56, %v2948_v14 }
 0x1c1   :  { %v2114_v63 = vpack.c.bf16 %v1351_v13, %v1348_v6  ;;  %v2144_v33 = vpack.c.bf16 %v1399_v52, %v1396_v62 }
 0x1c2   :  { %v2139_v0 = vpack.c.bf16 %v1391_v60, %v1388_v7 }
 0x1c3   :  { %2186 = vst [vmem:[%s3116_s6 + $0xa8] sm:$0xff] %v2114_v63   ;;  %2192 = vst [vmem:[%s3116_s6 + $0xd8] sm:$0xff] %v2144_v33  }
 0x1c4   :  { %2191 = vst [vmem:[%s3116_s6 + $0xd0] sm:$0xff] %v2139_v0   ;;  %v1066_v10 = vpop.f32.mrb[88].mxu0  ;;  %v2311_v18 = vpop.f32.mrb[88].mxu1 }
 0x1c5   :  { %v1356_v22 = vadd.f32 %v1355_v16, %v1066_v10  ;;  %v1412_v14 = vadd.f32 %v2311_v18, %v2962_v34  ;;  %v1068_v17 = vpop.f32.mrb[89].mxu0  ;;  %v1403_v25 = vpop.f32.mrb[89].mxu1 }
 0x1c6   :  { %v1404_v3 = vadd.f32 %v1403_v25, %v2956_v26  ;;  %v1069_v48 = vpop.f32.mrb[90].mxu0  ;;  %v2312_v4 = vpop.f32.mrb[90].mxu1 }
 0x1c7   :  { %v1359_v37 = vadd.f32 %v1358_v41, %v1069_v48  ;;  %v1415_v8 = vadd.f32 %v2312_v4, %v2964_v38  ;;  %v1071_v11 = vpop.f32.mrb[91].mxu0  ;;  %v1406_v12 = vpop.f32.mrb[91].mxu1 }
 0x1c8   :  { %v1407_v15 = vadd.f32 %v1406_v12, %v2960_v30 }
 0x1c9   :  { %v2119_v19 = vpack.c.bf16 %v1359_v37, %v1356_v22  ;;  %v2154_v49 = vpack.c.bf16 %v1415_v8, %v1412_v14 }
 0x1ca   :  { %v2149_v57 = vpack.c.bf16 %v1407_v15, %v1404_v3 }
 0x1cb   :  { %2187 = vst [vmem:[%s3116_s6 + $0xb0] sm:$0xff] %v2119_v19   ;;  %2194 = vst [vmem:[%s3116_s6 + $0xe8] sm:$0xff] %v2154_v49  }
 0x1cc   :  { %2193 = vst [vmem:[%s3116_s6 + $0xe0] sm:$0xff] %v2149_v57   ;;  %v1074_v26 = vpop.f32.mrb[92].mxu0  ;;  %v2315_v34 = vpop.f32.mrb[92].mxu1 }
 0x1cd   :  { %v1364_v38 = vadd.f32 %v3049_v29, %v1074_v26  ;;  %v1428_v30 = vadd.f32 %v2315_v34, %v2974_v50  ;;  %v1076_v16 = vpop.f32.mrb[93].mxu0  ;;  %v1419_v41 = vpop.f32.mrb[93].mxu1 }
 0x1ce   :  { %v1420_v23 = vadd.f32 %v1419_v41, %v2968_v42  ;;  %v1077_v24 = vpop.f32.mrb[94].mxu0  ;;  %v2316_v53 = vpop.f32.mrb[94].mxu1 }
 0x1cf   :  { %v1367_v27 = vadd.f32 %v3051_v20, %v1077_v24  ;;  %v1431_v5 = vadd.f32 %v2316_v53, %v2976_v54  ;;  %v1079_v45 = vpop.f32.mrb[95].mxu0  ;;  %v1422_v31 = vpop.f32.mrb[95].mxu1 }
 0x1d0   :  { %v1423_v61 = vadd.f32 %v1422_v31, %v2972_v46 }
 0x1d1   :  { %v2124_v32 = vpack.c.bf16 %v1367_v27, %v1364_v38  ;;  %v2164_v35 = vpack.c.bf16 %v1431_v5, %v1428_v30 }
 0x1d2   :  { %v2159_v36 = vpack.c.bf16 %v1423_v61, %v1420_v23 }
 0x1d3   :  { %2188 = vst [vmem:[%s3116_s6 + $0xb8] sm:$0xff] %v2124_v32   ;;  %2196 = vst [vmem:[%s3116_s6 + $0xf8] sm:$0xff] %v2164_v35  }
 0x1d4   :  { %2195 = vst [vmem:[%s3116_s6 + $0xf0] sm:$0xff] %v2159_v36  }

// kernel: densenet_encoder_forward.31
= control target key start
LH: loop header
LB: loop body
LE: loop exit
PB: predicated region body
PF: predicated region fallthrough
CT: control target
= control target key end

     0   :  { %s1065_s0 = inlined_call_operand.vmem [shape: bf16[4,128,128], index: 0, kind: input, shape index: {}]   ;;  %s1066_s1 = inlined_call_operand.vmem [shape: f32[1,128], index: 1, kind: input, shape index: {}]   ;;  %s1067_s2 = inlined_call_operand.vmem [shape: f32[1,128], index: 2, kind: input, shape index: {}]   ;;  %s1068_s3 = inlined_call_operand.vmem [shape: bf16[128,128], index: 3, kind: output, shape index: {}]  }
   0x1   :  { %v582_v0 = vld [vmem:[%s1065_s0] sm:$0xff]   ;;  %v749_v28 = vld [vmem:[%s1065_s0 + $0x8] sm:$0xff]  }
   0x2   :  { %v813_v1 = vld [vmem:[%s1066_s1] ss:$0 sm:$0xff]  ;;  %v583_v2 = vunpack.c.l.bf16 %v582_v0  ;;  %v584_v3 = vunpack.c.h.bf16 %v582_v0  ;;  %v757_v33 = vld [vmem:[%s1065_s0 + $0x48] sm:$0xff]   ;;  %v587_v41 = vunpack.c.l.bf16 %v749_v28  ;;  %v588_v42 = vunpack.c.h.bf16 %v749_v28 }
   0x3   :  { %v756_v4 = vld [vmem:[%s1065_s0 + $0x40] sm:$0xff]   ;;  %v765_v38 = vld [vmem:[%s1065_s0 + $0x88] sm:$0xff]   ;;  %v619_v45 = vunpack.c.l.bf16 %v757_v33  ;;  %v620_v46 = vunpack.c.h.bf16 %v757_v33 }
   0x4   :  { %v764_v5 = vld [vmem:[%s1065_s0 + $0x80] sm:$0xff]   ;;  %v615_v8 = vunpack.c.l.bf16 %v756_v4  ;;  %v616_v9 = vunpack.c.h.bf16 %v756_v4  ;;  %v53_v12 = vmul.f32 %v583_v2, %v813_v1  ;;  %v54_v13 = vmul.f32 %v584_v3, %v813_v1  ;;  %v773_v63 = vld [vmem:[%s1065_s0 + $0xc8] sm:$0xff]  }
   0x5   :  { %v772_v6 = vld [vmem:[%s1065_s0 + $0xc0] sm:$0xff]   ;;  %v647_v10 = vunpack.c.l.bf16 %v764_v5  ;;  %v648_v11 = vunpack.c.h.bf16 %v764_v5  ;;  %v55_v47 = vmul.f32 %v587_v41, %v813_v1  ;;  %v56_v48 = vmul.f32 %v588_v42, %v813_v1  ;;  %v750_v5 = vld [vmem:[%s1065_s0 + $0x10] sm:$0xff]  }
   0x6   :  { %v827_v7 = vld [vmem:[%s1067_s2] ss:$0 sm:$0xff]  ;;  %v679_v14 = vunpack.c.l.bf16 %v772_v6  ;;  %v680_v15 = vunpack.c.h.bf16 %v772_v6  ;;  %v141_v16 = vmul.f32 %v615_v8, %v813_v1  ;;  %v142_v17 = vmul.f32 %v616_v9, %v813_v1  ;;  %v774_v41 = vld [vmem:[%s1065_s0 + $0xd0] sm:$0xff]  }
   0x7   :  { %v238_v18 = vmul.f32 %v647_v10, %v813_v1  ;;  %v239_v19 = vmul.f32 %v648_v11, %v813_v1  ;;  %v76_v20 = vadd.f32 %v827_v7, %v53_v12  ;;  %v77_v21 = vadd.f32 %v827_v7, %v54_v13  ;;  %v758_v11 = vld [vmem:[%s1065_s0 + $0x50] sm:$0xff]  }
   0x8   :  { %v335_v22 = vmul.f32 %v679_v14, %v813_v1  ;;  %v336_v23 = vmul.f32 %v680_v15, %v813_v1  ;;  %v157_v24 = vadd.f32 %v827_v7, %v141_v16  ;;  %v158_v25 = vadd.f32 %v827_v7, %v142_v17 }
   0x9   :  { %v254_v26 = vadd.f32 %v827_v7, %v238_v18  ;;  %v255_v27 = vadd.f32 %v827_v7, %v239_v19  ;;  %v92_v29 = vmax.f32 %v76_v20, 0.0  ;;  %v93_v30 = vmax.f32 %v77_v21, 0.0 }
   0xa   :  { %v351_v31 = vadd.f32 %v827_v7, %v335_v22  ;;  %v352_v32 = vadd.f32 %v827_v7, %v336_v23  ;;  %v173_v34 = vmax.f32 %v157_v24, 0.0  ;;  %v174_v35 = vmax.f32 %v158_v25, 0.0  ;;  %v766_v24 = vld [vmem:[%s1065_s0 + $0x90] sm:$0xff]  }
   0xb   :  { %v270_v36 = vmax.f32 %v254_v26, 0.0  ;;  %v271_v37 = vmax.f32 %v255_v27, 0.0  ;;  %v651_v49 = vunpack.c.l.bf16 %v765_v38  ;;  %v652_v50 = vunpack.c.h.bf16 %v765_v38 }
   0xc   :  { %v367_v39 = vmax.f32 %v351_v31, 0.0  ;;  %v368_v40 = vmax.f32 %v352_v32, 0.0  ;;  %v189_v43 = vadd.f32 %v173_v34, %v92_v29  ;;  %v190_v44 = vadd.f32 %v174_v35, %v93_v30 }
   0xd   :  { %v143_v53 = vmul.f32 %v619_v45, %v813_v1  ;;  %v144_v54 = vmul.f32 %v620_v46, %v813_v1  ;;  %v78_v55 = vadd.f32 %v827_v7, %v55_v47  ;;  %v79_v56 = vadd.f32 %v827_v7, %v56_v48 }
   0xe   :  { %v286_v51 = vadd.f32 %v270_v36, %v189_v43  ;;  %v287_v52 = vadd.f32 %v271_v37, %v190_v44  ;;  %v240_v57 = vmul.f32 %v651_v49, %v813_v1  ;;  %v241_v58 = vmul.f32 %v652_v50, %v813_v1 }
   0xf   :  { %v159_v61 = vadd.f32 %v827_v7, %v143_v53  ;;  %v160_v62 = vadd.f32 %v827_v7, %v144_v54  ;;  %v94_v0 = vmax.f32 %v78_v55, 0.0  ;;  %v95_v2 = vmax.f32 %v79_v56, 0.0  ;;  %v751_v54 = vld [vmem:[%s1065_s0 + $0x18] sm:$0xff]  }
  0x10   :  { %v383_v59 = vadd.f32 %v367_v39, %v286_v51  ;;  %v384_v60 = vadd.f32 %v368_v40, %v287_v52  ;;  %v256_v3 = vadd.f32 %v827_v7, %v240_v57  ;;  %v257_v4 = vadd.f32 %v827_v7, %v241_v58 }
  0x11   :  { %v175_v9 = vmax.f32 %v159_v61, 0.0  ;;  %v176_v10 = vmax.f32 %v160_v62, 0.0  ;;  %v683_v14 = vunpack.c.l.bf16 %v773_v63  ;;  %v684_v15 = vunpack.c.h.bf16 %v773_v63 }
  0x12   :  { %v399_v6 = vmul.f32 0.25, %v383_v59  ;;  %v400_v8 = vmul.f32 0.25, %v384_v60  ;;  %v272_v12 = vmax.f32 %v256_v3, 0.0  ;;  %v273_v13 = vmax.f32 %v257_v4, 0.0  ;;  %v759_v59 = vld [vmem:[%s1065_s0 + $0x58] sm:$0xff]  }
  0x13   :  { %v191_v17 = vadd.f32 %v175_v9, %v94_v0  ;;  %v192_v18 = vadd.f32 %v176_v10, %v95_v2  ;;  %v591_v19 = vunpack.c.l.bf16 %v750_v5  ;;  %v337_v20 = vmul.f32 %v683_v14, %v813_v1 }
  0x14   :  { %v712_v16 = vpack.c.bf16 %v400_v8, %v399_v6  ;;  %v338_v21 = vmul.f32 %v684_v15, %v813_v1  ;;  %v592_v22 = vunpack.c.h.bf16 %v750_v5  ;;  %v623_v23 = vunpack.c.l.bf16 %v758_v11  ;;  %v767_v5 = vld [vmem:[%s1065_s0 + $0x98] sm:$0xff]  }
  0x15   :  { %v288_v25 = vadd.f32 %v272_v12, %v191_v17  ;;  %v289_v26 = vadd.f32 %v273_v13, %v192_v18  ;;  %v57_v27 = vmul.f32 %v591_v19, %v813_v1  ;;  %v624_v28 = vunpack.c.h.bf16 %v758_v11 }
  0x16   :  { %713 = vst [vmem:[%s1068_s3] sm:$0xff] %v712_v16   ;;  %v353_v29 = vadd.f32 %v827_v7, %v337_v20  ;;  %v354_v30 = vadd.f32 %v827_v7, %v338_v21  ;;  %v58_v31 = vmul.f32 %v592_v22, %v813_v1  ;;  %v145_v32 = vmul.f32 %v623_v23, %v813_v1 }
  0x17   :  { %v80_v33 = vadd.f32 %v827_v7, %v57_v27  ;;  %v146_v34 = vmul.f32 %v624_v28, %v813_v1  ;;  %v655_v35 = vunpack.c.l.bf16 %v766_v24  ;;  %v656_v36 = vunpack.c.h.bf16 %v766_v24  ;;  %v775_v27 = vld [vmem:[%s1065_s0 + $0xd8] sm:$0xff]  }
  0x18   :  { %v369_v37 = vmax.f32 %v353_v29, 0.0  ;;  %v370_v38 = vmax.f32 %v354_v30, 0.0  ;;  %v81_v39 = vadd.f32 %v827_v7, %v58_v31  ;;  %v161_v40 = vadd.f32 %v827_v7, %v145_v32  ;;  %v752_v32 = vld [vmem:[%s1065_s0 + $0x20] sm:$0xff]  }
  0x19   :  { %v96_v42 = vmax.f32 %v80_v33, 0.0  ;;  %v162_v43 = vadd.f32 %v827_v7, %v146_v34  ;;  %v242_v44 = vmul.f32 %v655_v35, %v813_v1  ;;  %v243_v45 = vmul.f32 %v656_v36, %v813_v1 }
  0x1a   :  { %v385_v46 = vadd.f32 %v369_v37, %v288_v25  ;;  %v386_v47 = vadd.f32 %v370_v38, %v289_v26  ;;  %v97_v48 = vmax.f32 %v81_v39, 0.0  ;;  %v177_v49 = vmax.f32 %v161_v40, 0.0 }
  0x1b   :  { %v178_v50 = vmax.f32 %v162_v43, 0.0  ;;  %v258_v51 = vadd.f32 %v827_v7, %v242_v44  ;;  %v259_v52 = vadd.f32 %v827_v7, %v243_v45  ;;  %v687_v53 = vunpack.c.l.bf16 %v774_v41 }
  0x1c   :  { %v401_v55 = vmul.f32 0.25, %v385_v46  ;;  %v402_v56 = vmul.f32 0.25, %v386_v47  ;;  %v193_v57 = vadd.f32 %v177_v49, %v96_v42  ;;  %v688_v58 = vunpack.c.h.bf16 %v774_v41  ;;  %v760_v41 = vld [vmem:[%s1065_s0 + $0x60] sm:$0xff]  }
  0x1d   :  { %v194_v60 = vadd.f32 %v178_v50, %v97_v48  ;;  %v274_v61 = vmax.f32 %v258_v51, 0.0  ;;  %v275_v62 = vmax.f32 %v259_v52, 0.0  ;;  %v339_v63 = vmul.f32 %v687_v53, %v813_v1  ;;  %v768_v50 = vld [vmem:[%s1065_s0 + $0xa0] sm:$0xff]  }
  0x1e   :  { %v717_v0 = vpack.c.bf16 %v402_v56, %v401_v55  ;;  %v340_v2 = vmul.f32 %v688_v58, %v813_v1  ;;  %v595_v3 = vunpack.c.l.bf16 %v751_v54  ;;  %v596_v4 = vunpack.c.h.bf16 %v751_v54 }
  0x1f   :  { %v290_v6 = vadd.f32 %v274_v61, %v193_v57  ;;  %v291_v8 = vadd.f32 %v275_v62, %v194_v60  ;;  %v355_v9 = vadd.f32 %v827_v7, %v339_v63  ;;  %v627_v10 = vunpack.c.l.bf16 %v759_v59 }
  0x20   :  { %780 = vst [vmem:[%s1068_s3 + $0x8] sm:$0xff] %v717_v0   ;;  %v356_v11 = vadd.f32 %v827_v7, %v340_v2  ;;  %v59_v12 = vmul.f32 %v595_v3, %v813_v1  ;;  %v60_v13 = vmul.f32 %v596_v4, %v813_v1  ;;  %v628_v14 = vunpack.c.h.bf16 %v759_v59  ;;  %v776_v4 = vld [vmem:[%s1065_s0 + $0xe0] sm:$0xff]  }
  0x21   :  { %v371_v15 = vmax.f32 %v355_v9, 0.0  ;;  %v147_v16 = vmul.f32 %v627_v10, %v813_v1  ;;  %v659_v17 = vunpack.c.l.bf16 %v767_v5  ;;  %v660_v18 = vunpack.c.h.bf16 %v767_v5 }
  0x22   :  { %v372_v19 = vmax.f32 %v356_v11, 0.0  ;;  %v82_v20 = vadd.f32 %v827_v7, %v59_v12  ;;  %v83_v21 = vadd.f32 %v827_v7, %v60_v13  ;;  %v148_v22 = vmul.f32 %v628_v14, %v813_v1 }
  0x23   :  { %v387_v23 = vadd.f32 %v371_v15, %v290_v6  ;;  %v163_v24 = vadd.f32 %v827_v7, %v147_v16  ;;  %v244_v25 = vmul.f32 %v659_v17, %v813_v1  ;;  %v245_v26 = vmul.f32 %v660_v18, %v813_v1  ;;  %v753_v18 = vld [vmem:[%s1065_s0 + $0x28] sm:$0xff]  }
  0x24   :  { %v388_v28 = vadd.f32 %v372_v19, %v291_v8  ;;  %v98_v29 = vmax.f32 %v82_v20, 0.0  ;;  %v99_v30 = vmax.f32 %v83_v21, 0.0  ;;  %v164_v31 = vadd.f32 %v827_v7, %v148_v22 }
  0x25   :  { %v403_v33 = vmul.f32 0.25, %v387_v23  ;;  %v179_v34 = vmax.f32 %v163_v24, 0.0  ;;  %v260_v35 = vadd.f32 %v827_v7, %v244_v25  ;;  %v261_v36 = vadd.f32 %v827_v7, %v245_v26 }
  0x26   :  { %v404_v37 = vmul.f32 0.25, %v388_v28  ;;  %v180_v38 = vmax.f32 %v164_v31, 0.0  ;;  %v691_v39 = vunpack.c.l.bf16 %v775_v27  ;;  %v692_v40 = vunpack.c.h.bf16 %v775_v27  ;;  %v761_v27 = vld [vmem:[%s1065_s0 + $0x68] sm:$0xff]  }
  0x27   :  { %v195_v42 = vadd.f32 %v179_v34, %v98_v29  ;;  %v276_v43 = vmax.f32 %v260_v35, 0.0  ;;  %v277_v44 = vmax.f32 %v261_v36, 0.0  ;;  %v599_v45 = vunpack.c.l.bf16 %v752_v32 }
  0x28   :  { %v722_v46 = vpack.c.bf16 %v404_v37, %v403_v33  ;;  %v196_v47 = vadd.f32 %v180_v38, %v99_v30  ;;  %v341_v48 = vmul.f32 %v691_v39, %v813_v1  ;;  %v342_v49 = vmul.f32 %v692_v40, %v813_v1 }
  0x29   :  { %v292_v51 = vadd.f32 %v276_v43, %v195_v42  ;;  %v600_v52 = vunpack.c.h.bf16 %v752_v32  ;;  %v61_v53 = vmul.f32 %v599_v45, %v813_v1  ;;  %v631_v54 = vunpack.c.l.bf16 %v760_v41  ;;  %v769_v32 = vld [vmem:[%s1065_s0 + $0xa8] sm:$0xff]  }
  0x2a   :  { %781 = vst [vmem:[%s1068_s3 + $0x10] sm:$0xff] %v722_v46   ;;  %v293_v55 = vadd.f32 %v277_v44, %v196_v47  ;;  %v357_v56 = vadd.f32 %v827_v7, %v341_v48  ;;  %v358_v57 = vadd.f32 %v827_v7, %v342_v49  ;;  %v632_v58 = vunpack.c.h.bf16 %v760_v41 }
  0x2b   :  { %v62_v59 = vmul.f32 %v600_v52, %v813_v1  ;;  %v84_v60 = vadd.f32 %v827_v7, %v61_v53  ;;  %v149_v61 = vmul.f32 %v631_v54, %v813_v1  ;;  %v663_v62 = vunpack.c.l.bf16 %v768_v50  ;;  %v777_v53 = vld [vmem:[%s1065_s0 + $0xe8] sm:$0xff]  }
  0x2c   :  { %v373_v63 = vmax.f32 %v357_v56, 0.0  ;;  %v374_v0 = vmax.f32 %v358_v57, 0.0  ;;  %v150_v2 = vmul.f32 %v632_v58, %v813_v1  ;;  %v664_v3 = vunpack.c.h.bf16 %v768_v50  ;;  %v754_v58 = vld [vmem:[%s1065_s0 + $0x30] sm:$0xff]  }
  0x2d   :  { %v85_v5 = vadd.f32 %v827_v7, %v62_v59  ;;  %v100_v6 = vmax.f32 %v84_v60, 0.0  ;;  %v165_v8 = vadd.f32 %v827_v7, %v149_v61  ;;  %v246_v9 = vmul.f32 %v663_v62, %v813_v1 }
  0x2e   :  { %v389_v10 = vadd.f32 %v373_v63, %v292_v51  ;;  %v390_v11 = vadd.f32 %v374_v0, %v293_v55  ;;  %v166_v12 = vadd.f32 %v827_v7, %v150_v2  ;;  %v247_v13 = vmul.f32 %v664_v3, %v813_v1 }
  0x2f   :  { %v101_v14 = vmax.f32 %v85_v5, 0.0  ;;  %v181_v15 = vmax.f32 %v165_v8, 0.0  ;;  %v262_v16 = vadd.f32 %v827_v7, %v246_v9  ;;  %v695_v17 = vunpack.c.l.bf16 %v776_v4  ;;  %v762_v9 = vld [vmem:[%s1065_s0 + $0x70] sm:$0xff]  }
  0x30   :  { %v405_v19 = vmul.f32 0.25, %v389_v10  ;;  %v406_v20 = vmul.f32 0.25, %v390_v11  ;;  %v182_v21 = vmax.f32 %v166_v12, 0.0  ;;  %v263_v22 = vadd.f32 %v827_v7, %v247_v13 }
  0x31   :  { %v197_v23 = vadd.f32 %v181_v15, %v100_v6  ;;  %v278_v24 = vmax.f32 %v262_v16, 0.0  ;;  %v696_v25 = vunpack.c.h.bf16 %v776_v4  ;;  %v343_v26 = vmul.f32 %v695_v17, %v813_v1 }
  0x32   :  { %v727_v28 = vpack.c.bf16 %v406_v20, %v405_v19  ;;  %v198_v29 = vadd.f32 %v182_v21, %v101_v14  ;;  %v279_v30 = vmax.f32 %v263_v22, 0.0  ;;  %v603_v31 = vunpack.c.l.bf16 %v753_v18 }
  0x33   :  { %v294_v33 = vadd.f32 %v278_v24, %v197_v23  ;;  %v344_v34 = vmul.f32 %v696_v25, %v813_v1  ;;  %v359_v35 = vadd.f32 %v827_v7, %v343_v26  ;;  %v604_v36 = vunpack.c.h.bf16 %v753_v18  ;;  %v770_v18 = vld [vmem:[%s1065_s0 + $0xb0] sm:$0xff]  }
  0x34   :  { %782 = vst [vmem:[%s1068_s3 + $0x18] sm:$0xff] %v727_v28   ;;  %v295_v37 = vadd.f32 %v279_v30, %v198_v29  ;;  %v63_v38 = vmul.f32 %v603_v31, %v813_v1  ;;  %v635_v39 = vunpack.c.l.bf16 %v761_v27  ;;  %v636_v40 = vunpack.c.h.bf16 %v761_v27  ;;  %v778_v31 = vld [vmem:[%s1065_s0 + $0xf0] sm:$0xff]  }
  0x35   :  { %v360_v41 = vadd.f32 %v827_v7, %v344_v34  ;;  %v375_v42 = vmax.f32 %v359_v35, 0.0  ;;  %v64_v43 = vmul.f32 %v604_v36, %v813_v1  ;;  %v667_v44 = vunpack.c.l.bf16 %v769_v32 }
  0x36   :  { %v86_v45 = vadd.f32 %v827_v7, %v63_v38  ;;  %v151_v46 = vmul.f32 %v635_v39, %v813_v1  ;;  %v152_v47 = vmul.f32 %v636_v40, %v813_v1  ;;  %v668_v48 = vunpack.c.h.bf16 %v769_v32 }
  0x37   :  { %v376_v49 = vmax.f32 %v360_v41, 0.0  ;;  %v391_v50 = vadd.f32 %v375_v42, %v294_v33  ;;  %v87_v51 = vadd.f32 %v827_v7, %v64_v43  ;;  %v248_v52 = vmul.f32 %v667_v44, %v813_v1  ;;  %v755_v44 = vld [vmem:[%s1065_s0 + $0x38] sm:$0xff]  }
  0x38   :  { %v102_v54 = vmax.f32 %v86_v45, 0.0  ;;  %v167_v55 = vadd.f32 %v827_v7, %v151_v46  ;;  %v168_v56 = vadd.f32 %v827_v7, %v152_v47  ;;  %v249_v57 = vmul.f32 %v668_v48, %v813_v1 }
  0x39   :  { %v392_v59 = vadd.f32 %v376_v49, %v295_v37  ;;  %v407_v60 = vmul.f32 0.25, %v391_v50  ;;  %v103_v61 = vmax.f32 %v87_v51, 0.0  ;;  %v264_v62 = vadd.f32 %v827_v7, %v248_v52 }
  0x3a   :  { %v183_v63 = vmax.f32 %v167_v55, 0.0  ;;  %v184_v0 = vmax.f32 %v168_v56, 0.0  ;;  %v265_v2 = vadd.f32 %v827_v7, %v249_v57  ;;  %v699_v3 = vunpack.c.l.bf16 %v777_v53 }
  0x3b   :  { %v408_v4 = vmul.f32 0.25, %v392_v59  ;;  %v280_v5 = vmax.f32 %v264_v62, 0.0  ;;  %v700_v6 = vunpack.c.h.bf16 %v777_v53  ;;  %v607_v8 = vunpack.c.l.bf16 %v754_v58  ;;  %v763_v53 = vld [vmem:[%s1065_s0 + $0x78] sm:$0xff]  }
  0x3c   :  { %v199_v10 = vadd.f32 %v183_v63, %v102_v54  ;;  %v200_v11 = vadd.f32 %v184_v0, %v103_v61  ;;  %v281_v12 = vmax.f32 %v265_v2, 0.0  ;;  %v345_v13 = vmul.f32 %v699_v3, %v813_v1  ;;  %v771_v62 = vld [vmem:[%s1065_s0 + $0xb8] sm:$0xff]  }
  0x3d   :  { %v732_v14 = vpack.c.bf16 %v408_v4, %v407_v60  ;;  %v346_v15 = vmul.f32 %v700_v6, %v813_v1  ;;  %v608_v16 = vunpack.c.h.bf16 %v754_v58  ;;  %v65_v17 = vmul.f32 %v607_v8, %v813_v1 }
  0x3e   :  { %v296_v19 = vadd.f32 %v280_v5, %v199_v10  ;;  %v297_v20 = vadd.f32 %v281_v12, %v200_v11  ;;  %v361_v21 = vadd.f32 %v827_v7, %v345_v13  ;;  %v639_v22 = vunpack.c.l.bf16 %v762_v9 }
  0x3f   :  { %783 = vst [vmem:[%s1068_s3 + $0x20] sm:$0xff] %v732_v14   ;;  %v362_v23 = vadd.f32 %v827_v7, %v346_v15  ;;  %v66_v24 = vmul.f32 %v608_v16, %v813_v1  ;;  %v88_v25 = vadd.f32 %v827_v7, %v65_v17  ;;  %v640_v26 = vunpack.c.h.bf16 %v762_v9  ;;  %v779_v17 = vld [vmem:[%s1065_s0 + $0xf8] sm:$0xff]  }
  0x40   :  { %v377_v27 = vmax.f32 %v361_v21, 0.0  ;;  %v153_v28 = vmul.f32 %v639_v22, %v813_v1  ;;  %v671_v29 = vunpack.c.l.bf16 %v770_v18  ;;  %v672_v30 = vunpack.c.h.bf16 %v770_v18 }
  0x41   :  { %v378_v32 = vmax.f32 %v362_v23, 0.0  ;;  %v89_v33 = vadd.f32 %v827_v7, %v66_v24  ;;  %v104_v34 = vmax.f32 %v88_v25, 0.0  ;;  %v154_v35 = vmul.f32 %v640_v26, %v813_v1 }
  0x42   :  { %v393_v36 = vadd.f32 %v377_v27, %v296_v19  ;;  %v169_v37 = vadd.f32 %v827_v7, %v153_v28  ;;  %v250_v38 = vmul.f32 %v671_v29, %v813_v1  ;;  %v251_v39 = vmul.f32 %v672_v30, %v813_v1 }
  0x43   :  { %v394_v40 = vadd.f32 %v378_v32, %v297_v20  ;;  %v105_v41 = vmax.f32 %v89_v33, 0.0  ;;  %v170_v42 = vadd.f32 %v827_v7, %v154_v35  ;;  %v703_v43 = vunpack.c.l.bf16 %v778_v31 }
  0x44   :  { %v409_v45 = vmul.f32 0.25, %v393_v36  ;;  %v185_v46 = vmax.f32 %v169_v37, 0.0  ;;  %v266_v47 = vadd.f32 %v827_v7, %v250_v38  ;;  %v267_v48 = vadd.f32 %v827_v7, %v251_v39 }
  0x45   :  { %v410_v49 = vmul.f32 0.25, %v394_v40  ;;  %v186_v50 = vmax.f32 %v170_v42, 0.0  ;;  %v704_v51 = vunpack.c.h.bf16 %v778_v31  ;;  %v347_v52 = vmul.f32 %v703_v43, %v813_v1 }
  0x46   :  { %v201_v54 = vadd.f32 %v185_v46, %v104_v34  ;;  %v282_v55 = vmax.f32 %v266_v47, 0.0  ;;  %v283_v56 = vmax.f32 %v267_v48, 0.0  ;;  %v611_v57 = vunpack.c.l.bf16 %v755_v44 }
  0x47   :  { %v737_v58 = vpack.c.bf16 %v410_v49, %v409_v45  ;;  %v202_v59 = vadd.f32 %v186_v50, %v105_v41  ;;  %v348_v60 = vmul.f32 %v704_v51, %v813_v1  ;;  %v363_v61 = vadd.f32 %v827_v7, %v347_v52 }
  0x48   :  { %v298_v63 = vadd.f32 %v282_v55, %v201_v54  ;;  %v612_v0 = vunpack.c.h.bf16 %v755_v44  ;;  %v67_v2 = vmul.f32 %v611_v57, %v813_v1  ;;  %v643_v3 = vunpack.c.l.bf16 %v763_v53 }
  0x49   :  { %784 = vst [vmem:[%s1068_s3 + $0x28] sm:$0xff] %v737_v58   ;;  %v299_v4 = vadd.f32 %v283_v56, %v202_v59  ;;  %v364_v5 = vadd.f32 %v827_v7, %v348_v60  ;;  %v379_v6 = vmax.f32 %v363_v61, 0.0  ;;  %v644_v8 = vunpack.c.h.bf16 %v763_v53 }
  0x4a   :  { %v68_v9 = vmul.f32 %v612_v0, %v813_v1  ;;  %v90_v10 = vadd.f32 %v827_v7, %v67_v2  ;;  %v155_v11 = vmul.f32 %v643_v3, %v813_v1  ;;  %v675_v12 = vunpack.c.l.bf16 %v771_v62 }
  0x4b   :  { %v380_v13 = vmax.f32 %v364_v5, 0.0  ;;  %v395_v14 = vadd.f32 %v379_v6, %v298_v63  ;;  %v156_v15 = vmul.f32 %v644_v8, %v813_v1  ;;  %v676_v16 = vunpack.c.h.bf16 %v771_v62 }
  0x4c   :  { %v91_v18 = vadd.f32 %v827_v7, %v68_v9  ;;  %v106_v19 = vmax.f32 %v90_v10, 0.0  ;;  %v171_v20 = vadd.f32 %v827_v7, %v155_v11  ;;  %v252_v21 = vmul.f32 %v675_v12, %v813_v1 }
  0x4d   :  { %v396_v22 = vadd.f32 %v380_v13, %v299_v4  ;;  %v411_v23 = vmul.f32 0.25, %v395_v14  ;;  %v172_v24 = vadd.f32 %v827_v7, %v156_v15  ;;  %v253_v25 = vmul.f32 %v676_v16, %v813_v1 }
  0x4e   :  { %v107_v26 = vmax.f32 %v91_v18, 0.0  ;;  %v187_v27 = vmax.f32 %v171_v20, 0.0  ;;  %v268_v28 = vadd.f32 %v827_v7, %v252_v21  ;;  %v707_v29 = vunpack.c.l.bf16 %v779_v17 }
  0x4f   :  { %v412_v30 = vmul.f32 0.25, %v396_v22  ;;  %v188_v31 = vmax.f32 %v172_v24, 0.0  ;;  %v269_v32 = vadd.f32 %v827_v7, %v253_v25  ;;  %v708_v33 = vunpack.c.h.bf16 %v779_v17 }
  0x50   :  { %v203_v34 = vadd.f32 %v187_v27, %v106_v19  ;;  %v284_v35 = vmax.f32 %v268_v28, 0.0  ;;  %v349_v36 = vmul.f32 %v707_v29, %v813_v1 }
  0x51   :  { %v742_v37 = vpack.c.bf16 %v412_v30, %v411_v23  ;;  %v204_v38 = vadd.f32 %v188_v31, %v107_v26  ;;  %v285_v39 = vmax.f32 %v269_v32, 0.0  ;;  %v350_v40 = vmul.f32 %v708_v33, %v813_v1 }
  0x52   :  { %v300_v41 = vadd.f32 %v284_v35, %v203_v34  ;;  %v365_v42 = vadd.f32 %v827_v7, %v349_v36 }
  0x53   :  { %785 = vst [vmem:[%s1068_s3 + $0x30] sm:$0xff] %v742_v37   ;;  %v301_v43 = vadd.f32 %v285_v39, %v204_v38  ;;  %v366_v44 = vadd.f32 %v827_v7, %v350_v40 }
  0x54   :  { %v381_v45 = vmax.f32 %v365_v42, 0.0 }
  0x55   :  { %v382_v46 = vmax.f32 %v366_v44, 0.0 }
  0x56   :  { %v397_v47 = vadd.f32 %v381_v45, %v300_v41 }
  0x57   :  { %v398_v48 = vadd.f32 %v382_v46, %v301_v43 }
  0x58   :  { %v413_v49 = vmul.f32 0.25, %v397_v47 }
  0x59   :  { %v414_v50 = vmul.f32 0.25, %v398_v48 }
  0x5b   :  { %v747_v51 = vpack.c.bf16 %v414_v50, %v413_v49 }
  0x5d   :  { %786 = vst [vmem:[%s1068_s3 + $0x38] sm:$0xff] %v747_v51  }

// kernel: densenet_encoder_forward.32
= control target key start
LH: loop header
LB: loop body
LE: loop exit
PB: predicated region body
PF: predicated region fallthrough
CT: control target
= control target key end

     0   :  { %s615_s1 = inlined_call_operand.vmem [shape: bf16[128,128], index: 1, kind: input, shape index: {}]   ;;  %s616_s2 = inlined_call_operand.vmem [shape: f32[1,128], index: 2, kind: input, shape index: {}, may-alias: {2,3}]   ;;  %s617_s3 = inlined_call_operand.vmem [shape: f32[1,128], index: 3, kind: input, shape index: {}, may-alias: {2,3}]   ;;  %s618_s4 = inlined_call_operand.vmem [shape: f32[1,128], index: 4, kind: input, shape index: {}, may-alias: {4,5}]   ;;  %s619_s5 = inlined_call_operand.vmem [shape: f32[1,128], index: 5, kind: input, shape index: {}, may-alias: {4,5}]   ;;  %s620_s0 = inlined_call_operand.vmem [shape: bf16[128,128], index: 0, kind: input, shape index: {}]   ;;  %s621_s6 = inlined_call_operand.vmem [shape: bf16[128,128], index: 6, kind: output, shape index: {}]  }
   0x1   :  { %v492_v0 = vld [vmem:[%s615_s1] sm:$0xff]   ;;  %v493_v1 = vld [vmem:[%s615_s1 + $0x8] sm:$0xff]   ;;  %v494_v2 = vld [vmem:[%s615_s1 + $0x10] sm:$0xff]  }
   0x2   :  { %444 = vmatprep.subr.bf16.mxu0 %v492_v0  ;;  %476 = vmatprep.subr.bf16.mxu1 %v492_v0  ;;  %v495_v3 = vld [vmem:[%s615_s1 + $0x18] sm:$0xff]   ;;  %v500_v4 = vld [vmem:[%s620_s0] sm:$0xff]   ;;  %v497_v7 = vld [vmem:[%s615_s1 + $0x28] sm:$0xff]  }
   0x3   :  { %445 = vmatpush3.bf16.msra.mxu0 %v492_v0  ;;  %484 = vmatpush3.bf16.msra.mxu1 %v492_v0  ;;  %v501_v5 = vld [vmem:[%s620_s0 + $0x20] sm:$0xff]   ;;  %v498_v8 = vld [vmem:[%s615_s1 + $0x30] sm:$0xff]   ;;  %v499_v9 = vld [vmem:[%s615_s1 + $0x38] sm:$0xff]  }
   0x4   :  { %446 = vmatprep.subr.bf16.mxu0 %v493_v1  ;;  %477 = vmatprep.subr.bf16.mxu1 %v493_v1  ;;  %v496_v6 = vld [vmem:[%s615_s1 + $0x20] sm:$0xff]   ;;  %v502_v10 = vld [vmem:[%s620_s0 + $0x8] sm:$0xff]   ;;  %v504_v12 = vld [vmem:[%s620_s0 + $0x10] sm:$0xff]  }
   0x5   :  { %460 = vmatprep.mubr.bf16.mxu0 %v500_v4  ;;  %468 = vmatprep.mubr.bf16.mxu1 %v501_v5  ;;  %v503_v11 = vld [vmem:[%s620_s0 + $0x28] sm:$0xff]   ;;  %v505_v13 = vld [vmem:[%s620_s0 + $0x30] sm:$0xff]   ;;  %v506_v14 = vld [vmem:[%s620_s0 + $0x18] sm:$0xff]  }
   0x6   :  { %v507_v15 = vld [vmem:[%s620_s0 + $0x38] sm:$0xff]  }
   0x7   :  { %447 = vmatpush3.bf16.msra.mxu0 %v493_v1  ;;  %485 = vmatpush3.bf16.msra.mxu1 %v493_v1 }
   0x8   :  { %448 = vmatprep.subr.bf16.mxu0 %v494_v2  ;;  %478 = vmatprep.subr.bf16.mxu1 %v494_v2 }
   0xb   :  { %449 = vmatpush3.bf16.msra.mxu0 %v494_v2  ;;  %486 = vmatpush3.bf16.msra.mxu1 %v494_v2 }
   0xc   :  { %450 = vmatprep.subr.bf16.mxu0 %v495_v3  ;;  %479 = vmatprep.subr.bf16.mxu1 %v495_v3 }
   0xf   :  { %451 = vmatpush3.bf16.msra.mxu0 %v495_v3  ;;  %487 = vmatpush3.bf16.msra.mxu1 %v495_v3 }
  0x10   :  { %452 = vmatprep.subr.bf16.mxu0 %v496_v6  ;;  %480 = vmatprep.subr.bf16.mxu1 %v496_v6 }
  0x13   :  { %453 = vmatpush3.bf16.msra.mxu0 %v496_v6  ;;  %488 = vmatpush3.bf16.msra.mxu1 %v496_v6 }
  0x14   :  { %454 = vmatprep.subr.bf16.mxu0 %v497_v7  ;;  %481 = vmatprep.subr.bf16.mxu1 %v497_v7 }
  0x17   :  { %455 = vmatpush3.bf16.msra.mxu0 %v497_v7  ;;  %489 = vmatpush3.bf16.msra.mxu1 %v497_v7 }
  0x18   :  { %456 = vmatprep.subr.bf16.mxu0 %v498_v8  ;;  %482 = vmatprep.subr.bf16.mxu1 %v498_v8 }
  0x1b   :  { %457 = vmatpush3.bf16.msra.mxu0 %v498_v8  ;;  %490 = vmatpush3.bf16.msra.mxu1 %v498_v8 }
  0x1c   :  { %458 = vmatprep.subr.bf16.mxu0 %v499_v9  ;;  %483 = vmatprep.subr.bf16.mxu1 %v499_v9 }
  0x1f   :  { %459 = vmatpush3.bf16.msra.mxu0 %v499_v9  ;;  %491 = vmatpush3.bf16.msra.mxu1 %v499_v9 }
  0x22   :  { %461 = vmatmul.mubr.bf16.vlgmr.msra.gmra.mrb[0].mxu0 %v502_v10  ;;  %469 = vmatmul.mubr.bf16.vlgmr.msra.gmra.mrb[0].mxu1 %v503_v11 }
  0x23   :  { %464 = vmatprep.mubr.bf16.mxu0 %v504_v12  ;;  %472 = vmatprep.mubr.bf16.mxu1 %v505_v13 }
  0x2a   :  { %465 = vmatmul.mubr.bf16.gmra.mrb[4].mxu0 %v506_v14  ;;  %473 = vmatmul.mubr.bf16.gmra.mrb[4].mxu1 %v507_v15 }
  0xf5   :  { %v462_v16 = vpop.f32.mrb[0].mxu0  ;;  %v470_v17 = vpop.f32.mrb[0].mxu1 }
  0xf6   :  { %v186_v18 = vpop.f32.mrb[1].mxu0  ;;  %v218_v19 = vpop.f32.mrb[1].mxu1 }
  0xf7   :  { %v463_v20 = vpop.f32.mrb[2].mxu0  ;;  %v471_v21 = vpop.f32.mrb[2].mxu1 }
  0xf8   :  { %v389_v22 = vpack.c.bf16 %v463_v20, %v462_v16  ;;  %v409_v23 = vpack.c.bf16 %v471_v21, %v470_v17  ;;  %v189_v24 = vpop.f32.mrb[3].mxu0  ;;  %v221_v25 = vpop.f32.mrb[3].mxu1 }
  0xf9   :  { %v384_v26 = vpack.c.bf16 %v189_v24, %v186_v18  ;;  %v404_v27 = vpack.c.bf16 %v221_v25, %v218_v19 }
  0xfa   :  { %421 = vst [vmem:[%s621_s6 + $0x8] sm:$0xff] %v389_v22   ;;  %425 = vst [vmem:[%s621_s6 + $0x28] sm:$0xff] %v409_v23  }
  0xfb   :  { %385 = vst [vmem:[%s621_s6] sm:$0xff] %v384_v26   ;;  %424 = vst [vmem:[%s621_s6 + $0x20] sm:$0xff] %v404_v27  }
  0xfd   :  { %v466_v28 = vpop.f32.mrb[4].mxu0  ;;  %v474_v29 = vpop.f32.mrb[4].mxu1 }
  0xfe   :  { %v202_v30 = vpop.f32.mrb[5].mxu0  ;;  %v234_v31 = vpop.f32.mrb[5].mxu1 }
  0xff   :  { %v467_v32 = vpop.f32.mrb[6].mxu0  ;;  %v475_v33 = vpop.f32.mrb[6].mxu1 }
 0x100   :  { %v399_v34 = vpack.c.bf16 %v467_v32, %v466_v28  ;;  %v419_v35 = vpack.c.bf16 %v475_v33, %v474_v29  ;;  %v205_v36 = vpop.f32.mrb[7].mxu0  ;;  %v237_v37 = vpop.f32.mrb[7].mxu1 }
 0x101   :  { %v394_v38 = vpack.c.bf16 %v205_v36, %v202_v30  ;;  %v414_v39 = vpack.c.bf16 %v237_v37, %v234_v31 }
 0x102   :  { %423 = vst [vmem:[%s621_s6 + $0x18] sm:$0xff] %v399_v34   ;;  %427 = vst [vmem:[%s621_s6 + $0x38] sm:$0xff] %v419_v35  }
 0x103   :  { %422 = vst [vmem:[%s621_s6 + $0x10] sm:$0xff] %v394_v38   ;;  %426 = vst [vmem:[%s621_s6 + $0x30] sm:$0xff] %v414_v39  }

// kernel: densenet_encoder_forward.33
= control target key start
LH: loop header
LB: loop body
LE: loop exit
PB: predicated region body
PF: predicated region fallthrough
CT: control target
= control target key end

     0   :  { %s808_s1 = inlined_call_operand.vmem [shape: bf16[128,128], index: 1, kind: input, shape index: {}]   ;;  %s809_s0 = inlined_call_operand.vmem [shape: bf16[128,128], index: 0, kind: input, shape index: {}]   ;;  %s810_s2 = inlined_call_operand.vmem [shape: f32[1,128], index: 2, kind: input, shape index: {}]   ;;  %s811_s3 = inlined_call_operand.vmem [shape: f32[1,128], index: 3, kind: input, shape index: {}]   ;;  %s812_s4 = inlined_call_operand.vmem [shape: f32[1,128], index: 4, kind: input, shape index: {}]   ;;  %s813_s5 = inlined_call_operand.vmem [shape: f32[1,128], index: 5, kind: input, shape index: {}]   ;;  %s814_s6 = inlined_call_operand.vmem [shape: bf16[128,128], index: 6, kind: output, shape index: {}]  }
   0x1   :  { %v627_v0 = vld [vmem:[%s808_s1] sm:$0xff]   ;;  %v628_v1 = vld [vmem:[%s808_s1 + $0x8] sm:$0xff]   ;;  %v629_v2 = vld [vmem:[%s808_s1 + $0x10] sm:$0xff]  }
   0x2   :  { %579 = vmatprep.subr.bf16.mxu0 %v627_v0  ;;  %611 = vmatprep.subr.bf16.mxu1 %v627_v0  ;;  %v630_v3 = vld [vmem:[%s808_s1 + $0x18] sm:$0xff]   ;;  %v478_v4 = vld [vmem:[%s809_s0] sm:$0xff]   ;;  %v549_v9 = vld [vmem:[%s809_s0 + $0x8] sm:$0xff]  }
   0x3   :  { %580 = vmatpush3.bf16.msra.mxu0 %v627_v0  ;;  %619 = vmatpush3.bf16.msra.mxu1 %v627_v0  ;;  %v688_v5 = vld [vmem:[%s810_s2] ss:$0 sm:$0xff]  ;;  %v479_v6 = vunpack.c.l.bf16 %v478_v4  ;;  %v480_v7 = vunpack.c.h.bf16 %v478_v4  ;;  %v553_v13 = vld [vmem:[%s809_s0 + $0x28] sm:$0xff]   ;;  %v550_v16 = vld [vmem:[%s809_s0 + $0x10] sm:$0xff]   ;;  %v483_v20 = vunpack.c.l.bf16 %v549_v9  ;;  %v484_v21 = vunpack.c.h.bf16 %v549_v9 }
   0x4   :  { %581 = vmatprep.subr.bf16.mxu0 %v628_v1  ;;  %612 = vmatprep.subr.bf16.mxu1 %v628_v1  ;;  %v552_v8 = vld [vmem:[%s809_s0 + $0x20] sm:$0xff]   ;;  %v499_v24 = vunpack.c.l.bf16 %v553_v13  ;;  %v500_v25 = vunpack.c.h.bf16 %v553_v13  ;;  %v487_v28 = vunpack.c.l.bf16 %v550_v16  ;;  %v554_v31 = vld [vmem:[%s809_s0 + $0x30] sm:$0xff]   ;;  %v632_v32 = vld [vmem:[%s808_s1 + $0x28] sm:$0xff]   ;;  %v488_v40 = vunpack.c.h.bf16 %v550_v16 }
   0x5   :  { %v699_v10 = vld [vmem:[%s811_s3] ss:$0 sm:$0xff]  ;;  %v495_v11 = vunpack.c.l.bf16 %v552_v8  ;;  %v496_v12 = vunpack.c.h.bf16 %v552_v8  ;;  %v63_v14 = vmul.f32 %v479_v6, %v688_v5  ;;  %v64_v15 = vmul.f32 %v480_v7, %v688_v5  ;;  %v551_v44 = vld [vmem:[%s809_s0 + $0x18] sm:$0xff]   ;;  %v633_v48 = vld [vmem:[%s808_s1 + $0x30] sm:$0xff]  }
   0x6   :  { %v631_v17 = vld [vmem:[%s808_s1 + $0x20] sm:$0xff]   ;;  %v65_v35 = vmul.f32 %v483_v20, %v688_v5  ;;  %v66_v36 = vmul.f32 %v484_v21, %v688_v5  ;;  %v73_v38 = vmul.f32 %v499_v24, %v688_v5  ;;  %v74_v39 = vmul.f32 %v500_v25, %v688_v5  ;;  %v555_v47 = vld [vmem:[%s809_s0 + $0x38] sm:$0xff]  }
   0x7   :  { %582 = vmatpush3.bf16.msra.mxu0 %v628_v1  ;;  %620 = vmatpush3.bf16.msra.mxu1 %v628_v1  ;;  %v71_v18 = vmul.f32 %v495_v11, %v688_v5  ;;  %v72_v19 = vmul.f32 %v496_v12, %v688_v5  ;;  %v86_v22 = vadd.f32 %v699_v10, %v63_v14  ;;  %v503_v43 = vunpack.c.l.bf16 %v554_v31  ;;  %v634_v63 = vld [vmem:[%s808_s1 + $0x38] sm:$0xff]  }
   0x8   :  { %583 = vmatprep.subr.bf16.mxu0 %v629_v2  ;;  %613 = vmatprep.subr.bf16.mxu1 %v629_v2  ;;  %v87_v23 = vadd.f32 %v699_v10, %v64_v15  ;;  %v67_v42 = vmul.f32 %v487_v28, %v688_v5  ;;  %v68_v45 = vmul.f32 %v488_v40, %v688_v5  ;;  %v504_v46 = vunpack.c.h.bf16 %v554_v31  ;;  %v766_v28 = vld [vmem:[%s813_s5] ss:$0 sm:$0xff] }
   0x9   :  { %v94_v26 = vadd.f32 %v699_v10, %v71_v18  ;;  %v95_v27 = vadd.f32 %v699_v10, %v72_v19  ;;  %v102_v29 = vmax.f32 %v86_v22, 0.0  ;;  %v88_v49 = vadd.f32 %v699_v10, %v65_v35 }
   0xa   :  { %v103_v30 = vmax.f32 %v87_v23, 0.0  ;;  %v89_v50 = vadd.f32 %v699_v10, %v66_v36  ;;  %v75_v51 = vmul.f32 %v503_v43, %v688_v5  ;;  %v96_v52 = vadd.f32 %v699_v10, %v73_v38 }
   0xb   :  { %584 = vmatpush3.bf16.msra.mxu0 %v629_v2  ;;  %621 = vmatpush3.bf16.msra.mxu1 %v629_v2  ;;  %v110_v33 = vmax.f32 %v94_v26, 0.0  ;;  %v111_v34 = vmax.f32 %v95_v27, 0.0  ;;  %v97_v53 = vadd.f32 %v699_v10, %v74_v39  ;;  %v76_v54 = vmul.f32 %v504_v46, %v688_v5 }
   0xc   :  { %585 = vmatprep.subr.bf16.mxu0 %v630_v3  ;;  %614 = vmatprep.subr.bf16.mxu1 %v630_v3  ;;  %v118_v37 = vpack.c.bf16 %v103_v30, %v102_v29  ;;  %v491_v55 = vunpack.c.l.bf16 %v551_v44  ;;  %v90_v56 = vadd.f32 %v699_v10, %v67_v42  ;;  %v492_v57 = vunpack.c.h.bf16 %v551_v44 }
   0xd   :  { %v122_v41 = vpack.c.bf16 %v111_v34, %v110_v33  ;;  %v507_v58 = vunpack.c.l.bf16 %v555_v47  ;;  %v508_v59 = vunpack.c.h.bf16 %v555_v47  ;;  %v91_v60 = vadd.f32 %v699_v10, %v68_v45 }
   0xe   :  { %595 = vmatprep.mubr.bf16.mxu0 %v118_v37  ;;  %v98_v61 = vadd.f32 %v699_v10, %v75_v51  ;;  %v99_v62 = vadd.f32 %v699_v10, %v76_v54  ;;  %v104_v0 = vmax.f32 %v88_v49, 0.0  ;;  %v105_v1 = vmax.f32 %v89_v50, 0.0 }
   0xf   :  { %586 = vmatpush3.bf16.msra.mxu0 %v630_v3  ;;  %622 = vmatpush3.bf16.msra.mxu1 %v630_v3  ;;  %v112_v2 = vmax.f32 %v96_v52, 0.0  ;;  %v113_v3 = vmax.f32 %v97_v53, 0.0  ;;  %v69_v4 = vmul.f32 %v491_v55, %v688_v5  ;;  %v70_v6 = vmul.f32 %v492_v57, %v688_v5 }
  0x10   :  { %587 = vmatprep.subr.bf16.mxu0 %v631_v17  ;;  %615 = vmatprep.subr.bf16.mxu1 %v631_v17  ;;  %v77_v7 = vmul.f32 %v507_v58, %v688_v5  ;;  %v78_v8 = vmul.f32 %v508_v59, %v688_v5  ;;  %v106_v9 = vmax.f32 %v90_v56, 0.0  ;;  %v107_v11 = vmax.f32 %v91_v60, 0.0 }
  0x11   :  { %603 = vmatprep.mubr.bf16.mxu1 %v122_v41  ;;  %v114_v12 = vmax.f32 %v98_v61, 0.0  ;;  %v115_v13 = vmax.f32 %v99_v62, 0.0  ;;  %v119_v14 = vpack.c.bf16 %v105_v1, %v104_v0  ;;  %v123_v15 = vpack.c.bf16 %v113_v3, %v112_v2 }
  0x12   :  { %v92_v16 = vadd.f32 %v699_v10, %v69_v4  ;;  %v100_v18 = vadd.f32 %v699_v10, %v77_v7  ;;  %v101_v19 = vadd.f32 %v699_v10, %v78_v8  ;;  %v120_v5 = vpack.c.bf16 %v107_v11, %v106_v9 }
  0x13   :  { %588 = vmatpush3.bf16.msra.mxu0 %v631_v17  ;;  %623 = vmatpush3.bf16.msra.mxu1 %v631_v17  ;;  %v93_v17 = vadd.f32 %v699_v10, %v70_v6  ;;  %v124_v20 = vpack.c.bf16 %v115_v13, %v114_v12  ;;  %v443_v10 = vld [vmem:[%s812_s4] ss:$0 sm:$0xff] }
  0x14   :  { %589 = vmatprep.subr.bf16.mxu0 %v632_v32  ;;  %616 = vmatprep.subr.bf16.mxu1 %v632_v32  ;;  %v108_v21 = vmax.f32 %v92_v16, 0.0  ;;  %v116_v23 = vmax.f32 %v100_v18, 0.0  ;;  %v117_v24 = vmax.f32 %v101_v19, 0.0 }
  0x15   :  { %v109_v22 = vmax.f32 %v93_v17, 0.0 }
  0x16   :  { %v125_v26 = vpack.c.bf16 %v117_v24, %v116_v23 }
  0x17   :  { %590 = vmatpush3.bf16.msra.mxu0 %v632_v32  ;;  %624 = vmatpush3.bf16.msra.mxu1 %v632_v32  ;;  %v121_v25 = vpack.c.bf16 %v109_v22, %v108_v21 }
  0x18   :  { %591 = vmatprep.subr.bf16.mxu0 %v633_v48  ;;  %617 = vmatprep.subr.bf16.mxu1 %v633_v48 }
  0x1b   :  { %592 = vmatpush3.bf16.msra.mxu0 %v633_v48  ;;  %625 = vmatpush3.bf16.msra.mxu1 %v633_v48 }
  0x1c   :  { %593 = vmatprep.subr.bf16.mxu0 %v634_v63  ;;  %618 = vmatprep.subr.bf16.mxu1 %v634_v63 }
  0x1f   :  { %594 = vmatpush3.bf16.msra.mxu0 %v634_v63  ;;  %626 = vmatpush3.bf16.msra.mxu1 %v634_v63 }
  0x22   :  { %596 = vmatmul.mubr.bf16.vlgmr.msra.gmra.mrb[0].mxu0 %v119_v14  ;;  %604 = vmatmul.mubr.bf16.vlgmr.msra.gmra.mrb[0].mxu1 %v123_v15 }
  0x23   :  { %599 = vmatprep.mubr.bf16.mxu0 %v120_v5  ;;  %607 = vmatprep.mubr.bf16.mxu1 %v124_v20 }
  0x2a   :  { %600 = vmatmul.mubr.bf16.gmra.mrb[4].mxu0 %v121_v25  ;;  %608 = vmatmul.mubr.bf16.gmra.mrb[4].mxu1 %v125_v26 }
  0xf5   :  { %v597_v27 = vpop.f32.mrb[0].mxu0  ;;  %v605_v29 = vpop.f32.mrb[0].mxu1 }
  0xf6   :  { %v296_v30 = vmul.f32 %v597_v27, %v443_v10  ;;  %v304_v31 = vmul.f32 %v605_v29, %v443_v10  ;;  %v224_v32 = vpop.f32.mrb[1].mxu0  ;;  %v256_v33 = vpop.f32.mrb[1].mxu1 }
  0xf7   :  { %v294_v34 = vmul.f32 %v443_v10, %v224_v32  ;;  %v302_v35 = vmul.f32 %v443_v10, %v256_v33  ;;  %v598_v36 = vpop.f32.mrb[2].mxu0  ;;  %v606_v37 = vpop.f32.mrb[2].mxu1 }
  0xf8   :  { %v319_v38 = vadd.f32 %v766_v28, %v296_v30  ;;  %v327_v39 = vadd.f32 %v766_v28, %v304_v31  ;;  %v297_v40 = vmul.f32 %v598_v36, %v443_v10  ;;  %v305_v41 = vmul.f32 %v606_v37, %v443_v10  ;;  %v227_v42 = vpop.f32.mrb[3].mxu0  ;;  %v259_v43 = vpop.f32.mrb[3].mxu1 }
  0xf9   :  { %v317_v44 = vadd.f32 %v766_v28, %v294_v34  ;;  %v325_v45 = vadd.f32 %v766_v28, %v302_v35  ;;  %v295_v46 = vmul.f32 %v443_v10, %v227_v42  ;;  %v303_v47 = vmul.f32 %v443_v10, %v259_v43 }
  0xfa   :  { %v320_v48 = vadd.f32 %v766_v28, %v297_v40  ;;  %v328_v49 = vadd.f32 %v766_v28, %v305_v41  ;;  %v335_v52 = vmax.f32 %v319_v38, 0.0  ;;  %v343_v53 = vmax.f32 %v327_v39, 0.0 }
  0xfb   :  { %v318_v50 = vadd.f32 %v766_v28, %v295_v46  ;;  %v326_v51 = vadd.f32 %v766_v28, %v303_v47  ;;  %v333_v56 = vmax.f32 %v317_v44, 0.0  ;;  %v341_v57 = vmax.f32 %v325_v45, 0.0 }
  0xfc   :  { %v336_v54 = vmax.f32 %v320_v48, 0.0  ;;  %v344_v55 = vmax.f32 %v328_v49, 0.0 }
  0xfd   :  { %v334_v58 = vmax.f32 %v318_v50, 0.0  ;;  %v342_v59 = vmax.f32 %v326_v51, 0.0  ;;  %v601_v60 = vpop.f32.mrb[4].mxu0  ;;  %v609_v61 = vpop.f32.mrb[4].mxu1 }
  0xfe   :  { %v517_v62 = vpack.c.bf16 %v336_v54, %v335_v52  ;;  %v537_v63 = vpack.c.bf16 %v344_v55, %v343_v53  ;;  %v300_v0 = vmul.f32 %v601_v60, %v443_v10  ;;  %v308_v1 = vmul.f32 %v609_v61, %v443_v10  ;;  %v240_v2 = vpop.f32.mrb[5].mxu0  ;;  %v272_v3 = vpop.f32.mrb[5].mxu1 }
  0xff   :  { %v512_v4 = vpack.c.bf16 %v334_v58, %v333_v56  ;;  %v532_v6 = vpack.c.bf16 %v342_v59, %v341_v57  ;;  %v298_v7 = vmul.f32 %v443_v10, %v240_v2  ;;  %v306_v8 = vmul.f32 %v443_v10, %v272_v3  ;;  %v602_v9 = vpop.f32.mrb[6].mxu0  ;;  %v610_v11 = vpop.f32.mrb[6].mxu1 }
 0x100   :  { %556 = vst [vmem:[%s814_s6 + $0x8] sm:$0xff] %v517_v62   ;;  %560 = vst [vmem:[%s814_s6 + $0x28] sm:$0xff] %v537_v63   ;;  %v323_v12 = vadd.f32 %v766_v28, %v300_v0  ;;  %v331_v13 = vadd.f32 %v766_v28, %v308_v1  ;;  %v301_v14 = vmul.f32 %v602_v9, %v443_v10  ;;  %v243_v16 = vpop.f32.mrb[7].mxu0  ;;  %v275_v17 = vpop.f32.mrb[7].mxu1 }
 0x101   :  { %v309_v15 = vmul.f32 %v610_v11, %v443_v10  ;;  %513 = vst [vmem:[%s814_s6] sm:$0xff] %v512_v4   ;;  %559 = vst [vmem:[%s814_s6 + $0x20] sm:$0xff] %v532_v6   ;;  %v321_v18 = vadd.f32 %v766_v28, %v298_v7  ;;  %v329_v19 = vadd.f32 %v766_v28, %v306_v8 }
 0x102   :  { %v299_v5 = vmul.f32 %v443_v10, %v243_v16  ;;  %v307_v20 = vmul.f32 %v443_v10, %v275_v17  ;;  %v324_v21 = vadd.f32 %v766_v28, %v301_v14  ;;  %v339_v25 = vmax.f32 %v323_v12, 0.0 }
 0x103   :  { %v332_v22 = vadd.f32 %v766_v28, %v309_v15  ;;  %v347_v26 = vmax.f32 %v331_v13, 0.0  ;;  %v337_v30 = vmax.f32 %v321_v18, 0.0  ;;  %v345_v31 = vmax.f32 %v329_v19, 0.0 }
 0x104   :  { %v322_v23 = vadd.f32 %v766_v28, %v299_v5  ;;  %v330_v24 = vadd.f32 %v766_v28, %v307_v20  ;;  %v340_v27 = vmax.f32 %v324_v21, 0.0 }
 0x105   :  { %v348_v29 = vmax.f32 %v332_v22, 0.0 }
 0x106   :  { %v338_v32 = vmax.f32 %v322_v23, 0.0  ;;  %v346_v33 = vmax.f32 %v330_v24, 0.0  ;;  %v527_v34 = vpack.c.bf16 %v340_v27, %v339_v25 }
 0x107   :  { %v547_v35 = vpack.c.bf16 %v348_v29, %v347_v26 }
 0x108   :  { %v522_v36 = vpack.c.bf16 %v338_v32, %v337_v30  ;;  %v542_v10 = vpack.c.bf16 %v346_v33, %v345_v31  ;;  %558 = vst [vmem:[%s814_s6 + $0x18] sm:$0xff] %v527_v34  }
 0x109   :  { %562 = vst [vmem:[%s814_s6 + $0x38] sm:$0xff] %v547_v35  }
 0x10a   :  { %557 = vst [vmem:[%s814_s6 + $0x10] sm:$0xff] %v522_v36   ;;  %561 = vst [vmem:[%s814_s6 + $0x30] sm:$0xff] %v542_v10  }

// kernel: densenet_encoder_forward.34
= control target key start
LH: loop header
LB: loop body
LE: loop exit
PB: predicated region body
PF: predicated region fallthrough
CT: control target
= control target key end

     0   :  { %s1152_s1 = inlined_call_operand.vmem [shape: bf16[384,128], index: 1, kind: input, shape index: {}]   ;;  %s1153_s2 = inlined_call_operand.vmem [shape: f32[1,384], index: 2, kind: input, shape index: {}, may-alias: {2,3}]   ;;  %s1154_s3 = inlined_call_operand.vmem [shape: f32[1,384], index: 3, kind: input, shape index: {}, may-alias: {2,3}]   ;;  %s1155_s4 = inlined_call_operand.vmem [shape: f32[1,128], index: 4, kind: input, shape index: {}, may-alias: {4,5}]   ;;  %s1156_s5 = inlined_call_operand.vmem [shape: f32[1,128], index: 5, kind: input, shape index: {}, may-alias: {4,5}]   ;;  %s1157_s0 = inlined_call_operand.vmem [shape: bf16[128,384], index: 0, kind: input, shape index: {}]   ;;  %s1158_s6 = inlined_call_operand.vmem [shape: bf16[128,128], index: 6, kind: output, shape index: {}]  }
   0x1   :  { %v893_v0 = vld [vmem:[%s1152_s1 + $0x40] sm:$0xff]   ;;  %v896_v3 = vld [vmem:[%s1152_s1 + $0x48] sm:$0xff]   ;;  %v899_v6 = vld [vmem:[%s1152_s1 + $0x50] sm:$0xff]  }
   0x2   :  { %v894_v1 = vld [vmem:[%s1152_s1] sm:$0xff]   ;;  %781 = vmatprep.subr.bf16.mxu0 %v893_v0  ;;  %v897_v4 = vld [vmem:[%s1152_s1 + $0x8] sm:$0xff]   ;;  %v900_v7 = vld [vmem:[%s1152_s1 + $0x10] sm:$0xff]  }
   0x3   :  { %v895_v2 = vld [vmem:[%s1152_s1 + $0x80] sm:$0xff]   ;;  %782 = vmatpush3.bf16.msra.mxu0 %v894_v1  ;;  %v898_v5 = vld [vmem:[%s1152_s1 + $0x88] sm:$0xff]   ;;  %v901_v8 = vld [vmem:[%s1152_s1 + $0x90] sm:$0xff]  }
   0x4   :  { %861 = vmatprep.subr.bf16.mxu1 %v895_v2  ;;  %783 = vmatprep.subr.bf16.mxu0 %v896_v3  ;;  %v902_v9 = vld [vmem:[%s1152_s1 + $0x58] sm:$0xff]   ;;  %v905_v12 = vld [vmem:[%s1152_s1 + $0x60] sm:$0xff]   ;;  %v908_v15 = vld [vmem:[%s1152_s1 + $0x68] sm:$0xff]  }
   0x5   :  { %862 = vmatpush3.bf16.msra.mxu1 %v895_v2  ;;  %v903_v10 = vld [vmem:[%s1152_s1 + $0x18] sm:$0xff]   ;;  %v907_v13 = vld [vmem:[%s1152_s1 + $0xa0] sm:$0xff]   ;;  %v910_v16 = vld [vmem:[%s1152_s1 + $0xa8] sm:$0xff]  }
   0x6   :  { %863 = vmatprep.subr.bf16.mxu1 %v898_v5  ;;  %v904_v11 = vld [vmem:[%s1152_s1 + $0x98] sm:$0xff]   ;;  %v906_v14 = vld [vmem:[%s1152_s1 + $0x20] sm:$0xff]   ;;  %v909_v17 = vld [vmem:[%s1152_s1 + $0x28] sm:$0xff]  }
   0x7   :  { %784 = vmatpush3.bf16.msra.mxu0 %v897_v4  ;;  %v911_v18 = vld [vmem:[%s1152_s1 + $0x70] sm:$0xff]   ;;  %v914_v21 = vld [vmem:[%s1152_s1 + $0x78] sm:$0xff]   ;;  %v917_v26 = vld [vmem:[%s1157_s0] ss:$12 sps:$4 sm:$0xff]  }
   0x8   :  { %785 = vmatprep.subr.bf16.mxu0 %v899_v6  ;;  %v912_v19 = vld [vmem:[%s1152_s1 + $0x30] sm:$0xff]   ;;  %v916_v22 = vld [vmem:[%s1152_s1 + $0xb8] sm:$0xff]   ;;  %v921_v28 = vld [vmem:[%s1157_s0 + $0x20] ss:$12 sps:$4 sm:$0xff]  }
   0x9   :  { %864 = vmatpush3.bf16.msra.mxu1 %v898_v5  ;;  %v913_v20 = vld [vmem:[%s1152_s1 + $0xb0] sm:$0xff]   ;;  %v915_v25 = vld [vmem:[%s1152_s1 + $0x38] sm:$0xff]   ;;  %v937_v36 = vld [vmem:[%s1157_s0 + $0x80] ss:$12 sps:$4 sm:$0xff]  }
   0xa   :  { %865 = vmatprep.subr.bf16.mxu1 %v901_v8  ;;  %v919_v23 = vld [vmem:[%s1157_s0 + $0x4] ss:$12 sps:$4 sm:$0xff]   ;;  %v920_v24 = vld [vmem:[%s1157_s0 + $0x8] ss:$12 sps:$4 sm:$0xff]   ;;  %v930_v35 = vld [vmem:[%s1157_s0 + $0x4c] ss:$12 sps:$4 sm:$0xff]  }
   0xb   :  { %786 = vmatpush3.bf16.msra.mxu0 %v900_v7  ;;  %408 = vmatprep.mubr.bf16.mxu0 %v919_v23  ;;  %v922_v27 = vld [vmem:[%s1157_s0 + $0x1c] ss:$12 sps:$4 sm:$0xff]   ;;  %v928_v29 = vld [vmem:[%s1157_s0 + $0x38] ss:$12 sps:$4 sm:$0xff]   ;;  %v925_v31 = vld [vmem:[%s1157_s0 + $0x34] ss:$12 sps:$4 sm:$0xff]  }
   0xc   :  { %787 = vmatprep.subr.bf16.mxu0 %v902_v9  ;;  %877 = vmatprep.mubr.bf16.mxu1 %v920_v24  ;;  %v924_v30 = vld [vmem:[%s1157_s0 + $0x18] ss:$12 sps:$4 sm:$0xff]   ;;  %v929_v32 = vld [vmem:[%s1157_s0 + $0x50] ss:$12 sps:$4 sm:$0xff]   ;;  %v936_v33 = vld [vmem:[%s1157_s0 + $0x68] ss:$12 sps:$4 sm:$0xff]  }
   0xd   :  { %866 = vmatpush3.bf16.msra.mxu1 %v901_v8  ;;  %v927_v34 = vld [vmem:[%s1157_s0 + $0x30] ss:$12 sps:$4 sm:$0xff]   ;;  %v944_v37 = vld [vmem:[%s1157_s0 + $0x98] ss:$12 sps:$4 sm:$0xff]   ;;  %v932_v38 = vld [vmem:[%s1157_s0 + $0x48] ss:$12 sps:$4 sm:$0xff]  }
   0xe   :  { %867 = vmatprep.subr.bf16.mxu1 %v904_v11  ;;  %v933_v39 = vld [vmem:[%s1157_s0 + $0x64] ss:$12 sps:$4 sm:$0xff]   ;;  %v935_v41 = vld [vmem:[%s1157_s0 + $0x60] ss:$12 sps:$4 sm:$0xff]   ;;  %v938_v42 = vld [vmem:[%s1157_s0 + $0x7c] ss:$12 sps:$4 sm:$0xff]  }
   0xf   :  { %788 = vmatpush3.bf16.msra.mxu0 %v903_v10  ;;  %v945_v40 = vld [vmem:[%s1157_s0 + $0xb0] ss:$12 sps:$4 sm:$0xff]   ;;  %v940_v43 = vld [vmem:[%s1157_s0 + $0x78] ss:$12 sps:$4 sm:$0xff]   ;;  %v941_v44 = vld [vmem:[%s1157_s0 + $0x94] ss:$12 sps:$4 sm:$0xff]  }
  0x10   :  { %789 = vmatprep.subr.bf16.mxu0 %v905_v12  ;;  %v943_v45 = vld [vmem:[%s1157_s0 + $0x90] ss:$12 sps:$4 sm:$0xff]   ;;  %v946_v46 = vld [vmem:[%s1157_s0 + $0xac] ss:$12 sps:$4 sm:$0xff]   ;;  %v948_v47 = vld [vmem:[%s1157_s0 + $0xa8] ss:$12 sps:$4 sm:$0xff]  }
  0x11   :  { %868 = vmatpush3.bf16.msra.mxu1 %v904_v11 }
  0x12   :  { %869 = vmatprep.subr.bf16.mxu1 %v907_v13 }
  0x13   :  { %790 = vmatpush3.bf16.msra.mxu0 %v906_v14 }
  0x14   :  { %791 = vmatprep.subr.bf16.mxu0 %v908_v15 }
  0x15   :  { %870 = vmatpush3.bf16.msra.mxu1 %v907_v13 }
  0x16   :  { %871 = vmatprep.subr.bf16.mxu1 %v910_v16 }
  0x17   :  { %792 = vmatpush3.bf16.msra.mxu0 %v909_v17 }
  0x18   :  { %793 = vmatprep.subr.bf16.mxu0 %v911_v18 }
  0x19   :  { %872 = vmatpush3.bf16.msra.mxu1 %v910_v16 }
  0x1a   :  { %873 = vmatprep.subr.bf16.mxu1 %v913_v20 }
  0x1b   :  { %794 = vmatpush3.bf16.msra.mxu0 %v912_v19 }
  0x1c   :  { %795 = vmatprep.subr.bf16.mxu0 %v914_v21 }
  0x1d   :  { %874 = vmatpush3.bf16.msra.mxu1 %v913_v20 }
  0x1e   :  { %875 = vmatprep.subr.bf16.mxu1 %v916_v22 }
  0x1f   :  { %796 = vmatpush3.bf16.msra.mxu0 %v915_v25 }
  0x21   :  { %876 = vmatpush3.bf16.msra.mxu1 %v916_v22 }
  0x22   :  { %409 = vmatmul.mubr.bf16.vlgmr.msra.gmra.mrb[0].mxu0 %v917_v26 }
  0x23   :  { %416 = vmatprep.mubr.bf16.mxu0 %v922_v27 }
  0x24   :  { %878 = vmatmul.mubr.bf16.vlgmr.msra.gmra.mrb[0].mxu1 %v921_v28 }
  0x25   :  { %881 = vmatprep.mubr.bf16.mxu1 %v928_v29 }
  0x2a   :  { %417 = vmatmul.mubr.bf16.gmra.mrb[4].mxu0 %v924_v30 }
  0x2b   :  { %424 = vmatprep.mubr.bf16.mxu0 %v925_v31 }
  0x2c   :  { %882 = vmatmul.mubr.bf16.gmra.mrb[4].mxu1 %v929_v32 }
  0x2d   :  { %885 = vmatprep.mubr.bf16.mxu1 %v936_v33 }
  0x32   :  { %425 = vmatmul.mubr.bf16.gmra.mrb[8].mxu0 %v927_v34 }
  0x33   :  { %432 = vmatprep.mubr.bf16.mxu0 %v930_v35 }
  0x34   :  { %886 = vmatmul.mubr.bf16.gmra.mrb[8].mxu1 %v937_v36 }
  0x35   :  { %889 = vmatprep.mubr.bf16.mxu1 %v944_v37 }
  0x3a   :  { %433 = vmatmul.mubr.bf16.gmra.mrb[12].mxu0 %v932_v38 }
  0x3b   :  { %440 = vmatprep.mubr.bf16.mxu0 %v933_v39 }
  0x3c   :  { %890 = vmatmul.mubr.bf16.gmra.mrb[12].mxu1 %v945_v40 }
  0x42   :  { %441 = vmatmul.mubr.bf16.gmra.mrb[16].mxu0 %v935_v41 }
  0x43   :  { %448 = vmatprep.mubr.bf16.mxu0 %v938_v42 }
  0x4a   :  { %449 = vmatmul.mubr.bf16.gmra.mrb[20].mxu0 %v940_v43 }
  0x4b   :  { %456 = vmatprep.mubr.bf16.mxu0 %v941_v44 }
  0x52   :  { %457 = vmatmul.mubr.bf16.gmra.mrb[24].mxu0 %v943_v45 }
  0x53   :  { %464 = vmatprep.mubr.bf16.mxu0 %v946_v46 }
  0x5a   :  { %465 = vmatmul.mubr.bf16.gmra.mrb[28].mxu0 %v948_v47 }
  0xf5   :  { %v797_v48 = vpop.f32.mrb[0].mxu0 }
  0xf6   :  { %v798_v49 = vpop.f32.mrb[1].mxu0 }
  0xf7   :  { %v799_v50 = vadd.f32 %v798_v49, %v797_v48  ;;  %v800_v51 = vpop.f32.mrb[2].mxu0  ;;  %v879_v52 = vpop.f32.mrb[0].mxu1 }
  0xf8   :  { %v801_v53 = vpop.f32.mrb[3].mxu0  ;;  %v507_v54 = vpop.f32.mrb[1].mxu1 }
  0xf9   :  { %v802_v55 = vadd.f32 %v801_v53, %v800_v51  ;;  %v508_v56 = vadd.f32 %v799_v50, %v507_v54  ;;  %v880_v57 = vpop.f32.mrb[2].mxu1 }
  0xfa   :  { %v510_v58 = vpop.f32.mrb[3].mxu1 }
  0xfb   :  { %v511_v59 = vadd.f32 %v802_v55, %v510_v58 }
  0xfd   :  { %v737_v60 = vpack.c.bf16 %v511_v59, %v508_v56  ;;  %v803_v61 = vpop.f32.mrb[4].mxu0 }
  0xfe   :  { %v804_v62 = vpop.f32.mrb[5].mxu0 }
  0xff   :  { %738 = vst [vmem:[%s1158_s6] sm:$0xff] %v737_v60   ;;  %v805_v63 = vadd.f32 %v804_v62, %v803_v61  ;;  %v806_v0 = vpop.f32.mrb[6].mxu0  ;;  %v883_v1 = vpop.f32.mrb[4].mxu1 }
 0x100   :  { %v807_v2 = vpop.f32.mrb[7].mxu0  ;;  %v523_v3 = vpop.f32.mrb[5].mxu1 }
 0x101   :  { %v516_v4 = vadd.f32 %v879_v52, %v805_v63  ;;  %v808_v5 = vadd.f32 %v807_v2, %v806_v0  ;;  %v884_v6 = vpop.f32.mrb[6].mxu1 }
 0x102   :  { %v526_v7 = vpop.f32.mrb[7].mxu1 }
 0x103   :  { %v519_v8 = vadd.f32 %v880_v57, %v808_v5 }
 0x105   :  { %v742_v9 = vpack.c.bf16 %v519_v8, %v516_v4  ;;  %v809_v10 = vpop.f32.mrb[8].mxu0 }
 0x106   :  { %v810_v11 = vpop.f32.mrb[9].mxu0 }
 0x107   :  { %774 = vst [vmem:[%s1158_s6 + $0x8] sm:$0xff] %v742_v9   ;;  %v811_v12 = vadd.f32 %v810_v11, %v809_v10  ;;  %v812_v13 = vpop.f32.mrb[10].mxu0  ;;  %v887_v14 = vpop.f32.mrb[8].mxu1 }
 0x108   :  { %v813_v15 = vpop.f32.mrb[11].mxu0  ;;  %v539_v16 = vpop.f32.mrb[9].mxu1 }
 0x109   :  { %v814_v17 = vadd.f32 %v813_v15, %v812_v13  ;;  %v524_v18 = vadd.f32 %v811_v12, %v523_v3  ;;  %v888_v19 = vpop.f32.mrb[10].mxu1 }
 0x10a   :  { %v542_v20 = vpop.f32.mrb[11].mxu1 }
 0x10b   :  { %v527_v21 = vadd.f32 %v814_v17, %v526_v7 }
 0x10d   :  { %v747_v22 = vpack.c.bf16 %v527_v21, %v524_v18  ;;  %v815_v23 = vpop.f32.mrb[12].mxu0 }
 0x10e   :  { %v816_v24 = vpop.f32.mrb[13].mxu0 }
 0x10f   :  { %775 = vst [vmem:[%s1158_s6 + $0x10] sm:$0xff] %v747_v22   ;;  %v817_v25 = vadd.f32 %v816_v24, %v815_v23  ;;  %v818_v26 = vpop.f32.mrb[14].mxu0  ;;  %v891_v27 = vpop.f32.mrb[12].mxu1 }
 0x110   :  { %v819_v28 = vpop.f32.mrb[15].mxu0  ;;  %v555_v29 = vpop.f32.mrb[13].mxu1 }
 0x111   :  { %v532_v30 = vadd.f32 %v883_v1, %v817_v25  ;;  %v820_v31 = vadd.f32 %v819_v28, %v818_v26  ;;  %v892_v32 = vpop.f32.mrb[14].mxu1 }
 0x112   :  { %v558_v33 = vpop.f32.mrb[15].mxu1 }
 0x113   :  { %v535_v34 = vadd.f32 %v884_v6, %v820_v31 }
 0x115   :  { %v752_v35 = vpack.c.bf16 %v535_v34, %v532_v30  ;;  %v821_v36 = vpop.f32.mrb[16].mxu0 }
 0x116   :  { %v822_v37 = vpop.f32.mrb[17].mxu0 }
 0x117   :  { %776 = vst [vmem:[%s1158_s6 + $0x18] sm:$0xff] %v752_v35   ;;  %v823_v38 = vadd.f32 %v822_v37, %v821_v36  ;;  %v824_v39 = vpop.f32.mrb[18].mxu0 }
 0x118   :  { %v825_v40 = vpop.f32.mrb[19].mxu0 }
 0x119   :  { %v826_v41 = vadd.f32 %v825_v40, %v824_v39  ;;  %v540_v42 = vadd.f32 %v823_v38, %v539_v16 }
 0x11b   :  { %v543_v43 = vadd.f32 %v826_v41, %v542_v20 }
 0x11d   :  { %v757_v44 = vpack.c.bf16 %v543_v43, %v540_v42  ;;  %v827_v45 = vpop.f32.mrb[20].mxu0 }
 0x11e   :  { %v828_v46 = vpop.f32.mrb[21].mxu0 }
 0x11f   :  { %777 = vst [vmem:[%s1158_s6 + $0x20] sm:$0xff] %v757_v44   ;;  %v829_v47 = vadd.f32 %v828_v46, %v827_v45  ;;  %v830_v48 = vpop.f32.mrb[22].mxu0 }
 0x120   :  { %v831_v49 = vpop.f32.mrb[23].mxu0 }
 0x121   :  { %v548_v50 = vadd.f32 %v887_v14, %v829_v47  ;;  %v832_v51 = vadd.f32 %v831_v49, %v830_v48 }
 0x123   :  { %v551_v52 = vadd.f32 %v888_v19, %v832_v51 }
 0x125   :  { %v762_v53 = vpack.c.bf16 %v551_v52, %v548_v50  ;;  %v833_v54 = vpop.f32.mrb[24].mxu0 }
 0x126   :  { %v834_v55 = vpop.f32.mrb[25].mxu0 }
 0x127   :  { %778 = vst [vmem:[%s1158_s6 + $0x28] sm:$0xff] %v762_v53   ;;  %v835_v56 = vadd.f32 %v834_v55, %v833_v54  ;;  %v836_v57 = vpop.f32.mrb[26].mxu0 }
 0x128   :  { %v837_v58 = vpop.f32.mrb[27].mxu0 }
 0x129   :  { %v838_v59 = vadd.f32 %v837_v58, %v836_v57  ;;  %v556_v60 = vadd.f32 %v835_v56, %v555_v29 }
 0x12b   :  { %v559_v61 = vadd.f32 %v838_v59, %v558_v33 }
 0x12d   :  { %v767_v62 = vpack.c.bf16 %v559_v61, %v556_v60  ;;  %v839_v63 = vpop.f32.mrb[28].mxu0 }
 0x12e   :  { %v840_v0 = vpop.f32.mrb[29].mxu0 }
 0x12f   :  { %779 = vst [vmem:[%s1158_s6 + $0x30] sm:$0xff] %v767_v62   ;;  %v841_v1 = vadd.f32 %v840_v0, %v839_v63  ;;  %v842_v2 = vpop.f32.mrb[30].mxu0 }
 0x130   :  { %v843_v3 = vpop.f32.mrb[31].mxu0 }
 0x131   :  { %v564_v4 = vadd.f32 %v891_v27, %v841_v1  ;;  %v844_v5 = vadd.f32 %v843_v3, %v842_v2 }
 0x133   :  { %v567_v6 = vadd.f32 %v892_v32, %v844_v5 }
 0x135   :  { %v772_v7 = vpack.c.bf16 %v567_v6, %v564_v4 }
 0x137   :  { %780 = vst [vmem:[%s1158_s6 + $0x38] sm:$0xff] %v772_v7  }

// kernel: densenet_encoder_forward.37
= control target key start
LH: loop header
LB: loop body
LE: loop exit
PB: predicated region body
PF: predicated region fallthrough
CT: control target
= control target key end

     0   :  { %s315_s0 = inlined_call_operand.vmem [shape: bf16[4,32,128], index: 0, kind: input, shape index: {}]   ;;  %s316_s1 = inlined_call_operand.vmem [shape: f32[1,128], index: 1, kind: input, shape index: {}]   ;;  %s317_s2 = inlined_call_operand.vmem [shape: f32[1,128], index: 2, kind: input, shape index: {}]   ;;  %s318_s3 = inlined_call_operand.vmem [shape: bf16[32,128], index: 3, kind: output, shape index: {}]  }
   0x1   :  { %v174_v0 = vld [vmem:[%s315_s0] sm:$0xff]   ;;  %v216_v4 = vld [vmem:[%s315_s0 + $0x10] sm:$0xff]   ;;  %v215_v28 = vld [vmem:[%s315_s0 + $0x8] sm:$0xff]  }
   0x2   :  { %v249_v1 = vld [vmem:[%s316_s1] ss:$0 sm:$0xff]  ;;  %v175_v2 = vunpack.c.l.bf16 %v174_v0  ;;  %v176_v3 = vunpack.c.h.bf16 %v174_v0  ;;  %v220_v6 = vld [vmem:[%s315_s0 + $0x30] sm:$0xff]   ;;  %v183_v8 = vunpack.c.l.bf16 %v216_v4  ;;  %v184_v9 = vunpack.c.h.bf16 %v216_v4  ;;  %v217_v33 = vld [vmem:[%s315_s0 + $0x18] sm:$0xff]  }
   0x3   :  { %v218_v5 = vld [vmem:[%s315_s0 + $0x20] sm:$0xff]   ;;  %v199_v14 = vunpack.c.l.bf16 %v220_v6  ;;  %v200_v15 = vunpack.c.h.bf16 %v220_v6  ;;  %v219_v38 = vld [vmem:[%s315_s0 + $0x28] sm:$0xff]   ;;  %v179_v41 = vunpack.c.l.bf16 %v215_v28  ;;  %v180_v42 = vunpack.c.h.bf16 %v215_v28  ;;  %v221_v63 = vld [vmem:[%s315_s0 + $0x38] sm:$0xff]  }
   0x4   :  { %v263_v7 = vld [vmem:[%s317_s2] ss:$0 sm:$0xff]  ;;  %v191_v10 = vunpack.c.l.bf16 %v218_v5  ;;  %v192_v11 = vunpack.c.h.bf16 %v218_v5  ;;  %v29_v12 = vmul.f32 %v175_v2, %v249_v1  ;;  %v30_v13 = vmul.f32 %v176_v3, %v249_v1 }
   0x5   :  { %v57_v16 = vmul.f32 %v183_v8, %v249_v1  ;;  %v58_v17 = vmul.f32 %v184_v9, %v249_v1  ;;  %v107_v22 = vmul.f32 %v199_v14, %v249_v1  ;;  %v108_v23 = vmul.f32 %v200_v15, %v249_v1 }
   0x6   :  { %v82_v18 = vmul.f32 %v191_v10, %v249_v1  ;;  %v83_v19 = vmul.f32 %v192_v11, %v249_v1  ;;  %v40_v20 = vadd.f32 %v263_v7, %v29_v12  ;;  %v41_v21 = vadd.f32 %v263_v7, %v30_v13 }
   0x7   :  { %v61_v24 = vadd.f32 %v263_v7, %v57_v16  ;;  %v62_v25 = vadd.f32 %v263_v7, %v58_v17  ;;  %v111_v31 = vadd.f32 %v263_v7, %v107_v22  ;;  %v112_v32 = vadd.f32 %v263_v7, %v108_v23 }
   0x8   :  { %v86_v26 = vadd.f32 %v263_v7, %v82_v18  ;;  %v87_v27 = vadd.f32 %v263_v7, %v83_v19  ;;  %v44_v29 = vmax.f32 %v40_v20, 0.0  ;;  %v45_v30 = vmax.f32 %v41_v21, 0.0 }
   0x9   :  { %v65_v34 = vmax.f32 %v61_v24, 0.0  ;;  %v66_v35 = vmax.f32 %v62_v25, 0.0  ;;  %v115_v39 = vmax.f32 %v111_v31, 0.0  ;;  %v116_v40 = vmax.f32 %v112_v32, 0.0 }
   0xa   :  { %v90_v36 = vmax.f32 %v86_v26, 0.0  ;;  %v91_v37 = vmax.f32 %v87_v27, 0.0  ;;  %v187_v45 = vunpack.c.l.bf16 %v217_v33  ;;  %v188_v46 = vunpack.c.h.bf16 %v217_v33 }
   0xb   :  { %v69_v43 = vadd.f32 %v65_v34, %v44_v29  ;;  %v70_v44 = vadd.f32 %v66_v35, %v45_v30  ;;  %v31_v47 = vmul.f32 %v179_v41, %v249_v1  ;;  %v32_v48 = vmul.f32 %v180_v42, %v249_v1 }
   0xc   :  { %v195_v49 = vunpack.c.l.bf16 %v219_v38  ;;  %v196_v50 = vunpack.c.h.bf16 %v219_v38  ;;  %v59_v53 = vmul.f32 %v187_v45, %v249_v1  ;;  %v60_v54 = vmul.f32 %v188_v46, %v249_v1 }
   0xd   :  { %v94_v51 = vadd.f32 %v90_v36, %v69_v43  ;;  %v95_v52 = vadd.f32 %v91_v37, %v70_v44  ;;  %v42_v55 = vadd.f32 %v263_v7, %v31_v47  ;;  %v43_v56 = vadd.f32 %v263_v7, %v32_v48 }
   0xe   :  { %v84_v57 = vmul.f32 %v195_v49, %v249_v1  ;;  %v85_v58 = vmul.f32 %v196_v50, %v249_v1  ;;  %v63_v61 = vadd.f32 %v263_v7, %v59_v53  ;;  %v64_v62 = vadd.f32 %v263_v7, %v60_v54 }
   0xf   :  { %v119_v59 = vadd.f32 %v115_v39, %v94_v51  ;;  %v120_v60 = vadd.f32 %v116_v40, %v95_v52  ;;  %v46_v0 = vmax.f32 %v42_v55, 0.0  ;;  %v47_v2 = vmax.f32 %v43_v56, 0.0 }
  0x10   :  { %v88_v3 = vadd.f32 %v263_v7, %v84_v57  ;;  %v89_v4 = vadd.f32 %v263_v7, %v85_v58  ;;  %v67_v8 = vmax.f32 %v63_v61, 0.0  ;;  %v68_v9 = vmax.f32 %v64_v62, 0.0 }
  0x11   :  { %v123_v5 = vmul.f32 0.25, %v119_v59  ;;  %v124_v6 = vmul.f32 0.25, %v120_v60  ;;  %v203_v12 = vunpack.c.l.bf16 %v221_v63  ;;  %v204_v13 = vunpack.c.h.bf16 %v221_v63 }
  0x12   :  { %v92_v10 = vmax.f32 %v88_v3, 0.0  ;;  %v93_v11 = vmax.f32 %v89_v4, 0.0  ;;  %v71_v15 = vadd.f32 %v67_v8, %v46_v0  ;;  %v72_v16 = vadd.f32 %v68_v9, %v47_v2 }
  0x13   :  { %v208_v14 = vpack.c.bf16 %v124_v6, %v123_v5  ;;  %v109_v17 = vmul.f32 %v203_v12, %v249_v1  ;;  %v110_v18 = vmul.f32 %v204_v13, %v249_v1 }
  0x14   :  { %v96_v19 = vadd.f32 %v92_v10, %v71_v15  ;;  %v97_v20 = vadd.f32 %v93_v11, %v72_v16 }
  0x15   :  { %209 = vst [vmem:[%s318_s3] sm:$0xff] %v208_v14   ;;  %v113_v21 = vadd.f32 %v263_v7, %v109_v17  ;;  %v114_v22 = vadd.f32 %v263_v7, %v110_v18 }
  0x17   :  { %v117_v23 = vmax.f32 %v113_v21, 0.0  ;;  %v118_v24 = vmax.f32 %v114_v22, 0.0 }
  0x19   :  { %v121_v25 = vadd.f32 %v117_v23, %v96_v19  ;;  %v122_v26 = vadd.f32 %v118_v24, %v97_v20 }
  0x1b   :  { %v125_v27 = vmul.f32 0.25, %v121_v25  ;;  %v126_v28 = vmul.f32 0.25, %v122_v26 }
  0x1d   :  { %v213_v29 = vpack.c.bf16 %v126_v28, %v125_v27 }
  0x1f   :  { %222 = vst [vmem:[%s318_s3 + $0x8] sm:$0xff] %v213_v29  }

// kernel: densenet_encoder_forward.38
= control target key start
LH: loop header
LB: loop body
LE: loop exit
PB: predicated region body
PF: predicated region fallthrough
CT: control target
= control target key end

     0   :  { %s317_s1 = inlined_call_operand.vmem [shape: bf16[128,128], index: 1, kind: input, shape index: {}]   ;;  %s318_s2 = inlined_call_operand.vmem [shape: f32[1,128], index: 2, kind: input, shape index: {}, may-alias: {2,3}]   ;;  %s319_s3 = inlined_call_operand.vmem [shape: f32[1,128], index: 3, kind: input, shape index: {}, may-alias: {2,3}]   ;;  %s320_s4 = inlined_call_operand.vmem [shape: f32[1,128], index: 4, kind: input, shape index: {}, may-alias: {4,5}]   ;;  %s321_s5 = inlined_call_operand.vmem [shape: f32[1,128], index: 5, kind: input, shape index: {}, may-alias: {4,5}]   ;;  %s322_s0 = inlined_call_operand.vmem [shape: bf16[32,128], index: 0, kind: input, shape index: {}]   ;;  %s323_s6 = inlined_call_operand.vmem [shape: bf16[32,128], index: 6, kind: output, shape index: {}]  }
   0x1   :  { %v236_v0 = vld [vmem:[%s317_s1] sm:$0xff]   ;;  %v237_v1 = vld [vmem:[%s317_s1 + $0x8] sm:$0xff]   ;;  %v238_v2 = vld [vmem:[%s317_s1 + $0x10] sm:$0xff]  }
   0x2   :  { %216 = vmatprep.subr.bf16.mxu0 %v236_v0  ;;  %v239_v3 = vld [vmem:[%s317_s1 + $0x18] sm:$0xff]   ;;  %v244_v4 = vld [vmem:[%s322_s0] sm:$0xff]   ;;  %v241_v6 = vld [vmem:[%s317_s1 + $0x28] sm:$0xff]  }
   0x3   :  { %217 = vmatpush3.bf16.msra.mxu0 %v236_v0  ;;  %232 = vmatprep.mubr.bf16.mxu0 %v244_v4  ;;  %v240_v5 = vld [vmem:[%s317_s1 + $0x20] sm:$0xff]   ;;  %v242_v7 = vld [vmem:[%s317_s1 + $0x30] sm:$0xff]   ;;  %v243_v8 = vld [vmem:[%s317_s1 + $0x38] sm:$0xff]  }
   0x4   :  { %218 = vmatprep.subr.bf16.mxu0 %v237_v1  ;;  %v245_v9 = vld [vmem:[%s322_s0 + $0x8] sm:$0xff]  }
   0x7   :  { %219 = vmatpush3.bf16.msra.mxu0 %v237_v1 }
   0x8   :  { %220 = vmatprep.subr.bf16.mxu0 %v238_v2 }
   0xb   :  { %221 = vmatpush3.bf16.msra.mxu0 %v238_v2 }
   0xc   :  { %222 = vmatprep.subr.bf16.mxu0 %v239_v3 }
   0xf   :  { %223 = vmatpush3.bf16.msra.mxu0 %v239_v3 }
  0x10   :  { %224 = vmatprep.subr.bf16.mxu0 %v240_v5 }
  0x13   :  { %225 = vmatpush3.bf16.msra.mxu0 %v240_v5 }
  0x14   :  { %226 = vmatprep.subr.bf16.mxu0 %v241_v6 }
  0x17   :  { %227 = vmatpush3.bf16.msra.mxu0 %v241_v6 }
  0x18   :  { %228 = vmatprep.subr.bf16.mxu0 %v242_v7 }
  0x1b   :  { %229 = vmatpush3.bf16.msra.mxu0 %v242_v7 }
  0x1c   :  { %230 = vmatprep.subr.bf16.mxu0 %v243_v8 }
  0x1f   :  { %231 = vmatpush3.bf16.msra.mxu0 %v243_v8 }
  0x22   :  { %233 = vmatmul.mubr.bf16.vlgmr.msra.gmra.mrb[0].mxu0 %v245_v9 }
  0xf5   :  { %v234_v10 = vpop.f32.mrb[0].mxu0 }
  0xf6   :  { %v138_v11 = vpop.f32.mrb[1].mxu0 }
  0xf7   :  { %v235_v12 = vpop.f32.mrb[2].mxu0 }
  0xf8   :  { %v203_v13 = vpack.c.bf16 %v235_v12, %v234_v10  ;;  %v141_v14 = vpop.f32.mrb[3].mxu0 }
  0xf9   :  { %v198_v15 = vpack.c.bf16 %v141_v14, %v138_v11 }
  0xfa   :  { %205 = vst [vmem:[%s323_s6 + $0x8] sm:$0xff] %v203_v13  }
  0xfb   :  { %199 = vst [vmem:[%s323_s6] sm:$0xff] %v198_v15  }

// kernel: densenet_encoder_forward.39
= control target key start
LH: loop header
LB: loop body
LE: loop exit
PB: predicated region body
PF: predicated region fallthrough
CT: control target
= control target key end

     0   :  { %s384_s1 = inlined_call_operand.vmem [shape: bf16[128,128], index: 1, kind: input, shape index: {}]   ;;  %s385_s0 = inlined_call_operand.vmem [shape: bf16[32,128], index: 0, kind: input, shape index: {}]   ;;  %s386_s2 = inlined_call_operand.vmem [shape: f32[1,128], index: 2, kind: input, shape index: {}]   ;;  %s387_s3 = inlined_call_operand.vmem [shape: f32[1,128], index: 3, kind: input, shape index: {}]   ;;  %s388_s4 = inlined_call_operand.vmem [shape: f32[1,128], index: 4, kind: input, shape index: {}]   ;;  %s389_s5 = inlined_call_operand.vmem [shape: f32[1,128], index: 5, kind: input, shape index: {}]   ;;  %s390_s6 = inlined_call_operand.vmem [shape: bf16[32,128], index: 6, kind: output, shape index: {}]  }
   0x1   :  { %v293_v0 = vld [vmem:[%s384_s1] sm:$0xff]   ;;  %v294_v1 = vld [vmem:[%s384_s1 + $0x8] sm:$0xff]   ;;  %v295_v2 = vld [vmem:[%s384_s1 + $0x10] sm:$0xff]  }
   0x2   :  { %273 = vmatprep.subr.bf16.mxu0 %v293_v0  ;;  %v296_v3 = vld [vmem:[%s384_s1 + $0x18] sm:$0xff]   ;;  %v244_v4 = vld [vmem:[%s385_s0] sm:$0xff]   ;;  %v261_v9 = vld [vmem:[%s385_s0 + $0x8] sm:$0xff]  }
   0x3   :  { %274 = vmatpush3.bf16.msra.mxu0 %v293_v0  ;;  %v223_v5 = vld [vmem:[%s386_s2] ss:$0 sm:$0xff]  ;;  %v245_v6 = vunpack.c.l.bf16 %v244_v4  ;;  %v246_v7 = vunpack.c.h.bf16 %v244_v4  ;;  %v249_v15 = vunpack.c.l.bf16 %v261_v9  ;;  %v250_v16 = vunpack.c.h.bf16 %v261_v9  ;;  %v298_v19 = vld [vmem:[%s384_s1 + $0x28] sm:$0xff]   ;;  %v299_v23 = vld [vmem:[%s384_s1 + $0x30] sm:$0xff]  }
   0x4   :  { %275 = vmatprep.subr.bf16.mxu0 %v294_v1  ;;  %v224_v8 = vld [vmem:[%s387_s3] ss:$0 sm:$0xff]  ;;  %v300_v26 = vld [vmem:[%s384_s1 + $0x38] sm:$0xff]  }
   0x5   :  { %v39_v10 = vmul.f32 %v245_v6, %v223_v5  ;;  %v40_v11 = vmul.f32 %v246_v7, %v223_v5  ;;  %v297_v12 = vld [vmem:[%s384_s1 + $0x20] sm:$0xff]   ;;  %v41_v21 = vmul.f32 %v249_v15, %v223_v5  ;;  %v42_v22 = vmul.f32 %v250_v16, %v223_v5 }
   0x6   :  { %v233_v30 = vld [vmem:[%s388_s4] ss:$0 sm:$0xff] }
   0x7   :  { %276 = vmatpush3.bf16.msra.mxu0 %v294_v1  ;;  %v50_v13 = vadd.f32 %v224_v8, %v39_v10  ;;  %v51_v14 = vadd.f32 %v224_v8, %v40_v11  ;;  %v52_v24 = vadd.f32 %v224_v8, %v41_v21  ;;  %v53_v25 = vadd.f32 %v224_v8, %v42_v22  ;;  %v234_v32 = vld [vmem:[%s389_s5] ss:$0 sm:$0xff] }
   0x8   :  { %277 = vmatprep.subr.bf16.mxu0 %v295_v2 }
   0x9   :  { %v54_v17 = vmax.f32 %v50_v13, 0.0  ;;  %v55_v18 = vmax.f32 %v51_v14, 0.0  ;;  %v56_v27 = vmax.f32 %v52_v24, 0.0  ;;  %v57_v28 = vmax.f32 %v53_v25, 0.0 }
   0xb   :  { %278 = vmatpush3.bf16.msra.mxu0 %v295_v2  ;;  %v58_v20 = vpack.c.bf16 %v55_v18, %v54_v17  ;;  %v59_v29 = vpack.c.bf16 %v57_v28, %v56_v27 }
   0xc   :  { %279 = vmatprep.subr.bf16.mxu0 %v296_v3 }
   0xd   :  { %289 = vmatprep.mubr.bf16.mxu0 %v58_v20 }
   0xf   :  { %280 = vmatpush3.bf16.msra.mxu0 %v296_v3 }
  0x10   :  { %281 = vmatprep.subr.bf16.mxu0 %v297_v12 }
  0x13   :  { %282 = vmatpush3.bf16.msra.mxu0 %v297_v12 }
  0x14   :  { %283 = vmatprep.subr.bf16.mxu0 %v298_v19 }
  0x17   :  { %284 = vmatpush3.bf16.msra.mxu0 %v298_v19 }
  0x18   :  { %285 = vmatprep.subr.bf16.mxu0 %v299_v23 }
  0x1b   :  { %286 = vmatpush3.bf16.msra.mxu0 %v299_v23 }
  0x1c   :  { %287 = vmatprep.subr.bf16.mxu0 %v300_v26 }
  0x1f   :  { %288 = vmatpush3.bf16.msra.mxu0 %v300_v26 }
  0x22   :  { %290 = vmatmul.mubr.bf16.vlgmr.msra.gmra.mrb[0].mxu0 %v59_v29 }
  0xf5   :  { %v291_v31 = vpop.f32.mrb[0].mxu0 }
  0xf6   :  { %v182_v33 = vmul.f32 %v291_v31, %v233_v30  ;;  %v158_v34 = vpop.f32.mrb[1].mxu0 }
  0xf7   :  { %v180_v35 = vmul.f32 %v233_v30, %v158_v34  ;;  %v292_v36 = vpop.f32.mrb[2].mxu0 }
  0xf8   :  { %v193_v37 = vadd.f32 %v234_v32, %v182_v33  ;;  %v183_v38 = vmul.f32 %v292_v36, %v233_v30  ;;  %v161_v39 = vpop.f32.mrb[3].mxu0 }
  0xf9   :  { %v191_v40 = vadd.f32 %v234_v32, %v180_v35  ;;  %v181_v41 = vmul.f32 %v233_v30, %v161_v39 }
  0xfa   :  { %v194_v42 = vadd.f32 %v234_v32, %v183_v38  ;;  %v197_v44 = vmax.f32 %v193_v37, 0.0 }
  0xfb   :  { %v192_v43 = vadd.f32 %v234_v32, %v181_v41  ;;  %v195_v46 = vmax.f32 %v191_v40, 0.0 }
  0xfc   :  { %v198_v45 = vmax.f32 %v194_v42, 0.0 }
  0xfd   :  { %v196_v47 = vmax.f32 %v192_v43, 0.0 }
  0xfe   :  { %v259_v48 = vpack.c.bf16 %v198_v45, %v197_v44 }
  0xff   :  { %v254_v49 = vpack.c.bf16 %v196_v47, %v195_v46 }
 0x100   :  { %262 = vst [vmem:[%s390_s6 + $0x8] sm:$0xff] %v259_v48  }
 0x101   :  { %255 = vst [vmem:[%s390_s6] sm:$0xff] %v254_v49  }

// kernel: densenet_encoder_forward.40
= control target key start
LH: loop header
LB: loop body
LE: loop exit
PB: predicated region body
PF: predicated region fallthrough
CT: control target
= control target key end

     0   :  { %s648_s1 = inlined_call_operand.vmem [shape: bf16[384,128], index: 1, kind: input, shape index: {}]   ;;  %s649_s2 = inlined_call_operand.vmem [shape: f32[1,384], index: 2, kind: input, shape index: {}, may-alias: {2,3}]   ;;  %s650_s3 = inlined_call_operand.vmem [shape: f32[1,384], index: 3, kind: input, shape index: {}, may-alias: {2,3}]   ;;  %s651_s4 = inlined_call_operand.vmem [shape: f32[1,128], index: 4, kind: input, shape index: {}, may-alias: {4,5}]   ;;  %s652_s5 = inlined_call_operand.vmem [shape: f32[1,128], index: 5, kind: input, shape index: {}, may-alias: {4,5}]   ;;  %s653_s0 = inlined_call_operand.vmem [shape: bf16[32,384], index: 0, kind: input, shape index: {}]   ;;  %s654_s6 = inlined_call_operand.vmem [shape: bf16[32,128], index: 6, kind: output, shape index: {}]  }
   0x1   :  { %v485_v0 = vld [vmem:[%s648_s1 + $0x40] sm:$0xff]   ;;  %v488_v3 = vld [vmem:[%s648_s1 + $0x48] sm:$0xff]   ;;  %v491_v6 = vld [vmem:[%s648_s1 + $0x50] sm:$0xff]  }
   0x2   :  { %v486_v1 = vld [vmem:[%s648_s1] sm:$0xff]   ;;  %427 = vmatprep.subr.bf16.mxu0 %v485_v0  ;;  %v489_v4 = vld [vmem:[%s648_s1 + $0x8] sm:$0xff]   ;;  %v492_v7 = vld [vmem:[%s648_s1 + $0x10] sm:$0xff]  }
   0x3   :  { %v487_v2 = vld [vmem:[%s648_s1 + $0x80] sm:$0xff]   ;;  %428 = vmatpush3.bf16.msra.mxu0 %v486_v1  ;;  %v490_v5 = vld [vmem:[%s648_s1 + $0x88] sm:$0xff]   ;;  %v493_v8 = vld [vmem:[%s648_s1 + $0x90] sm:$0xff]  }
   0x4   :  { %465 = vmatprep.subr.bf16.mxu1 %v487_v2  ;;  %429 = vmatprep.subr.bf16.mxu0 %v488_v3  ;;  %v494_v9 = vld [vmem:[%s648_s1 + $0x58] sm:$0xff]   ;;  %v497_v12 = vld [vmem:[%s648_s1 + $0x60] sm:$0xff]   ;;  %v500_v15 = vld [vmem:[%s648_s1 + $0x68] sm:$0xff]  }
   0x5   :  { %466 = vmatpush3.bf16.msra.mxu1 %v487_v2  ;;  %v495_v10 = vld [vmem:[%s648_s1 + $0x18] sm:$0xff]   ;;  %v499_v13 = vld [vmem:[%s648_s1 + $0xa0] sm:$0xff]   ;;  %v502_v16 = vld [vmem:[%s648_s1 + $0xa8] sm:$0xff]  }
   0x6   :  { %467 = vmatprep.subr.bf16.mxu1 %v490_v5  ;;  %v496_v11 = vld [vmem:[%s648_s1 + $0x98] sm:$0xff]   ;;  %v498_v14 = vld [vmem:[%s648_s1 + $0x20] sm:$0xff]   ;;  %v501_v17 = vld [vmem:[%s648_s1 + $0x28] sm:$0xff]  }
   0x7   :  { %430 = vmatpush3.bf16.msra.mxu0 %v489_v4  ;;  %v503_v18 = vld [vmem:[%s648_s1 + $0x70] sm:$0xff]   ;;  %v506_v21 = vld [vmem:[%s648_s1 + $0x78] sm:$0xff]   ;;  %v509_v26 = vld [vmem:[%s653_s0] ss:$12 sps:$4 sm:$0xff]  }
   0x8   :  { %431 = vmatprep.subr.bf16.mxu0 %v491_v6  ;;  %v504_v19 = vld [vmem:[%s648_s1 + $0x30] sm:$0xff]   ;;  %v508_v22 = vld [vmem:[%s648_s1 + $0xb8] sm:$0xff]   ;;  %v513_v28 = vld [vmem:[%s653_s0 + $0x20] ss:$12 sps:$4 sm:$0xff]  }
   0x9   :  { %468 = vmatpush3.bf16.msra.mxu1 %v490_v5  ;;  %v505_v20 = vld [vmem:[%s648_s1 + $0xb0] sm:$0xff]   ;;  %v507_v25 = vld [vmem:[%s648_s1 + $0x38] sm:$0xff]  }
   0xa   :  { %469 = vmatprep.subr.bf16.mxu1 %v493_v8  ;;  %v511_v23 = vld [vmem:[%s653_s0 + $0x4] ss:$12 sps:$4 sm:$0xff]   ;;  %v512_v24 = vld [vmem:[%s653_s0 + $0x8] ss:$12 sps:$4 sm:$0xff]  }
   0xb   :  { %432 = vmatpush3.bf16.msra.mxu0 %v492_v7  ;;  %288 = vmatprep.mubr.bf16.mxu0 %v511_v23  ;;  %v514_v27 = vld [vmem:[%s653_s0 + $0x1c] ss:$12 sps:$4 sm:$0xff]   ;;  %v516_v29 = vld [vmem:[%s653_s0 + $0x18] ss:$12 sps:$4 sm:$0xff]  }
   0xc   :  { %433 = vmatprep.subr.bf16.mxu0 %v494_v9  ;;  %481 = vmatprep.mubr.bf16.mxu1 %v512_v24 }
   0xd   :  { %470 = vmatpush3.bf16.msra.mxu1 %v493_v8 }
   0xe   :  { %471 = vmatprep.subr.bf16.mxu1 %v496_v11 }
   0xf   :  { %434 = vmatpush3.bf16.msra.mxu0 %v495_v10 }
  0x10   :  { %435 = vmatprep.subr.bf16.mxu0 %v497_v12 }
  0x11   :  { %472 = vmatpush3.bf16.msra.mxu1 %v496_v11 }
  0x12   :  { %473 = vmatprep.subr.bf16.mxu1 %v499_v13 }
  0x13   :  { %436 = vmatpush3.bf16.msra.mxu0 %v498_v14 }
  0x14   :  { %437 = vmatprep.subr.bf16.mxu0 %v500_v15 }
  0x15   :  { %474 = vmatpush3.bf16.msra.mxu1 %v499_v13 }
  0x16   :  { %475 = vmatprep.subr.bf16.mxu1 %v502_v16 }
  0x17   :  { %438 = vmatpush3.bf16.msra.mxu0 %v501_v17 }
  0x18   :  { %439 = vmatprep.subr.bf16.mxu0 %v503_v18 }
  0x19   :  { %476 = vmatpush3.bf16.msra.mxu1 %v502_v16 }
  0x1a   :  { %477 = vmatprep.subr.bf16.mxu1 %v505_v20 }
  0x1b   :  { %440 = vmatpush3.bf16.msra.mxu0 %v504_v19 }
  0x1c   :  { %441 = vmatprep.subr.bf16.mxu0 %v506_v21 }
  0x1d   :  { %478 = vmatpush3.bf16.msra.mxu1 %v505_v20 }
  0x1e   :  { %479 = vmatprep.subr.bf16.mxu1 %v508_v22 }
  0x1f   :  { %442 = vmatpush3.bf16.msra.mxu0 %v507_v25 }
  0x21   :  { %480 = vmatpush3.bf16.msra.mxu1 %v508_v22 }
  0x22   :  { %289 = vmatmul.mubr.bf16.vlgmr.msra.gmra.mrb[0].mxu0 %v509_v26 }
  0x23   :  { %296 = vmatprep.mubr.bf16.mxu0 %v514_v27 }
  0x24   :  { %482 = vmatmul.mubr.bf16.vlgmr.msra.gmra.mrb[0].mxu1 %v513_v28 }
  0x2a   :  { %297 = vmatmul.mubr.bf16.gmra.mrb[4].mxu0 %v516_v29 }
  0xf5   :  { %v443_v30 = vpop.f32.mrb[0].mxu0 }
  0xf6   :  { %v444_v31 = vpop.f32.mrb[1].mxu0 }
  0xf7   :  { %v445_v32 = vadd.f32 %v444_v31, %v443_v30  ;;  %v446_v33 = vpop.f32.mrb[2].mxu0  ;;  %v483_v34 = vpop.f32.mrb[0].mxu1 }
  0xf8   :  { %v447_v35 = vpop.f32.mrb[3].mxu0  ;;  %v339_v36 = vpop.f32.mrb[1].mxu1 }
  0xf9   :  { %v448_v37 = vadd.f32 %v447_v35, %v446_v33  ;;  %v340_v38 = vadd.f32 %v445_v32, %v339_v36  ;;  %v484_v39 = vpop.f32.mrb[2].mxu1 }
  0xfa   :  { %v342_v40 = vpop.f32.mrb[3].mxu1 }
  0xfb   :  { %v343_v41 = vadd.f32 %v448_v37, %v342_v40 }
  0xfd   :  { %v419_v42 = vpack.c.bf16 %v343_v41, %v340_v38  ;;  %v449_v43 = vpop.f32.mrb[4].mxu0 }
  0xfe   :  { %v450_v44 = vpop.f32.mrb[5].mxu0 }
  0xff   :  { %420 = vst [vmem:[%s654_s6] sm:$0xff] %v419_v42   ;;  %v451_v45 = vadd.f32 %v450_v44, %v449_v43  ;;  %v452_v46 = vpop.f32.mrb[6].mxu0 }
 0x100   :  { %v453_v47 = vpop.f32.mrb[7].mxu0 }
 0x101   :  { %v348_v48 = vadd.f32 %v483_v34, %v451_v45  ;;  %v454_v49 = vadd.f32 %v453_v47, %v452_v46 }
 0x103   :  { %v351_v50 = vadd.f32 %v484_v39, %v454_v49 }
 0x105   :  { %v424_v51 = vpack.c.bf16 %v351_v50, %v348_v48 }
 0x107   :  { %426 = vst [vmem:[%s654_s6 + $0x8] sm:$0xff] %v424_v51  }

// kernel: densenet_encoder_forward.43
= control target key start
LH: loop header
LB: loop body
LE: loop exit
PB: predicated region body
PF: predicated region fallthrough
CT: control target
= control target key end

     0   :  { %s101_s0 = inlined_call_operand.vmem [shape: bf16[4,8,128], index: 0, kind: input, shape index: {}]   ;;  %s102_s1 = inlined_call_operand.vmem [shape: f32[1,128], index: 1, kind: input, shape index: {}]   ;;  %s103_s2 = inlined_call_operand.vmem [shape: f32[1,128], index: 2, kind: input, shape index: {}]   ;;  %s104_s3 = inlined_call_operand.vmem [shape: bf16[8,128], index: 3, kind: output, shape index: {}]  }
   0x1   :  { %v14_v0 = vld [vmem:[%s101_s0] sm:$0xff]   ;;  %v64_v4 = vld [vmem:[%s101_s0 + $0x8] sm:$0xff]  }
   0x2   :  { %v61_v1 = vld [vmem:[%s102_s1] ss:$0 sm:$0xff]  ;;  %v15_v2 = vunpack.c.l.bf16 %v14_v0  ;;  %v35_v3 = vunpack.c.h.bf16 %v14_v0  ;;  %v42_v6 = vunpack.c.l.bf16 %v64_v4  ;;  %v49_v7 = vunpack.c.h.bf16 %v64_v4 }
   0x3   :  { %v62_v5 = vld [vmem:[%s103_s2] ss:$0 sm:$0xff] }
   0x4   :  { %v23_v8 = vmul.f32 %v61_v1, %v15_v2  ;;  %v36_v9 = vmul.f32 %v61_v1, %v35_v3  ;;  %v43_v10 = vmul.f32 %v61_v1, %v42_v6  ;;  %v50_v11 = vmul.f32 %v61_v1, %v49_v7 }
   0x6   :  { %v31_v12 = vadd.f32 %v62_v5, %v23_v8  ;;  %v37_v13 = vadd.f32 %v62_v5, %v36_v9  ;;  %v44_v14 = vadd.f32 %v62_v5, %v43_v10  ;;  %v51_v15 = vadd.f32 %v62_v5, %v50_v11 }
   0x8   :  { %v32_v16 = vmax.f32 %v31_v12, 0.0  ;;  %v38_v17 = vmax.f32 %v37_v13, 0.0  ;;  %v45_v18 = vmax.f32 %v44_v14, 0.0  ;;  %v52_v20 = vmax.f32 %v51_v15, 0.0 }
   0xa   :  { %v39_v19 = vadd.f32 %v38_v17, %v32_v16 }
   0xc   :  { %v46_v21 = vadd.f32 %v45_v18, %v39_v19 }
   0xe   :  { %v53_v22 = vadd.f32 %v52_v20, %v46_v21 }
  0x10   :  { %v54_v23 = vmul.f32 0.25, %v53_v22 }
  0x12   :  { %v55_v24 = vpack.c.bf16 %v54_v23, %v54_v23 }
  0x14   :  { %56 = vst [vmem:[%s104_s3] sm:$0xf] %v55_v24 }

// kernel: densenet_encoder_forward.44
= control target key start
LH: loop header
LB: loop body
LE: loop exit
PB: predicated region body
PF: predicated region fallthrough
CT: control target
= control target key end

     0   :  { %v182_v0 = vmov 0.0   ;;  %vm183_vm0 = vmmov 0   ;;  %s249_s2 = inlined_call_operand.vmem [shape: f32[1,128], index: 2, kind: input, shape index: {}, may-alias: {2,3}]   ;;  %s250_s3 = inlined_call_operand.vmem [shape: f32[1,128], index: 3, kind: input, shape index: {}, may-alias: {2,3}]   ;;  %s251_s4 = inlined_call_operand.vmem [shape: f32[1,128], index: 4, kind: input, shape index: {}, may-alias: {4,5}]   ;;  %s252_s5 = inlined_call_operand.vmem [shape: f32[1,128], index: 5, kind: input, shape index: {}, may-alias: {4,5}]   ;;  %s253_s1 = inlined_call_operand.vmem [shape: bf16[128,128], index: 1, kind: input, shape index: {}]   ;;  %s254_s0 = inlined_call_operand.vmem [shape: bf16[8,128], index: 0, kind: input, shape index: {}]   ;;  %s255_s6 = inlined_call_operand.vmem [shape: bf16[8,128], index: 6, kind: output, shape index: {}]  }
   0x1   :  { %152 = vmatprep.subr.bf16.mxu0 %v182_v0  ;;  %v174_v1 = vld [vmem:[%s253_s1] sm:$0xff]   ;;  %168 = vmatprep.mubr.msk.bf16.mxu0 %vm183_vm0, %v182_v0  ;;  %v175_v2 = vld [vmem:[%s253_s1 + $0x8] sm:$0xff]   ;;  %v176_v3 = vld [vmem:[%s253_s1 + $0x10] sm:$0xff]  }
   0x2   :  { %153 = vmatpush3.bf16.msra.mxu0 %v174_v1  ;;  %v177_v4 = vld [vmem:[%s253_s1 + $0x18] sm:$0xff]   ;;  %v178_v5 = vld [vmem:[%s253_s1 + $0x20] sm:$0xff]   ;;  %v179_v6 = vld [vmem:[%s253_s1 + $0x28] sm:$0xff]  }
   0x3   :  { %154 = vmatprep.subr.bf16.mxu0 %v182_v0  ;;  %v180_v7 = vld [vmem:[%s253_s1 + $0x30] sm:$0xff]   ;;  %v181_v8 = vld [vmem:[%s253_s1 + $0x38] sm:$0xff]   ;;  %v24_v9 = vld [vmem:[%s254_s0] sm:$0xf] }
   0x6   :  { %155 = vmatpush3.bf16.msra.mxu0 %v175_v2 }
   0x7   :  { %156 = vmatprep.subr.bf16.mxu0 %v182_v0 }
   0xa   :  { %157 = vmatpush3.bf16.msra.mxu0 %v176_v3 }
   0xb   :  { %158 = vmatprep.subr.bf16.mxu0 %v182_v0 }
   0xe   :  { %159 = vmatpush3.bf16.msra.mxu0 %v177_v4 }
   0xf   :  { %160 = vmatprep.subr.bf16.mxu0 %v182_v0 }
  0x12   :  { %161 = vmatpush3.bf16.msra.mxu0 %v178_v5 }
  0x13   :  { %162 = vmatprep.subr.bf16.mxu0 %v182_v0 }
  0x16   :  { %163 = vmatpush3.bf16.msra.mxu0 %v179_v6 }
  0x17   :  { %164 = vmatprep.subr.bf16.mxu0 %v182_v0 }
  0x1a   :  { %165 = vmatpush3.bf16.msra.mxu0 %v180_v7 }
  0x1b   :  { %166 = vmatprep.subr.bf16.mxu0 %v182_v0 }
  0x1e   :  { %167 = vmatpush3.bf16.msra.mxu0 %v181_v8 }
  0x21   :  { %169 = vmatmul.mubr.bf16.vlgmr.msra.gmra.mrb[0].mxu0 %v24_v9 }
  0xf4   :  { %v123_v10 = vpop.f32.mrb[0].mxu0 }
  0xf5   :  { %v129_v11 = vpack.c.bf16 %v123_v10, %v123_v10  ;;  %v170_v12 = vpop.f32.mrb[1].mxu0 }
  0xf6   :  { %v126_v13 = vpop.f32.mrb[2].mxu0 }
  0xf7   :  { %130 = vst [vmem:[%s255_s6] sm:$0xf] %v129_v11  ;;  %v171_v14 = vpop.f32.mrb[3].mxu0 }

// kernel: densenet_encoder_forward.45
= control target key start
LH: loop header
LB: loop body
LE: loop exit
PB: predicated region body
PF: predicated region fallthrough
CT: control target
= control target key end

     0   :  { %v222_v0 = vmov 0.0   ;;  %vm223_vm0 = vmmov 0   ;;  %s301_s1 = inlined_call_operand.vmem [shape: bf16[128,128], index: 1, kind: input, shape index: {}]   ;;  %s302_s0 = inlined_call_operand.vmem [shape: bf16[8,128], index: 0, kind: input, shape index: {}]   ;;  %s303_s2 = inlined_call_operand.vmem [shape: f32[1,128], index: 2, kind: input, shape index: {}]   ;;  %s304_s3 = inlined_call_operand.vmem [shape: f32[1,128], index: 3, kind: input, shape index: {}]   ;;  %s305_s4 = inlined_call_operand.vmem [shape: f32[1,128], index: 4, kind: input, shape index: {}]   ;;  %s306_s5 = inlined_call_operand.vmem [shape: f32[1,128], index: 5, kind: input, shape index: {}]   ;;  %s307_s6 = inlined_call_operand.vmem [shape: bf16[8,128], index: 6, kind: output, shape index: {}]  }
   0x1   :  { %192 = vmatprep.subr.bf16.mxu0 %v222_v0  ;;  %v214_v1 = vld [vmem:[%s301_s1] sm:$0xff]   ;;  %208 = vmatprep.mubr.msk.bf16.mxu0 %vm223_vm0, %v222_v0  ;;  %v215_v2 = vld [vmem:[%s301_s1 + $0x8] sm:$0xff]   ;;  %v216_v3 = vld [vmem:[%s301_s1 + $0x10] sm:$0xff]  }
   0x2   :  { %193 = vmatpush3.bf16.msra.mxu0 %v214_v1  ;;  %v217_v4 = vld [vmem:[%s301_s1 + $0x18] sm:$0xff]   ;;  %v24_v5 = vld [vmem:[%s302_s0] sm:$0xf]  ;;  %v219_v10 = vld [vmem:[%s301_s1 + $0x28] sm:$0xff]  }
   0x3   :  { %194 = vmatprep.subr.bf16.mxu0 %v222_v0  ;;  %v25_v6 = vunpack.c.l.bf16 %v24_v5  ;;  %v218_v7 = vld [vmem:[%s301_s1 + $0x20] sm:$0xff]   ;;  %v220_v13 = vld [vmem:[%s301_s1 + $0x30] sm:$0xff]   ;;  %v221_v15 = vld [vmem:[%s301_s1 + $0x38] sm:$0xff]  }
   0x4   :  { %v171_v8 = vld [vmem:[%s303_s2] ss:$0 sm:$0xff] }
   0x5   :  { %v33_v9 = vmul.f32 %v171_v8, %v25_v6  ;;  %v172_v11 = vld [vmem:[%s304_s3] ss:$0 sm:$0xff] }
   0x6   :  { %195 = vmatpush3.bf16.msra.mxu0 %v215_v2  ;;  %v181_v17 = vld [vmem:[%s305_s4] ss:$0 sm:$0xff] }
   0x7   :  { %196 = vmatprep.subr.bf16.mxu0 %v222_v0  ;;  %v41_v12 = vadd.f32 %v172_v11, %v33_v9  ;;  %v182_v19 = vld [vmem:[%s306_s5] ss:$0 sm:$0xff] }
   0x9   :  { %v42_v14 = vmax.f32 %v41_v12, 0.0 }
   0xa   :  { %197 = vmatpush3.bf16.msra.mxu0 %v216_v3 }
   0xb   :  { %198 = vmatprep.subr.bf16.mxu0 %v222_v0  ;;  %v43_v16 = vpack.c.bf16 %v42_v14, %v42_v14 }
   0xe   :  { %199 = vmatpush3.bf16.msra.mxu0 %v217_v4 }
   0xf   :  { %200 = vmatprep.subr.bf16.mxu0 %v222_v0 }
  0x12   :  { %201 = vmatpush3.bf16.msra.mxu0 %v218_v7 }
  0x13   :  { %202 = vmatprep.subr.bf16.mxu0 %v222_v0 }
  0x16   :  { %203 = vmatpush3.bf16.msra.mxu0 %v219_v10 }
  0x17   :  { %204 = vmatprep.subr.bf16.mxu0 %v222_v0 }
  0x1a   :  { %205 = vmatpush3.bf16.msra.mxu0 %v220_v13 }
  0x1b   :  { %206 = vmatprep.subr.bf16.mxu0 %v222_v0 }
  0x1e   :  { %207 = vmatpush3.bf16.msra.mxu0 %v221_v15 }
  0x21   :  { %209 = vmatmul.mubr.bf16.vlgmr.msra.gmra.mrb[0].mxu0 %v43_v16 }
  0xf4   :  { %v142_v18 = vpop.f32.mrb[0].mxu0 }
  0xf5   :  { %v155_v20 = vmul.f32 %v181_v17, %v142_v18  ;;  %v210_v21 = vpop.f32.mrb[1].mxu0 }
  0xf6   :  { %v145_v22 = vpop.f32.mrb[2].mxu0 }
  0xf7   :  { %v163_v23 = vadd.f32 %v182_v19, %v155_v20  ;;  %v211_v24 = vpop.f32.mrb[3].mxu0 }
  0xf9   :  { %v164_v25 = vmax.f32 %v163_v23, 0.0 }
  0xfb   :  { %v165_v26 = vpack.c.bf16 %v164_v25, %v164_v25 }
  0xfd   :  { %166 = vst [vmem:[%s307_s6] sm:$0xf] %v165_v26 }

// kernel: densenet_encoder_forward.46
= control target key start
LH: loop header
LB: loop body
LE: loop exit
PB: predicated region body
PF: predicated region fallthrough
CT: control target
= control target key end

     0   :  { %v422_v1 = vmov 0.0   ;;  %vm423_vm0 = vmmov 0   ;;  %s540_s1 = inlined_call_operand.vmem [shape: bf16[384,128], index: 1, kind: input, shape index: {}]   ;;  %s541_s2 = inlined_call_operand.vmem [shape: f32[1,384], index: 2, kind: input, shape index: {}, may-alias: {2,3}]   ;;  %s542_s3 = inlined_call_operand.vmem [shape: f32[1,384], index: 3, kind: input, shape index: {}, may-alias: {2,3}]   ;;  %s543_s4 = inlined_call_operand.vmem [shape: f32[1,128], index: 4, kind: input, shape index: {}, may-alias: {4,5}]   ;;  %s544_s5 = inlined_call_operand.vmem [shape: f32[1,128], index: 5, kind: input, shape index: {}, may-alias: {4,5}]   ;;  %s545_s0 = inlined_call_operand.vmem [shape: bf16[8,384], index: 0, kind: input, shape index: {}]   ;;  %s546_s6 = inlined_call_operand.vmem [shape: bf16[8,128], index: 6, kind: output, shape index: {}]  }
   0x1   :  { %v395_v0 = vld [vmem:[%s540_s1 + $0x40] sm:$0xff]   ;;  %373 = vmatprep.subr.bf16.mxu1 %v422_v1  ;;  %389 = vmatprep.mubr.msk.bf16.mxu1 %vm423_vm0, %v422_v1  ;;  %v398_v4 = vld [vmem:[%s540_s1 + $0x48] sm:$0xff]   ;;  %v401_v7 = vld [vmem:[%s540_s1 + $0x50] sm:$0xff]  }
   0x2   :  { %v396_v2 = vld [vmem:[%s540_s1] sm:$0xff]   ;;  %342 = vmatprep.subr.bf16.mxu0 %v395_v0  ;;  %v399_v5 = vld [vmem:[%s540_s1 + $0x8] sm:$0xff]   ;;  %v402_v8 = vld [vmem:[%s540_s1 + $0x10] sm:$0xff]  }
   0x3   :  { %v397_v3 = vld [vmem:[%s540_s1 + $0x80] sm:$0xff]   ;;  %343 = vmatpush3.bf16.msra.mxu0 %v396_v2  ;;  %v400_v6 = vld [vmem:[%s540_s1 + $0x88] sm:$0xff]   ;;  %v403_v9 = vld [vmem:[%s540_s1 + $0x90] sm:$0xff]  }
   0x4   :  { %374 = vmatpush3.bf16.msra.mxu1 %v397_v3  ;;  %344 = vmatprep.subr.bf16.mxu0 %v398_v4  ;;  %v404_v10 = vld [vmem:[%s540_s1 + $0x58] sm:$0xff]   ;;  %v407_v13 = vld [vmem:[%s540_s1 + $0x60] sm:$0xff]   ;;  %v410_v16 = vld [vmem:[%s540_s1 + $0x68] sm:$0xff]  }
   0x5   :  { %375 = vmatprep.subr.bf16.mxu1 %v422_v1  ;;  %v405_v11 = vld [vmem:[%s540_s1 + $0x18] sm:$0xff]   ;;  %v408_v14 = vld [vmem:[%s540_s1 + $0x20] sm:$0xff]   ;;  %v411_v17 = vld [vmem:[%s540_s1 + $0x28] sm:$0xff]  }
   0x6   :  { %v406_v12 = vld [vmem:[%s540_s1 + $0x98] sm:$0xff]   ;;  %v409_v15 = vld [vmem:[%s540_s1 + $0xa0] sm:$0xff]   ;;  %v412_v18 = vld [vmem:[%s540_s1 + $0xa8] sm:$0xff]  }
   0x7   :  { %345 = vmatpush3.bf16.msra.mxu0 %v399_v5  ;;  %v413_v19 = vld [vmem:[%s540_s1 + $0x70] sm:$0xff]   ;;  %v416_v22 = vld [vmem:[%s540_s1 + $0x78] sm:$0xff]   ;;  %v24_v23 = vld [vmem:[%s545_s0] sm:$0xff] }
   0x8   :  { %376 = vmatpush3.bf16.msra.mxu1 %v400_v6  ;;  %346 = vmatprep.subr.bf16.mxu0 %v401_v7  ;;  %v414_v20 = vld [vmem:[%s540_s1 + $0x30] sm:$0xff]   ;;  %v316_v24 = vcombine.high %v24_v23, %v24_v23  ;;  %v417_v25 = vld [vmem:[%s540_s1 + $0x38] sm:$0xff]   ;;  %v315_v27 = vcombine.low %v24_v23, %v24_v23  ;;  %v421_v28 = vld [vmem:[%s545_s0 + $0x8] ss:$0 sps:$4 sm:$0xff]  }
   0x9   :  { %377 = vmatprep.subr.bf16.mxu1 %v422_v1  ;;  %v415_v21 = vld [vmem:[%s540_s1 + $0xb0] sm:$0xff]   ;;  %v418_v26 = vld [vmem:[%s540_s1 + $0xb8] sm:$0xff]  }
   0xa   :  { %261 = vmatprep.mubr.bf16.mxu0 %v316_v24 }
   0xb   :  { %347 = vmatpush3.bf16.msra.mxu0 %v402_v8 }
   0xc   :  { %378 = vmatpush3.bf16.msra.mxu1 %v403_v9  ;;  %348 = vmatprep.subr.bf16.mxu0 %v404_v10 }
   0xd   :  { %379 = vmatprep.subr.bf16.mxu1 %v422_v1 }
   0xf   :  { %349 = vmatpush3.bf16.msra.mxu0 %v405_v11 }
  0x10   :  { %380 = vmatpush3.bf16.msra.mxu1 %v406_v12  ;;  %350 = vmatprep.subr.bf16.mxu0 %v407_v13 }
  0x11   :  { %381 = vmatprep.subr.bf16.mxu1 %v422_v1 }
  0x13   :  { %351 = vmatpush3.bf16.msra.mxu0 %v408_v14 }
  0x14   :  { %382 = vmatpush3.bf16.msra.mxu1 %v409_v15  ;;  %352 = vmatprep.subr.bf16.mxu0 %v410_v16 }
  0x15   :  { %383 = vmatprep.subr.bf16.mxu1 %v422_v1 }
  0x17   :  { %353 = vmatpush3.bf16.msra.mxu0 %v411_v17 }
  0x18   :  { %384 = vmatpush3.bf16.msra.mxu1 %v412_v18  ;;  %354 = vmatprep.subr.bf16.mxu0 %v413_v19 }
  0x19   :  { %385 = vmatprep.subr.bf16.mxu1 %v422_v1 }
  0x1b   :  { %355 = vmatpush3.bf16.msra.mxu0 %v414_v20 }
  0x1c   :  { %386 = vmatpush3.bf16.msra.mxu1 %v415_v21  ;;  %356 = vmatprep.subr.bf16.mxu0 %v416_v22 }
  0x1d   :  { %387 = vmatprep.subr.bf16.mxu1 %v422_v1 }
  0x1f   :  { %357 = vmatpush3.bf16.msra.mxu0 %v417_v25 }
  0x20   :  { %388 = vmatpush3.bf16.msra.mxu1 %v418_v26 }
  0x22   :  { %262 = vmatmul.mubr.bf16.vlgmr.msra.gmra.mrb[0].mxu0 %v315_v27 }
  0x23   :  { %390 = vmatmul.mubr.bf16.vlgmr.msra.gmra.mrb[0].mxu1 %v421_v28 }
  0xf5   :  { %v358_v29 = vpop.f32.mrb[0].mxu0 }
  0xf6   :  { %v303_v30 = vpop.f32.mrb[0].mxu1  ;;  %v359_v31 = vpop.f32.mrb[1].mxu0 }
  0xf7   :  { %v360_v32 = vadd.f32 %v359_v31, %v358_v29  ;;  %v391_v33 = vpop.f32.mrb[1].mxu1  ;;  %v361_v34 = vpop.f32.mrb[2].mxu0 }
  0xf8   :  { %v306_v35 = vpop.f32.mrb[2].mxu1  ;;  %v362_v36 = vpop.f32.mrb[3].mxu0 }
  0xf9   :  { %v304_v37 = vadd.f32 %v360_v32, %v303_v30  ;;  %v392_v38 = vpop.f32.mrb[3].mxu1 }
  0xfb   :  { %v309_v39 = vpack.c.bf16 %v304_v37, %v304_v37 }
  0xfd   :  { %310 = vst [vmem:[%s546_s6] sm:$0xf] %v309_v39 }

// kernel: densenet_encoder_forward.49
= control target key start
LH: loop header
LB: loop body
LE: loop exit
PB: predicated region body
PF: predicated region fallthrough
CT: control target
= control target key end

     0   :  { %s71_s0 = inlined_call_operand.vmem [shape: bf16[8,128], index: 0, kind: input, shape index: {}]   ;;  %s72_s1 = inlined_call_operand.vmem [shape: f32[1,128], index: 1, kind: input, shape index: {}]   ;;  %s73_s2 = inlined_call_operand.vmem [shape: f32[1,128], index: 2, kind: input, shape index: {}]   ;;  %s74_s3 = inlined_call_operand.vmem [shape: f32[8,128], index: 3, kind: output, shape index: {}]  }
   0x1   :  { %v14_v0 = vld [vmem:[%s71_s0] sm:$0xf] }
   0x2   :  { %v37_v1 = vld [vmem:[%s72_s1] ss:$0 sm:$0xff]  ;;  %v15_v2 = vunpack.c.l.bf16 %v14_v0 }
   0x3   :  { %v38_v3 = vld [vmem:[%s73_s2] ss:$0 sm:$0xff] }
   0x4   :  { %v23_v4 = vmul.f32 %v37_v1, %v15_v2 }
   0x6   :  { %v31_v5 = vadd.f32 %v38_v3, %v23_v4 }
   0x8   :  { %32 = vst [vmem:[%s74_s3] sm:$0xff] %v31_v5 }

</bundles_post_ra>
